<compile_context>
chip_gen: v6e
topology: v6e:2x2x1
jax: 0.10.0
libtpu: 0.0.40
codegen_flags: <defaults>
</compile_context>

<pallas_src>
import functools

import jax
import jax.numpy as jnp
from jax.experimental import pallas as pl
from jax.experimental.pallas import tpu as pltpu

SIZES = (1, 2, 4, 8)


# ---------------------------------------------------------------------------
# Hierarchical row order: for every scale in {1,2,4,8}, each PAM local block
# (si, sj, b, both width-halves) is a contiguous row slab.
# Row digit order: (b, h3, w3, h2, w2, h1, w1, h0r, w0r, side).
# ---------------------------------------------------------------------------

def to_hier_rows(x_nhwc):
    """(B, H, 2w, C) -> (M, C) with hierarchical row order (two rank<=8 transposes)."""
    B, H, W2, C = x_nhwc.shape
    w = W2 // 2
    hb, wb = H // 8, w // 8
    # step 1: (b, h3, hrest, side, w3, wrest, C) -> (b, h3, w3, hrest, wrest, side, C)
    x = x_nhwc.reshape(B, 2, H // 2, 2, 2, w // 2, C)
    x = jnp.transpose(x, (0, 1, 4, 2, 5, 3, 6))
    # step 2: hrest->(h2,h1,h0r), wrest->(w2,w1,w0r), interleave; side merged with C.
    x = x.reshape(B * 4, 2, 2, hb, 2, 2, wb, 2 * C)
    x = jnp.transpose(x, (0, 1, 4, 2, 5, 3, 6, 7))
    return x.reshape(B * H * W2, C)


def from_hier_rows(y_rows, B, H, W2):
    """Inverse of to_hier_rows: (M, C) -> (B, H, 2w, C)."""
    C = y_rows.shape[-1]
    w = W2 // 2
    hb, wb = H // 8, w // 8
    y = y_rows.reshape(B * 4, 2, 2, 2, 2, hb, wb, 2 * C)
    y = jnp.transpose(y, (0, 1, 3, 5, 2, 4, 6, 7))
    y = y.reshape(B, 2, 2, H // 2, w // 2, 2, C)
    y = jnp.transpose(y, (0, 1, 3, 5, 2, 4, 6))
    return y.reshape(B, H, W2, C)


# ---------------------------------------------------------------------------
# Pallas kernels
# ---------------------------------------------------------------------------

def _proj_kernel(x_ref, w_ref, b_ref, o_ref):
    o_ref[...] = jnp.dot(x_ref[...], w_ref[...],
                         preferred_element_type=jnp.float32) + b_ref[...]


def fused_conv1x1(x_rows, weight, bias):
    """(M, Cin) @ (Cin, Cout) + bias; bf16 MXU inputs, f32 accumulation/output."""
    M, Cin = x_rows.shape
    Cout = weight.shape[1]
    # Tile M against an explicit VMEM budget (double-buffered x tile + out tile),
    # comfortably inside the scoped limit on every generation (incl. v7x's 64 MiB VMEM).
    bytes_per_row = 2 * (Cin * 2 + Cout * 4)
    tm = min(M, 1024, max(8, (8 << 20) // bytes_per_row))
    tm = max(8, (tm // 8) * 8)
    return pl.pallas_call(
        _proj_kernel,
        grid=(pl.cdiv(M, tm),),
        in_specs=[
            pl.BlockSpec((tm, Cin), lambda i: (i, 0)),
            pl.BlockSpec((Cin, Cout), lambda i: (0, 0)),
            pl.BlockSpec((1, Cout), lambda i: (0, 0)),
        ],
        out_specs=pl.BlockSpec((tm, Cout), lambda i: (i, 0)),
        out_shape=jax.ShapeDtypeStruct((M, Cout), jnp.float32),
        compiler_params=pltpu.CompilerParams(
            dimension_semantics=("parallel",),
            vmem_limit_bytes=32 * 1024 * 1024),
    )(x_rows.astype(jnp.bfloat16), weight.astype(jnp.bfloat16),
      bias.reshape(1, Cout).astype(jnp.float32))


def _attn_kernel(q_ref, k_ref, v_ref, o_ref, *, scale):
    q = q_ref[...]                                    # (Gb, N, Kc) bf16
    k = k_ref[...]                                    # (Gb, N, Kc) bf16
    v = v_ref[...]                                    # (Gb, N, Cv) bf16
    sim = jnp.einsum('gnk,gmk->gnm', q, k,
                     preferred_element_type=jnp.float32) * scale
    sim = sim - jnp.max(sim, axis=-1, keepdims=True)  # softmax kept in f32 (v5e-safe)
    p = jnp.exp(sim)
    p = p * pl.reciprocal(jnp.sum(p, axis=-1, keepdims=True), approx=True)
    ctx = jnp.einsum('gnm,gmc->gnc', p.astype(v.dtype), v,
                     preferred_element_type=jnp.float32)
    o_ref[...] = ctx.astype(o_ref.dtype)


def block_attention(q, k, v, key_channels):
    """q, k: (G, N, Kc), v: (G, N, Cv) -> ctx: (G, N, Cv). Token-major, channels-last."""
    G, N, Kc = q.shape
    Cv = v.shape[-1]
    # Batch groups per grid step: amortize per-step overhead for small-N stages while
    # keeping per-step VMEM tiny. gblk always divides G.
    gblk = 1
    for cand in range(1, G + 1):
        if G % cand:
            continue
        step_bytes = cand * (2 * (2 * N * Kc * 2 + 3 * N * Cv * 2) + N * N * 4)
        if cand * N <= 1024 and cand <= 64 and step_bytes <= (4 << 20):
            gblk = cand
    # TODO(synk): for very large N (e.g. scale=1 at real feature-map sizes) switch to an
    # online-softmax (flash-style) kernel tiled over keys instead of the full (N, N) sim.
    kernel = functools.partial(_attn_kernel, scale=float(key_channels) ** (-0.5))
    return pl.pallas_call(
        kernel,
        grid=(G // gblk,),
        in_specs=[
            pl.BlockSpec((gblk, N, Kc), lambda g: (g, 0, 0)),
            pl.BlockSpec((gblk, N, Kc), lambda g: (g, 0, 0)),
            pl.BlockSpec((gblk, N, Cv), lambda g: (g, 0, 0)),
        ],
        out_specs=pl.BlockSpec((gblk, N, Cv), lambda g: (g, 0, 0)),
        out_shape=jax.ShapeDtypeStruct((G, N, Cv), jnp.bfloat16),
        compiler_params=pltpu.CompilerParams(
            dimension_semantics=("parallel",),
            vmem_limit_bytes=32 * 1024 * 1024),
    )(q.astype(jnp.bfloat16), k.astype(jnp.bfloat16), v.astype(jnp.bfloat16))


def _final_proj_kernel(*refs):
    ctx_refs, w_ref, o_ref = refs[:-2], refs[-2], refs[-1]
    acc = jnp.dot(ctx_refs[0][...], w_ref[0], preferred_element_type=jnp.float32)
    for s in range(1, len(ctx_refs)):
        acc = acc + jnp.dot(ctx_refs[s][...], w_ref[s],
                            preferred_element_type=jnp.float32)
    o_ref[...] = acc


def final_conv1x1(ctx_list, w_stacked):
    """sum_s ctx_s @ w[s]  == 1x1 conv over the 4-stage channel concat (never materialized)."""
    M, Cv = ctx_list[0].shape
    n_st, _, Cout = w_stacked.shape
    bytes_per_row = 2 * (n_st * Cv * 2 + Cout * 4)
    tm = min(M, 1024, max(8, (8 << 20) // bytes_per_row))
    tm = max(8, (tm // 8) * 8)
    in_specs = [pl.BlockSpec((tm, Cv), lambda i: (i, 0)) for _ in ctx_list]
    in_specs.append(pl.BlockSpec((n_st, Cv, Cout), lambda i: (0, 0, 0)))
    return pl.pallas_call(
        _final_proj_kernel,
        grid=(pl.cdiv(M, tm),),
        in_specs=in_specs,
        out_specs=pl.BlockSpec((tm, Cout), lambda i: (i, 0)),
        out_shape=jax.ShapeDtypeStruct((M, Cout), jnp.float32),
        compiler_params=pltpu.CompilerParams(
            dimension_semantics=("parallel",),
            vmem_limit_bytes=32 * 1024 * 1024),
    )(*[c.astype(jnp.bfloat16) for c in ctx_list], w_stacked.astype(jnp.bfloat16))


# ---------------------------------------------------------------------------
# CDSA forward (Pallas hot paths, thin JAX glue)
# ---------------------------------------------------------------------------

def _bn_train_cols(x, gamma, beta, eps=1e-5):
    # nn.BatchNorm2d training mode: batch statistics, biased variance (channels-last).
    mean = jnp.mean(x, axis=0, keepdims=True)
    var = jnp.mean(jnp.square(x - mean), axis=0, keepdims=True)
    return (x - mean) * jax.lax.rsqrt(var + eps) * gamma[None, :] + beta[None, :]


def cdsa_forward_pallas(x1, x2, params, sizes=SIZES):
    # Literal reference forward: x = torch.cat((x1, x2), 1)  (channel concat).
    x = jnp.concatenate([x1, x2], axis=1)                   # (B, C, H, 2w)
    B, C, H, W2 = x.shape
    w = W2 // 2
    assert H % 8 == 0 and w % 8 == 0, "assumes H and W/2 divisible by the max scale (8)"
    kc, vc = C // 8, C
    n_st = len(sizes)

    # One layout pass: NCHW -> NHWC -> hierarchical row order.
    x_rows = to_hier_rows(jnp.transpose(x, (0, 2, 3, 1)))    # (M, C)
    M = x_rows.shape[0]

    # Fused Q/K/V projection for all 4 stages: one lane-dense GEMM.
    st = params['stages']
    w_all = jnp.concatenate([s['wq'] for s in st] + [s['wk'] for s in st] +
                            [s['wv'] for s in st], axis=1)   # (C, 2*n_st*kc + n_st*vc)
    b_all = jnp.concatenate([s['bq'] for s in st] + [s['bk'] for s in st] +
                            [s['bv'] for s in st], axis=0)
    proj = fused_conv1x1(x_rows, w_all, b_all)               # (M, 160) f32

    q_all = proj[:, :n_st * kc]
    k_all = proj[:, n_st * kc:2 * n_st * kc]
    v_all = proj[:, 2 * n_st * kc:]

    ctxs = []
    for i, s in enumerate(sizes):
        q = _bn_train_cols(q_all[:, i * kc:(i + 1) * kc], st[i]['q_gamma'], st[i]['q_beta'])
        k = _bn_train_cols(k_all[:, i * kc:(i + 1) * kc], st[i]['k_gamma'], st[i]['k_beta'])
        v = v_all[:, i * vc:(i + 1) * vc]
        G = B * s * s
        N = M // G
        # Hierarchical row order makes each local block a contiguous slab -> free reshape.
        ctx = block_attention(q.reshape(G, N, kc), k.reshape(G, N, kc),
                              v.reshape(G, N, vc), kc)       # (G, N, vc) bf16
        ctxs.append(ctx.reshape(M, vc))

    # Final 1x1 conv over the stage-concatenated context, accumulated in-kernel.
    w_fin = params['conv_bn_w'].reshape(n_st, vc, C)
    out_rows = final_conv1x1(ctxs, w_fin)                    # (M, C) f32

    out_nhwc = from_hier_rows(out_rows, B, H, W2)
    # TODO(synk): ds > 1 (AvgPool2d + F.interpolate) and mode='BAM' branches are not
    # implemented; CDSA defaults (ds=1, mode='PAM') are exercised here.
    return jnp.transpose(out_nhwc, (0, 3, 1, 2))


# ---------------------------------------------------------------------------
# Pure-JAX f32 reference (independent check, mirrors the PyTorch code exactly)
# ---------------------------------------------------------------------------

def conv1x1_ref(x, w, b):
    y = jnp.einsum('bchw,cd->bdhw', x, w)
    return y if b is None else y + b.reshape(1, -1, 1, 1)


def block_attention_ref(q, k, v, key_channels):
    sim = jnp.einsum('gnk,gkm->gnm', q, k) * (float(key_channels) ** (-0.5))
    p = jax.nn.softmax(sim, axis=-1)
    return jnp.einsum('gcn,gmn->gcm', v, p)


def _batchnorm_train_nchw(x, gamma, beta, eps=1e-5):
    mean = jnp.mean(x, axis=(0, 2, 3), keepdims=True)
    var = jnp.mean(jnp.square(x - mean), axis=(0, 2, 3), keepdims=True)
    xn = (x - mean) / jnp.sqrt(var + eps)
    return xn * gamma.reshape(1, -1, 1, 1) + beta.reshape(1, -1, 1, 1)


def _pam_block_ref(x, p, scale, key_channels, value_channels):
    B, C, H, W2 = x.shape
    W = W2 // 2
    sh, sw = H // scale, W // scale
    value = conv1x1_ref(x, p['wv'], p['bv'])
    query = _batchnorm_train_nchw(conv1x1_ref(x, p['wq'], p['bq']), p['q_gamma'], p['q_beta'])
    key = _batchnorm_train_nchw(conv1x1_ref(x, p['wk'], p['bk']), p['k_gamma'], p['k_beta'])

    def to_blocks(t):
        ch = t.shape[1]
        t5 = jnp.stack([t[:, :, :, :W], t[:, :, :, W:]], axis=4)
        t7 = t5.reshape(B, ch, scale, sh, scale, sw, 2)
        t7 = jnp.transpose(t7, (2, 4, 0, 1, 3, 5, 6))
        return t7.reshape(scale * scale * B, ch, sh * sw * 2)

    v_loc = to_blocks(value)
    q_loc = jnp.transpose(to_blocks(query), (0, 2, 1))
    k_loc = to_blocks(key)
    ctx = block_attention_ref(q_loc, k_loc, v_loc, key_channels)
    ctx = ctx.reshape(scale, scale, B, value_channels, sh, sw, 2)
    ctx = jnp.transpose(ctx, (2, 3, 0, 4, 1, 5, 6)).reshape(B, value_channels, H, W, 2)
    return jnp.concatenate([ctx[..., 0], ctx[..., 1]], axis=3)


def cdsa_forward_ref(x1, x2, params, sizes=SIZES):
    x = jnp.concatenate([x1, x2], axis=1)
    in_c = x.shape[1]
    kc, vc = in_c // 8, in_c
    priors = [_pam_block_ref(x, params['stages'][i], s, kc, vc) for i, s in enumerate(sizes)]
    context = jnp.concatenate(priors, axis=1)
    return conv1x1_ref(context, params['conv_bn_w'], None)


# ---------------------------------------------------------------------------
# Deterministic init (mimics weights_init: conv ~ N(0, 0.02), BN ~ N(1, 0.02), bias 0)
# ---------------------------------------------------------------------------

def init_params(seed, in_c, n_stages):
    kc, vc = in_c // 8, in_c
    keys = iter(jax.random.split(jax.random.PRNGKey(seed), 64))

    def nrm(shape, std=0.02, mean=0.0):
        return (mean + std * jax.random.normal(next(keys), shape)).astype(jnp.float32)

    stages = []
    for _ in range(n_stages):
        stages.append(dict(
            wq=nrm((in_c, kc)), bq=jnp.zeros((kc,), jnp.float32),
            q_gamma=nrm((kc,), mean=1.0), q_beta=jnp.zeros((kc,), jnp.float32),
            wk=nrm((in_c, kc)), bk=jnp.zeros((kc,), jnp.float32),
            k_gamma=nrm((kc,), mean=1.0), k_beta=jnp.zeros((kc,), jnp.float32),
            wv=nrm((in_c, vc)), bv=nrm((vc,)),
        ))
    conv_bn_w = nrm((in_c * n_stages, in_c))
    return dict(stages=stages, conv_bn_w=conv_bn_w)


if __name__ == "__main__":
    in_c = 32                      # concatenated channel count: CDSA(in_c=32)
    B, H, W = 2, 8, 16             # each of x1, x2: (B, in_c//2, H, W)

    k1, k2 = jax.random.split(jax.random.PRNGKey(0))
    x1 = jax.random.normal(k1, (B, in_c // 2, H, W), jnp.float32)
    x2 = jax.random.normal(k2, (B, in_c // 2, H, W), jnp.float32)
    params = init_params(0, in_c, n_stages=len(SIZES))

    out = jax.jit(cdsa_forward_pallas)(x1, x2, params)
    out = jax.block_until_ready(out)

    assert out.shape == (B, in_c, H, W), out.shape
    assert bool(jnp.all(jnp.isfinite(out)))

    ref = cdsa_forward_ref(x1, x2, params)
    max_diff = float(jnp.max(jnp.abs(out - ref)))
    # Tolerance covers bf16 matmul inputs, approx reciprocal, and reassociation.
    assert max_diff < 2e-2, f"Pallas vs reference mismatch: {max_diff}"

    print("KERNEL_OK")
</pallas_src>

<mosaic_0001>
module attributes {stable_mosaic.version = 11 : i64} {
  func.func @_proj_kernel(%arg0: i32, %arg1: memref<256x32xbf16, #tpu.memory_space<vmem>>, %arg2: memref<32x160xbf16, #tpu.memory_space<vmem>>, %arg3: memref<1x160xf32, #tpu.memory_space<vmem>>, %arg4: memref<256x160xf32, #tpu.memory_space<vmem>>) attributes {dimension_semantics = [#tpu.dimension_semantics<parallel>], iteration_bounds = array<i64: 1>, scalar_prefetch = 0 : i64, scratch_operands = 0 : i64, tpu.core_type = #tpu.core_type<tc>, window_params = [{transform_indices = @transform_0, window_bounds = array<i64: 256, 32>}, {pipeline_mode = #tpu.pipeline_mode<synchronous>, transform_indices = @transform_1, window_bounds = array<i64: 32, 160>}, {pipeline_mode = #tpu.pipeline_mode<synchronous>, transform_indices = @transform_2, window_bounds = array<i64: 1, 160>}, {transform_indices = @transform_3, window_bounds = array<i64: 256, 160>}]} {
    %c0 = arith.constant 0 : index
    %c0_0 = arith.constant 0 : index
    %0 = vector.load %arg1[%c0, %c0_0] : memref<256x32xbf16, #tpu.memory_space<vmem>>, vector<256x32xbf16>
    %c0_1 = arith.constant 0 : index
    %c0_2 = arith.constant 0 : index
    %1 = vector.load %arg2[%c0_1, %c0_2] : memref<32x160xbf16, #tpu.memory_space<vmem>>, vector<32x160xbf16>
    %cst = arith.constant dense<0.000000e+00> : vector<256x160xf32>
    %2 = tpu.matmul %0, %1, %cst {dimension_numbers = #tpu.dot_dimension_numbers<[1], [0], [0], [1], [0, 0, 1, 1], [], []>} : vector<256x32xbf16>, vector<32x160xbf16>, vector<256x160xf32> -> vector<256x160xf32>
    %c0_3 = arith.constant 0 : index
    %c0_4 = arith.constant 0 : index
    %3 = vector.load %arg3[%c0_3, %c0_4] : memref<1x160xf32, #tpu.memory_space<vmem>>, vector<1x160xf32>
    %4 = vector.broadcast %3 : vector<1x160xf32> to vector<256x160xf32>
    %5 = arith.addf %2, %4 : vector<256x160xf32>
    %c0_5 = arith.constant 0 : index
    %c0_6 = arith.constant 0 : index
    %6 = vector.load %arg4[%c0_5, %c0_6] : memref<256x160xf32, #tpu.memory_space<vmem>>, vector<256x160xf32>
    tpu.vector_store %arg4[%c0_5, %c0_6], %5 {strides = array<i32>} : memref<256x160xf32, #tpu.memory_space<vmem>>, vector<256x160xf32>,
    return
  }
  func.func @transform_0(%arg0: i32) -> (i32, i32) {
    %c0_i32 = arith.constant 0 : i32
    %c0_i32_0 = arith.constant 0 : i32
    return %arg0, %c0_i32 : i32, i32
  }
  func.func @transform_1(%arg0: i32) -> (i32, i32) {
    %c0_i32 = arith.constant 0 : i32
    %c0_i32_0 = arith.constant 0 : i32
    %c0_i32_1 = arith.constant 0 : i32
    return %c0_i32, %c0_i32_0 : i32, i32
  }
  func.func @transform_2(%arg0: i32) -> (i32, i32) {
    %c0_i32 = arith.constant 0 : i32
    %c0_i32_0 = arith.constant 0 : i32
    %c0_i32_1 = arith.constant 0 : i32
    return %c0_i32, %c0_i32_0 : i32, i32
  }
  func.func @transform_3(%arg0: i32) -> (i32, i32) {
    %c0_i32 = arith.constant 0 : i32
    %c0_i32_0 = arith.constant 0 : i32
    return %arg0, %c0_i32 : i32, i32
  }
}

module attributes {stable_mosaic.version = 11 : i64} {
  func.func @_attn_kernel(%arg0: i32, %arg1: memref<64x2x4xbf16, #tpu.memory_space<vmem>>, %arg2: memref<64x2x4xbf16, #tpu.memory_space<vmem>>, %arg3: memref<64x2x32xbf16, #tpu.memory_space<vmem>>, %arg4: memref<64x2x32xbf16, #tpu.memory_space<vmem>>) attributes {dimension_semantics = [#tpu.dimension_semantics<parallel>], iteration_bounds = array<i64: 2>, scalar_prefetch = 0 : i64, scratch_operands = 0 : i64, tpu.core_type = #tpu.core_type<tc>, window_params = [{transform_indices = @transform_0, window_bounds = array<i64: 64, 2, 4>}, {transform_indices = @transform_1, window_bounds = array<i64: 64, 2, 4>}, {transform_indices = @transform_2, window_bounds = array<i64: 64, 2, 32>}, {transform_indices = @transform_3, window_bounds = array<i64: 64, 2, 32>}]} {
    %c0 = arith.constant 0 : index
    %c0_0 = arith.constant 0 : index
    %c0_1 = arith.constant 0 : index
    %0 = vector.load %arg1[%c0, %c0_0, %c0_1] : memref<64x2x4xbf16, #tpu.memory_space<vmem>>, vector<64x2x4xbf16>
    %c0_2 = arith.constant 0 : index
    %c0_3 = arith.constant 0 : index
    %c0_4 = arith.constant 0 : index
    %1 = vector.load %arg2[%c0_2, %c0_3, %c0_4] : memref<64x2x4xbf16, #tpu.memory_space<vmem>>, vector<64x2x4xbf16>
    %c0_5 = arith.constant 0 : index
    %c0_6 = arith.constant 0 : index
    %c0_7 = arith.constant 0 : index
    %2 = vector.load %arg3[%c0_5, %c0_6, %c0_7] : memref<64x2x32xbf16, #tpu.memory_space<vmem>>, vector<64x2x32xbf16>
    "tpu.trace_start"() <{level = 10 : i32, message = "gnk,gmk->gnm"}> : () -> ()
    %cst = arith.constant dense<0.000000e+00> : vector<64x2x2xf32>
    %3 = tpu.matmul %0, %1, %cst {dimension_numbers = #tpu.dot_dimension_numbers<[2], [2], [1], [1], [0, 0, 0, 1, 1, 1], [0], [0]>} : vector<64x2x4xbf16>, vector<64x2x4xbf16>, vector<64x2x2xf32> -> vector<64x2x2xf32>
    "tpu.trace_stop"() : () -> ()
    %cst_8 = arith.constant 5.000000e-01 : f32
    %4 = vector.broadcast %cst_8 : f32 to vector<64x2x2xf32>
    %5 = arith.mulf %3, %4 : vector<64x2x2xf32>
    %cst_9 = arith.constant dense<0xFF800000> : vector<64x2xf32>
    %6 = vector.multi_reduction <maximumf>, %5, %cst_9 [2] : vector<64x2x2xf32> to vector<64x2xf32>
    %7 = vector.shape_cast %6 : vector<64x2xf32> to vector<64x2x1xf32>
    %8 = vector.broadcast %7 : vector<64x2x1xf32> to vector<64x2x2xf32>
    %9 = arith.subf %5, %8 : vector<64x2x2xf32>
    %10 = math.exp %9 : vector<64x2x2xf32>
    %cst_10 = arith.constant dense<0.000000e+00> : vector<64x2xf32>
    %11 = vector.multi_reduction <add>, %10, %cst_10 [2] : vector<64x2x2xf32> to vector<64x2xf32>
    %12 = vector.shape_cast %11 : vector<64x2xf32> to vector<64x2x1xf32>
    %13 = tpu.reciprocal %12 {approx = true} : vector<64x2x1xf32> -> vector<64x2x1xf32>
    %14 = vector.broadcast %13 : vector<64x2x1xf32> to vector<64x2x2xf32>
    %15 = arith.mulf %10, %14 : vector<64x2x2xf32>
    %16 = arith.truncf %15 : vector<64x2x2xf32> to vector<64x2x2xbf16>
    "tpu.trace_start"() <{level = 10 : i32, message = "gnm,gmc->gnc"}> : () -> ()
    %cst_11 = arith.constant dense<0.000000e+00> : vector<64x2x32xf32>
    %17 = tpu.matmul %16, %2, %cst_11 {dimension_numbers = #tpu.dot_dimension_numbers<[2], [1], [1], [2], [0, 0, 0, 1, 1, 2], [0], [0]>} : vector<64x2x2xbf16>, vector<64x2x32xbf16>, vector<64x2x32xf32> -> vector<64x2x32xf32>
    "tpu.trace_stop"() : () -> ()
    %18 = arith.truncf %17 : vector<64x2x32xf32> to vector<64x2x32xbf16>
    %c0_12 = arith.constant 0 : index
    %c0_13 = arith.constant 0 : index
    %c0_14 = arith.constant 0 : index
    %19 = vector.load %arg4[%c0_12, %c0_13, %c0_14] : memref<64x2x32xbf16, #tpu.memory_space<vmem>>, vector<64x2x32xbf16>
    tpu.vector_store %arg4[%c0_12, %c0_13, %c0_14], %18 {strides = array<i32>} : memref<64x2x32xbf16, #tpu.memory_space<vmem>>, vector<64x2x32xbf16>,
    return
  }
  func.func @transform_0(%arg0: i32) -> (i32, i32, i32) {
    %c0_i32 = arith.constant 0 : i32
    %c0_i32_0 = arith.constant 0 : i32
    %c0_i32_1 = arith.constant 0 : i32
    return %arg0, %c0_i32, %c0_i32_0 : i32, i32, i32
  }
  func.func @transform_1(%arg0: i32) -> (i32, i32, i32) {
    %c0_i32 = arith.constant 0 : i32
    %c0_i32_0 = arith.constant 0 : i32
    %c0_i32_1 = arith.constant 0 : i32
    return %arg0, %c0_i32, %c0_i32_0 : i32, i32, i32
  }
  func.func @transform_2(%arg0: i32) -> (i32, i32, i32) {
    %c0_i32 = arith.constant 0 : i32
    %c0_i32_0 = arith.constant 0 : i32
    %c0_i32_1 = arith.constant 0 : i32
    return %arg0, %c0_i32, %c0_i32_0 : i32, i32, i32
  }
  func.func @transform_3(%arg0: i32) -> (i32, i32, i32) {
    %c0_i32 = arith.constant 0 : i32
    %c0_i32_0 = arith.constant 0 : i32
    %c0_i32_1 = arith.constant 0 : i32
    return %arg0, %c0_i32, %c0_i32_0 : i32, i32, i32
  }
}

module attributes {stable_mosaic.version = 11 : i64} {
  func.func @_attn_kernel(%arg0: i32, %arg1: memref<32x8x4xbf16, #tpu.memory_space<vmem>>, %arg2: memref<32x8x4xbf16, #tpu.memory_space<vmem>>, %arg3: memref<32x8x32xbf16, #tpu.memory_space<vmem>>, %arg4: memref<32x8x32xbf16, #tpu.memory_space<vmem>>) attributes {dimension_semantics = [#tpu.dimension_semantics<parallel>], iteration_bounds = array<i64: 1>, scalar_prefetch = 0 : i64, scratch_operands = 0 : i64, tpu.core_type = #tpu.core_type<tc>, window_params = [{transform_indices = @transform_0, window_bounds = array<i64: 32, 8, 4>}, {transform_indices = @transform_1, window_bounds = array<i64: 32, 8, 4>}, {transform_indices = @transform_2, window_bounds = array<i64: 32, 8, 32>}, {transform_indices = @transform_3, window_bounds = array<i64: 32, 8, 32>}]} {
    %c0 = arith.constant 0 : index
    %c0_0 = arith.constant 0 : index
    %c0_1 = arith.constant 0 : index
    %0 = vector.load %arg1[%c0, %c0_0, %c0_1] : memref<32x8x4xbf16, #tpu.memory_space<vmem>>, vector<32x8x4xbf16>
    %c0_2 = arith.constant 0 : index
    %c0_3 = arith.constant 0 : index
    %c0_4 = arith.constant 0 : index
    %1 = vector.load %arg2[%c0_2, %c0_3, %c0_4] : memref<32x8x4xbf16, #tpu.memory_space<vmem>>, vector<32x8x4xbf16>
    %c0_5 = arith.constant 0 : index
    %c0_6 = arith.constant 0 : index
    %c0_7 = arith.constant 0 : index
    %2 = vector.load %arg3[%c0_5, %c0_6, %c0_7] : memref<32x8x32xbf16, #tpu.memory_space<vmem>>, vector<32x8x32xbf16>
    "tpu.trace_start"() <{level = 10 : i32, message = "gnk,gmk->gnm"}> : () -> ()
    %cst = arith.constant dense<0.000000e+00> : vector<32x8x8xf32>
    %3 = tpu.matmul %0, %1, %cst {dimension_numbers = #tpu.dot_dimension_numbers<[2], [2], [1], [1], [0, 0, 0, 1, 1, 1], [0], [0]>} : vector<32x8x4xbf16>, vector<32x8x4xbf16>, vector<32x8x8xf32> -> vector<32x8x8xf32>
    "tpu.trace_stop"() : () -> ()
    %cst_8 = arith.constant 5.000000e-01 : f32
    %4 = vector.broadcast %cst_8 : f32 to vector<32x8x8xf32>
    %5 = arith.mulf %3, %4 : vector<32x8x8xf32>
    %cst_9 = arith.constant dense<0xFF800000> : vector<32x8xf32>
    %6 = vector.multi_reduction <maximumf>, %5, %cst_9 [2] : vector<32x8x8xf32> to vector<32x8xf32>
    %7 = vector.shape_cast %6 : vector<32x8xf32> to vector<32x8x1xf32>
    %8 = vector.broadcast %7 : vector<32x8x1xf32> to vector<32x8x8xf32>
    %9 = arith.subf %5, %8 : vector<32x8x8xf32>
    %10 = math.exp %9 : vector<32x8x8xf32>
    %cst_10 = arith.constant dense<0.000000e+00> : vector<32x8xf32>
    %11 = vector.multi_reduction <add>, %10, %cst_10 [2] : vector<32x8x8xf32> to vector<32x8xf32>
    %12 = vector.shape_cast %11 : vector<32x8xf32> to vector<32x8x1xf32>
    %13 = tpu.reciprocal %12 {approx = true} : vector<32x8x1xf32> -> vector<32x8x1xf32>
    %14 = vector.broadcast %13 : vector<32x8x1xf32> to vector<32x8x8xf32>
    %15 = arith.mulf %10, %14 : vector<32x8x8xf32>
    %16 = arith.truncf %15 : vector<32x8x8xf32> to vector<32x8x8xbf16>
    "tpu.trace_start"() <{level = 10 : i32, message = "gnm,gmc->gnc"}> : () -> ()
    %cst_11 = arith.constant dense<0.000000e+00> : vector<32x8x32xf32>
    %17 = tpu.matmul %16, %2, %cst_11 {dimension_numbers = #tpu.dot_dimension_numbers<[2], [1], [1], [2], [0, 0, 0, 1, 1, 2], [0], [0]>} : vector<32x8x8xbf16>, vector<32x8x32xbf16>, vector<32x8x32xf32> -> vector<32x8x32xf32>
    "tpu.trace_stop"() : () -> ()
    %18 = arith.truncf %17 : vector<32x8x32xf32> to vector<32x8x32xbf16>
    %c0_12 = arith.constant 0 : index
    %c0_13 = arith.constant 0 : index
    %c0_14 = arith.constant 0 : index
    %19 = vector.load %arg4[%c0_12, %c0_13, %c0_14] : memref<32x8x32xbf16, #tpu.memory_space<vmem>>, vector<32x8x32xbf16>
    tpu.vector_store %arg4[%c0_12, %c0_13, %c0_14], %18 {strides = array<i32>} : memref<32x8x32xbf16, #tpu.memory_space<vmem>>, vector<32x8x32xbf16>,
    return
  }
  func.func @transform_0(%arg0: i32) -> (i32, i32, i32) {
    %c0_i32 = arith.constant 0 : i32
    %c0_i32_0 = arith.constant 0 : i32
    %c0_i32_1 = arith.constant 0 : i32
    return %arg0, %c0_i32, %c0_i32_0 : i32, i32, i32
  }
  func.func @transform_1(%arg0: i32) -> (i32, i32, i32) {
    %c0_i32 = arith.constant 0 : i32
    %c0_i32_0 = arith.constant 0 : i32
    %c0_i32_1 = arith.constant 0 : i32
    return %arg0, %c0_i32, %c0_i32_0 : i32, i32, i32
  }
  func.func @transform_2(%arg0: i32) -> (i32, i32, i32) {
    %c0_i32 = arith.constant 0 : i32
    %c0_i32_0 = arith.constant 0 : i32
    %c0_i32_1 = arith.constant 0 : i32
    return %arg0, %c0_i32, %c0_i32_0 : i32, i32, i32
  }
  func.func @transform_3(%arg0: i32) -> (i32, i32, i32) {
    %c0_i32 = arith.constant 0 : i32
    %c0_i32_0 = arith.constant 0 : i32
    %c0_i32_1 = arith.constant 0 : i32
    return %arg0, %c0_i32, %c0_i32_0 : i32, i32, i32
  }
}

module attributes {stable_mosaic.version = 11 : i64} {
  func.func @_attn_kernel(%arg0: i32, %arg1: memref<8x32x4xbf16, #tpu.memory_space<vmem>>, %arg2: memref<8x32x4xbf16, #tpu.memory_space<vmem>>, %arg3: memref<8x32x32xbf16, #tpu.memory_space<vmem>>, %arg4: memref<8x32x32xbf16, #tpu.memory_space<vmem>>) attributes {dimension_semantics = [#tpu.dimension_semantics<parallel>], iteration_bounds = array<i64: 1>, scalar_prefetch = 0 : i64, scratch_operands = 0 : i64, tpu.core_type = #tpu.core_type<tc>, window_params = [{transform_indices = @transform_0, window_bounds = array<i64: 8, 32, 4>}, {transform_indices = @transform_1, window_bounds = array<i64: 8, 32, 4>}, {transform_indices = @transform_2, window_bounds = array<i64: 8, 32, 32>}, {transform_indices = @transform_3, window_bounds = array<i64: 8, 32, 32>}]} {
    %c0 = arith.constant 0 : index
    %c0_0 = arith.constant 0 : index
    %c0_1 = arith.constant 0 : index
    %0 = vector.load %arg1[%c0, %c0_0, %c0_1] : memref<8x32x4xbf16, #tpu.memory_space<vmem>>, vector<8x32x4xbf16>
    %c0_2 = arith.constant 0 : index
    %c0_3 = arith.constant 0 : index
    %c0_4 = arith.constant 0 : index
    %1 = vector.load %arg2[%c0_2, %c0_3, %c0_4] : memref<8x32x4xbf16, #tpu.memory_space<vmem>>, vector<8x32x4xbf16>
    %c0_5 = arith.constant 0 : index
    %c0_6 = arith.constant 0 : index
    %c0_7 = arith.constant 0 : index
    %2 = vector.load %arg3[%c0_5, %c0_6, %c0_7] : memref<8x32x32xbf16, #tpu.memory_space<vmem>>, vector<8x32x32xbf16>
    "tpu.trace_start"() <{level = 10 : i32, message = "gnk,gmk->gnm"}> : () -> ()
    %cst = arith.constant dense<0.000000e+00> : vector<8x32x32xf32>
    %3 = tpu.matmul %0, %1, %cst {dimension_numbers = #tpu.dot_dimension_numbers<[2], [2], [1], [1], [0, 0, 0, 1, 1, 1], [0], [0]>} : vector<8x32x4xbf16>, vector<8x32x4xbf16>, vector<8x32x32xf32> -> vector<8x32x32xf32>
    "tpu.trace_stop"() : () -> ()
    %cst_8 = arith.constant 5.000000e-01 : f32
    %4 = vector.broadcast %cst_8 : f32 to vector<8x32x32xf32>
    %5 = arith.mulf %3, %4 : vector<8x32x32xf32>
    %cst_9 = arith.constant dense<0xFF800000> : vector<8x32xf32>
    %6 = vector.multi_reduction <maximumf>, %5, %cst_9 [2] : vector<8x32x32xf32> to vector<8x32xf32>
    %7 = vector.shape_cast %6 : vector<8x32xf32> to vector<8x32x1xf32>
    %8 = vector.broadcast %7 : vector<8x32x1xf32> to vector<8x32x32xf32>
    %9 = arith.subf %5, %8 : vector<8x32x32xf32>
    %10 = math.exp %9 : vector<8x32x32xf32>
    %cst_10 = arith.constant dense<0.000000e+00> : vector<8x32xf32>
    %11 = vector.multi_reduction <add>, %10, %cst_10 [2] : vector<8x32x32xf32> to vector<8x32xf32>
    %12 = vector.shape_cast %11 : vector<8x32xf32> to vector<8x32x1xf32>
    %13 = tpu.reciprocal %12 {approx = true} : vector<8x32x1xf32> -> vector<8x32x1xf32>
    %14 = vector.broadcast %13 : vector<8x32x1xf32> to vector<8x32x32xf32>
    %15 = arith.mulf %10, %14 : vector<8x32x32xf32>
    %16 = arith.truncf %15 : vector<8x32x32xf32> to vector<8x32x32xbf16>
    "tpu.trace_start"() <{level = 10 : i32, message = "gnm,gmc->gnc"}> : () -> ()
    %cst_11 = arith.constant dense<0.000000e+00> : vector<8x32x32xf32>
    %17 = tpu.matmul %16, %2, %cst_11 {dimension_numbers = #tpu.dot_dimension_numbers<[2], [1], [1], [2], [0, 0, 0, 1, 1, 2], [0], [0]>} : vector<8x32x32xbf16>, vector<8x32x32xbf16>, vector<8x32x32xf32> -> vector<8x32x32xf32>
    "tpu.trace_stop"() : () -> ()
    %18 = arith.truncf %17 : vector<8x32x32xf32> to vector<8x32x32xbf16>
    %c0_12 = arith.constant 0 : index
    %c0_13 = arith.constant 0 : index
    %c0_14 = arith.constant 0 : index
    %19 = vector.load %arg4[%c0_12, %c0_13, %c0_14] : memref<8x32x32xbf16, #tpu.memory_space<vmem>>, vector<8x32x32xbf16>
    tpu.vector_store %arg4[%c0_12, %c0_13, %c0_14], %18 {strides = array<i32>} : memref<8x32x32xbf16, #tpu.memory_space<vmem>>, vector<8x32x32xbf16>,
    return
  }
  func.func @transform_0(%arg0: i32) -> (i32, i32, i32) {
    %c0_i32 = arith.constant 0 : i32
    %c0_i32_0 = arith.constant 0 : i32
    %c0_i32_1 = arith.constant 0 : i32
    return %arg0, %c0_i32, %c0_i32_0 : i32, i32, i32
  }
  func.func @transform_1(%arg0: i32) -> (i32, i32, i32) {
    %c0_i32 = arith.constant 0 : i32
    %c0_i32_0 = arith.constant 0 : i32
    %c0_i32_1 = arith.constant 0 : i32
    return %arg0, %c0_i32, %c0_i32_0 : i32, i32, i32
  }
  func.func @transform_2(%arg0: i32) -> (i32, i32, i32) {
    %c0_i32 = arith.constant 0 : i32
    %c0_i32_0 = arith.constant 0 : i32
    %c0_i32_1 = arith.constant 0 : i32
    return %arg0, %c0_i32, %c0_i32_0 : i32, i32, i32
  }
  func.func @transform_3(%arg0: i32) -> (i32, i32, i32) {
    %c0_i32 = arith.constant 0 : i32
    %c0_i32_0 = arith.constant 0 : i32
    %c0_i32_1 = arith.constant 0 : i32
    return %arg0, %c0_i32, %c0_i32_0 : i32, i32, i32
  }
}

module attributes {stable_mosaic.version = 11 : i64} {
  func.func @_attn_kernel(%arg0: i32, %arg1: memref<2x128x4xbf16, #tpu.memory_space<vmem>>, %arg2: memref<2x128x4xbf16, #tpu.memory_space<vmem>>, %arg3: memref<2x128x32xbf16, #tpu.memory_space<vmem>>, %arg4: memref<2x128x32xbf16, #tpu.memory_space<vmem>>) attributes {dimension_semantics = [#tpu.dimension_semantics<parallel>], iteration_bounds = array<i64: 1>, scalar_prefetch = 0 : i64, scratch_operands = 0 : i64, tpu.core_type = #tpu.core_type<tc>, window_params = [{transform_indices = @transform_0, window_bounds = array<i64: 2, 128, 4>}, {transform_indices = @transform_1, window_bounds = array<i64: 2, 128, 4>}, {transform_indices = @transform_2, window_bounds = array<i64: 2, 128, 32>}, {transform_indices = @transform_3, window_bounds = array<i64: 2, 128, 32>}]} {
    %c0 = arith.constant 0 : index
    %c0_0 = arith.constant 0 : index
    %c0_1 = arith.constant 0 : index
    %0 = vector.load %arg1[%c0, %c0_0, %c0_1] : memref<2x128x4xbf16, #tpu.memory_space<vmem>>, vector<2x128x4xbf16>
    %c0_2 = arith.constant 0 : index
    %c0_3 = arith.constant 0 : index
    %c0_4 = arith.constant 0 : index
    %1 = vector.load %arg2[%c0_2, %c0_3, %c0_4] : memref<2x128x4xbf16, #tpu.memory_space<vmem>>, vector<2x128x4xbf16>
    %c0_5 = arith.constant 0 : index
    %c0_6 = arith.constant 0 : index
    %c0_7 = arith.constant 0 : index
    %2 = vector.load %arg3[%c0_5, %c0_6, %c0_7] : memref<2x128x32xbf16, #tpu.memory_space<vmem>>, vector<2x128x32xbf16>
    "tpu.trace_start"() <{level = 10 : i32, message = "gnk,gmk->gnm"}> : () -> ()
    %cst = arith.constant dense<0.000000e+00> : vector<2x128x128xf32>
    %3 = tpu.matmul %0, %1, %cst {dimension_numbers = #tpu.dot_dimension_numbers<[2], [2], [1], [1], [0, 0, 0, 1, 1, 1], [0], [0]>} : vector<2x128x4xbf16>, vector<2x128x4xbf16>, vector<2x128x128xf32> -> vector<2x128x128xf32>
    "tpu.trace_stop"() : () -> ()
    %cst_8 = arith.constant 5.000000e-01 : f32
    %4 = vector.broadcast %cst_8 : f32 to vector<2x128x128xf32>
    %5 = arith.mulf %3, %4 : vector<2x128x128xf32>
    %cst_9 = arith.constant dense<0xFF800000> : vector<2x128xf32>
    %6 = vector.multi_reduction <maximumf>, %5, %cst_9 [2] : vector<2x128x128xf32> to vector<2x128xf32>
    %7 = vector.shape_cast %6 : vector<2x128xf32> to vector<2x128x1xf32>
    %8 = vector.broadcast %7 : vector<2x128x1xf32> to vector<2x128x128xf32>
    %9 = arith.subf %5, %8 : vector<2x128x128xf32>
    %10 = math.exp %9 : vector<2x128x128xf32>
    %cst_10 = arith.constant dense<0.000000e+00> : vector<2x128xf32>
    %11 = vector.multi_reduction <add>, %10, %cst_10 [2] : vector<2x128x128xf32> to vector<2x128xf32>
    %12 = vector.shape_cast %11 : vector<2x128xf32> to vector<2x128x1xf32>
    %13 = tpu.reciprocal %12 {approx = true} : vector<2x128x1xf32> -> vector<2x128x1xf32>
    %14 = vector.broadcast %13 : vector<2x128x1xf32> to vector<2x128x128xf32>
    %15 = arith.mulf %10, %14 : vector<2x128x128xf32>
    %16 = arith.truncf %15 : vector<2x128x128xf32> to vector<2x128x128xbf16>
    "tpu.trace_start"() <{level = 10 : i32, message = "gnm,gmc->gnc"}> : () -> ()
    %cst_11 = arith.constant dense<0.000000e+00> : vector<2x128x32xf32>
    %17 = tpu.matmul %16, %2, %cst_11 {dimension_numbers = #tpu.dot_dimension_numbers<[2], [1], [1], [2], [0, 0, 0, 1, 1, 2], [0], [0]>} : vector<2x128x128xbf16>, vector<2x128x32xbf16>, vector<2x128x32xf32> -> vector<2x128x32xf32>
    "tpu.trace_stop"() : () -> ()
    %18 = arith.truncf %17 : vector<2x128x32xf32> to vector<2x128x32xbf16>
    %c0_12 = arith.constant 0 : index
    %c0_13 = arith.constant 0 : index
    %c0_14 = arith.constant 0 : index
    %19 = vector.load %arg4[%c0_12, %c0_13, %c0_14] : memref<2x128x32xbf16, #tpu.memory_space<vmem>>, vector<2x128x32xbf16>
    tpu.vector_store %arg4[%c0_12, %c0_13, %c0_14], %18 {strides = array<i32>} : memref<2x128x32xbf16, #tpu.memory_space<vmem>>, vector<2x128x32xbf16>,
    return
  }
  func.func @transform_0(%arg0: i32) -> (i32, i32, i32) {
    %c0_i32 = arith.constant 0 : i32
    %c0_i32_0 = arith.constant 0 : i32
    %c0_i32_1 = arith.constant 0 : i32
    return %arg0, %c0_i32, %c0_i32_0 : i32, i32, i32
  }
  func.func @transform_1(%arg0: i32) -> (i32, i32, i32) {
    %c0_i32 = arith.constant 0 : i32
    %c0_i32_0 = arith.constant 0 : i32
    %c0_i32_1 = arith.constant 0 : i32
    return %arg0, %c0_i32, %c0_i32_0 : i32, i32, i32
  }
  func.func @transform_2(%arg0: i32) -> (i32, i32, i32) {
    %c0_i32 = arith.constant 0 : i32
    %c0_i32_0 = arith.constant 0 : i32
    %c0_i32_1 = arith.constant 0 : i32
    return %arg0, %c0_i32, %c0_i32_0 : i32, i32, i32
  }
  func.func @transform_3(%arg0: i32) -> (i32, i32, i32) {
    %c0_i32 = arith.constant 0 : i32
    %c0_i32_0 = arith.constant 0 : i32
    %c0_i32_1 = arith.constant 0 : i32
    return %arg0, %c0_i32, %c0_i32_0 : i32, i32, i32
  }
}

module attributes {stable_mosaic.version = 11 : i64} {
  func.func @_final_proj_kernel(%arg0: i32, %arg1: memref<256x32xbf16, #tpu.memory_space<vmem>>, %arg2: memref<256x32xbf16, #tpu.memory_space<vmem>>, %arg3: memref<256x32xbf16, #tpu.memory_space<vmem>>, %arg4: memref<256x32xbf16, #tpu.memory_space<vmem>>, %arg5: memref<4x32x32xbf16, #tpu.memory_space<vmem>>, %arg6: memref<256x32xf32, #tpu.memory_space<vmem>>) attributes {dimension_semantics = [#tpu.dimension_semantics<parallel>], iteration_bounds = array<i64: 1>, scalar_prefetch = 0 : i64, scratch_operands = 0 : i64, tpu.core_type = #tpu.core_type<tc>, window_params = [{transform_indices = @transform_0, window_bounds = array<i64: 256, 32>}, {transform_indices = @transform_1, window_bounds = array<i64: 256, 32>}, {transform_indices = @transform_2, window_bounds = array<i64: 256, 32>}, {transform_indices = @transform_3, window_bounds = array<i64: 256, 32>}, {pipeline_mode = #tpu.pipeline_mode<synchronous>, transform_indices = @transform_4, window_bounds = array<i64: 4, 32, 32>}, {transform_indices = @transform_5, window_bounds = array<i64: 256, 32>}]} {
    %c0 = arith.constant 0 : index
    %c0_0 = arith.constant 0 : index
    %0 = vector.load %arg1[%c0, %c0_0] : memref<256x32xbf16, #tpu.memory_space<vmem>>, vector<256x32xbf16>
    %c0_1 = arith.constant 0 : index
    %c0_2 = arith.constant 0 : index
    %c0_3 = arith.constant 0 : index
    %1 = vector.load %arg5[%c0_1, %c0_2, %c0_3] : memref<4x32x32xbf16, #tpu.memory_space<vmem>>, vector<1x32x32xbf16>
    %2 = vector.shape_cast %1 : vector<1x32x32xbf16> to vector<32x32xbf16>
    %cst = arith.constant dense<0.000000e+00> : vector<256x32xf32>
    %3 = tpu.matmul %0, %2, %cst {dimension_numbers = #tpu.dot_dimension_numbers<[1], [0], [0], [1], [0, 0, 1, 1], [], []>} : vector<256x32xbf16>, vector<32x32xbf16>, vector<256x32xf32> -> vector<256x32xf32>
    %c0_4 = arith.constant 0 : index
    %c0_5 = arith.constant 0 : index
    %4 = vector.load %arg2[%c0_4, %c0_5] : memref<256x32xbf16, #tpu.memory_space<vmem>>, vector<256x32xbf16>
    %c1 = arith.constant 1 : index
    %c0_6 = arith.constant 0 : index
    %c0_7 = arith.constant 0 : index
    %5 = vector.load %arg5[%c1, %c0_6, %c0_7] : memref<4x32x32xbf16, #tpu.memory_space<vmem>>, vector<1x32x32xbf16>
    %6 = vector.shape_cast %5 : vector<1x32x32xbf16> to vector<32x32xbf16>
    %cst_8 = arith.constant dense<0.000000e+00> : vector<256x32xf32>
    %7 = tpu.matmul %4, %6, %cst_8 {dimension_numbers = #tpu.dot_dimension_numbers<[1], [0], [0], [1], [0, 0, 1, 1], [], []>} : vector<256x32xbf16>, vector<32x32xbf16>, vector<256x32xf32> -> vector<256x32xf32>
    %8 = arith.addf %3, %7 : vector<256x32xf32>
    %c0_9 = arith.constant 0 : index
    %c0_10 = arith.constant 0 : index
    %9 = vector.load %arg3[%c0_9, %c0_10] : memref<256x32xbf16, #tpu.memory_space<vmem>>, vector<256x32xbf16>
    %c2 = arith.constant 2 : index
    %c0_11 = arith.constant 0 : index
    %c0_12 = arith.constant 0 : index
    %10 = vector.load %arg5[%c2, %c0_11, %c0_12] : memref<4x32x32xbf16, #tpu.memory_space<vmem>>, vector<1x32x32xbf16>
    %11 = vector.shape_cast %10 : vector<1x32x32xbf16> to vector<32x32xbf16>
    %cst_13 = arith.constant dense<0.000000e+00> : vector<256x32xf32>
    %12 = tpu.matmul %9, %11, %cst_13 {dimension_numbers = #tpu.dot_dimension_numbers<[1], [0], [0], [1], [0, 0, 1, 1], [], []>} : vector<256x32xbf16>, vector<32x32xbf16>, vector<256x32xf32> -> vector<256x32xf32>
    %13 = arith.addf %8, %12 : vector<256x32xf32>
    %c0_14 = arith.constant 0 : index
    %c0_15 = arith.constant 0 : index
    %14 = vector.load %arg4[%c0_14, %c0_15] : memref<256x32xbf16, #tpu.memory_space<vmem>>, vector<256x32xbf16>
    %c3 = arith.constant 3 : index
    %c0_16 = arith.constant 0 : index
    %c0_17 = arith.constant 0 : index
    %15 = vector.load %arg5[%c3, %c0_16, %c0_17] : memref<4x32x32xbf16, #tpu.memory_space<vmem>>, vector<1x32x32xbf16>
    %16 = vector.shape_cast %15 : vector<1x32x32xbf16> to vector<32x32xbf16>
    %cst_18 = arith.constant dense<0.000000e+00> : vector<256x32xf32>
    %17 = tpu.matmul %14, %16, %cst_18 {dimension_numbers = #tpu.dot_dimension_numbers<[1], [0], [0], [1], [0, 0, 1, 1], [], []>} : vector<256x32xbf16>, vector<32x32xbf16>, vector<256x32xf32> -> vector<256x32xf32>
    %18 = arith.addf %13, %17 : vector<256x32xf32>
    %c0_19 = arith.constant 0 : index
    %c0_20 = arith.constant 0 : index
    %19 = vector.load %arg6[%c0_19, %c0_20] : memref<256x32xf32, #tpu.memory_space<vmem>>, vector<256x32xf32>
    tpu.vector_store %arg6[%c0_19, %c0_20], %18 {strides = array<i32>} : memref<256x32xf32, #tpu.memory_space<vmem>>, vector<256x32xf32>,
    return
  }
  func.func @transform_0(%arg0: i32) -> (i32, i32) {
    %c0_i32 = arith.constant 0 : i32
    %c0_i32_0 = arith.constant 0 : i32
    return %arg0, %c0_i32 : i32, i32
  }
  func.func @transform_1(%arg0: i32) -> (i32, i32) {
    %c0_i32 = arith.constant 0 : i32
    %c0_i32_0 = arith.constant 0 : i32
    return %arg0, %c0_i32 : i32, i32
  }
  func.func @transform_2(%arg0: i32) -> (i32, i32) {
    %c0_i32 = arith.constant 0 : i32
    %c0_i32_0 = arith.constant 0 : i32
    return %arg0, %c0_i32 : i32, i32
  }
  func.func @transform_3(%arg0: i32) -> (i32, i32) {
    %c0_i32 = arith.constant 0 : i32
    %c0_i32_0 = arith.constant 0 : i32
    return %arg0, %c0_i32 : i32, i32
  }
  func.func @transform_4(%arg0: i32) -> (i32, i32, i32) {
    %c0_i32 = arith.constant 0 : i32
    %c0_i32_0 = arith.constant 0 : i32
    %c0_i32_1 = arith.constant 0 : i32
    %c0_i32_2 = arith.constant 0 : i32
    return %c0_i32, %c0_i32_0, %c0_i32_1 : i32, i32, i32
  }
  func.func @transform_5(%arg0: i32) -> (i32, i32) {
    %c0_i32 = arith.constant 0 : i32
    %c0_i32_0 = arith.constant 0 : i32
    return %arg0, %c0_i32 : i32, i32
  }
}

</mosaic_0001>

<bundles_post_ra>
// kernel: cdsa_forward_pallas.6
= control target key start
LH: loop header
LB: loop body
LE: loop exit
PB: predicated region body
PF: predicated region fallthrough
CT: control target
= control target key end

     0   :  { %v536_v1 = vmov 0   ;;  %vm163_vm0 = vcmask 261120   ;;  %v53_v21 = vlaneseq  ;;  %s928_s1 = inlined_call_operand.vmem [shape: bf16[32,160], index: 1, kind: input, shape index: {}]   ;;  %s929_s0 = inlined_call_operand.vmem [shape: bf16[256,32], index: 0, kind: input, shape index: {}]   ;;  %s930_s2 = inlined_call_operand.vmem [shape: f32[1,160], index: 2, kind: input, shape index: {}]   ;;  %s931_s3 = inlined_call_operand.vmem [shape: f32[256,160], index: 3, kind: output, shape index: {}]  }
   0x1   :  { %v514_v0 = vld [vmem:[%s928_s1 + $0x14] ss:$8 sps:$4 sm:$0xff]   ;;  %244 = vmatprep.mubr.bf16.mxu0 %v536_v1  ;;  %324 = vmatprep.mubr.bf16.mxu1 %v536_v1  ;;  %v516_v2 = vld [vmem:[%s928_s1 + $0x10] ss:$8 sps:$4 sm:$0xff]   ;;  %v517_v3 = vld [vmem:[%s928_s1 + $0x4] ss:$8 sps:$4 sm:$0xff]  }
   0x2   :  { %224 = vmatprep.subr.bf16.mxu0 %v514_v0  ;;  %509 = vmatprep.subr.bf16.mxu1 %v514_v0  ;;  %v519_v4 = vld [vmem:[%s928_s1] ss:$8 sps:$4 sm:$0xff]   ;;  %v524_v9 = vld [vmem:[%s929_s0 + $0x10] sm:$0xff]   ;;  %v526_v11 = vld [vmem:[%s929_s0 + $0x18] sm:$0xff]   ;;  %v54_v22 = vshrl.u32 %v53_v21, 7 }
   0x3   :  { %225 = vmatpush1.bf16.msra.mxu0 %v516_v2  ;;  %511 = vmatpush1.bf16.msra.mxu1 %v516_v2  ;;  %v520_v5 = vld [vmem:[%s929_s0] sm:$0xff]   ;;  %v522_v7 = vld [vmem:[%s929_s0 + $0x8] sm:$0xff]   ;;  %v525_v10 = vld [vmem:[%s929_s0 + $0x50] sm:$0xff]  }
   0x4   :  { %226 = vmatprep.subr.bf16.mxu0 %v517_v3  ;;  %510 = vmatprep.subr.bf16.mxu1 %v517_v3  ;;  %v521_v6 = vld [vmem:[%s929_s0 + $0x40] sm:$0xff]   ;;  %v523_v8 = vld [vmem:[%s929_s0 + $0x48] sm:$0xff]   ;;  %v527_v12 = vld [vmem:[%s929_s0 + $0x58] sm:$0xff]   ;;  %v55_v23 = vsub.s32 0, %v54_v22  ;;  %v59_v25 = vsub.s32 1, %v54_v22 }
   0x5   :  { %v528_v13 = vld [vmem:[%s929_s0 + $0x20] sm:$0xff]   ;;  %v530_v15 = vld [vmem:[%s929_s0 + $0x28] sm:$0xff]   ;;  %v532_v17 = vld [vmem:[%s929_s0 + $0x30] sm:$0xff]  }
   0x6   :  { %v529_v14 = vld [vmem:[%s929_s0 + $0x60] sm:$0xff]   ;;  %v531_v16 = vld [vmem:[%s929_s0 + $0x68] sm:$0xff]   ;;  %v533_v18 = vld [vmem:[%s929_s0 + $0x70] sm:$0xff]  }
   0x7   :  { %227 = vmatpush1.bf16.msra.mxu0 %v519_v4  ;;  %512 = vmatpush1.bf16.msra.mxu1 %v519_v4  ;;  %v534_v19 = vld [vmem:[%s929_s0 + $0x38] sm:$0xff]   ;;  %v51_v24 = vld [vmem:[%s930_s2] sm:$0x3] }
   0x8   :  { %v535_v20 = vld [vmem:[%s929_s0 + $0x78] sm:$0xff]   ;;  %v636_v26 = vrot.slane %v51_v24, %v55_v23  ;;  %v638_v27 = vrot.slane %v51_v24, %v59_v25 }
   0xa   :  { %493 = vmatmul.mubr.msk.bf16.vlgmr.msra.gmra.mxu0 %vm163_vm0, %v520_v5  ;;  %501 = vmatmul.mubr.msk.bf16.vlgmr.msra.gmra.mxu1 %vm163_vm0, %v521_v6 }
   0xb   :  { %254 = vmatprep.mubr.bf16.mxu0 %v536_v1  ;;  %334 = vmatprep.mubr.bf16.mxu1 %v536_v1 }
  0x12   :  { %494 = vmatmul.mubr.msk.bf16.gmra.mxu0 %vm163_vm0, %v522_v7  ;;  %502 = vmatmul.mubr.msk.bf16.gmra.mxu1 %vm163_vm0, %v523_v8 }
  0x13   :  { %264 = vmatprep.mubr.bf16.mxu0 %v536_v1  ;;  %344 = vmatprep.mubr.bf16.mxu1 %v536_v1 }
  0x1a   :  { %495 = vmatmul.mubr.msk.bf16.gmra.mxu0 %vm163_vm0, %v524_v9  ;;  %503 = vmatmul.mubr.msk.bf16.gmra.mxu1 %vm163_vm0, %v525_v10 }
  0x1b   :  { %274 = vmatprep.mubr.bf16.mxu0 %v536_v1  ;;  %354 = vmatprep.mubr.bf16.mxu1 %v536_v1 }
  0x22   :  { %496 = vmatmul.mubr.msk.bf16.gmra.mxu0 %vm163_vm0, %v526_v11  ;;  %504 = vmatmul.mubr.msk.bf16.gmra.mxu1 %vm163_vm0, %v527_v12 }
  0x23   :  { %284 = vmatprep.mubr.bf16.mxu0 %v536_v1  ;;  %364 = vmatprep.mubr.bf16.mxu1 %v536_v1 }
  0x2a   :  { %497 = vmatmul.mubr.msk.bf16.gmra.mxu0 %vm163_vm0, %v528_v13  ;;  %505 = vmatmul.mubr.msk.bf16.gmra.mxu1 %vm163_vm0, %v529_v14 }
  0x2b   :  { %294 = vmatprep.mubr.bf16.mxu0 %v536_v1  ;;  %374 = vmatprep.mubr.bf16.mxu1 %v536_v1 }
  0x32   :  { %498 = vmatmul.mubr.msk.bf16.gmra.mxu0 %vm163_vm0, %v530_v15  ;;  %506 = vmatmul.mubr.msk.bf16.gmra.mxu1 %vm163_vm0, %v531_v16 }
  0x33   :  { %304 = vmatprep.mubr.bf16.mxu0 %v536_v1  ;;  %384 = vmatprep.mubr.bf16.mxu1 %v536_v1 }
  0x3a   :  { %499 = vmatmul.mubr.msk.bf16.gmra.mxu0 %vm163_vm0, %v532_v17  ;;  %507 = vmatmul.mubr.msk.bf16.gmra.mxu1 %vm163_vm0, %v533_v18 }
  0x3b   :  { %314 = vmatprep.mubr.bf16.mxu0 %v536_v1  ;;  %394 = vmatprep.mubr.bf16.mxu1 %v536_v1 }
  0x42   :  { %500 = vmatmul.mubr.msk.bf16.gmra.mxu0 %vm163_vm0, %v534_v19  ;;  %508 = vmatmul.mubr.msk.bf16.gmra.mxu1 %vm163_vm0, %v535_v20 }
  0xca   :  { %v246_v28 = vpop.f32.mrf.mxu0  ;;  %v326_v29 = vpop.f32.mrf.mxu1 }
  0xcb   :  { %v247_v30 = vadd.f32 %v246_v28, %v636_v26  ;;  %v327_v31 = vadd.f32 %v326_v29, %v636_v26 }
  0xcc   :  { %v248_v32 = vpop.f32.mrf.mxu0  ;;  %v328_v33 = vpop.f32.mrf.mxu1 }
  0xcd   :  { %405 = vst [vmem:[%s931_s3] sm:$0xff] %v247_v30  ;;  %437 = vst [vmem:[%s931_s3 + $0x100] sm:$0xff] %v327_v31  ;;  %v249_v34 = vadd.f32 %v248_v32, %v638_v27  ;;  %v329_v35 = vadd.f32 %v328_v33, %v638_v27 }
  0xce   :  { %v250_v36 = vpop.f32.mrf.mxu0  ;;  %v330_v37 = vpop.f32.mrf.mxu1 }
  0xcf   :  { %406 = vst.msk [vmem:[%s931_s3 + $0x8] sm:$0xff] %vm163_vm0, %v249_v34  ;;  %438 = vst.msk [vmem:[%s931_s3 + $0x108] sm:$0xff] %vm163_vm0, %v329_v35  ;;  %v251_v38 = vadd.f32 %v250_v36, %v636_v26  ;;  %v331_v39 = vadd.f32 %v330_v37, %v636_v26 }
  0xd0   :  { %v252_v40 = vpop.f32.mrf.mxu0  ;;  %v332_v41 = vpop.f32.mrf.mxu1 }
  0xd1   :  { %407 = vst [vmem:[%s931_s3 + $0x10] sm:$0xff] %v251_v38  ;;  %439 = vst [vmem:[%s931_s3 + $0x110] sm:$0xff] %v331_v39  ;;  %v253_v42 = vadd.f32 %v252_v40, %v638_v27  ;;  %v333_v43 = vadd.f32 %v332_v41, %v638_v27 }
  0xd2   :  { %v256_v44 = vpop.f32.mrf.mxu0  ;;  %v336_v45 = vpop.f32.mrf.mxu1 }
  0xd3   :  { %408 = vst.msk [vmem:[%s931_s3 + $0x18] sm:$0xff] %vm163_vm0, %v253_v42  ;;  %440 = vst.msk [vmem:[%s931_s3 + $0x118] sm:$0xff] %vm163_vm0, %v333_v43  ;;  %v257_v46 = vadd.f32 %v256_v44, %v636_v26  ;;  %v337_v47 = vadd.f32 %v336_v45, %v636_v26 }
  0xd4   :  { %v258_v48 = vpop.f32.mrf.mxu0  ;;  %v338_v49 = vpop.f32.mrf.mxu1 }
  0xd5   :  { %409 = vst [vmem:[%s931_s3 + $0x20] sm:$0xff] %v257_v46  ;;  %441 = vst [vmem:[%s931_s3 + $0x120] sm:$0xff] %v337_v47  ;;  %v259_v50 = vadd.f32 %v258_v48, %v638_v27  ;;  %v339_v51 = vadd.f32 %v338_v49, %v638_v27 }
  0xd6   :  { %v260_v52 = vpop.f32.mrf.mxu0  ;;  %v340_v53 = vpop.f32.mrf.mxu1 }
  0xd7   :  { %410 = vst.msk [vmem:[%s931_s3 + $0x28] sm:$0xff] %vm163_vm0, %v259_v50  ;;  %442 = vst.msk [vmem:[%s931_s3 + $0x128] sm:$0xff] %vm163_vm0, %v339_v51  ;;  %v261_v54 = vadd.f32 %v260_v52, %v636_v26  ;;  %v341_v55 = vadd.f32 %v340_v53, %v636_v26 }
  0xd8   :  { %v262_v56 = vpop.f32.mrf.mxu0  ;;  %v342_v57 = vpop.f32.mrf.mxu1 }
  0xd9   :  { %411 = vst [vmem:[%s931_s3 + $0x30] sm:$0xff] %v261_v54  ;;  %443 = vst [vmem:[%s931_s3 + $0x130] sm:$0xff] %v341_v55  ;;  %v263_v58 = vadd.f32 %v262_v56, %v638_v27  ;;  %v343_v59 = vadd.f32 %v342_v57, %v638_v27 }
  0xda   :  { %v266_v60 = vpop.f32.mrf.mxu0  ;;  %v346_v61 = vpop.f32.mrf.mxu1 }
  0xdb   :  { %412 = vst.msk [vmem:[%s931_s3 + $0x38] sm:$0xff] %vm163_vm0, %v263_v58  ;;  %444 = vst.msk [vmem:[%s931_s3 + $0x138] sm:$0xff] %vm163_vm0, %v343_v59  ;;  %v267_v62 = vadd.f32 %v266_v60, %v636_v26  ;;  %v347_v63 = vadd.f32 %v346_v61, %v636_v26 }
  0xdc   :  { %v268_v0 = vpop.f32.mrf.mxu0  ;;  %v348_v1 = vpop.f32.mrf.mxu1 }
  0xdd   :  { %413 = vst [vmem:[%s931_s3 + $0x40] sm:$0xff] %v267_v62  ;;  %445 = vst [vmem:[%s931_s3 + $0x140] sm:$0xff] %v347_v63  ;;  %v269_v2 = vadd.f32 %v268_v0, %v638_v27  ;;  %v349_v3 = vadd.f32 %v348_v1, %v638_v27 }
  0xde   :  { %v270_v4 = vpop.f32.mrf.mxu0  ;;  %v350_v5 = vpop.f32.mrf.mxu1 }
  0xdf   :  { %414 = vst.msk [vmem:[%s931_s3 + $0x48] sm:$0xff] %vm163_vm0, %v269_v2  ;;  %446 = vst.msk [vmem:[%s931_s3 + $0x148] sm:$0xff] %vm163_vm0, %v349_v3  ;;  %v271_v6 = vadd.f32 %v270_v4, %v636_v26  ;;  %v351_v7 = vadd.f32 %v350_v5, %v636_v26 }
  0xe0   :  { %v272_v8 = vpop.f32.mrf.mxu0  ;;  %v352_v9 = vpop.f32.mrf.mxu1 }
  0xe1   :  { %415 = vst [vmem:[%s931_s3 + $0x50] sm:$0xff] %v271_v6  ;;  %447 = vst [vmem:[%s931_s3 + $0x150] sm:$0xff] %v351_v7  ;;  %v273_v10 = vadd.f32 %v272_v8, %v638_v27  ;;  %v353_v11 = vadd.f32 %v352_v9, %v638_v27 }
  0xe2   :  { %v276_v12 = vpop.f32.mrf.mxu0  ;;  %v356_v13 = vpop.f32.mrf.mxu1 }
  0xe3   :  { %416 = vst.msk [vmem:[%s931_s3 + $0x58] sm:$0xff] %vm163_vm0, %v273_v10  ;;  %448 = vst.msk [vmem:[%s931_s3 + $0x158] sm:$0xff] %vm163_vm0, %v353_v11  ;;  %v277_v14 = vadd.f32 %v276_v12, %v636_v26  ;;  %v357_v15 = vadd.f32 %v356_v13, %v636_v26 }
  0xe4   :  { %v278_v16 = vpop.f32.mrf.mxu0  ;;  %v358_v17 = vpop.f32.mrf.mxu1 }
  0xe5   :  { %417 = vst [vmem:[%s931_s3 + $0x60] sm:$0xff] %v277_v14  ;;  %449 = vst [vmem:[%s931_s3 + $0x160] sm:$0xff] %v357_v15  ;;  %v279_v18 = vadd.f32 %v278_v16, %v638_v27  ;;  %v359_v19 = vadd.f32 %v358_v17, %v638_v27 }
  0xe6   :  { %v280_v20 = vpop.f32.mrf.mxu0  ;;  %v360_v21 = vpop.f32.mrf.mxu1 }
  0xe7   :  { %418 = vst.msk [vmem:[%s931_s3 + $0x68] sm:$0xff] %vm163_vm0, %v279_v18  ;;  %450 = vst.msk [vmem:[%s931_s3 + $0x168] sm:$0xff] %vm163_vm0, %v359_v19  ;;  %v281_v22 = vadd.f32 %v280_v20, %v636_v26  ;;  %v361_v23 = vadd.f32 %v360_v21, %v636_v26 }
  0xe8   :  { %v282_v24 = vpop.f32.mrf.mxu0  ;;  %v362_v25 = vpop.f32.mrf.mxu1 }
  0xe9   :  { %419 = vst [vmem:[%s931_s3 + $0x70] sm:$0xff] %v281_v22  ;;  %451 = vst [vmem:[%s931_s3 + $0x170] sm:$0xff] %v361_v23  ;;  %v283_v28 = vadd.f32 %v282_v24, %v638_v27  ;;  %v363_v29 = vadd.f32 %v362_v25, %v638_v27 }
  0xea   :  { %v286_v30 = vpop.f32.mrf.mxu0  ;;  %v366_v31 = vpop.f32.mrf.mxu1 }
  0xeb   :  { %420 = vst.msk [vmem:[%s931_s3 + $0x78] sm:$0xff] %vm163_vm0, %v283_v28  ;;  %452 = vst.msk [vmem:[%s931_s3 + $0x178] sm:$0xff] %vm163_vm0, %v363_v29  ;;  %v287_v32 = vadd.f32 %v286_v30, %v636_v26  ;;  %v367_v33 = vadd.f32 %v366_v31, %v636_v26 }
  0xec   :  { %v288_v34 = vpop.f32.mrf.mxu0  ;;  %v368_v35 = vpop.f32.mrf.mxu1 }
  0xed   :  { %421 = vst [vmem:[%s931_s3 + $0x80] sm:$0xff] %v287_v32  ;;  %453 = vst [vmem:[%s931_s3 + $0x180] sm:$0xff] %v367_v33  ;;  %v289_v36 = vadd.f32 %v288_v34, %v638_v27  ;;  %v369_v37 = vadd.f32 %v368_v35, %v638_v27 }
  0xee   :  { %v290_v38 = vpop.f32.mrf.mxu0  ;;  %v370_v39 = vpop.f32.mrf.mxu1 }
  0xef   :  { %422 = vst.msk [vmem:[%s931_s3 + $0x88] sm:$0xff] %vm163_vm0, %v289_v36  ;;  %454 = vst.msk [vmem:[%s931_s3 + $0x188] sm:$0xff] %vm163_vm0, %v369_v37  ;;  %v291_v40 = vadd.f32 %v290_v38, %v636_v26  ;;  %v371_v41 = vadd.f32 %v370_v39, %v636_v26 }
  0xf0   :  { %v292_v42 = vpop.f32.mrf.mxu0  ;;  %v372_v43 = vpop.f32.mrf.mxu1 }
  0xf1   :  { %423 = vst [vmem:[%s931_s3 + $0x90] sm:$0xff] %v291_v40  ;;  %455 = vst [vmem:[%s931_s3 + $0x190] sm:$0xff] %v371_v41  ;;  %v293_v44 = vadd.f32 %v292_v42, %v638_v27  ;;  %v373_v45 = vadd.f32 %v372_v43, %v638_v27 }
  0xf2   :  { %v296_v46 = vpop.f32.mrf.mxu0  ;;  %v376_v47 = vpop.f32.mrf.mxu1 }
  0xf3   :  { %424 = vst.msk [vmem:[%s931_s3 + $0x98] sm:$0xff] %vm163_vm0, %v293_v44  ;;  %456 = vst.msk [vmem:[%s931_s3 + $0x198] sm:$0xff] %vm163_vm0, %v373_v45  ;;  %v297_v48 = vadd.f32 %v296_v46, %v636_v26  ;;  %v377_v49 = vadd.f32 %v376_v47, %v636_v26 }
  0xf4   :  { %v298_v50 = vpop.f32.mrf.mxu0  ;;  %v378_v51 = vpop.f32.mrf.mxu1 }
  0xf5   :  { %425 = vst [vmem:[%s931_s3 + $0xa0] sm:$0xff] %v297_v48  ;;  %457 = vst [vmem:[%s931_s3 + $0x1a0] sm:$0xff] %v377_v49  ;;  %v299_v52 = vadd.f32 %v298_v50, %v638_v27  ;;  %v379_v53 = vadd.f32 %v378_v51, %v638_v27 }
  0xf6   :  { %v300_v54 = vpop.f32.mrf.mxu0  ;;  %v380_v55 = vpop.f32.mrf.mxu1 }
  0xf7   :  { %426 = vst.msk [vmem:[%s931_s3 + $0xa8] sm:$0xff] %vm163_vm0, %v299_v52  ;;  %458 = vst.msk [vmem:[%s931_s3 + $0x1a8] sm:$0xff] %vm163_vm0, %v379_v53  ;;  %v301_v56 = vadd.f32 %v300_v54, %v636_v26  ;;  %v381_v57 = vadd.f32 %v380_v55, %v636_v26 }
  0xf8   :  { %v302_v58 = vpop.f32.mrf.mxu0  ;;  %v382_v59 = vpop.f32.mrf.mxu1 }
  0xf9   :  { %427 = vst [vmem:[%s931_s3 + $0xb0] sm:$0xff] %v301_v56  ;;  %459 = vst [vmem:[%s931_s3 + $0x1b0] sm:$0xff] %v381_v57  ;;  %v303_v60 = vadd.f32 %v302_v58, %v638_v27  ;;  %v383_v61 = vadd.f32 %v382_v59, %v638_v27 }
  0xfa   :  { %v306_v62 = vpop.f32.mrf.mxu0  ;;  %v386_v63 = vpop.f32.mrf.mxu1 }
  0xfb   :  { %428 = vst.msk [vmem:[%s931_s3 + $0xb8] sm:$0xff] %vm163_vm0, %v303_v60  ;;  %460 = vst.msk [vmem:[%s931_s3 + $0x1b8] sm:$0xff] %vm163_vm0, %v383_v61  ;;  %v307_v0 = vadd.f32 %v306_v62, %v636_v26  ;;  %v387_v1 = vadd.f32 %v386_v63, %v636_v26 }
  0xfc   :  { %v308_v2 = vpop.f32.mrf.mxu0  ;;  %v388_v3 = vpop.f32.mrf.mxu1 }
  0xfd   :  { %429 = vst [vmem:[%s931_s3 + $0xc0] sm:$0xff] %v307_v0  ;;  %461 = vst [vmem:[%s931_s3 + $0x1c0] sm:$0xff] %v387_v1  ;;  %v309_v4 = vadd.f32 %v308_v2, %v638_v27  ;;  %v389_v5 = vadd.f32 %v388_v3, %v638_v27 }
  0xfe   :  { %v310_v6 = vpop.f32.mrf.mxu0  ;;  %v390_v7 = vpop.f32.mrf.mxu1 }
  0xff   :  { %430 = vst.msk [vmem:[%s931_s3 + $0xc8] sm:$0xff] %vm163_vm0, %v309_v4  ;;  %462 = vst.msk [vmem:[%s931_s3 + $0x1c8] sm:$0xff] %vm163_vm0, %v389_v5  ;;  %v311_v8 = vadd.f32 %v310_v6, %v636_v26  ;;  %v391_v9 = vadd.f32 %v390_v7, %v636_v26 }
 0x100   :  { %v312_v10 = vpop.f32.mrf.mxu0  ;;  %v392_v11 = vpop.f32.mrf.mxu1 }
 0x101   :  { %431 = vst [vmem:[%s931_s3 + $0xd0] sm:$0xff] %v311_v8  ;;  %463 = vst [vmem:[%s931_s3 + $0x1d0] sm:$0xff] %v391_v9  ;;  %v313_v12 = vadd.f32 %v312_v10, %v638_v27  ;;  %v393_v13 = vadd.f32 %v392_v11, %v638_v27 }
 0x102   :  { %v316_v14 = vpop.f32.mrf.mxu0  ;;  %v396_v15 = vpop.f32.mrf.mxu1 }
 0x103   :  { %432 = vst.msk [vmem:[%s931_s3 + $0xd8] sm:$0xff] %vm163_vm0, %v313_v12  ;;  %464 = vst.msk [vmem:[%s931_s3 + $0x1d8] sm:$0xff] %vm163_vm0, %v393_v13  ;;  %v317_v16 = vadd.f32 %v316_v14, %v636_v26  ;;  %v397_v17 = vadd.f32 %v396_v15, %v636_v26 }
 0x104   :  { %v318_v18 = vpop.f32.mrf.mxu0  ;;  %v398_v19 = vpop.f32.mrf.mxu1 }
 0x105   :  { %433 = vst [vmem:[%s931_s3 + $0xe0] sm:$0xff] %v317_v16  ;;  %465 = vst [vmem:[%s931_s3 + $0x1e0] sm:$0xff] %v397_v17  ;;  %v319_v20 = vadd.f32 %v318_v18, %v638_v27  ;;  %v399_v21 = vadd.f32 %v398_v19, %v638_v27 }
 0x106   :  { %v320_v22 = vpop.f32.mrf.mxu0  ;;  %v400_v23 = vpop.f32.mrf.mxu1 }
 0x107   :  { %434 = vst.msk [vmem:[%s931_s3 + $0xe8] sm:$0xff] %vm163_vm0, %v319_v20  ;;  %466 = vst.msk [vmem:[%s931_s3 + $0x1e8] sm:$0xff] %vm163_vm0, %v399_v21  ;;  %v321_v24 = vadd.f32 %v320_v22, %v636_v26  ;;  %v401_v25 = vadd.f32 %v400_v23, %v636_v26 }
 0x108   :  { %v322_v28 = vpop.f32.mrf.mxu0  ;;  %v402_v29 = vpop.f32.mrf.mxu1 }
 0x109   :  { %435 = vst [vmem:[%s931_s3 + $0xf0] sm:$0xff] %v321_v24  ;;  %467 = vst [vmem:[%s931_s3 + $0x1f0] sm:$0xff] %v401_v25  ;;  %v323_v30 = vadd.f32 %v322_v28, %v638_v27  ;;  %v403_v31 = vadd.f32 %v402_v29, %v638_v27 }
 0x10b   :  { %436 = vst.msk [vmem:[%s931_s3 + $0xf8] sm:$0xff] %vm163_vm0, %v323_v30  ;;  %468 = vst.msk [vmem:[%s931_s3 + $0x1f8] sm:$0xff] %vm163_vm0, %v403_v31 }

// kernel: cdsa_forward_pallas.8
= control target key start
LH: loop header
LB: loop body
LE: loop exit
PB: predicated region body
PF: predicated region fallthrough
CT: control target
= control target key end

     0   :  { %vm131_vm0 = vcmask 31744   ;;  %vm792_vm1 = vcmask 261120   ;;  %vm1825_vm2 = vcmask 257024   ;;  %s3074_s1 = inlined_call_operand.vmem [shape: bf16[8,32,4], index: 1, kind: input, shape index: {}]   ;;  %s3075_s0 = inlined_call_operand.vmem [shape: bf16[8,32,4], index: 0, kind: input, shape index: {}]   ;;  %s3076_s2 = inlined_call_operand.vmem [shape: bf16[8,32,32], index: 2, kind: input, shape index: {}]   ;;  %s3077_s3 = inlined_call_operand.vmem [shape: bf16[8,32,32], index: 3, kind: output, shape index: {}]  }
   0x1   :  { %v2214_v0 = vld [vmem:[%s3074_s1 + $0x8] sm:$0xff]   ;;  %v2215_v1 = vld [vmem:[%s3074_s1 + $0x18] sm:$0xff]   ;;  %v2216_v3 = vld [vmem:[%s3074_s1] sm:$0xff]  }
   0x2   :  { %2198 = vmatprep.subr.msk.bf16.mxu0 %vm131_vm0, %v2214_v0  ;;  %v142_v2 = vsel %vm131_vm0, %v2214_v0, 0  ;;  %2200 = vmatprep.subr.msk.bf16.mxu1 %vm131_vm0, %v2215_v1  ;;  %v223_v4 = vsel %vm131_vm0, %v2215_v1, 0  ;;  %v2217_v5 = vld [vmem:[%s3074_s1 + $0x10] sm:$0xff]   ;;  %v2218_v6 = vld [vmem:[%s3075_s0] sm:$0xff]   ;;  %v139_v8 = vsel %vm131_vm0, %v2216_v3, 0  ;;  %v2222_v9 = vld [vmem:[%s3074_s1 + $0x28] sm:$0xff]  }
   0x3   :  { %2071 = vmatpush3.bf16.xpose.msra.mxu0 %v142_v2  ;;  %2079 = vmatpush3.bf16.xpose.msra.mxu1 %v223_v4  ;;  %v2219_v7 = vld [vmem:[%s3075_s0 + $0x10] sm:$0xff]   ;;  %v220_v10 = vsel %vm131_vm0, %v2217_v5, 0  ;;  %v2223_v11 = vld [vmem:[%s3074_s1 + $0x38] sm:$0xff]   ;;  %v2220_v12 = vld [vmem:[%s3075_s0 + $0x8] sm:$0xff]   ;;  %v304_v15 = vsel %vm131_vm0, %v2222_v9, 0 }
   0x4   :  { %2199 = vmatprep.subr.msk.bf16.mxu0 %vm131_vm0, %v2216_v3  ;;  %2201 = vmatprep.subr.msk.bf16.mxu1 %vm131_vm0, %v2217_v5  ;;  %v2221_v13 = vld [vmem:[%s3075_s0 + $0x18] sm:$0xff]   ;;  %v2224_v14 = vld [vmem:[%s3074_s1 + $0x20] sm:$0xff]   ;;  %v2225_v16 = vld [vmem:[%s3074_s1 + $0x30] sm:$0xff]   ;;  %v385_v17 = vsel %vm131_vm0, %v2223_v11, 0 }
   0x5   :  { %2074 = vmatprep.mubr.msk.bf16.mxu0 %vm131_vm0, %v2218_v6  ;;  %2082 = vmatprep.mubr.msk.bf16.mxu1 %vm131_vm0, %v2219_v7  ;;  %v2226_v18 = vld [vmem:[%s3075_s0 + $0x20] sm:$0xff]   ;;  %v2227_v19 = vld [vmem:[%s3075_s0 + $0x30] sm:$0xff]   ;;  %v301_v20 = vsel %vm131_vm0, %v2224_v14, 0  ;;  %v2230_v21 = vld [vmem:[%s3074_s1 + $0x48] sm:$0xff]   ;;  %v382_v22 = vsel %vm131_vm0, %v2225_v16, 0 }
   0x6   :  { %v2231_v23 = vld [vmem:[%s3074_s1 + $0x58] sm:$0xff]   ;;  %v2228_v24 = vld [vmem:[%s3075_s0 + $0x28] sm:$0xff]   ;;  %v466_v26 = vsel %vm131_vm0, %v2230_v21, 0  ;;  %v2232_v27 = vld [vmem:[%s3074_s1 + $0x40] sm:$0xff]  }
   0x7   :  { %v2229_v25 = vld [vmem:[%s3075_s0 + $0x38] sm:$0xff]   ;;  %v547_v28 = vsel %vm131_vm0, %v2231_v23, 0  ;;  %v2233_v29 = vld [vmem:[%s3074_s1 + $0x50] sm:$0xff]   ;;  %v2234_v30 = vld [vmem:[%s3075_s0 + $0x40] sm:$0xff]   ;;  %v463_v32 = vsel %vm131_vm0, %v2232_v27, 0 }
   0x8   :  { %v2235_v31 = vld [vmem:[%s3075_s0 + $0x50] sm:$0xff]   ;;  %v2238_v33 = vld [vmem:[%s3074_s1 + $0x68] sm:$0xff]   ;;  %v544_v34 = vsel %vm131_vm0, %v2233_v29, 0  ;;  %v2239_v35 = vld [vmem:[%s3074_s1 + $0x78] sm:$0xff]  }
   0x9   :  { %v2236_v36 = vld [vmem:[%s3075_s0 + $0x48] sm:$0xff]   ;;  %v2237_v37 = vld [vmem:[%s3075_s0 + $0x58] sm:$0xff]   ;;  %v628_v38 = vsel %vm131_vm0, %v2238_v33, 0  ;;  %v2240_v39 = vld [vmem:[%s3074_s1 + $0x60] sm:$0xff]   ;;  %v709_v40 = vsel %vm131_vm0, %v2239_v35, 0 }
   0xa   :  { %v2241_v41 = vld [vmem:[%s3074_s1 + $0x70] sm:$0xff]   ;;  %v2242_v42 = vld [vmem:[%s3075_s0 + $0x60] sm:$0xff]   ;;  %v625_v44 = vsel %vm131_vm0, %v2240_v39, 0  ;;  %v2243_v46 = vld [vmem:[%s3075_s0 + $0x68] sm:$0xff]  }
   0xb   :  { %2073 = vmatpush3.bf16.xpose.msra.mxu0 %v139_v8  ;;  %2081 = vmatpush3.bf16.xpose.msra.mxu1 %v220_v10  ;;  %v2244_v43 = vld [vmem:[%s3075_s0 + $0x70] sm:$0xff]   ;;  %v706_v45 = vsel %vm131_vm0, %v2241_v41, 0  ;;  %v2245_v47 = vld [vmem:[%s3075_s0 + $0x78] sm:$0xff]  }
   0xc   :  { %2202 = vmatprep.subr.msk.bf16.mxu0 %vm131_vm0, %v2222_v9  ;;  %2204 = vmatprep.subr.msk.bf16.mxu1 %vm131_vm0, %v2223_v11 }
  0x12   :  { %2075 = vmatmul.mubr.msk.bf16.vlgmr.msra.gmra.mxu0 %vm131_vm0, %v2220_v12  ;;  %2083 = vmatmul.mubr.msk.bf16.vlgmr.msra.gmra.mxu1 %vm131_vm0, %v2221_v13 }
  0x13   :  { %2087 = vmatpush3.bf16.xpose.msra.mxu0 %v304_v15  ;;  %2095 = vmatpush3.bf16.xpose.msra.mxu1 %v385_v17 }
  0x14   :  { %2203 = vmatprep.subr.msk.bf16.mxu0 %vm131_vm0, %v2224_v14  ;;  %2205 = vmatprep.subr.msk.bf16.mxu1 %vm131_vm0, %v2225_v16 }
  0x15   :  { %2090 = vmatprep.mubr.msk.bf16.mxu0 %vm131_vm0, %v2226_v18  ;;  %2098 = vmatprep.mubr.msk.bf16.mxu1 %vm131_vm0, %v2227_v19 }
  0x1b   :  { %2089 = vmatpush3.bf16.xpose.msra.mxu0 %v301_v20  ;;  %2097 = vmatpush3.bf16.xpose.msra.mxu1 %v382_v22 }
  0x1c   :  { %2206 = vmatprep.subr.msk.bf16.mxu0 %vm131_vm0, %v2230_v21  ;;  %2208 = vmatprep.subr.msk.bf16.mxu1 %vm131_vm0, %v2231_v23 }
  0x22   :  { %2091 = vmatmul.mubr.msk.bf16.vlgmr.msra.gmra.mxu0 %vm131_vm0, %v2228_v24  ;;  %2099 = vmatmul.mubr.msk.bf16.vlgmr.msra.gmra.mxu1 %vm131_vm0, %v2229_v25 }
  0x23   :  { %2103 = vmatpush3.bf16.xpose.msra.mxu0 %v466_v26  ;;  %2111 = vmatpush3.bf16.xpose.msra.mxu1 %v547_v28 }
  0x24   :  { %2207 = vmatprep.subr.msk.bf16.mxu0 %vm131_vm0, %v2232_v27  ;;  %2209 = vmatprep.subr.msk.bf16.mxu1 %vm131_vm0, %v2233_v29 }
  0x25   :  { %2106 = vmatprep.mubr.msk.bf16.mxu0 %vm131_vm0, %v2234_v30  ;;  %2114 = vmatprep.mubr.msk.bf16.mxu1 %vm131_vm0, %v2235_v31 }
  0x2b   :  { %2105 = vmatpush3.bf16.xpose.msra.mxu0 %v463_v32  ;;  %2113 = vmatpush3.bf16.xpose.msra.mxu1 %v544_v34 }
  0x2c   :  { %2210 = vmatprep.subr.msk.bf16.mxu0 %vm131_vm0, %v2238_v33  ;;  %2212 = vmatprep.subr.msk.bf16.mxu1 %vm131_vm0, %v2239_v35 }
  0x32   :  { %2107 = vmatmul.mubr.msk.bf16.vlgmr.msra.gmra.mxu0 %vm131_vm0, %v2236_v36  ;;  %2115 = vmatmul.mubr.msk.bf16.vlgmr.msra.gmra.mxu1 %vm131_vm0, %v2237_v37 }
  0x33   :  { %2119 = vmatpush3.bf16.xpose.msra.mxu0 %v628_v38  ;;  %2127 = vmatpush3.bf16.xpose.msra.mxu1 %v709_v40 }
  0x34   :  { %2211 = vmatprep.subr.msk.bf16.mxu0 %vm131_vm0, %v2240_v39  ;;  %2213 = vmatprep.subr.msk.bf16.mxu1 %vm131_vm0, %v2241_v41 }
  0x35   :  { %2122 = vmatprep.mubr.msk.bf16.mxu0 %vm131_vm0, %v2242_v42  ;;  %2130 = vmatprep.mubr.msk.bf16.mxu1 %vm131_vm0, %v2244_v43 }
  0x3b   :  { %2121 = vmatpush3.bf16.xpose.msra.mxu0 %v625_v44  ;;  %2129 = vmatpush3.bf16.xpose.msra.mxu1 %v706_v45 }
  0x42   :  { %2123 = vmatmul.mubr.msk.bf16.vlgmr.msra.gmra.mxu0 %vm131_vm0, %v2243_v46  ;;  %2131 = vmatmul.mubr.msk.bf16.vlgmr.msra.gmra.mxu1 %vm131_vm0, %v2245_v47 }
  0xd2   :  { %v2076_v48 = vpop.f32.mrf.mxu0  ;;  %v2084_v50 = vpop.f32.mrf.mxu1 }
  0xd3   :  { %v2554_v49 = vmul.f32 0.5, %v2076_v48  ;;  %v2556_v52 = vmul.f32 0.5, %v2084_v50 }
  0xd4   :  { %v178_v51 = vpop.f32.mrf.mxu0  ;;  %v259_v53 = vpop.f32.mrf.mxu1 }
  0xd5   :  { %v799_v54 = vsel %vm792_vm1, %v2554_v49, -inf  ;;  %v2560_v55 = vmul.f32 0.5, %v259_v53  ;;  %v2566_v59 = vmul.f32 0.5, %v178_v51  ;;  %v811_v61 = vsel %vm792_vm1, %v2556_v52, -inf }
  0xd6   :  { %800 = vmax.xlane.f32.xlu0 %v799_v54  ;;  %v2077_v56 = vpop.f32.mrf.mxu0  ;;  %v2085_v60 = vpop.f32.mrf.mxu1 }
  0xd7   :  { %v2562_v57 = vmul.f32 0.5, %v2077_v56  ;;  %v805_v58 = vsel %vm792_vm1, %v2560_v55, -inf  ;;  %v2570_v63 = vmul.f32 0.5, %v2085_v60  ;;  %v793_v3 = vsel %vm792_vm1, %v2566_v59, -inf }
  0xd8   :  { %806 = vmax.xlane.f32.xlu1 %v805_v58  ;;  %v181_v62 = vpop.f32.mrf.mxu0  ;;  %v262_v2 = vpop.f32.mrf.mxu1 }
  0xd9   :  { %v802_v0 = vsel %vm792_vm1, %v2562_v57, -inf  ;;  %v2574_v1 = vmul.f32 0.5, %v181_v62  ;;  %v2578_v4 = vmul.f32 0.5, %v262_v2  ;;  %v814_v5 = vsel %vm792_vm1, %v2570_v63, -inf }
  0xda   :  { %812 = vmax.xlane.f32.xlu0 %v811_v61 }
  0xdb   :  { %v796_v6 = vsel %vm792_vm1, %v2574_v1, -inf  ;;  %v808_v11 = vsel %vm792_vm1, %v2578_v4, -inf }
  0xdc   :  { %803 = vmax.xlane.f32.xlu1 %v802_v0 }
  0xde   :  { %794 = vmax.xlane.f32.xlu0 %v793_v3 }
  0xe0   :  { %815 = vmax.xlane.f32.xlu1 %v814_v5 }
  0xe2   :  { %797 = vmax.xlane.f32.xlu0 %v796_v6  ;;  %v2092_v7 = vpop.f32.mrf.mxu0  ;;  %v2100_v8 = vpop.f32.mrf.mxu1 }
  0xe3   :  { %v2584_v9 = vmul.f32 0.5, %v2092_v7  ;;  %v2586_v10 = vmul.f32 0.5, %v2100_v8 }
  0xe4   :  { %v340_v12 = vpop.f32.mrf.mxu0  ;;  %v421_v13 = vpop.f32.mrf.mxu1  ;;  %809 = vmax.xlane.f32.xlu1 %v808_v11 }
  0xe5   :  { %v823_v14 = vsel %vm792_vm1, %v2584_v9, -inf  ;;  %v835_v17 = vsel %vm792_vm1, %v2586_v10, -inf  ;;  %v2596_v19 = vmul.f32 0.5, %v340_v12  ;;  %v2602_v23 = vmul.f32 0.5, %v421_v13 }
  0xe6   :  { %824 = vmax.xlane.f32.xlu0 %v823_v14  ;;  %v2093_v15 = vpop.f32.mrf.mxu0  ;;  %v2101_v18 = vpop.f32.mrf.mxu1 }
  0xe7   :  { %v2592_v16 = vmul.f32 0.5, %v2093_v15  ;;  %v2598_v20 = vmul.f32 0.5, %v2101_v18  ;;  %v817_v25 = vsel %vm792_vm1, %v2596_v19, -inf  ;;  %v829_v29 = vsel %vm792_vm1, %v2602_v23, -inf }
  0xe8   :  { %v343_v22 = vpop.f32.mrf.mxu0  ;;  %v424_v27 = vpop.f32.mrf.mxu1 }
  0xe9   :  { %v826_v21 = vsel %vm792_vm1, %v2592_v16, -inf  ;;  %v2604_v24 = vmul.f32 0.5, %v343_v22  ;;  %v838_v26 = vsel %vm792_vm1, %v2598_v20, -inf  ;;  %v2610_v28 = vmul.f32 0.5, %v424_v27 }
  0xea   :  { %836 = vmax.xlane.f32.xlu0 %v835_v17  ;;  %827 = vmax.xlane.f32.xlu1 %v826_v21 }
  0xeb   :  { %v820_v30 = vsel %vm792_vm1, %v2604_v24, -inf  ;;  %v832_v37 = vsel %vm792_vm1, %v2610_v28, -inf }
  0xee   :  { %818 = vmax.xlane.f32.xlu0 %v817_v25  ;;  %839 = vmax.xlane.f32.xlu1 %v838_v26 }
  0xf2   :  { %830 = vmax.xlane.f32.xlu0 %v829_v29  ;;  %821 = vmax.xlane.f32.xlu1 %v820_v30  ;;  %v2108_v31 = vpop.f32.mrf.mxu0  ;;  %v2116_v32 = vpop.f32.mrf.mxu1 }
  0xf3   :  { %v2616_v33 = vmul.f32 0.5, %v2108_v31  ;;  %v2618_v34 = vmul.f32 0.5, %v2116_v32 }
  0xf4   :  { %v502_v35 = vpop.f32.mrf.mxu0  ;;  %v583_v36 = vpop.f32.mrf.mxu1 }
  0xf5   :  { %v847_v38 = vsel %vm792_vm1, %v2616_v33, -inf  ;;  %v859_v41 = vsel %vm792_vm1, %v2618_v34, -inf  ;;  %v2628_v43 = vmul.f32 0.5, %v502_v35  ;;  %v2634_v47 = vmul.f32 0.5, %v583_v36 }
  0xf6   :  { %833 = vmax.xlane.f32.xlu1 %v832_v37  ;;  %848 = vmax.xlane.f32.xlu0 %v847_v38  ;;  %v2109_v39 = vpop.f32.mrf.mxu0  ;;  %v2117_v42 = vpop.f32.mrf.mxu1 }
  0xf7   :  { %v2624_v40 = vmul.f32 0.5, %v2109_v39  ;;  %v2630_v44 = vmul.f32 0.5, %v2117_v42  ;;  %v841_v50 = vsel %vm792_vm1, %v2628_v43, -inf  ;;  %v853_v56 = vsel %vm792_vm1, %v2634_v47, -inf }
  0xf8   :  { %v505_v46 = vpop.f32.mrf.mxu0  ;;  %v586_v53 = vpop.f32.mrf.mxu1 }
  0xf9   :  { %v850_v45 = vsel %vm792_vm1, %v2624_v40, -inf  ;;  %v2636_v48 = vmul.f32 0.5, %v505_v46  ;;  %v862_v51 = vsel %vm792_vm1, %v2630_v44, -inf  ;;  %v2642_v54 = vmul.f32 0.5, %v586_v53 }
  0xfa   :  { %860 = vmax.xlane.f32.xlu0 %v859_v41  ;;  %851 = vmax.xlane.f32.xlu1 %v850_v45 }
  0xfb   :  { %v844_v58 = vsel %vm792_vm1, %v2636_v48, -inf  ;;  %v856_v5 = vsel %vm792_vm1, %v2642_v54, -inf }
  0xfe   :  { %842 = vmax.xlane.f32.xlu0 %v841_v50  ;;  %863 = vmax.xlane.f32.xlu1 %v862_v51 }
 0x102   :  { %854 = vmax.xlane.f32.xlu0 %v853_v56  ;;  %845 = vmax.xlane.f32.xlu1 %v844_v58  ;;  %v2124_v60 = vpop.f32.mrf.mxu0  ;;  %v2132_v62 = vpop.f32.mrf.mxu1 }
 0x103   :  { %v2648_v61 = vmul.f32 0.5, %v2124_v60  ;;  %v2668_v22 = vmul.f32 0.5, %v2132_v62 }
 0x104   :  { %v664_v0 = vpop.f32.mrf.mxu0  ;;  %v745_v3 = vpop.f32.mrf.mxu1 }
 0x105   :  { %v2650_v2 = vmul.f32 0.5, %v664_v0  ;;  %v871_v6 = vsel %vm792_vm1, %v2648_v61, -inf  ;;  %v2656_v8 = vmul.f32 0.5, %v745_v3  ;;  %v883_v29 = vsel %vm792_vm1, %v2668_v22, -inf }
 0x106   :  { %857 = vmax.xlane.f32.xlu1 %v856_v5  ;;  %872 = vmax.xlane.f32.xlu0 %v871_v6  ;;  %v2125_v7 = vpop.f32.mrf.mxu0  ;;  %v2133_v12 = vpop.f32.mrf.mxu1 }
 0x107   :  { %v2658_v11 = vmul.f32 0.5, %v2125_v7  ;;  %v865_v15 = vsel %vm792_vm1, %v2650_v2, -inf  ;;  %v877_v21 = vsel %vm792_vm1, %v2656_v8, -inf  ;;  %v2674_v27 = vmul.f32 0.5, %v2133_v12 }
 0x108   :  { %v667_v13 = vpop.f32.mrf.mxu0  ;;  %v748_v18 = vpop.f32.mrf.mxu1 }
 0x109   :  { %v2660_v14 = vmul.f32 0.5, %v667_v13  ;;  %v874_v17 = vsel %vm792_vm1, %v2658_v11, -inf  ;;  %v2670_v25 = vmul.f32 0.5, %v748_v18  ;;  %v886_v31 = vsel %vm792_vm1, %v2674_v27, -inf }
 0x10a   :  { %866 = vmax.xlane.f32.xlu0 %v865_v15  ;;  %875 = vmax.xlane.f32.xlu1 %v874_v17 }
 0x10b   :  { %v868_v26 = vsel %vm792_vm1, %v2660_v14, -inf  ;;  %v880_v30 = vsel %vm792_vm1, %v2670_v25, -inf }
 0x10e   :  { %878 = vmax.xlane.f32.xlu0 %v877_v21  ;;  %869 = vmax.xlane.f32.xlu1 %v868_v26 }
 0x112   :  { %884 = vmax.xlane.f32.xlu0 %v883_v29  ;;  %881 = vmax.xlane.f32.xlu1 %v880_v30 }
 0x116   :  { %887 = vmax.xlane.f32.xlu1 %v886_v31 }
 0x15f   :  { %v801_v32 = vpop.xlane.xlu0 %800 }
 0x160   :  { %v891_v35 = vsub.f32 %v2554_v49, %v801_v32 }
 0x161   :  { %v807_v37 = vpop.xlane.xlu1 %806 }
 0x162   :  { %v925_v36 = vmul.f32 1.442695, %v891_v35  ;;  %v893_v41 = vsub.f32 %v2560_v55, %v807_v37 }
 0x163   :  { %v813_v38 = vpop.xlane.xlu0 %812 }
 0x164   :  { %2262 = vpow2.f32 %v925_v36  ;;  %v895_v39 = vsub.f32 %v2556_v52, %v813_v38  ;;  %v929_v56 = vmul.f32 1.442695, %v893_v41 }
 0x165   :  { %v804_v45 = vpop.xlane.xlu1 %803 }
 0x166   :  { %v933_v42 = vmul.f32 1.442695, %v895_v39  ;;  %v892_v46 = vsub.f32 %v2562_v57, %v804_v45 }
 0x167   :  { %v795_v50 = vpop.xlane.xlu0 %794 }
 0x168   :  { %2264 = vpow2.f32 %v933_v42  ;;  %v889_v51 = vsub.f32 %v2566_v59, %v795_v50  ;;  %v927_v53 = vmul.f32 1.442695, %v892_v46 }
 0x169   :  { %v816_v49 = vpop.xlane.xlu1 %815 }
 0x16a   :  { %v921_v58 = vmul.f32 1.442695, %v889_v51  ;;  %2266 = vpow2.f32 %v927_v53  ;;  %v896_v60 = vsub.f32 %v2570_v63, %v816_v49 }
 0x16b   :  { %v798_v62 = vpop.xlane.xlu0 %797 }
 0x16c   :  { %2268 = vpow2.f32 %v921_v58  ;;  %v890_v52 = vsub.f32 %v2574_v1, %v798_v62  ;;  %v935_v55 = vmul.f32 1.442695, %v896_v60 }
 0x16d   :  { %2270 = vpow2.f32 %v929_v56  ;;  %v810_v3 = vpop.xlane.xlu1 %809 }
 0x16e   :  { %v923_v0 = vmul.f32 1.442695, %v890_v52  ;;  %2272 = vpow2.f32 %v935_v55  ;;  %v894_v57 = vsub.f32 %v2578_v4, %v810_v3 }
 0x16f   :  { %v825_v5 = vpop.xlane.xlu0 %824 }
 0x170   :  { %v899_v59 = vsub.f32 %v2584_v9, %v825_v5  ;;  %2274 = vpow2.f32 %v923_v0  ;;  %v931_v7 = vmul.f32 1.442695, %v894_v57 }
 0x171   :  { %v2691_v6 = vpop.eup %2262 }
 0x172   :  { %v941_v12 = vmul.f32 1.442695, %v899_v59  ;;  %v991_v63 = vsel %vm792_vm1, %v2691_v6, 0.0 }
 0x173   :  { %v837_v13 = vpop.xlane.xlu0 %836  ;;  %v828_v1 = vpop.xlane.xlu1 %827  ;;  %992 = vadd.xlane.f32.xlu0 %v991_v63 }
 0x174   :  { %2276 = vpow2.f32 %v941_v12  ;;  %v903_v15 = vsub.f32 %v2586_v10, %v837_v13  ;;  %v900_v17 = vsub.f32 %v2592_v16, %v828_v1 }
 0x175   :  { %v2697_v4 = vpop.eup %2264  ;;  %2278 = vpow2.f32 %v931_v7 }
 0x176   :  { %v949_v9 = vmul.f32 1.442695, %v903_v15  ;;  %v943_v18 = vmul.f32 1.442695, %v900_v17  ;;  %v1003_v21 = vsel %vm792_vm1, %v2697_v4, 0.0 }
 0x177   :  { %v819_v26 = vpop.xlane.xlu0 %818  ;;  %v840_v29 = vpop.xlane.xlu1 %839  ;;  %1004 = vadd.xlane.f32.xlu0 %v1003_v21 }
 0x178   :  { %v2701_v30 = vpop.eup %2266  ;;  %2280 = vpow2.f32 %v949_v9  ;;  %v897_v31 = vsub.f32 %v2596_v19, %v819_v26  ;;  %v904_v10 = vsub.f32 %v2598_v20, %v840_v29 }
 0x179   :  { %v2705_v32 = vpop.eup %2268  ;;  %2282 = vpow2.f32 %v943_v18  ;;  %v994_v16 = vsel %vm792_vm1, %v2701_v30, 0.0 }
 0x17a   :  { %v937_v35 = vmul.f32 1.442695, %v897_v31  ;;  %v951_v36 = vmul.f32 1.442695, %v904_v10  ;;  %995 = vadd.xlane.f32.xlu1 %v994_v16  ;;  %v985_v37 = vsel %vm792_vm1, %v2705_v32, 0.0  ;;  %v2711_v38 = vpop.eup %2270 }
 0x17b   :  { %v831_v39 = vpop.xlane.xlu0 %830  ;;  %v822_v41 = vpop.xlane.xlu1 %821  ;;  %986 = vadd.xlane.f32.xlu0 %v985_v37  ;;  %v997_v53 = vsel %vm792_vm1, %v2711_v38, 0.0 }
 0x17c   :  { %v2713_v19 = vpop.eup %2272  ;;  %2284 = vpow2.f32 %v937_v35  ;;  %v901_v20 = vsub.f32 %v2602_v23, %v831_v39  ;;  %v898_v42 = vsub.f32 %v2604_v24, %v822_v41 }
 0x17d   :  { %2286 = vpow2.f32 %v951_v36  ;;  %v1006_v45 = vsel %vm792_vm1, %v2713_v19, 0.0  ;;  %v2719_v46 = vpop.eup %2274 }
 0x17e   :  { %v945_v50 = vmul.f32 1.442695, %v901_v20  ;;  %v939_v51 = vmul.f32 1.442695, %v898_v42  ;;  %1007 = vadd.xlane.f32.xlu1 %v1006_v45  ;;  %v988_v60 = vsel %vm792_vm1, %v2719_v46, 0.0 }
 0x17f   :  { %v834_v56 = vpop.xlane.xlu1 %833  ;;  %v849_v58 = vpop.xlane.xlu0 %848  ;;  %998 = vadd.xlane.f32.xlu0 %v997_v53 }
 0x180   :  { %2288 = vpow2.f32 %v945_v50  ;;  %v902_v23 = vsub.f32 %v2610_v28, %v834_v56  ;;  %v907_v24 = vsub.f32 %v2616_v33, %v849_v58 }
 0x181   :  { %v2725_v49 = vpop.eup %2276  ;;  %2290 = vpow2.f32 %v939_v51 }
 0x182   :  { %v2729_v62 = vpop.eup %2278  ;;  %v947_v52 = vmul.f32 1.442695, %v902_v23  ;;  %v957_v55 = vmul.f32 1.442695, %v907_v24  ;;  %989 = vadd.xlane.f32.xlu1 %v988_v60  ;;  %v1015_v0 = vsel %vm792_vm1, %v2725_v49, 0.0 }
 0x183   :  { %v861_v3 = vpop.xlane.xlu0 %860  ;;  %v852_v57 = vpop.xlane.xlu1 %851  ;;  %1016 = vadd.xlane.f32.xlu0 %v1015_v0  ;;  %v1000_v59 = vsel %vm792_vm1, %v2729_v62, 0.0 }
 0x184   :  { %2292 = vpow2.f32 %v947_v52  ;;  %v911_v28 = vsub.f32 %v2618_v34, %v861_v3  ;;  %v908_v33 = vsub.f32 %v2624_v40, %v852_v57 }
 0x185   :  { %v2735_v5 = vpop.eup %2280  ;;  %2294 = vpow2.f32 %v957_v55  ;;  %v2246_v55 = vld [vmem:[%s3076_s2 + $0x8] sm:$0xff]  }
 0x186   :  { %v2739_v7 = vpop.eup %2282  ;;  %v965_v12 = vmul.f32 1.442695, %v911_v28  ;;  %v959_v63 = vmul.f32 1.442695, %v908_v33  ;;  %1001 = vadd.xlane.f32.xlu1 %v1000_v59  ;;  %v1027_v13 = vsel %vm792_vm1, %v2735_v5, 0.0  ;;  %2134 = vmatprep.subr.bf16.mxu0 %v2246_v55 }
 0x187   :  { %v843_v1 = vpop.xlane.xlu0 %842  ;;  %v864_v15 = vpop.xlane.xlu1 %863  ;;  %1028 = vadd.xlane.f32.xlu0 %v1027_v13  ;;  %v1018_v9 = vsel %vm792_vm1, %v2739_v7, 0.0  ;;  %2135 = vmatpush3.bf16.msra.mxu0 %v2246_v55  ;;  %v2247_v13 = vld [vmem:[%s3076_s2] sm:$0xff]  }
 0x188   :  { %2296 = vpow2.f32 %v965_v12  ;;  %v905_v34 = vsub.f32 %v2628_v43, %v843_v1  ;;  %v912_v40 = vsub.f32 %v2630_v44, %v864_v15  ;;  %v2248_v1 = vld [vmem:[%s3076_s2 + $0x18] sm:$0xff]   ;;  %2136 = vmatprep.subr.bf16.mxu0 %v2247_v13 }
 0x189   :  { %v2745_v17 = vpop.eup %2284  ;;  %2298 = vpow2.f32 %v959_v63  ;;  %2142 = vmatprep.subr.bf16.mxu1 %v2248_v1 }
 0x18a   :  { %v2749_v18 = vpop.eup %2286  ;;  %v953_v21 = vmul.f32 1.442695, %v905_v34  ;;  %v967_v26 = vmul.f32 1.442695, %v912_v40  ;;  %1019 = vadd.xlane.f32.xlu1 %v1018_v9  ;;  %v1009_v29 = vsel %vm792_vm1, %v2745_v17, 0.0  ;;  %2143 = vmatpush3.bf16.msra.mxu1 %v2248_v1 }
 0x18b   :  { %v855_v31 = vpop.xlane.xlu0 %854  ;;  %v846_v10 = vpop.xlane.xlu1 %845  ;;  %1010 = vadd.xlane.f32.xlu0 %v1009_v29  ;;  %v1030_v35 = vsel %vm792_vm1, %v2749_v18, 0.0  ;;  %2137 = vmatpush3.bf16.msra.mxu0 %v2247_v13 }
 0x18c   :  { %2300 = vpow2.f32 %v953_v21  ;;  %v909_v43 = vsub.f32 %v2634_v47, %v855_v31  ;;  %v906_v44 = vsub.f32 %v2636_v48, %v846_v10  ;;  %v2249_v10 = vld [vmem:[%s3076_s2 + $0x10] sm:$0xff]  }
 0x18d   :  { %v2755_v16 = vpop.eup %2288  ;;  %2302 = vpow2.f32 %v967_v26  ;;  %2144 = vmatprep.subr.bf16.mxu1 %v2249_v10 }
 0x18e   :  { %v2759_v36 = vpop.eup %2290  ;;  %v961_v37 = vmul.f32 1.442695, %v909_v43  ;;  %v955_v39 = vmul.f32 1.442695, %v906_v44  ;;  %1031 = vadd.xlane.f32.xlu1 %v1030_v35  ;;  %v1021_v41 = vsel %vm792_vm1, %v2755_v16, 0.0  ;;  %2145 = vmatpush3.bf16.msra.mxu1 %v2249_v10 }
 0x18f   :  { %v858_v20 = vpop.xlane.xlu1 %857  ;;  %v873_v42 = vpop.xlane.xlu0 %872  ;;  %1022 = vadd.xlane.f32.xlu0 %v1021_v41  ;;  %v1012_v50 = vsel %vm792_vm1, %v2759_v36, 0.0 }
 0x190   :  { %2304 = vpow2.f32 %v961_v37  ;;  %v910_v47 = vsub.f32 %v2642_v54, %v858_v20  ;;  %v915_v48 = vsub.f32 %v2648_v61, %v873_v42 }
 0x191   :  { %v2765_v45 = vpop.eup %2292  ;;  %2306 = vpow2.f32 %v955_v39 }
 0x192   :  { %v2769_v51 = vpop.eup %2294  ;;  %v963_v53 = vmul.f32 1.442695, %v910_v47  ;;  %v973_v56 = vmul.f32 1.442695, %v915_v48  ;;  %1013 = vadd.xlane.f32.xlu1 %v1012_v50  ;;  %v1024_v52 = vsel %vm792_vm1, %v2765_v45, 0.0 }
 0x193   :  { %v1039_v58 = vsel %vm792_vm1, %v2769_v51, 0.0  ;;  %v867_v23 = vpop.xlane.xlu0 %866  ;;  %v876_v24 = vpop.xlane.xlu1 %875 }
 0x194   :  { %2308 = vpow2.f32 %v963_v53  ;;  %1040 = vadd.xlane.f32.xlu0 %v1039_v58  ;;  %v913_v54 = vsub.f32 %v2650_v2, %v867_v23  ;;  %v916_v61 = vsub.f32 %v2658_v11, %v876_v24  ;;  %v2845_v24 = vld [vmem:[%s3076_s2 + $0x38] sm:$0xff]  }
 0x195   :  { %v2775_v60 = vpop.eup %2296  ;;  %2310 = vpow2.f32 %v973_v56  ;;  %2158 = vmatprep.subr.bf16.mxu1 %v2845_v24 }
 0x196   :  { %v2782_v0 = vpop.eup %2298  ;;  %v969_v3 = vmul.f32 1.442695, %v913_v54  ;;  %v975_v57 = vmul.f32 1.442695, %v916_v61  ;;  %1025 = vadd.xlane.f32.xlu1 %v1024_v52  ;;  %v1051_v2 = vsel %vm792_vm1, %v2775_v60, 0.0 }
 0x197   :  { %v879_v28 = vpop.xlane.xlu0 %878  ;;  %v870_v11 = vpop.xlane.xlu1 %869  ;;  %v1042_v63 = vsel %vm792_vm1, %v2782_v0, 0.0 }
 0x198   :  { %2312 = vpow2.f32 %v969_v3  ;;  %1052 = vadd.xlane.f32.xlu0 %v1051_v2  ;;  %v917_v33 = vsub.f32 %v2656_v8, %v879_v28  ;;  %v914_v59 = vsub.f32 %v2660_v14, %v870_v11 }
 0x199   :  { %v2788_v12 = vpop.eup %2300  ;;  %2314 = vpow2.f32 %v975_v57 }
 0x19a   :  { %v2798_v15 = vpop.eup %2302  ;;  %v977_v8 = vmul.f32 1.442695, %v917_v33  ;;  %v971_v34 = vmul.f32 1.442695, %v914_v59  ;;  %1043 = vadd.xlane.f32.xlu1 %v1042_v63  ;;  %v1033_v14 = vsel %vm792_vm1, %v2788_v12, 0.0 }
 0x19b   :  { %v885_v40 = vpop.xlane.xlu0 %884  ;;  %v882_v9 = vpop.xlane.xlu1 %881  ;;  %v1054_v31 = vsel %vm792_vm1, %v2798_v15, 0.0 }
 0x19c   :  { %2316 = vpow2.f32 %v977_v8  ;;  %1034 = vadd.xlane.f32.xlu0 %v1033_v14  ;;  %v919_v21 = vsub.f32 %v2668_v22, %v885_v40  ;;  %v918_v26 = vsub.f32 %v2670_v25, %v882_v9 }
 0x19d   :  { %v2804_v29 = vpop.eup %2304  ;;  %2318 = vpow2.f32 %v971_v34 }
 0x19e   :  { %v2811_v43 = vpop.eup %2306  ;;  %v981_v44 = vmul.f32 1.442695, %v919_v21  ;;  %v979_v35 = vmul.f32 1.442695, %v918_v26  ;;  %1055 = vadd.xlane.f32.xlu1 %v1054_v31  ;;  %v1045_v22 = vsel %vm792_vm1, %v2804_v29, 0.0 }
 0x19f   :  { %v888_v25 = vpop.xlane.xlu1 %887  ;;  %v1036_v37 = vsel %vm792_vm1, %v2811_v43, 0.0 }
 0x1a0   :  { %2320 = vpow2.f32 %v981_v44  ;;  %1046 = vadd.xlane.f32.xlu0 %v1045_v22  ;;  %v920_v39 = vsub.f32 %v2674_v27, %v888_v25  ;;  %v2831_v27 = vld [vmem:[%s3076_s2 + $0x28] sm:$0xff]  }
 0x1a1   :  { %v2818_v41 = vpop.eup %2308  ;;  %2322 = vpow2.f32 %v979_v35  ;;  %2150 = vmatprep.subr.bf16.mxu0 %v2831_v27 }
 0x1a2   :  { %v2820_v20 = vpop.eup %2310  ;;  %v983_v42 = vmul.f32 1.442695, %v920_v39  ;;  %1037 = vadd.xlane.f32.xlu1 %v1036_v37  ;;  %v1048_v50 = vsel %vm792_vm1, %v2818_v41, 0.0 }
 0x1a3   :  { %v1063_v47 = vsel %vm792_vm1, %v2820_v20, 0.0 }
 0x1a4   :  { %1064 = vadd.xlane.f32.xlu0 %v1063_v47  ;;  %2324 = vpow2.f32 %v983_v42 }
 0x1a5   :  { %v2824_v48 = vpop.eup %2312 }
 0x1a6   :  { %v2833_v53 = vpop.eup %2314  ;;  %1049 = vadd.xlane.f32.xlu1 %v1048_v50  ;;  %v1057_v56 = vsel %vm792_vm1, %v2824_v48, 0.0 }
 0x1a7   :  { %v1066_v23 = vsel %vm792_vm1, %v2833_v53, 0.0 }
 0x1a8   :  { %1058 = vadd.xlane.f32.xlu0 %v1057_v56 }
 0x1a9   :  { %v2838_v58 = vpop.eup %2316 }
 0x1aa   :  { %v2847_v54 = vpop.eup %2318  ;;  %1067 = vadd.xlane.f32.xlu1 %v1066_v23  ;;  %v1069_v61 = vsel %vm792_vm1, %v2838_v58, 0.0 }
 0x1ab   :  { %v1060_v55 = vsel %vm792_vm1, %v2847_v54, 0.0 }
 0x1ac   :  { %1070 = vadd.xlane.f32.xlu0 %v1069_v61 }
 0x1ad   :  { %v2852_v52 = vpop.eup %2320 }
 0x1ae   :  { %v2856_v3 = vpop.eup %2322  ;;  %1061 = vadd.xlane.f32.xlu1 %v1060_v55  ;;  %v1075_v57 = vsel %vm792_vm1, %v2852_v52, 0.0 }
 0x1af   :  { %v1072_v2 = vsel %vm792_vm1, %v2856_v3, 0.0 }
 0x1b0   :  { %1076 = vadd.xlane.f32.xlu0 %v1075_v57 }
 0x1b1   :  { %v2862_v28 = vpop.eup %2324 }
 0x1b2   :  { %1073 = vadd.xlane.f32.xlu1 %v1072_v2  ;;  %v1078_v11 = vsel %vm792_vm1, %v2862_v28, 0.0 }
 0x1b6   :  { %1079 = vadd.xlane.f32.xlu1 %v1078_v11 }
 0x1fc   :  { %v993_v33 = vpop.xlane.xlu0 %992 }
 0x200   :  { %v1005_v59 = vpop.xlane.xlu0 %1004 }
 0x203   :  { %v996_v63 = vpop.xlane.xlu1 %995 }
 0x204   :  { %v987_v13 = vpop.xlane.xlu0 %986  ;;  %2326 = vrcp.f32 %v996_v63 }
 0x205   :  { %2328 = vrcp.f32 %v987_v13 }
 0x206   :  { %2330 = vrcp.f32 %v993_v33 }
 0x207   :  { %v1008_v1 = vpop.xlane.xlu1 %1007 }
 0x208   :  { %v999_v8 = vpop.xlane.xlu0 %998 }
 0x20b   :  { %v990_v34 = vpop.xlane.xlu1 %989 }
 0x20c   :  { %2332 = vrcp.f32 %v990_v34  ;;  %v1017_v14 = vpop.xlane.xlu0 %1016 }
 0x20d   :  { %2334 = vrcp.f32 %v1008_v1  ;;  %v2253_v1 = vld [vmem:[%s3076_s2 + $0x30] sm:$0xff]  }
 0x20e   :  { %2336 = vrcp.f32 %v999_v8 }
 0x20f   :  { %2338 = vrcp.f32 %v1005_v59  ;;  %v1002_v40 = vpop.xlane.xlu1 %1001 }
 0x210   :  { %2340 = vrcp.f32 %v1002_v40  ;;  %v1029_v9 = vpop.xlane.xlu0 %1028 }
 0x211   :  { %v2327_v31 = vpop.eup %2326 }
 0x212   :  { %v2329_v10 = vpop.eup %2328  ;;  %v1116_v37 = vmul.f32 %v2327_v31, %v2701_v30 }
 0x213   :  { %v1020_v21 = vpop.xlane.xlu1 %1019  ;;  %v2331_v35 = vpop.eup %2330  ;;  %v1113_v42 = vmul.f32 %v2329_v10, %v2705_v32  ;;  %v2251_v32 = vld [vmem:[%s3076_s2 + $0x20] sm:$0xff]  }
 0x214   :  { %v1011_v26 = vpop.xlane.xlu0 %1010  ;;  %2342 = vrcp.f32 %v1020_v21  ;;  %v1115_v23 = vmul.f32 %v2331_v35, %v2691_v6 }
 0x215   :  { %2344 = vrcp.f32 %v1011_v26 }
 0x216   :  { %2346 = vrcp.f32 %v1017_v14  ;;  %v1146_v11 = vpack.c.bf16 %v1116_v37, %v1115_v23 }
 0x217   :  { %v1032_v44 = vpop.xlane.xlu1 %1031 }
 0x218   :  { %v1023_v22 = vpop.xlane.xlu0 %1022 }
 0x219   :  { %v2333_v25 = vpop.eup %2332 }
 0x21a   :  { %v2335_v39 = vpop.eup %2334  ;;  %v1114_v47 = vmul.f32 %v2333_v25, %v2719_v46 }
 0x21b   :  { %v2337_v50 = vpop.eup %2336  ;;  %v1014_v56 = vpop.xlane.xlu1 %1013  ;;  %v1120_v30 = vmul.f32 %v2335_v39, %v2713_v19 }
 0x21c   :  { %v2339_v61 = vpop.eup %2338  ;;  %2348 = vrcp.f32 %v1014_v56  ;;  %v1145_v55 = vpack.c.bf16 %v1114_v47, %v1113_v42  ;;  %v1117_v46 = vmul.f32 %v2337_v50, %v2711_v38  ;;  %v2254_v38 = vld [vmem:[%s3076_s2 + $0x48] sm:$0xff]  }
 0x21d   :  { %v2341_v57 = vpop.eup %2340  ;;  %2350 = vrcp.f32 %v1032_v44  ;;  %v1041_v2 = vpop.xlane.xlu0 %1040  ;;  %v1119_v59 = vmul.f32 %v2339_v61, %v2697_v4 }
 0x21e   :  { %2352 = vrcp.f32 %v1023_v22  ;;  %2138 = vmatprep.mubr.msk.bf16.mxu0 %vm792_vm1, %v1145_v55  ;;  %v1118_v6 = vmul.f32 %v2341_v57, %v2729_v62  ;;  %v2257_v55 = vld [vmem:[%s3076_s2 + $0x50] sm:$0xff]   ;;  %v2260_v57 = vld [vmem:[%s3076_s2 + $0x78] sm:$0xff]  }
 0x21f   :  { %2354 = vrcp.f32 %v1029_v9  ;;  %2139 = vmatmul.mubr.msk.bf16.vlgmr.msra.gmra.mxu0 %vm792_vm1, %v1146_v11  ;;  %v1026_v33 = vpop.xlane.xlu1 %1025  ;;  %v1148_v13 = vpack.c.bf16 %v1120_v30, %v1119_v59 }
 0x220   :  { %2356 = vrcp.f32 %v1026_v33  ;;  %v1147_v63 = vpack.c.bf16 %v1118_v6, %v1117_v46  ;;  %2151 = vmatpush3.bf16.msra.mxu0 %v2831_v27  ;;  %v2256_v27 = vld [vmem:[%s3076_s2 + $0x58] sm:$0xff]  }
 0x221   :  { %v1053_v19 = vpop.xlane.xlu0 %1052  ;;  %2152 = vmatprep.subr.bf16.mxu0 %v2251_v32  ;;  %v2343_v8 = vpop.eup %2342 }
 0x222   :  { %2146 = vmatprep.mubr.msk.bf16.mxu1 %vm792_vm1, %v1147_v63  ;;  %v2345_v34 = vpop.eup %2344  ;;  %v1124_v26 = vmul.f32 %v2343_v8, %v2739_v7 }
 0x223   :  { %2147 = vmatmul.mubr.msk.bf16.vlgmr.msra.gmra.mxu1 %vm792_vm1, %v1148_v13  ;;  %v1044_v4 = vpop.xlane.xlu1 %1043  ;;  %v2347_v40 = vpop.eup %2346 }
 0x224   :  { %2153 = vmatpush3.bf16.msra.mxu0 %v2251_v32  ;;  %2159 = vmatpush3.bf16.msra.mxu1 %v2845_v24  ;;  %2358 = vrcp.f32 %v1044_v4  ;;  %v1121_v24 = vmul.f32 %v2345_v34, %v2745_v17  ;;  %v1123_v22 = vmul.f32 %v2347_v40, %v2725_v49  ;;  %v2255_v17 = vld [vmem:[%s3076_s2 + $0x40] sm:$0xff]  }
 0x225   :  { %v1035_v62 = vpop.xlane.xlu0 %1034  ;;  %2160 = vmatprep.subr.bf16.mxu1 %v2253_v1  ;;  %2166 = vmatprep.subr.bf16.mxu0 %v2254_v38 }
 0x226   :  { %2360 = vrcp.f32 %v1035_v62  ;;  %v1150_v47 = vpack.c.bf16 %v1124_v26, %v1123_v22 }
 0x227   :  { %v1056_v14 = vpop.xlane.xlu1 %1055  ;;  %2362 = vrcp.f32 %v1041_v2 }
 0x228   :  { %2161 = vmatpush3.bf16.msra.mxu1 %v2253_v1 }
 0x229   :  { %v2349_v9 = vpop.eup %2348  ;;  %v1047_v21 = vpop.xlane.xlu0 %1046  ;;  %2174 = vmatprep.subr.bf16.mxu1 %v2256_v27 }
 0x22a   :  { %v2351_v31 = vpop.eup %2350  ;;  %v1122_v10 = vmul.f32 %v2349_v9, %v2759_v36  ;;  %v2261_v9 = vld [vmem:[%s3076_s2 + $0x70] sm:$0xff]  }
 0x22b   :  { %v2353_v44 = vpop.eup %2352  ;;  %v1038_v35 = vpop.xlane.xlu1 %1037  ;;  %v1128_v7 = vmul.f32 %v2351_v31, %v2749_v18 }
 0x22c   :  { %v2355_v25 = vpop.eup %2354  ;;  %2364 = vrcp.f32 %v1038_v35  ;;  %v1149_v37 = vpack.c.bf16 %v1122_v10, %v1121_v24  ;;  %v1125_v36 = vmul.f32 %v2353_v44, %v2755_v16  ;;  %v2258_v16 = vld [vmem:[%s3076_s2 + $0x68] sm:$0xff]  }
 0x22d   :  { %v2357_v39 = vpop.eup %2356  ;;  %2366 = vrcp.f32 %v1056_v14  ;;  %v1065_v42 = vpop.xlane.xlu0 %1064  ;;  %v1127_v56 = vmul.f32 %v2355_v25, %v2735_v5 }
 0x22e   :  { %2368 = vrcp.f32 %v1047_v21  ;;  %2154 = vmatprep.mubr.msk.bf16.mxu0 %vm792_vm1, %v1149_v37  ;;  %v1126_v49 = vmul.f32 %v2357_v39, %v2765_v45 }
 0x22f   :  { %2370 = vrcp.f32 %v1053_v19  ;;  %2155 = vmatmul.mubr.msk.bf16.vlgmr.msra.gmra.mxu0 %vm792_vm1, %v1150_v47  ;;  %v1050_v50 = vpop.xlane.xlu1 %1049  ;;  %v1152_v61 = vpack.c.bf16 %v1128_v7, %v1127_v56 }
 0x230   :  { %2372 = vrcp.f32 %v1050_v50  ;;  %v1151_v23 = vpack.c.bf16 %v1126_v49, %v1125_v36  ;;  %2167 = vmatpush3.bf16.msra.mxu0 %v2254_v38 }
 0x231   :  { %v1059_v18 = vpop.xlane.xlu0 %1058  ;;  %2168 = vmatprep.subr.bf16.mxu0 %v2255_v17  ;;  %v2359_v2 = vpop.eup %2358 }
 0x232   :  { %2162 = vmatprep.mubr.msk.bf16.mxu1 %vm792_vm1, %v1151_v23  ;;  %v1132_v6 = vmul.f32 %v2359_v2, %v2782_v0  ;;  %v2259_v0 = vld [vmem:[%s3076_s2 + $0x60] sm:$0xff]  }
 0x233   :  { %2163 = vmatmul.mubr.msk.bf16.vlgmr.msra.gmra.mxu1 %vm792_vm1, %v1152_v61  ;;  %v1068_v45 = vpop.xlane.xlu1 %1067  ;;  %v2361_v11 = vpop.eup %2360 }
 0x234   :  { %2169 = vmatpush3.bf16.msra.mxu0 %v2255_v17  ;;  %2175 = vmatpush3.bf16.msra.mxu1 %v2256_v27  ;;  %2374 = vrcp.f32 %v1068_v45  ;;  %v2363_v32 = vpop.eup %2362  ;;  %v1129_v59 = vmul.f32 %v2361_v11, %v2788_v12 }
 0x235   :  { %v1071_v5 = vpop.xlane.xlu0 %1070  ;;  %2176 = vmatprep.subr.bf16.mxu1 %v2257_v55  ;;  %2182 = vmatprep.subr.bf16.mxu0 %v2258_v16  ;;  %2376 = vrcp.f32 %v1059_v18  ;;  %v1131_v38 = vmul.f32 %v2363_v32, %v2769_v51 }
 0x236   :  { %2378 = vrcp.f32 %v1065_v42 }
 0x237   :  { %v1062_v30 = vpop.xlane.xlu1 %1061  ;;  %v1154_v8 = vpack.c.bf16 %v1132_v6, %v1131_v38 }
 0x238   :  { %2380 = vrcp.f32 %v1062_v30  ;;  %2177 = vmatpush3.bf16.msra.mxu1 %v2257_v55 }
 0x239   :  { %v2365_v46 = vpop.eup %2364  ;;  %2190 = vmatprep.subr.bf16.mxu1 %v2260_v57  ;;  %2382 = vrcp.f32 %v1071_v5  ;;  %v1077_v13 = vpop.xlane.xlu0 %1076 }
 0x23a   :  { %v2367_v33 = vpop.eup %2366  ;;  %v1130_v63 = vmul.f32 %v2365_v46, %v2811_v43 }
 0x23b   :  { %v2369_v19 = vpop.eup %2368  ;;  %v1074_v1 = vpop.xlane.xlu1 %1073  ;;  %v1136_v34 = vmul.f32 %v2367_v33, %v2798_v15 }
 0x23c   :  { %v2371_v4 = vpop.eup %2370  ;;  %2384 = vrcp.f32 %v1074_v1  ;;  %v1153_v62 = vpack.c.bf16 %v1130_v63, %v1129_v59  ;;  %v1133_v12 = vmul.f32 %v2369_v19, %v2804_v29 }
 0x23d   :  { %v2373_v27 = vpop.eup %2372  ;;  %2386 = vrcp.f32 %v1077_v13  ;;  %v1135_v14 = vmul.f32 %v2371_v4, %v2775_v60 }
 0x23e   :  { %2170 = vmatprep.mubr.msk.bf16.mxu0 %vm792_vm1, %v1153_v62  ;;  %v1134_v43 = vmul.f32 %v2373_v27, %v2818_v41 }
 0x23f   :  { %2171 = vmatmul.mubr.msk.bf16.vlgmr.msra.gmra.mxu0 %vm792_vm1, %v1154_v8  ;;  %v1080_v51 = vpop.xlane.xlu1 %1079  ;;  %v1156_v15 = vpack.c.bf16 %v1136_v34, %v1135_v14 }
 0x240   :  { %2388 = vrcp.f32 %v1080_v51  ;;  %v1155_v40 = vpack.c.bf16 %v1134_v43, %v1133_v12  ;;  %2183 = vmatpush3.bf16.msra.mxu0 %v2258_v16 }
 0x241   :  { %2184 = vmatprep.subr.bf16.mxu0 %v2259_v0  ;;  %v2375_v21 = vpop.eup %2374 }
 0x242   :  { %2178 = vmatprep.mubr.msk.bf16.mxu1 %vm792_vm1, %v1155_v40  ;;  %v2377_v29 = vpop.eup %2376  ;;  %v1140_v60 = vmul.f32 %v2375_v21, %v2833_v53 }
 0x243   :  { %2179 = vmatmul.mubr.msk.bf16.vlgmr.msra.gmra.mxu1 %vm792_vm1, %v1156_v15  ;;  %v2379_v41 = vpop.eup %2378  ;;  %v1137_v31 = vmul.f32 %v2377_v29, %v2824_v48 }
 0x244   :  { %2185 = vmatpush3.bf16.msra.mxu0 %v2259_v0  ;;  %2191 = vmatpush3.bf16.msra.mxu1 %v2260_v57  ;;  %v1139_v44 = vmul.f32 %v2379_v41, %v2820_v20 }
 0x245   :  { %v2381_v26 = vpop.eup %2380  ;;  %2192 = vmatprep.subr.bf16.mxu1 %v2261_v9 }
 0x246   :  { %v1138_v24 = vmul.f32 %v2381_v26, %v2847_v54  ;;  %v2383_v10 = vpop.eup %2382  ;;  %v1158_v25 = vpack.c.bf16 %v1140_v60, %v1139_v44 }
 0x247   :  { %v1141_v37 = vmul.f32 %v2383_v10, %v2838_v58 }
 0x248   :  { %v1157_v35 = vpack.c.bf16 %v1138_v24, %v1137_v31  ;;  %2193 = vmatpush3.bf16.msra.mxu1 %v2261_v9 }
 0x249   :  { %v2385_v22 = vpop.eup %2384 }
 0x24a   :  { %2186 = vmatprep.mubr.msk.bf16.mxu0 %vm792_vm1, %v1157_v35  ;;  %v1142_v39 = vmul.f32 %v2385_v22, %v2856_v3  ;;  %v2387_v42 = vpop.eup %2386 }
 0x24b   :  { %2187 = vmatmul.mubr.msk.bf16.vlgmr.msra.gmra.mxu0 %vm792_vm1, %v1158_v25  ;;  %v1143_v54 = vmul.f32 %v2387_v42, %v2852_v52 }
 0x24c   :  { %v1159_v53 = vpack.c.bf16 %v1142_v39, %v1141_v37 }
 0x24d   :  { %v2389_v48 = vpop.eup %2388 }
 0x24e   :  { %v1144_v47 = vmul.f32 %v2389_v48, %v2862_v28  ;;  %2194 = vmatprep.mubr.msk.bf16.mxu1 %vm792_vm1, %v1159_v53 }
 0x250   :  { %v1160_v20 = vpack.c.bf16 %v1144_v47, %v1143_v54 }
 0x252   :  { %2195 = vmatmul.mubr.msk.bf16.vlgmr.msra.gmra.mxu1 %vm792_vm1, %v1160_v20 }
 0x2df   :  { %v2140_v7 = vpop.f32.mrf.mxu0 }
 0x2e0   :  { %v1976_v17 = vpack.c.bf16 %v2140_v7, %v2140_v7 }
 0x2e1   :  { %v1213_v58 = vpop.f32.mrf.mxu0 }
 0x2e2   :  { %1828 = vst.msk [vmem:[%s3077_s3 + $0x8] sm:$0xf] %vm1825_vm2, %v1976_v17  ;;  %v1974_v3 = vpack.c.bf16 %v1213_v58, %v1213_v58 }
 0x2e3   :  { %v2141_v36 = vpop.f32.mrf.mxu0  ;;  %v2148_v49 = vpop.f32.mrf.mxu1 }
 0x2e4   :  { %1826 = vst.msk [vmem:[%s3077_s3] sm:$0xf] %vm1825_vm2, %v1974_v3  ;;  %v1977_v52 = vpack.c.bf16 %v2141_v36, %v2141_v36  ;;  %v1980_v28 = vpack.c.bf16 %v2148_v49, %v2148_v49 }
 0x2e5   :  { %v1216_v50 = vpop.f32.mrf.mxu0  ;;  %v1280_v56 = vpop.f32.mrf.mxu1 }
 0x2e6   :  { %1829 = vst.msk [vmem:[%s3077_s3 + $0xc] sm:$0xf] %vm1825_vm2, %v1977_v52  ;;  %1832 = vst.msk [vmem:[%s3077_s3 + $0x18] sm:$0xf] %vm1825_vm2, %v1980_v28  ;;  %v1975_v23 = vpack.c.bf16 %v1216_v50, %v1216_v50  ;;  %v1978_v18 = vpack.c.bf16 %v1280_v56, %v1280_v56 }
 0x2e7   :  { %v2149_v61 = vpop.f32.mrf.mxu1 }
 0x2e8   :  { %1827 = vst.msk [vmem:[%s3077_s3 + $0x4] sm:$0xf] %vm1825_vm2, %v1975_v23  ;;  %1830 = vst.msk [vmem:[%s3077_s3 + $0x10] sm:$0xf] %vm1825_vm2, %v1978_v18  ;;  %v1981_v55 = vpack.c.bf16 %v2149_v61, %v2149_v61 }
 0x2e9   :  { %v1283_v16 = vpop.f32.mrf.mxu1 }
 0x2ea   :  { %1833 = vst.msk [vmem:[%s3077_s3 + $0x1c] sm:$0xf] %vm1825_vm2, %v1981_v55  ;;  %v1979_v45 = vpack.c.bf16 %v1283_v16, %v1283_v16 }
 0x2ec   :  { %1831 = vst.msk [vmem:[%s3077_s3 + $0x14] sm:$0xf] %vm1825_vm2, %v1979_v45 }
 0x2ef   :  { %v2156_v5 = vpop.f32.mrf.mxu0 }
 0x2f0   :  { %v1984_v57 = vpack.c.bf16 %v2156_v5, %v2156_v5 }
 0x2f1   :  { %v1347_v2 = vpop.f32.mrf.mxu0 }
 0x2f2   :  { %1836 = vst.msk [vmem:[%s3077_s3 + $0x28] sm:$0xf] %vm1825_vm2, %v1984_v57  ;;  %v1982_v11 = vpack.c.bf16 %v1347_v2, %v1347_v2 }
 0x2f3   :  { %v2157_v30 = vpop.f32.mrf.mxu0  ;;  %v2164_v32 = vpop.f32.mrf.mxu1 }
 0x2f4   :  { %1834 = vst.msk [vmem:[%s3077_s3 + $0x20] sm:$0xf] %vm1825_vm2, %v1982_v11  ;;  %v1985_v46 = vpack.c.bf16 %v2157_v30, %v2157_v30  ;;  %v1988_v6 = vpack.c.bf16 %v2164_v32, %v2164_v32 }
 0x2f5   :  { %v1350_v33 = vpop.f32.mrf.mxu0  ;;  %v1414_v59 = vpop.f32.mrf.mxu1 }
 0x2f6   :  { %1837 = vst.msk [vmem:[%s3077_s3 + $0x2c] sm:$0xf] %vm1825_vm2, %v1985_v46  ;;  %1840 = vst.msk [vmem:[%s3077_s3 + $0x38] sm:$0xf] %vm1825_vm2, %v1988_v6  ;;  %v1983_v63 = vpack.c.bf16 %v1350_v33, %v1350_v33  ;;  %v1986_v19 = vpack.c.bf16 %v1414_v59, %v1414_v59 }
 0x2f7   :  { %v2165_v13 = vpop.f32.mrf.mxu1 }
 0x2f8   :  { %1835 = vst.msk [vmem:[%s3077_s3 + $0x24] sm:$0xf] %vm1825_vm2, %v1983_v63  ;;  %1838 = vst.msk [vmem:[%s3077_s3 + $0x30] sm:$0xf] %vm1825_vm2, %v1986_v19  ;;  %v1989_v1 = vpack.c.bf16 %v2165_v13, %v2165_v13 }
 0x2f9   :  { %v1417_v38 = vpop.f32.mrf.mxu1 }
 0x2fa   :  { %1841 = vst.msk [vmem:[%s3077_s3 + $0x3c] sm:$0xf] %vm1825_vm2, %v1989_v1  ;;  %v1987_v4 = vpack.c.bf16 %v1417_v38, %v1417_v38 }
 0x2fc   :  { %1839 = vst.msk [vmem:[%s3077_s3 + $0x34] sm:$0xf] %vm1825_vm2, %v1987_v4 }
 0x2ff   :  { %v2172_v62 = vpop.f32.mrf.mxu0 }
 0x300   :  { %v1992_v27 = vpack.c.bf16 %v2172_v62, %v2172_v62 }
 0x301   :  { %v1481_v8 = vpop.f32.mrf.mxu0 }
 0x302   :  { %1844 = vst.msk [vmem:[%s3077_s3 + $0x48] sm:$0xf] %vm1825_vm2, %v1992_v27  ;;  %v1990_v34 = vpack.c.bf16 %v1481_v8, %v1481_v8 }
 0x303   :  { %v2173_v0 = vpop.f32.mrf.mxu0  ;;  %v2180_v12 = vpop.f32.mrf.mxu1 }
 0x304   :  { %1842 = vst.msk [vmem:[%s3077_s3 + $0x40] sm:$0xf] %vm1825_vm2, %v1990_v34  ;;  %v1993_v43 = vpack.c.bf16 %v2173_v0, %v2173_v0  ;;  %v1996_v51 = vpack.c.bf16 %v2180_v12, %v2180_v12 }
 0x305   :  { %v1484_v14 = vpop.f32.mrf.mxu0  ;;  %v1548_v40 = vpop.f32.mrf.mxu1 }
 0x306   :  { %1845 = vst.msk [vmem:[%s3077_s3 + $0x4c] sm:$0xf] %vm1825_vm2, %v1993_v43  ;;  %1848 = vst.msk [vmem:[%s3077_s3 + $0x58] sm:$0xf] %vm1825_vm2, %v1996_v51  ;;  %v1991_v15 = vpack.c.bf16 %v1484_v14, %v1484_v14  ;;  %v1994_v9 = vpack.c.bf16 %v1548_v40, %v1548_v40 }
 0x307   :  { %v2181_v21 = vpop.f32.mrf.mxu1 }
 0x308   :  { %1843 = vst.msk [vmem:[%s3077_s3 + $0x44] sm:$0xf] %vm1825_vm2, %v1991_v15  ;;  %1846 = vst.msk [vmem:[%s3077_s3 + $0x50] sm:$0xf] %vm1825_vm2, %v1994_v9  ;;  %v1997_v29 = vpack.c.bf16 %v2181_v21, %v2181_v21 }
 0x309   :  { %v1551_v41 = vpop.f32.mrf.mxu1 }
 0x30a   :  { %1849 = vst.msk [vmem:[%s3077_s3 + $0x5c] sm:$0xf] %vm1825_vm2, %v1997_v29  ;;  %v1995_v26 = vpack.c.bf16 %v1551_v41, %v1551_v41 }
 0x30b   :  { %v2188_v60 = vpop.f32.mrf.mxu0 }
 0x30c   :  { %1847 = vst.msk [vmem:[%s3077_s3 + $0x54] sm:$0xf] %vm1825_vm2, %v1995_v26  ;;  %v2000_v31 = vpack.c.bf16 %v2188_v60, %v2188_v60 }
 0x30d   :  { %v1615_v24 = vpop.f32.mrf.mxu0 }
 0x30e   :  { %1852 = vst.msk [vmem:[%s3077_s3 + $0x68] sm:$0xf] %vm1825_vm2, %v2000_v31  ;;  %v1998_v10 = vpack.c.bf16 %v1615_v24, %v1615_v24 }
 0x30f   :  { %v2189_v44 = vpop.f32.mrf.mxu0 }
 0x310   :  { %1850 = vst.msk [vmem:[%s3077_s3 + $0x60] sm:$0xf] %vm1825_vm2, %v1998_v10  ;;  %v2001_v35 = vpack.c.bf16 %v2189_v44, %v2189_v44 }
 0x311   :  { %v1618_v22 = vpop.f32.mrf.mxu0 }
 0x312   :  { %1853 = vst.msk [vmem:[%s3077_s3 + $0x6c] sm:$0xf] %vm1825_vm2, %v2001_v35  ;;  %v1999_v25 = vpack.c.bf16 %v1618_v22, %v1618_v22  ;;  %v2196_v37 = vpop.f32.mrf.mxu1 }
 0x313   :  { %v2004_v39 = vpack.c.bf16 %v2196_v37, %v2196_v37 }
 0x314   :  { %1851 = vst.msk [vmem:[%s3077_s3 + $0x64] sm:$0xf] %vm1825_vm2, %v1999_v25  ;;  %v1682_v42 = vpop.f32.mrf.mxu1 }
 0x315   :  { %1856 = vst.msk [vmem:[%s3077_s3 + $0x78] sm:$0xf] %vm1825_vm2, %v2004_v39  ;;  %v2002_v53 = vpack.c.bf16 %v1682_v42, %v1682_v42 }
 0x316   :  { %v2197_v48 = vpop.f32.mrf.mxu1 }
 0x317   :  { %1854 = vst.msk [vmem:[%s3077_s3 + $0x70] sm:$0xf] %vm1825_vm2, %v2002_v53  ;;  %v2005_v54 = vpack.c.bf16 %v2197_v48, %v2197_v48 }
 0x318   :  { %v1685_v47 = vpop.f32.mrf.mxu1 }
 0x319   :  { %1857 = vst.msk [vmem:[%s3077_s3 + $0x7c] sm:$0xf] %vm1825_vm2, %v2005_v54  ;;  %v2003_v20 = vpack.c.bf16 %v1685_v47, %v1685_v47 }
 0x31b   :  { %1855 = vst.msk [vmem:[%s3077_s3 + $0x74] sm:$0xf] %vm1825_vm2, %v2003_v20 }

// kernel: cdsa_forward_pallas.9
= control target key start
LH: loop header
LB: loop body
LE: loop exit
PB: predicated region body
PF: predicated region fallthrough
CT: control target
= control target key end

     0   :  { %vm111_vm0 = vcmask 31744   ;;  %v4249_v0 = vmov 0.0   ;;  %vm4250_vm1 = vmmov 0   ;;  %vm1616_vm2 = vcmask 64512   ;;  %s5342_s1 = inlined_call_operand.vmem [shape: bf16[32,8,4], index: 1, kind: input, shape index: {}]   ;;  %s5343_s0 = inlined_call_operand.vmem [shape: bf16[32,8,4], index: 0, kind: input, shape index: {}]   ;;  %s5344_s2 = inlined_call_operand.vmem [shape: bf16[32,8,32], index: 2, kind: input, shape index: {}]   ;;  %s5345_s3 = inlined_call_operand.vmem [shape: bf16[32,8,32], index: 3, kind: output, shape index: {}]  }
   0x1   :  { %3735 = vmatprep.subr.bf16.mxu0 %v4249_v0  ;;  %3741 = vmatprep.subr.bf16.mxu1 %v4249_v0  ;;  %v47_v1 = vld [vmem:[%s5342_s1] sm:$0xf]  ;;  %v48_v2 = vld [vmem:[%s5342_s1 + $0x4] sm:$0xf]  ;;  %v49_v5 = vld [vmem:[%s5342_s1 + $0x8] sm:$0xf] }
   0x2   :  { %v116_v3 = vsel %vm111_vm0, %v47_v1, 0  ;;  %v162_v4 = vsel %vm111_vm0, %v48_v2, 0  ;;  %3737 = vmatprep.mubr.msk.bf16.mxu0 %vm4250_vm1, %v4249_v0  ;;  %3743 = vmatprep.mubr.msk.bf16.mxu1 %vm4250_vm1, %v4249_v0  ;;  %v50_v6 = vld [vmem:[%s5342_s1 + $0xc] sm:$0xf]  ;;  %v15_v7 = vld [vmem:[%s5343_s0] sm:$0xf] }
   0x3   :  { %3736 = vmatpush3.bf16.xpose.msra.mxu0 %v116_v3  ;;  %3742 = vmatpush3.bf16.xpose.msra.mxu1 %v162_v4  ;;  %v16_v8 = vld [vmem:[%s5343_s0 + $0x4] sm:$0xf]  ;;  %v208_v9 = vsel %vm111_vm0, %v49_v5, 0  ;;  %v254_v10 = vsel %vm111_vm0, %v50_v6, 0  ;;  %v51_v11 = vld [vmem:[%s5342_s1 + $0x10] sm:$0xf] }
   0x4   :  { %3747 = vmatprep.subr.bf16.mxu0 %v4249_v0  ;;  %3753 = vmatprep.subr.bf16.mxu1 %v4249_v0  ;;  %v52_v12 = vld [vmem:[%s5342_s1 + $0x14] sm:$0xf]  ;;  %v17_v13 = vld [vmem:[%s5343_s0 + $0x8] sm:$0xf]  ;;  %v18_v14 = vld [vmem:[%s5343_s0 + $0xc] sm:$0xf] }
   0x5   :  { %v300_v15 = vsel %vm111_vm0, %v51_v11, 0  ;;  %v346_v16 = vsel %vm111_vm0, %v52_v12, 0  ;;  %v53_v17 = vld [vmem:[%s5342_s1 + $0x18] sm:$0xf]  ;;  %v54_v18 = vld [vmem:[%s5342_s1 + $0x1c] sm:$0xf] }
   0x6   :  { %v19_v19 = vld [vmem:[%s5343_s0 + $0x10] sm:$0xf]  ;;  %v20_v20 = vld [vmem:[%s5343_s0 + $0x14] sm:$0xf]  ;;  %v392_v21 = vsel %vm111_vm0, %v53_v17, 0  ;;  %v438_v22 = vsel %vm111_vm0, %v54_v18, 0 }
   0x7   :  { %v55_v23 = vld [vmem:[%s5342_s1 + $0x20] sm:$0xf]  ;;  %v56_v24 = vld [vmem:[%s5342_s1 + $0x24] sm:$0xf]  ;;  %v21_v25 = vld [vmem:[%s5343_s0 + $0x18] sm:$0xf] }
   0x8   :  { %v22_v26 = vld [vmem:[%s5343_s0 + $0x1c] sm:$0xf]  ;;  %v484_v27 = vsel %vm111_vm0, %v55_v23, 0  ;;  %v530_v28 = vsel %vm111_vm0, %v56_v24, 0  ;;  %v57_v29 = vld [vmem:[%s5342_s1 + $0x28] sm:$0xf] }
   0x9   :  { %v58_v30 = vld [vmem:[%s5342_s1 + $0x2c] sm:$0xf]  ;;  %v23_v31 = vld [vmem:[%s5343_s0 + $0x20] sm:$0xf]  ;;  %v24_v32 = vld [vmem:[%s5343_s0 + $0x24] sm:$0xf] }
   0xa   :  { %3738 = vmatmul.mubr.msk.bf16.vlgmr.msra.gmra.mxu0 %vm111_vm0, %v15_v7  ;;  %3744 = vmatmul.mubr.msk.bf16.vlgmr.msra.gmra.mxu1 %vm111_vm0, %v16_v8  ;;  %v576_v33 = vsel %vm111_vm0, %v57_v29, 0  ;;  %v622_v34 = vsel %vm111_vm0, %v58_v30, 0  ;;  %v59_v35 = vld [vmem:[%s5342_s1 + $0x30] sm:$0xf]  ;;  %v60_v36 = vld [vmem:[%s5342_s1 + $0x34] sm:$0xf] }
   0xb   :  { %3748 = vmatpush3.bf16.xpose.msra.mxu0 %v208_v9  ;;  %3754 = vmatpush3.bf16.xpose.msra.mxu1 %v254_v10  ;;  %v25_v37 = vld [vmem:[%s5343_s0 + $0x28] sm:$0xf]  ;;  %v26_v38 = vld [vmem:[%s5343_s0 + $0x2c] sm:$0xf]  ;;  %v668_v39 = vsel %vm111_vm0, %v59_v35, 0  ;;  %v714_v40 = vsel %vm111_vm0, %v60_v36, 0 }
   0xc   :  { %3749 = vmatprep.mubr.msk.bf16.mxu0 %vm4250_vm1, %v4249_v0  ;;  %3755 = vmatprep.mubr.msk.bf16.mxu1 %vm4250_vm1, %v4249_v0  ;;  %v61_v41 = vld [vmem:[%s5342_s1 + $0x38] sm:$0xf]  ;;  %v62_v42 = vld [vmem:[%s5342_s1 + $0x3c] sm:$0xf]  ;;  %v27_v43 = vld [vmem:[%s5343_s0 + $0x30] sm:$0xf] }
   0xd   :  { %3759 = vmatprep.subr.bf16.mxu0 %v4249_v0  ;;  %3765 = vmatprep.subr.bf16.mxu1 %v4249_v0  ;;  %v28_v44 = vld [vmem:[%s5343_s0 + $0x34] sm:$0xf]  ;;  %v760_v45 = vsel %vm111_vm0, %v61_v41, 0  ;;  %v806_v46 = vsel %vm111_vm0, %v62_v42, 0  ;;  %v63_v47 = vld [vmem:[%s5342_s1 + $0x40] sm:$0xf] }
   0xe   :  { %v64_v48 = vld [vmem:[%s5342_s1 + $0x44] sm:$0xf]  ;;  %v29_v49 = vld [vmem:[%s5343_s0 + $0x38] sm:$0xf]  ;;  %v30_v50 = vld [vmem:[%s5343_s0 + $0x3c] sm:$0xf] }
   0xf   :  { %v852_v51 = vsel %vm111_vm0, %v63_v47, 0  ;;  %v898_v52 = vsel %vm111_vm0, %v64_v48, 0  ;;  %v65_v53 = vld [vmem:[%s5342_s1 + $0x48] sm:$0xf]  ;;  %v66_v54 = vld [vmem:[%s5342_s1 + $0x4c] sm:$0xf] }
  0x10   :  { %v31_v55 = vld [vmem:[%s5343_s0 + $0x40] sm:$0xf]  ;;  %v32_v56 = vld [vmem:[%s5343_s0 + $0x44] sm:$0xf]  ;;  %v944_v57 = vsel %vm111_vm0, %v65_v53, 0  ;;  %v990_v58 = vsel %vm111_vm0, %v66_v54, 0 }
  0x11   :  { %v67_v59 = vld [vmem:[%s5342_s1 + $0x50] sm:$0xf]  ;;  %v68_v60 = vld [vmem:[%s5342_s1 + $0x54] sm:$0xf]  ;;  %v33_v61 = vld [vmem:[%s5343_s0 + $0x48] sm:$0xf] }
  0x12   :  { %3750 = vmatmul.mubr.msk.bf16.vlgmr.msra.gmra.mxu0 %vm111_vm0, %v17_v13  ;;  %3756 = vmatmul.mubr.msk.bf16.vlgmr.msra.gmra.mxu1 %vm111_vm0, %v18_v14  ;;  %v34_v62 = vld [vmem:[%s5343_s0 + $0x4c] sm:$0xf]  ;;  %v1036_v63 = vsel %vm111_vm0, %v67_v59, 0  ;;  %v1082_v1 = vsel %vm111_vm0, %v68_v60, 0  ;;  %v69_v2 = vld [vmem:[%s5342_s1 + $0x58] sm:$0xf] }
  0x13   :  { %3760 = vmatpush3.bf16.xpose.msra.mxu0 %v300_v15  ;;  %3766 = vmatpush3.bf16.xpose.msra.mxu1 %v346_v16  ;;  %v70_v3 = vld [vmem:[%s5342_s1 + $0x5c] sm:$0xf]  ;;  %v35_v4 = vld [vmem:[%s5343_s0 + $0x50] sm:$0xf]  ;;  %v36_v5 = vld [vmem:[%s5343_s0 + $0x54] sm:$0xf] }
  0x14   :  { %3761 = vmatprep.mubr.msk.bf16.mxu0 %vm4250_vm1, %v4249_v0  ;;  %3767 = vmatprep.mubr.msk.bf16.mxu1 %vm4250_vm1, %v4249_v0  ;;  %v1128_v6 = vsel %vm111_vm0, %v69_v2, 0  ;;  %v1174_v7 = vsel %vm111_vm0, %v70_v3, 0  ;;  %v71_v8 = vld [vmem:[%s5342_s1 + $0x60] sm:$0xf]  ;;  %v72_v9 = vld [vmem:[%s5342_s1 + $0x64] sm:$0xf] }
  0x15   :  { %3771 = vmatprep.subr.bf16.mxu0 %v4249_v0  ;;  %3777 = vmatprep.subr.bf16.mxu1 %v4249_v0  ;;  %v37_v10 = vld [vmem:[%s5343_s0 + $0x58] sm:$0xf]  ;;  %v38_v11 = vld [vmem:[%s5343_s0 + $0x5c] sm:$0xf]  ;;  %v1220_v12 = vsel %vm111_vm0, %v71_v8, 0  ;;  %v1266_v13 = vsel %vm111_vm0, %v72_v9, 0 }
  0x16   :  { %v73_v14 = vld [vmem:[%s5342_s1 + $0x68] sm:$0xf]  ;;  %v74_v15 = vld [vmem:[%s5342_s1 + $0x6c] sm:$0xf]  ;;  %v39_v16 = vld [vmem:[%s5343_s0 + $0x60] sm:$0xf] }
  0x17   :  { %v40_v17 = vld [vmem:[%s5343_s0 + $0x64] sm:$0xf]  ;;  %v1312_v18 = vsel %vm111_vm0, %v73_v14, 0  ;;  %v42_v23 = vld [vmem:[%s5343_s0 + $0x6c] sm:$0xf]  ;;  %vm2004_vm3 = vcmask 1043456  }
  0x18   :  { %v44_v29 = vld [vmem:[%s5343_s0 + $0x74] sm:$0xf]  ;;  %vm3506_vm4 = vcmask 257024  }
  0x1a   :  { %3762 = vmatmul.mubr.msk.bf16.vlgmr.msra.gmra.mxu0 %vm111_vm0, %v19_v19  ;;  %3768 = vmatmul.mubr.msk.bf16.vlgmr.msra.gmra.mxu1 %vm111_vm0, %v20_v20  ;;  %v1358_v19 = vsel %vm111_vm0, %v74_v15, 0  ;;  %v75_v20 = vld [vmem:[%s5342_s1 + $0x70] sm:$0xf] }
  0x1b   :  { %3772 = vmatpush3.bf16.xpose.msra.mxu0 %v392_v21  ;;  %3778 = vmatpush3.bf16.xpose.msra.mxu1 %v438_v22  ;;  %v76_v21 = vld [vmem:[%s5342_s1 + $0x74] sm:$0xf]  ;;  %v41_v22 = vld [vmem:[%s5343_s0 + $0x68] sm:$0xf]  ;;  %v1404_v24 = vsel %vm111_vm0, %v75_v20, 0 }
  0x1c   :  { %3773 = vmatprep.mubr.msk.bf16.mxu0 %vm4250_vm1, %v4249_v0  ;;  %3779 = vmatprep.mubr.msk.bf16.mxu1 %vm4250_vm1, %v4249_v0 }
  0x1d   :  { %3783 = vmatprep.subr.bf16.mxu0 %v4249_v0  ;;  %3789 = vmatprep.subr.bf16.mxu1 %v4249_v0 }
  0x22   :  { %3774 = vmatmul.mubr.msk.bf16.vlgmr.msra.gmra.mxu0 %vm111_vm0, %v21_v25  ;;  %3780 = vmatmul.mubr.msk.bf16.vlgmr.msra.gmra.mxu1 %vm111_vm0, %v22_v26  ;;  %v1450_v25 = vsel %vm111_vm0, %v76_v21, 0  ;;  %v77_v26 = vld [vmem:[%s5342_s1 + $0x78] sm:$0xf] }
  0x23   :  { %3784 = vmatpush3.bf16.xpose.msra.mxu0 %v484_v27  ;;  %3790 = vmatpush3.bf16.xpose.msra.mxu1 %v530_v28  ;;  %v78_v27 = vld [vmem:[%s5342_s1 + $0x7c] sm:$0xf]  ;;  %v43_v28 = vld [vmem:[%s5343_s0 + $0x70] sm:$0xf]  ;;  %v1496_v30 = vsel %vm111_vm0, %v77_v26, 0 }
  0x24   :  { %3785 = vmatprep.mubr.msk.bf16.mxu0 %vm4250_vm1, %v4249_v0  ;;  %3791 = vmatprep.mubr.msk.bf16.mxu1 %vm4250_vm1, %v4249_v0 }
  0x25   :  { %3795 = vmatprep.subr.bf16.mxu0 %v4249_v0  ;;  %3801 = vmatprep.subr.bf16.mxu1 %v4249_v0 }
  0x2a   :  { %3786 = vmatmul.mubr.msk.bf16.vlgmr.msra.gmra.mxu0 %vm111_vm0, %v23_v31  ;;  %3792 = vmatmul.mubr.msk.bf16.vlgmr.msra.gmra.mxu1 %vm111_vm0, %v24_v32  ;;  %v1542_v31 = vsel %vm111_vm0, %v78_v27, 0  ;;  %v45_v32 = vld [vmem:[%s5343_s0 + $0x78] sm:$0xf] }
  0x2b   :  { %3796 = vmatpush3.bf16.xpose.msra.mxu0 %v576_v33  ;;  %3802 = vmatpush3.bf16.xpose.msra.mxu1 %v622_v34  ;;  %v46_v33 = vld [vmem:[%s5343_s0 + $0x7c] sm:$0xf] }
  0x2c   :  { %3797 = vmatprep.mubr.msk.bf16.mxu0 %vm4250_vm1, %v4249_v0  ;;  %3803 = vmatprep.mubr.msk.bf16.mxu1 %vm4250_vm1, %v4249_v0 }
  0x2d   :  { %3807 = vmatprep.subr.bf16.mxu0 %v4249_v0  ;;  %3813 = vmatprep.subr.bf16.mxu1 %v4249_v0 }
  0x32   :  { %3798 = vmatmul.mubr.msk.bf16.vlgmr.msra.gmra.mxu0 %vm111_vm0, %v25_v37  ;;  %3804 = vmatmul.mubr.msk.bf16.vlgmr.msra.gmra.mxu1 %vm111_vm0, %v26_v38 }
  0x33   :  { %3808 = vmatpush3.bf16.xpose.msra.mxu0 %v668_v39  ;;  %3814 = vmatpush3.bf16.xpose.msra.mxu1 %v714_v40 }
  0x34   :  { %3809 = vmatprep.mubr.msk.bf16.mxu0 %vm4250_vm1, %v4249_v0  ;;  %3815 = vmatprep.mubr.msk.bf16.mxu1 %vm4250_vm1, %v4249_v0 }
  0x35   :  { %3819 = vmatprep.subr.bf16.mxu0 %v4249_v0  ;;  %3825 = vmatprep.subr.bf16.mxu1 %v4249_v0 }
  0x3a   :  { %3810 = vmatmul.mubr.msk.bf16.vlgmr.msra.gmra.mxu0 %vm111_vm0, %v27_v43  ;;  %3816 = vmatmul.mubr.msk.bf16.vlgmr.msra.gmra.mxu1 %vm111_vm0, %v28_v44 }
  0x3b   :  { %3820 = vmatpush3.bf16.xpose.msra.mxu0 %v760_v45  ;;  %3826 = vmatpush3.bf16.xpose.msra.mxu1 %v806_v46 }
  0x3c   :  { %3821 = vmatprep.mubr.msk.bf16.mxu0 %vm4250_vm1, %v4249_v0  ;;  %3827 = vmatprep.mubr.msk.bf16.mxu1 %vm4250_vm1, %v4249_v0 }
  0x3d   :  { %3831 = vmatprep.subr.bf16.mxu0 %v4249_v0  ;;  %3837 = vmatprep.subr.bf16.mxu1 %v4249_v0 }
  0x42   :  { %3822 = vmatmul.mubr.msk.bf16.vlgmr.msra.gmra.mxu0 %vm111_vm0, %v29_v49  ;;  %3828 = vmatmul.mubr.msk.bf16.vlgmr.msra.gmra.mxu1 %vm111_vm0, %v30_v50 }
  0x43   :  { %3832 = vmatpush3.bf16.xpose.msra.mxu0 %v852_v51  ;;  %3838 = vmatpush3.bf16.xpose.msra.mxu1 %v898_v52 }
  0x44   :  { %3833 = vmatprep.mubr.msk.bf16.mxu0 %vm4250_vm1, %v4249_v0  ;;  %3839 = vmatprep.mubr.msk.bf16.mxu1 %vm4250_vm1, %v4249_v0 }
  0x45   :  { %3843 = vmatprep.subr.bf16.mxu0 %v4249_v0  ;;  %3849 = vmatprep.subr.bf16.mxu1 %v4249_v0 }
  0x4a   :  { %3834 = vmatmul.mubr.msk.bf16.vlgmr.msra.gmra.mxu0 %vm111_vm0, %v31_v55  ;;  %3840 = vmatmul.mubr.msk.bf16.vlgmr.msra.gmra.mxu1 %vm111_vm0, %v32_v56 }
  0x4b   :  { %3844 = vmatpush3.bf16.xpose.msra.mxu0 %v944_v57  ;;  %3850 = vmatpush3.bf16.xpose.msra.mxu1 %v990_v58 }
  0x4c   :  { %3845 = vmatprep.mubr.msk.bf16.mxu0 %vm4250_vm1, %v4249_v0  ;;  %3851 = vmatprep.mubr.msk.bf16.mxu1 %vm4250_vm1, %v4249_v0 }
  0x4d   :  { %3855 = vmatprep.subr.bf16.mxu0 %v4249_v0  ;;  %3861 = vmatprep.subr.bf16.mxu1 %v4249_v0 }
  0x52   :  { %3846 = vmatmul.mubr.msk.bf16.vlgmr.msra.gmra.mxu0 %vm111_vm0, %v33_v61  ;;  %3852 = vmatmul.mubr.msk.bf16.vlgmr.msra.gmra.mxu1 %vm111_vm0, %v34_v62 }
  0x53   :  { %3856 = vmatpush3.bf16.xpose.msra.mxu0 %v1036_v63  ;;  %3862 = vmatpush3.bf16.xpose.msra.mxu1 %v1082_v1 }
  0x54   :  { %3857 = vmatprep.mubr.msk.bf16.mxu0 %vm4250_vm1, %v4249_v0  ;;  %3863 = vmatprep.mubr.msk.bf16.mxu1 %vm4250_vm1, %v4249_v0 }
  0x55   :  { %3867 = vmatprep.subr.bf16.mxu0 %v4249_v0  ;;  %3873 = vmatprep.subr.bf16.mxu1 %v4249_v0 }
  0x5a   :  { %3858 = vmatmul.mubr.msk.bf16.vlgmr.msra.gmra.mxu0 %vm111_vm0, %v35_v4  ;;  %3864 = vmatmul.mubr.msk.bf16.vlgmr.msra.gmra.mxu1 %vm111_vm0, %v36_v5 }
  0x5b   :  { %3868 = vmatpush3.bf16.xpose.msra.mxu0 %v1128_v6  ;;  %3874 = vmatpush3.bf16.xpose.msra.mxu1 %v1174_v7 }
  0x5c   :  { %3869 = vmatprep.mubr.msk.bf16.mxu0 %vm4250_vm1, %v4249_v0  ;;  %3875 = vmatprep.mubr.msk.bf16.mxu1 %vm4250_vm1, %v4249_v0 }
  0x5d   :  { %3879 = vmatprep.subr.bf16.mxu0 %v4249_v0  ;;  %3885 = vmatprep.subr.bf16.mxu1 %v4249_v0 }
  0x62   :  { %3870 = vmatmul.mubr.msk.bf16.vlgmr.msra.gmra.mxu0 %vm111_vm0, %v37_v10  ;;  %3876 = vmatmul.mubr.msk.bf16.vlgmr.msra.gmra.mxu1 %vm111_vm0, %v38_v11 }
  0x63   :  { %3880 = vmatpush3.bf16.xpose.msra.mxu0 %v1220_v12  ;;  %3886 = vmatpush3.bf16.xpose.msra.mxu1 %v1266_v13 }
  0x64   :  { %3881 = vmatprep.mubr.msk.bf16.mxu0 %vm4250_vm1, %v4249_v0  ;;  %3887 = vmatprep.mubr.msk.bf16.mxu1 %vm4250_vm1, %v4249_v0 }
  0x65   :  { %3891 = vmatprep.subr.bf16.mxu0 %v4249_v0  ;;  %3897 = vmatprep.subr.bf16.mxu1 %v4249_v0 }
  0x6a   :  { %3882 = vmatmul.mubr.msk.bf16.vlgmr.msra.gmra.mxu0 %vm111_vm0, %v39_v16  ;;  %3888 = vmatmul.mubr.msk.bf16.vlgmr.msra.gmra.mxu1 %vm111_vm0, %v40_v17 }
  0x6b   :  { %3892 = vmatpush3.bf16.xpose.msra.mxu0 %v1312_v18  ;;  %3898 = vmatpush3.bf16.xpose.msra.mxu1 %v1358_v19 }
  0x6c   :  { %3893 = vmatprep.mubr.msk.bf16.mxu0 %vm4250_vm1, %v4249_v0  ;;  %3899 = vmatprep.mubr.msk.bf16.mxu1 %vm4250_vm1, %v4249_v0 }
  0x6d   :  { %3903 = vmatprep.subr.bf16.mxu0 %v4249_v0  ;;  %3909 = vmatprep.subr.bf16.mxu1 %v4249_v0 }
  0x72   :  { %3894 = vmatmul.mubr.msk.bf16.vlgmr.msra.gmra.mxu0 %vm111_vm0, %v41_v22  ;;  %3900 = vmatmul.mubr.msk.bf16.vlgmr.msra.gmra.mxu1 %vm111_vm0, %v42_v23 }
  0x73   :  { %3904 = vmatpush3.bf16.xpose.msra.mxu0 %v1404_v24  ;;  %3910 = vmatpush3.bf16.xpose.msra.mxu1 %v1450_v25 }
  0x74   :  { %3905 = vmatprep.mubr.msk.bf16.mxu0 %vm4250_vm1, %v4249_v0  ;;  %3911 = vmatprep.mubr.msk.bf16.mxu1 %vm4250_vm1, %v4249_v0 }
  0x75   :  { %3915 = vmatprep.subr.bf16.mxu0 %v4249_v0  ;;  %3921 = vmatprep.subr.bf16.mxu1 %v4249_v0 }
  0x7a   :  { %3906 = vmatmul.mubr.msk.bf16.vlgmr.msra.gmra.mxu0 %vm111_vm0, %v43_v28  ;;  %3912 = vmatmul.mubr.msk.bf16.vlgmr.msra.gmra.mxu1 %vm111_vm0, %v44_v29 }
  0x7b   :  { %3916 = vmatpush3.bf16.xpose.msra.mxu0 %v1496_v30  ;;  %3922 = vmatpush3.bf16.xpose.msra.mxu1 %v1542_v31 }
  0x7c   :  { %3917 = vmatprep.mubr.msk.bf16.mxu0 %vm4250_vm1, %v4249_v0  ;;  %3923 = vmatprep.mubr.msk.bf16.mxu1 %vm4250_vm1, %v4249_v0 }
  0x7d   :  { %3927 = vmatprep.subr.bf16.mxu0 %v4249_v0  ;;  %3933 = vmatprep.subr.bf16.mxu1 %v4249_v0 }
  0x82   :  { %3918 = vmatmul.mubr.msk.bf16.vlgmr.msra.gmra.mxu0 %vm111_vm0, %v45_v32  ;;  %3924 = vmatmul.mubr.msk.bf16.vlgmr.msra.gmra.mxu1 %vm111_vm0, %v46_v33 }
  0x83   :  { %3929 = vmatprep.mubr.msk.bf16.mxu0 %vm4250_vm1, %v4249_v0  ;;  %3935 = vmatprep.mubr.msk.bf16.mxu1 %vm4250_vm1, %v4249_v0 }
  0xca   :  { %v152_v34 = vpop.f32.mrf.mxu0  ;;  %v198_v35 = vpop.f32.mrf.mxu1 }
  0xcb   :  { %v4629_v36 = vmul.f32 0.5, %v152_v34  ;;  %v4631_v37 = vmul.f32 0.5, %v198_v35 }
  0xcc   :  { %v3739_v38 = vpop.f32.mrf.mxu0  ;;  %v3745_v39 = vpop.f32.mrf.mxu1 }
  0xcd   :  { %v1617_v40 = vsel %vm1616_vm2, %v4629_v36, -inf  ;;  %v1620_v43 = vsel %vm1616_vm2, %v4631_v37, -inf }
  0xce   :  { %v201_v41 = vpop.f32.mrf.mxu1  ;;  %1618 = vmax.xlane.f32.xlu0 %v1617_v40  ;;  %v155_v42 = vpop.f32.mrf.mxu0 }
  0xd0   :  { %v3740_v44 = vpop.f32.mrf.mxu0  ;;  %v3746_v45 = vpop.f32.mrf.mxu1 }
  0xd2   :  { %v290_v46 = vpop.f32.mrf.mxu1  ;;  %1621 = vmax.xlane.f32.xlu0 %v1620_v43  ;;  %v244_v47 = vpop.f32.mrf.mxu0 }
  0xd3   :  { %v4637_v48 = vmul.f32 0.5, %v290_v46  ;;  %v4639_v49 = vmul.f32 0.5, %v244_v47 }
  0xd4   :  { %v3751_v50 = vpop.f32.mrf.mxu0  ;;  %v3757_v51 = vpop.f32.mrf.mxu1 }
  0xd5   :  { %v1623_v52 = vsel %vm1616_vm2, %v4639_v49, -inf  ;;  %v1626_v55 = vsel %vm1616_vm2, %v4637_v48, -inf }
  0xd6   :  { %v293_v53 = vpop.f32.mrf.mxu1  ;;  %1624 = vmax.xlane.f32.xlu1 %v1623_v52  ;;  %v247_v54 = vpop.f32.mrf.mxu0 }
  0xd8   :  { %v3752_v56 = vpop.f32.mrf.mxu0  ;;  %v3758_v57 = vpop.f32.mrf.mxu1 }
  0xda   :  { %v382_v58 = vpop.f32.mrf.mxu1  ;;  %1627 = vmax.xlane.f32.xlu1 %v1626_v55  ;;  %v336_v59 = vpop.f32.mrf.mxu0 }
  0xdb   :  { %v4645_v60 = vmul.f32 0.5, %v382_v58  ;;  %v4647_v61 = vmul.f32 0.5, %v336_v59 }
  0xdc   :  { %v3763_v62 = vpop.f32.mrf.mxu0  ;;  %v3769_v63 = vpop.f32.mrf.mxu1 }
  0xdd   :  { %v1632_v1 = vsel %vm1616_vm2, %v4645_v60, -inf  ;;  %v1629_v2 = vsel %vm1616_vm2, %v4647_v61, -inf }
  0xde   :  { %v385_v3 = vpop.f32.mrf.mxu1  ;;  %1633 = vmax.xlane.f32.xlu1 %v1632_v1  ;;  %1630 = vmax.xlane.f32.xlu0 %v1629_v2  ;;  %v339_v4 = vpop.f32.mrf.mxu0 }
  0xe0   :  { %v3764_v5 = vpop.f32.mrf.mxu0  ;;  %v3770_v6 = vpop.f32.mrf.mxu1 }
  0xe2   :  { %v428_v7 = vpop.f32.mrf.mxu0  ;;  %v474_v8 = vpop.f32.mrf.mxu1 }
  0xe3   :  { %v4653_v9 = vmul.f32 0.5, %v428_v7  ;;  %v4655_v10 = vmul.f32 0.5, %v474_v8 }
  0xe4   :  { %v3775_v11 = vpop.f32.mrf.mxu0  ;;  %v3781_v12 = vpop.f32.mrf.mxu1 }
  0xe5   :  { %v1638_v13 = vsel %vm1616_vm2, %v4655_v10, -inf  ;;  %v1635_v14 = vsel %vm1616_vm2, %v4653_v9, -inf }
  0xe6   :  { %v477_v15 = vpop.f32.mrf.mxu1  ;;  %1639 = vmax.xlane.f32.xlu1 %v1638_v13  ;;  %1636 = vmax.xlane.f32.xlu0 %v1635_v14  ;;  %v431_v16 = vpop.f32.mrf.mxu0 }
  0xe8   :  { %v3776_v17 = vpop.f32.mrf.mxu0  ;;  %v3782_v18 = vpop.f32.mrf.mxu1 }
  0xea   :  { %v520_v19 = vpop.f32.mrf.mxu0  ;;  %v566_v20 = vpop.f32.mrf.mxu1 }
  0xeb   :  { %v4661_v21 = vmul.f32 0.5, %v520_v19  ;;  %v4663_v22 = vmul.f32 0.5, %v566_v20 }
  0xec   :  { %v3787_v23 = vpop.f32.mrf.mxu0  ;;  %v3793_v24 = vpop.f32.mrf.mxu1 }
  0xed   :  { %v1644_v25 = vsel %vm1616_vm2, %v4663_v22, -inf  ;;  %v1641_v26 = vsel %vm1616_vm2, %v4661_v21, -inf }
  0xee   :  { %v569_v27 = vpop.f32.mrf.mxu1  ;;  %1645 = vmax.xlane.f32.xlu1 %v1644_v25  ;;  %1642 = vmax.xlane.f32.xlu0 %v1641_v26  ;;  %v523_v28 = vpop.f32.mrf.mxu0 }
  0xf0   :  { %v3788_v29 = vpop.f32.mrf.mxu0  ;;  %v3794_v30 = vpop.f32.mrf.mxu1 }
  0xf2   :  { %v612_v31 = vpop.f32.mrf.mxu0  ;;  %v658_v32 = vpop.f32.mrf.mxu1 }
  0xf3   :  { %v4669_v33 = vmul.f32 0.5, %v612_v31  ;;  %v4671_v34 = vmul.f32 0.5, %v658_v32 }
  0xf4   :  { %v3799_v35 = vpop.f32.mrf.mxu0  ;;  %v3805_v38 = vpop.f32.mrf.mxu1 }
  0xf5   :  { %v1650_v39 = vsel %vm1616_vm2, %v4671_v34, -inf  ;;  %v1647_v40 = vsel %vm1616_vm2, %v4669_v33, -inf }
  0xf6   :  { %v661_v41 = vpop.f32.mrf.mxu1  ;;  %1651 = vmax.xlane.f32.xlu1 %v1650_v39  ;;  %1648 = vmax.xlane.f32.xlu0 %v1647_v40  ;;  %v615_v42 = vpop.f32.mrf.mxu0 }
  0xf8   :  { %v3800_v43 = vpop.f32.mrf.mxu0  ;;  %v3806_v44 = vpop.f32.mrf.mxu1 }
  0xfa   :  { %v704_v45 = vpop.f32.mrf.mxu0  ;;  %v750_v46 = vpop.f32.mrf.mxu1 }
  0xfb   :  { %v4677_v47 = vmul.f32 0.5, %v704_v45  ;;  %v4679_v50 = vmul.f32 0.5, %v750_v46 }
  0xfc   :  { %v3811_v51 = vpop.f32.mrf.mxu0  ;;  %v3817_v52 = vpop.f32.mrf.mxu1 }
  0xfd   :  { %v1656_v53 = vsel %vm1616_vm2, %v4679_v50, -inf  ;;  %v1653_v54 = vsel %vm1616_vm2, %v4677_v47, -inf }
  0xfe   :  { %v753_v55 = vpop.f32.mrf.mxu1  ;;  %1657 = vmax.xlane.f32.xlu1 %v1656_v53  ;;  %1654 = vmax.xlane.f32.xlu0 %v1653_v54  ;;  %v707_v56 = vpop.f32.mrf.mxu0 }
 0x100   :  { %v3812_v57 = vpop.f32.mrf.mxu0  ;;  %v3818_v58 = vpop.f32.mrf.mxu1 }
 0x102   :  { %v796_v59 = vpop.f32.mrf.mxu0  ;;  %v842_v62 = vpop.f32.mrf.mxu1 }
 0x103   :  { %v4685_v63 = vmul.f32 0.5, %v796_v59  ;;  %v4687_v1 = vmul.f32 0.5, %v842_v62 }
 0x104   :  { %v3823_v2 = vpop.f32.mrf.mxu0  ;;  %v3829_v3 = vpop.f32.mrf.mxu1 }
 0x105   :  { %v1662_v4 = vsel %vm1616_vm2, %v4687_v1, -inf  ;;  %v1659_v5 = vsel %vm1616_vm2, %v4685_v63, -inf }
 0x106   :  { %v845_v6 = vpop.f32.mrf.mxu1  ;;  %1663 = vmax.xlane.f32.xlu1 %v1662_v4  ;;  %1660 = vmax.xlane.f32.xlu0 %v1659_v5  ;;  %v799_v7 = vpop.f32.mrf.mxu0 }
 0x108   :  { %v3824_v8 = vpop.f32.mrf.mxu0  ;;  %v3830_v11 = vpop.f32.mrf.mxu1 }
 0x10a   :  { %v888_v12 = vpop.f32.mrf.mxu0  ;;  %v934_v13 = vpop.f32.mrf.mxu1 }
 0x10b   :  { %v4693_v14 = vmul.f32 0.5, %v888_v12  ;;  %v4695_v15 = vmul.f32 0.5, %v934_v13 }
 0x10c   :  { %v3835_v16 = vpop.f32.mrf.mxu0  ;;  %v3841_v17 = vpop.f32.mrf.mxu1 }
 0x10d   :  { %v1668_v18 = vsel %vm1616_vm2, %v4695_v15, -inf  ;;  %v1665_v19 = vsel %vm1616_vm2, %v4693_v14, -inf }
 0x10e   :  { %v937_v20 = vpop.f32.mrf.mxu1  ;;  %1669 = vmax.xlane.f32.xlu1 %v1668_v18  ;;  %1666 = vmax.xlane.f32.xlu0 %v1665_v19  ;;  %v891_v23 = vpop.f32.mrf.mxu0 }
 0x110   :  { %v3836_v24 = vpop.f32.mrf.mxu0  ;;  %v3842_v25 = vpop.f32.mrf.mxu1 }
 0x112   :  { %v980_v26 = vpop.f32.mrf.mxu0  ;;  %v1026_v27 = vpop.f32.mrf.mxu1 }
 0x113   :  { %v4701_v28 = vmul.f32 0.5, %v980_v26  ;;  %v4703_v29 = vmul.f32 0.5, %v1026_v27 }
 0x114   :  { %v3847_v30 = vpop.f32.mrf.mxu0  ;;  %v3853_v31 = vpop.f32.mrf.mxu1 }
 0x115   :  { %v1674_v32 = vsel %vm1616_vm2, %v4703_v29, -inf  ;;  %v1671_v35 = vsel %vm1616_vm2, %v4701_v28, -inf }
 0x116   :  { %v1029_v38 = vpop.f32.mrf.mxu1  ;;  %1675 = vmax.xlane.f32.xlu1 %v1674_v32  ;;  %1672 = vmax.xlane.f32.xlu0 %v1671_v35  ;;  %v983_v39 = vpop.f32.mrf.mxu0 }
 0x118   :  { %v3848_v40 = vpop.f32.mrf.mxu0  ;;  %v3854_v41 = vpop.f32.mrf.mxu1 }
 0x11a   :  { %v1072_v42 = vpop.f32.mrf.mxu0  ;;  %v1118_v43 = vpop.f32.mrf.mxu1 }
 0x11b   :  { %v4709_v44 = vmul.f32 0.5, %v1072_v42  ;;  %v4711_v45 = vmul.f32 0.5, %v1118_v43 }
 0x11c   :  { %v3859_v46 = vpop.f32.mrf.mxu0  ;;  %v3865_v51 = vpop.f32.mrf.mxu1 }
 0x11d   :  { %v1680_v52 = vsel %vm1616_vm2, %v4711_v45, -inf  ;;  %v1677_v53 = vsel %vm1616_vm2, %v4709_v44, -inf }
 0x11e   :  { %v1121_v54 = vpop.f32.mrf.mxu1  ;;  %1681 = vmax.xlane.f32.xlu1 %v1680_v52  ;;  %1678 = vmax.xlane.f32.xlu0 %v1677_v53  ;;  %v1075_v55 = vpop.f32.mrf.mxu0 }
 0x120   :  { %v3860_v56 = vpop.f32.mrf.mxu0  ;;  %v3866_v57 = vpop.f32.mrf.mxu1 }
 0x122   :  { %v1164_v58 = vpop.f32.mrf.mxu0  ;;  %v1210_v59 = vpop.f32.mrf.mxu1 }
 0x123   :  { %v4717_v62 = vmul.f32 0.5, %v1164_v58  ;;  %v4719_v2 = vmul.f32 0.5, %v1210_v59 }
 0x124   :  { %v3871_v3 = vpop.f32.mrf.mxu0  ;;  %v3877_v4 = vpop.f32.mrf.mxu1 }
 0x125   :  { %v1686_v5 = vsel %vm1616_vm2, %v4719_v2, -inf  ;;  %v1683_v6 = vsel %vm1616_vm2, %v4717_v62, -inf }
 0x126   :  { %1687 = vmax.xlane.f32.xlu1 %v1686_v5  ;;  %1684 = vmax.xlane.f32.xlu0 %v1683_v6  ;;  %v1167_v7 = vpop.f32.mrf.mxu0  ;;  %v1213_v8 = vpop.f32.mrf.mxu1 }
 0x128   :  { %v3872_v11 = vpop.f32.mrf.mxu0  ;;  %v3878_v12 = vpop.f32.mrf.mxu1 }
 0x12a   :  { %v1256_v13 = vpop.f32.mrf.mxu0  ;;  %v1302_v16 = vpop.f32.mrf.mxu1 }
 0x12c   :  { %v3883_v17 = vpop.f32.mrf.mxu0  ;;  %v3889_v18 = vpop.f32.mrf.mxu1 }
 0x12e   :  { %v1259_v19 = vpop.f32.mrf.mxu0  ;;  %v1305_v20 = vpop.f32.mrf.mxu1 }
 0x130   :  { %v3884_v23 = vpop.f32.mrf.mxu0  ;;  %v3890_v24 = vpop.f32.mrf.mxu1 }
 0x132   :  { %v1348_v25 = vpop.f32.mrf.mxu0  ;;  %v4725_v26 = vpop.f32.mrf.mxu1 }
 0x134   :  { %v3895_v27 = vpop.f32.mrf.mxu0  ;;  %v3901_v30 = vpop.f32.mrf.mxu1 }
 0x136   :  { %v1351_v31 = vpop.f32.mrf.mxu0  ;;  %v1397_v32 = vpop.f32.mrf.mxu1 }
 0x137   :  { %v4741_v31 = vmul.f32 0.5, %v1256_v13 }
 0x138   :  { %v3896_v35 = vpop.f32.mrf.mxu0  ;;  %v3902_v38 = vpop.f32.mrf.mxu1 }
 0x139   :  { %v4747_v38 = vmul.f32 0.5, %v1302_v16  ;;  %v4757_v16 = vmul.f32 0.5, %v1348_v25 }
 0x13a   :  { %v4727_v39 = vpop.f32.mrf.mxu0  ;;  %v4729_v40 = vpop.f32.mrf.mxu1 }
 0x13c   :  { %v3907_v41 = vpop.f32.mrf.mxu0  ;;  %v3913_v42 = vpop.f32.mrf.mxu1 }
 0x13e   :  { %v1443_v43 = vpop.f32.mrf.mxu0  ;;  %v1489_v46 = vpop.f32.mrf.mxu1 }
 0x13f   :  { %v1692_v46 = vsel %vm1616_vm2, %v4747_v38, -inf }
 0x140   :  { %v3908_v51 = vpop.f32.mrf.mxu0  ;;  %v3914_v52 = vpop.f32.mrf.mxu1 }
 0x142   :  { %v4731_v53 = vpop.f32.mrf.mxu0  ;;  %v4733_v54 = vpop.f32.mrf.mxu1 }
 0x144   :  { %v3919_v55 = vpop.f32.mrf.mxu0  ;;  %v3925_v56 = vpop.f32.mrf.mxu1 }
 0x146   :  { %v1535_v57 = vpop.f32.mrf.mxu0  ;;  %v1581_v58 = vpop.f32.mrf.mxu1 }
 0x147   :  { %v4766_v57 = vmul.f32 0.5, %v4725_v26 }
 0x148   :  { %v3920_v59 = vpop.f32.mrf.mxu0  ;;  %v3926_v3 = vpop.f32.mrf.mxu1 }
 0x149   :  { %v1698_v26 = vsel %vm1616_vm2, %v4766_v57, -inf }
 0x157   :  { %v1619_v4 = vpop.xlane.xlu0 %1618 }
 0x158   :  { %v1713_v5 = vsub.f32 %v4629_v36, %v1619_v4 }
 0x15a   :  { %v1745_v6 = vmul.f32 1.442695, %v1713_v5  ;;  %v4779_v5 = vmul.f32 0.5, %v4727_v39 }
 0x15b   :  { %v1622_v7 = vpop.xlane.xlu0 %1621 }
 0x15c   :  { %4121 = vpow2.f32 %v1745_v6  ;;  %v1714_v8 = vsub.f32 %v4631_v37, %v1622_v7 }
 0x15e   :  { %v1747_v11 = vmul.f32 1.442695, %v1714_v8 }
 0x15f   :  { %v1625_v12 = vpop.xlane.xlu1 %1624 }
 0x160   :  { %4123 = vpow2.f32 %v1747_v11  ;;  %v1715_v17 = vsub.f32 %v4639_v49, %v1625_v12 }
 0x162   :  { %v1749_v18 = vmul.f32 1.442695, %v1715_v17 }
 0x163   :  { %v1628_v19 = vpop.xlane.xlu1 %1627 }
 0x164   :  { %4125 = vpow2.f32 %v1749_v18  ;;  %v1716_v20 = vsub.f32 %v4637_v48, %v1628_v19  ;;  %v1689_v48 = vsel %vm1616_vm2, %v4741_v31, -inf }
 0x166   :  { %v1751_v23 = vmul.f32 1.442695, %v1716_v20 }
 0x167   :  { %v1634_v24 = vpop.xlane.xlu1 %1633  ;;  %v1631_v27 = vpop.xlane.xlu0 %1630 }
 0x168   :  { %4127 = vpow2.f32 %v1751_v23  ;;  %v1718_v36 = vsub.f32 %v4645_v60, %v1634_v24  ;;  %v1717_v30 = vsub.f32 %v4647_v61, %v1631_v27  ;;  %v4799_v23 = vmul.f32 0.5, %v4731_v53 }
 0x169   :  { %v4743_v37 = vpop.eup %4121 }
 0x16a   :  { %v1755_v32 = vmul.f32 1.442695, %v1718_v36  ;;  %v1753_v35 = vmul.f32 1.442695, %v1717_v30  ;;  %v1809_v49 = vsel %vm1616_vm2, %v4743_v37, 0.0 }
 0x16b   :  { %1810 = vadd.xlane.f32.xlu0 %v1809_v49 }
 0x16c   :  { %4129 = vpow2.f32 %v1753_v35  ;;  %v1707_v35 = vsel %vm1616_vm2, %v4799_v23, -inf }
 0x16d   :  { %v4751_v41 = vpop.eup %4123  ;;  %4131 = vpow2.f32 %v1755_v32 }
 0x16e   :  { %v1812_v60 = vsel %vm1616_vm2, %v4751_v41, 0.0 }
 0x16f   :  { %1813 = vadd.xlane.f32.xlu1 %v1812_v60  ;;  %v1640_v61 = vpop.xlane.xlu1 %1639  ;;  %v1637_v13 = vpop.xlane.xlu0 %1636  ;;  %1690 = vmax.xlane.f32.xlu0 %v1689_v48 }
 0x170   :  { %v1720_v42 = vsub.f32 %v4655_v10, %v1640_v61  ;;  %v1719_v43 = vsub.f32 %v4653_v9, %v1637_v13  ;;  %v1695_v9 = vsel %vm1616_vm2, %v4757_v16, -inf }
 0x171   :  { %v4761_v51 = vpop.eup %4125 }
 0x172   :  { %v1759_v52 = vmul.f32 1.442695, %v1720_v42  ;;  %v1757_v55 = vmul.f32 1.442695, %v1719_v43  ;;  %v1815_v56 = vsel %vm1616_vm2, %v4761_v51, 0.0 }
 0x173   :  { %1693 = vmax.xlane.f32.xlu1 %v1692_v46  ;;  %1816 = vadd.xlane.f32.xlu0 %v1815_v56 }
 0x174   :  { %4133 = vpow2.f32 %v1757_v55 }
 0x175   :  { %v4770_v10 = vpop.eup %4127  ;;  %4135 = vpow2.f32 %v1759_v52 }
 0x176   :  { %v1818_v25 = vsel %vm1616_vm2, %v4770_v10, 0.0 }
 0x177   :  { %1819 = vadd.xlane.f32.xlu1 %v1818_v25  ;;  %v1646_v58 = vpop.xlane.xlu1 %1645  ;;  %v1643_v59 = vpop.xlane.xlu0 %1642  ;;  %1696 = vmax.xlane.f32.xlu0 %v1695_v9 }
 0x178   :  { %v1722_v3 = vsub.f32 %v4663_v22, %v1646_v58  ;;  %v1721_v4 = vsub.f32 %v4661_v21, %v1643_v59  ;;  %v4788_v22 = vmul.f32 0.5, %v4729_v40  ;;  %v1701_v21 = vsel %vm1616_vm2, %v4779_v5, -inf }
 0x179   :  { %v4781_v6 = vpop.eup %4129 }
 0x17a   :  { %v1763_v7 = vmul.f32 1.442695, %v1722_v3  ;;  %v1761_v8 = vmul.f32 1.442695, %v1721_v4  ;;  %v4783_v11 = vpop.eup %4131  ;;  %v1821_v12 = vsel %vm1616_vm2, %v4781_v6, 0.0  ;;  %v1704_v40 = vsel %vm1616_vm2, %v4788_v22, -inf }
 0x17b   :  { %1699 = vmax.xlane.f32.xlu1 %v1698_v26  ;;  %1822 = vadd.xlane.f32.xlu0 %v1821_v12  ;;  %v1824_v39 = vsel %vm1616_vm2, %v4783_v11, 0.0 }
 0x17c   :  { %4137 = vpow2.f32 %v1761_v8 }
 0x17d   :  { %4139 = vpow2.f32 %v1763_v7 }
 0x17f   :  { %1825 = vadd.xlane.f32.xlu1 %v1824_v39  ;;  %v1652_v17 = vpop.xlane.xlu1 %1651  ;;  %v1649_v18 = vpop.xlane.xlu0 %1648  ;;  %1702 = vmax.xlane.f32.xlu0 %v1701_v21 }
 0x180   :  { %v1724_v19 = vsub.f32 %v4671_v34, %v1652_v17  ;;  %v1723_v20 = vsub.f32 %v4669_v33, %v1649_v18  ;;  %v79_v33 = vld [vmem:[%s5344_s2] sm:$0xf]  ;;  %v4811_v34 = vmul.f32 0.5, %v4733_v54  ;;  %v80_v54 = vld [vmem:[%s5344_s2 + $0x4] sm:$0xf] }
 0x181   :  { %v4801_v24 = vpop.eup %4133  ;;  %v2006_v53 = vsel %vm2004_vm3, %v79_v33, 0  ;;  %v2052_v43 = vsel %vm2004_vm3, %v80_v54, 0 }
 0x182   :  { %v1767_v27 = vmul.f32 1.442695, %v1724_v19  ;;  %v1765_v36 = vmul.f32 1.442695, %v1723_v20  ;;  %v4803_v30 = vpop.eup %4135  ;;  %v1827_v32 = vsel %vm1616_vm2, %v4801_v24, 0.0  ;;  %3928 = vmatpush3.bf16.msra.mxu0 %v2006_v53  ;;  %v1710_v42 = vsel %vm1616_vm2, %v4811_v34, -inf  ;;  %3934 = vmatpush3.bf16.msra.mxu1 %v2052_v43 }
 0x183   :  { %1705 = vmax.xlane.f32.xlu1 %v1704_v40  ;;  %1828 = vadd.xlane.f32.xlu0 %v1827_v32  ;;  %v1830_v49 = vsel %vm1616_vm2, %v4803_v30, 0.0 }
 0x184   :  { %4141 = vpow2.f32 %v1767_v27  ;;  %3939 = vmatprep.subr.bf16.mxu0 %v4249_v0  ;;  %3945 = vmatprep.subr.bf16.mxu1 %v4249_v0 }
 0x185   :  { %4143 = vpow2.f32 %v1765_v36 }
 0x187   :  { %1831 = vadd.xlane.f32.xlu1 %v1830_v49  ;;  %v1658_v48 = vpop.xlane.xlu1 %1657  ;;  %v1655_v60 = vpop.xlane.xlu0 %1654  ;;  %1708 = vmax.xlane.f32.xlu0 %v1707_v35 }
 0x188   :  { %v1726_v61 = vsub.f32 %v4679_v50, %v1658_v48  ;;  %v1725_v13 = vsub.f32 %v4677_v47, %v1655_v60 }
 0x189   :  { %v4827_v46 = vpop.eup %4137 }
 0x18a   :  { %v1771_v52 = vmul.f32 1.442695, %v1726_v61  ;;  %v1769_v55 = vmul.f32 1.442695, %v1725_v13  ;;  %v4830_v56 = vpop.eup %4139  ;;  %v1833_v50 = vsel %vm1616_vm2, %v4827_v46, 0.0 }
 0x18b   :  { %1711 = vmax.xlane.f32.xlu1 %v1710_v42  ;;  %1834 = vadd.xlane.f32.xlu0 %v1833_v50  ;;  %v1836_v47 = vsel %vm1616_vm2, %v4830_v56, 0.0 }
 0x18c   :  { %4145 = vpow2.f32 %v1771_v52 }
 0x18d   :  { %4147 = vpow2.f32 %v1769_v55 }
 0x18f   :  { %1837 = vadd.xlane.f32.xlu1 %v1836_v47  ;;  %v1664_v9 = vpop.xlane.xlu1 %1663  ;;  %v1661_v25 = vpop.xlane.xlu0 %1660 }
 0x190   :  { %v1728_v58 = vsub.f32 %v4687_v1, %v1664_v9  ;;  %v1727_v59 = vsub.f32 %v4685_v63, %v1661_v25 }
 0x191   :  { %v4838_v3 = vpop.eup %4141 }
 0x192   :  { %v4840_v4 = vpop.eup %4143  ;;  %v1775_v26 = vmul.f32 1.442695, %v1728_v58  ;;  %v1773_v7 = vmul.f32 1.442695, %v1727_v59  ;;  %v1842_v8 = vsel %vm1616_vm2, %v4838_v3, 0.0 }
 0x193   :  { %1843 = vadd.xlane.f32.xlu1 %v1842_v8  ;;  %v1839_v12 = vsel %vm1616_vm2, %v4840_v4, 0.0 }
 0x194   :  { %4149 = vpow2.f32 %v1775_v26  ;;  %1840 = vadd.xlane.f32.xlu0 %v1839_v12 }
 0x195   :  { %4151 = vpow2.f32 %v1773_v7 }
 0x197   :  { %v1670_v21 = vpop.xlane.xlu1 %1669  ;;  %v1667_v1 = vpop.xlane.xlu0 %1666 }
 0x198   :  { %v1730_v63 = vsub.f32 %v4695_v15, %v1670_v21  ;;  %v1729_v39 = vsub.f32 %v4693_v14, %v1667_v1 }
 0x199   :  { %v4848_v17 = vpop.eup %4145 }
 0x19a   :  { %v4850_v18 = vpop.eup %4147  ;;  %v1779_v19 = vmul.f32 1.442695, %v1730_v63  ;;  %v1777_v20 = vmul.f32 1.442695, %v1729_v39  ;;  %v1848_v40 = vsel %vm1616_vm2, %v4848_v17, 0.0 }
 0x19b   :  { %1849 = vadd.xlane.f32.xlu1 %v1848_v40  ;;  %v1845_v27 = vsel %vm1616_vm2, %v4850_v18, 0.0 }
 0x19c   :  { %4153 = vpow2.f32 %v1779_v19  ;;  %1846 = vadd.xlane.f32.xlu0 %v1845_v27 }
 0x19d   :  { %4155 = vpow2.f32 %v1777_v20 }
 0x19f   :  { %v1676_v36 = vpop.xlane.xlu1 %1675  ;;  %v1673_v15 = vpop.xlane.xlu0 %1672 }
 0x1a0   :  { %v1732_v14 = vsub.f32 %v4703_v29, %v1676_v36  ;;  %v1731_v32 = vsub.f32 %v4701_v28, %v1673_v15 }
 0x1a1   :  { %v4858_v33 = vpop.eup %4149 }
 0x1a2   :  { %v4860_v53 = vpop.eup %4151  ;;  %v1783_v35 = vmul.f32 1.442695, %v1732_v14  ;;  %v1781_v49 = vmul.f32 1.442695, %v1731_v32  ;;  %v1854_v48 = vsel %vm1616_vm2, %v4858_v33, 0.0 }
 0x1a3   :  { %1855 = vadd.xlane.f32.xlu1 %v1854_v48  ;;  %v1851_v60 = vsel %vm1616_vm2, %v4860_v53, 0.0 }
 0x1a4   :  { %4157 = vpow2.f32 %v1783_v35  ;;  %1852 = vadd.xlane.f32.xlu0 %v1851_v60 }
 0x1a5   :  { %4159 = vpow2.f32 %v1781_v49 }
 0x1a7   :  { %v1682_v54 = vpop.xlane.xlu1 %1681  ;;  %v1679_v29 = vpop.xlane.xlu0 %1678 }
 0x1a8   :  { %v1734_v28 = vsub.f32 %v4711_v45, %v1682_v54  ;;  %v1733_v61 = vsub.f32 %v4709_v44, %v1679_v29 }
 0x1a9   :  { %v4868_v13 = vpop.eup %4153 }
 0x1aa   :  { %v4870_v42 = vpop.eup %4155  ;;  %v1787_v43 = vmul.f32 1.442695, %v1734_v28  ;;  %v1785_v52 = vmul.f32 1.442695, %v1733_v61  ;;  %v1860_v55 = vsel %vm1616_vm2, %v4868_v13, 0.0 }
 0x1ab   :  { %1861 = vadd.xlane.f32.xlu1 %v1860_v55  ;;  %v1857_v50 = vsel %vm1616_vm2, %v4870_v42, 0.0  ;;  %v81_v28 = vld [vmem:[%s5344_s2 + $0x8] sm:$0xf] }
 0x1ac   :  { %4161 = vpow2.f32 %v1787_v43  ;;  %1858 = vadd.xlane.f32.xlu0 %v1857_v50  ;;  %v2098_v50 = vsel %vm2004_vm3, %v81_v28, 0 }
 0x1ad   :  { %4163 = vpow2.f32 %v1785_v52 }
 0x1af   :  { %v1688_v47 = vpop.xlane.xlu1 %1687  ;;  %v1685_v45 = vpop.xlane.xlu0 %1684 }
 0x1b0   :  { %v1736_v44 = vsub.f32 %v4719_v2, %v1688_v47  ;;  %v1735_v9 = vsub.f32 %v4717_v62, %v1685_v45 }
 0x1b1   :  { %v4878_v25 = vpop.eup %4157 }
 0x1b2   :  { %v4880_v58 = vpop.eup %4159  ;;  %v1791_v59 = vmul.f32 1.442695, %v1736_v44  ;;  %v1789_v26 = vmul.f32 1.442695, %v1735_v9  ;;  %v1866_v7 = vsel %vm1616_vm2, %v4878_v25, 0.0 }
 0x1b3   :  { %1867 = vadd.xlane.f32.xlu1 %v1866_v7  ;;  %v1863_v8 = vsel %vm1616_vm2, %v4880_v58, 0.0 }
 0x1b4   :  { %4165 = vpow2.f32 %v1791_v59  ;;  %1864 = vadd.xlane.f32.xlu0 %v1863_v8 }
 0x1b5   :  { %4167 = vpow2.f32 %v1789_v26 }
 0x1b9   :  { %v4886_v12 = vpop.eup %4161 }
 0x1ba   :  { %v4888_v2 = vpop.eup %4163  ;;  %v1872_v62 = vsel %vm1616_vm2, %v4886_v12, 0.0 }
 0x1bb   :  { %1873 = vadd.xlane.f32.xlu1 %v1872_v62  ;;  %v1869_v21 = vsel %vm1616_vm2, %v4888_v2, 0.0  ;;  %v83_v62 = vld [vmem:[%s5344_s2 + $0x10] sm:$0xf] }
 0x1bc   :  { %1870 = vadd.xlane.f32.xlu0 %v1869_v21 }
 0x1c1   :  { %v4894_v1 = vpop.eup %4165 }
 0x1c2   :  { %v4896_v63 = vpop.eup %4167  ;;  %v1878_v39 = vsel %vm1616_vm2, %v4894_v1, 0.0 }
 0x1c3   :  { %1879 = vadd.xlane.f32.xlu1 %v1878_v39  ;;  %v1875_v19 = vsel %vm1616_vm2, %v4896_v63, 0.0 }
 0x1c4   :  { %1876 = vadd.xlane.f32.xlu0 %v1875_v19 }
 0x1f4   :  { %v1811_v20 = vpop.xlane.xlu0 %1810 }
 0x1f5   :  { %4169 = vrcp.f32 %v1811_v20 }
 0x1f8   :  { %v1814_v40 = vpop.xlane.xlu1 %1813  ;;  %v1691_v27 = vpop.xlane.xlu0 %1690 }
 0x1f9   :  { %4171 = vrcp.f32 %v1814_v40  ;;  %v1737_v36 = vsub.f32 %v4741_v31, %v1691_v27 }
 0x1fb   :  { %v1793_v15 = vmul.f32 1.442695, %v1737_v36  ;;  %v2190_v36 = vsel %vm2004_vm3, %v83_v62, 0 }
 0x1fc   :  { %v1694_v14 = vpop.xlane.xlu1 %1693  ;;  %v1817_v32 = vpop.xlane.xlu0 %1816 }
 0x1fd   :  { %4173 = vpow2.f32 %v1793_v15  ;;  %v1738_v35 = vsub.f32 %v4747_v38, %v1694_v14 }
 0x1fe   :  { %4175 = vrcp.f32 %v1817_v32 }
 0x1ff   :  { %v1795_v49 = vmul.f32 1.442695, %v1738_v35 }
 0x200   :  { %v1820_v48 = vpop.xlane.xlu1 %1819  ;;  %v1697_v60 = vpop.xlane.xlu0 %1696 }
 0x201   :  { %4177 = vpow2.f32 %v1795_v49  ;;  %v1739_v54 = vsub.f32 %v4757_v16, %v1697_v60  ;;  %v82_v16 = vld [vmem:[%s5344_s2 + $0xc] sm:$0xf] }
 0x202   :  { %v4170_v29 = vpop.eup %4169  ;;  %4179 = vrcp.f32 %v1820_v48  ;;  %v2144_v59 = vsel %vm2004_vm3, %v82_v16, 0 }
 0x203   :  { %v1797_v31 = vmul.f32 1.442695, %v1739_v54  ;;  %v1937_v61 = vmul.f32 %v4170_v29, %v4743_v37 }
 0x204   :  { %v1700_v43 = vpop.xlane.xlu1 %1699  ;;  %v1823_v52 = vpop.xlane.xlu0 %1822 }
 0x205   :  { %4181 = vpow2.f32 %v1797_v31  ;;  %v1740_v38 = vsub.f32 %v4766_v57, %v1700_v43  ;;  %v1969_v55 = vpack.c.bf16 %v1937_v61, %v1937_v61  ;;  %v85_v31 = vld [vmem:[%s5344_s2 + $0x18] sm:$0xf] }
 0x206   :  { %v4172_v47 = vpop.eup %4171  ;;  %4183 = vrcp.f32 %v1823_v52 }
 0x207   :  { %v1799_v45 = vmul.f32 1.442695, %v1740_v38  ;;  %3930 = vmatmul.mubr.msk.bf16.vlgmr.msra.gmra.mxu0 %vm1616_vm2, %v1969_v55  ;;  %v1938_v44 = vmul.f32 %v4172_v47, %v4751_v41  ;;  %v2282_v47 = vsel %vm2004_vm3, %v85_v31, 0 }
 0x208   :  { %v1826_v37 = vpop.xlane.xlu1 %1825  ;;  %3940 = vmatpush3.bf16.msra.mxu0 %v2098_v50  ;;  %3941 = vmatprep.mubr.msk.bf16.mxu0 %vm4250_vm1, %v4249_v0  ;;  %v1703_v57 = vpop.xlane.xlu0 %1702 }
 0x209   :  { %4185 = vpow2.f32 %v1799_v45  ;;  %v1970_v9 = vpack.c.bf16 %v1938_v44, %v1938_v44  ;;  %3951 = vmatprep.subr.bf16.mxu0 %v4249_v0  ;;  %v1741_v7 = vsub.f32 %v4779_v5, %v1703_v57 }
 0x20a   :  { %v4920_v26 = vpop.eup %4173  ;;  %4187 = vrcp.f32 %v1826_v37 }
 0x20b   :  { %v4176_v8 = vpop.eup %4175  ;;  %3936 = vmatmul.mubr.msk.bf16.vlgmr.msra.gmra.mxu1 %vm1616_vm2, %v1970_v9  ;;  %v1881_v41 = vsel %vm1616_vm2, %v4920_v26, 0.0  ;;  %v1801_v21 = vmul.f32 1.442695, %v1741_v7 }
 0x20c   :  { %v1706_v39 = vpop.xlane.xlu1 %1705  ;;  %1882 = vadd.xlane.f32.xlu0 %v1881_v41  ;;  %v1939_v19 = vmul.f32 %v4176_v8, %v4761_v51  ;;  %3946 = vmatpush3.bf16.msra.mxu1 %v2144_v59  ;;  %v1829_v40 = vpop.xlane.xlu0 %1828  ;;  %v87_v41 = vld [vmem:[%s5344_s2 + $0x20] sm:$0xf] }
 0x20d   :  { %v1742_v20 = vsub.f32 %v4788_v22, %v1706_v39  ;;  %3947 = vmatprep.mubr.msk.bf16.mxu1 %vm4250_vm1, %v4249_v0  ;;  %3957 = vmatprep.subr.bf16.mxu1 %v4249_v0  ;;  %4189 = vpow2.f32 %v1801_v21  ;;  %v84_v22 = vld [vmem:[%s5344_s2 + $0x14] sm:$0xf] }
 0x20e   :  { %v4934_v5 = vpop.eup %4177  ;;  %v1971_v27 = vpack.c.bf16 %v1939_v19, %v1939_v19  ;;  %4191 = vrcp.f32 %v1829_v40  ;;  %v2236_v29 = vsel %vm2004_vm3, %v84_v22, 0 }
 0x20f   :  { %v4180_v15 = vpop.eup %4179  ;;  %v1803_v14 = vmul.f32 1.442695, %v1742_v20  ;;  %v1884_v51 = vsel %vm1616_vm2, %v4934_v5, 0.0 }
 0x210   :  { %3942 = vmatmul.mubr.msk.bf16.vlgmr.msra.gmra.mxu0 %vm1616_vm2, %v1971_v27  ;;  %1885 = vadd.xlane.f32.xlu1 %v1884_v51  ;;  %v1832_v32 = vpop.xlane.xlu1 %1831  ;;  %v1940_v35 = vmul.f32 %v4180_v15, %v4770_v10  ;;  %v1709_v49 = vpop.xlane.xlu0 %1708  ;;  %v2374_v27 = vsel %vm2004_vm3, %v87_v41, 0 }
 0x211   :  { %4193 = vpow2.f32 %v1803_v14  ;;  %3952 = vmatpush3.bf16.msra.mxu0 %v2190_v36  ;;  %3953 = vmatprep.mubr.msk.bf16.mxu0 %vm4250_vm1, %v4249_v0  ;;  %v1743_v60 = vsub.f32 %v4799_v23, %v1709_v49 }
 0x212   :  { %v4946_v48 = vpop.eup %4181  ;;  %4195 = vrcp.f32 %v1832_v32  ;;  %v1972_v54 = vpack.c.bf16 %v1940_v35, %v1940_v35  ;;  %3963 = vmatprep.subr.bf16.mxu0 %v4249_v0  ;;  %v89_v35 = vld [vmem:[%s5344_s2 + $0x28] sm:$0xf] }
 0x213   :  { %v4184_v28 = vpop.eup %4183  ;;  %v1887_v10 = vsel %vm1616_vm2, %v4946_v48, 0.0  ;;  %v1805_v61 = vmul.f32 1.442695, %v1743_v60  ;;  %v2466_v31 = vsel %vm2004_vm3, %v89_v35, 0 }
 0x214   :  { %3948 = vmatmul.mubr.msk.bf16.vlgmr.msra.gmra.mxu1 %vm1616_vm2, %v1972_v54  ;;  %v1712_v43 = vpop.xlane.xlu1 %1711  ;;  %1888 = vadd.xlane.f32.xlu0 %v1887_v10  ;;  %v1941_v23 = vmul.f32 %v4184_v28, %v4781_v6  ;;  %v1835_v52 = vpop.xlane.xlu0 %1834 }
 0x215   :  { %v1744_v38 = vsub.f32 %v4811_v34, %v1712_v43  ;;  %3958 = vmatpush3.bf16.msra.mxu1 %v2236_v29  ;;  %3959 = vmatprep.mubr.msk.bf16.mxu1 %vm4250_vm1, %v4249_v0  ;;  %4197 = vpow2.f32 %v1805_v61  ;;  %v86_v34 = vld [vmem:[%s5344_s2 + $0x1c] sm:$0xf] }
 0x216   :  { %v4961_v55 = vpop.eup %4185  ;;  %v1973_v50 = vpack.c.bf16 %v1941_v23, %v1941_v23  ;;  %3969 = vmatprep.subr.bf16.mxu1 %v4249_v0  ;;  %4199 = vrcp.f32 %v1835_v52  ;;  %v2328_v9 = vsel %vm2004_vm3, %v86_v34, 0 }
 0x217   :  { %v4188_v16 = vpop.eup %4187  ;;  %v1807_v45 = vmul.f32 1.442695, %v1744_v38  ;;  %v1890_v6 = vsel %vm1616_vm2, %v4961_v55, 0.0 }
 0x218   :  { %3954 = vmatmul.mubr.msk.bf16.vlgmr.msra.gmra.mxu0 %vm1616_vm2, %v1973_v50  ;;  %1891 = vadd.xlane.f32.xlu1 %v1890_v6  ;;  %v1838_v44 = vpop.xlane.xlu1 %1837  ;;  %v1942_v37 = vmul.f32 %v4188_v16, %v4783_v11 }
 0x219   :  { %4201 = vpow2.f32 %v1807_v45  ;;  %3964 = vmatpush3.bf16.msra.mxu0 %v2282_v47  ;;  %3965 = vmatprep.mubr.msk.bf16.mxu0 %vm4250_vm1, %v4249_v0 }
 0x21a   :  { %4203 = vrcp.f32 %v1838_v44  ;;  %v1974_v57 = vpack.c.bf16 %v1942_v37, %v1942_v37  ;;  %3975 = vmatprep.subr.bf16.mxu0 %v4249_v0  ;;  %v4976_v59 = vpop.eup %4189 }
 0x21b   :  { %v4192_v7 = vpop.eup %4191  ;;  %v1893_v11 = vsel %vm1616_vm2, %v4976_v59, 0.0 }
 0x21c   :  { %3960 = vmatmul.mubr.msk.bf16.vlgmr.msra.gmra.mxu1 %vm1616_vm2, %v1974_v57  ;;  %v1844_v8 = vpop.xlane.xlu1 %1843  ;;  %1894 = vadd.xlane.f32.xlu0 %v1893_v11  ;;  %v1943_v21 = vmul.f32 %v4192_v7, %v4801_v24  ;;  %v88_v24 = vld [vmem:[%s5344_s2 + $0x24] sm:$0xf] }
 0x21d   :  { %4205 = vrcp.f32 %v1844_v8  ;;  %v1841_v62 = vpop.xlane.xlu0 %1840  ;;  %3970 = vmatpush3.bf16.msra.mxu1 %v2328_v9  ;;  %3971 = vmatprep.mubr.msk.bf16.mxu1 %vm4250_vm1, %v4249_v0  ;;  %v2420_v14 = vsel %vm2004_vm3, %v88_v24, 0  ;;  %v93_v8 = vld [vmem:[%s5344_s2 + $0x38] sm:$0xf] }
 0x21e   :  { %v4985_v39 = vpop.eup %4193  ;;  %4207 = vrcp.f32 %v1841_v62  ;;  %3981 = vmatprep.subr.bf16.mxu1 %v4249_v0  ;;  %v1975_v20 = vpack.c.bf16 %v1943_v21, %v1943_v21  ;;  %v2650_v21 = vsel %vm2004_vm3, %v93_v8, 0  ;;  %v102_v8 = vld [vmem:[%s5344_s2 + $0x5c] sm:$0xf] }
 0x21f   :  { %v4196_v19 = vpop.eup %4195  ;;  %v1896_v40 = vsel %vm1616_vm2, %v4985_v39, 0.0 }
 0x220   :  { %1897 = vadd.xlane.f32.xlu1 %v1896_v40  ;;  %v1944_v36 = vmul.f32 %v4196_v19, %v4803_v30  ;;  %3966 = vmatmul.mubr.msk.bf16.vlgmr.msra.gmra.mxu0 %vm1616_vm2, %v1975_v20 }
 0x221   :  { %3976 = vmatpush3.bf16.msra.mxu0 %v2374_v27  ;;  %3977 = vmatprep.mubr.msk.bf16.mxu0 %vm4250_vm1, %v4249_v0 }
 0x222   :  { %v1976_v15 = vpack.c.bf16 %v1944_v36, %v1944_v36  ;;  %v5001_v51 = vpop.eup %4197  ;;  %3987 = vmatprep.subr.bf16.mxu0 %v4249_v0  ;;  %v95_v36 = vld [vmem:[%s5344_s2 + $0x40] sm:$0xf] }
 0x223   :  { %v4200_v22 = vpop.eup %4199  ;;  %v1899_v30 = vsel %vm1616_vm2, %v5001_v51, 0.0 }
 0x224   :  { %3972 = vmatmul.mubr.msk.bf16.vlgmr.msra.gmra.mxu1 %vm1616_vm2, %v1976_v15  ;;  %v1850_v32 = vpop.xlane.xlu1 %1849  ;;  %1900 = vadd.xlane.f32.xlu0 %v1899_v30  ;;  %v1945_v60 = vmul.f32 %v4200_v22, %v4827_v46  ;;  %v90_v46 = vld [vmem:[%s5344_s2 + $0x2c] sm:$0xf] }
 0x225   :  { %4209 = vrcp.f32 %v1850_v32  ;;  %v1847_v49 = vpop.xlane.xlu0 %1846  ;;  %3982 = vmatpush3.bf16.msra.mxu1 %v2420_v14  ;;  %3983 = vmatprep.mubr.msk.bf16.mxu1 %vm4250_vm1, %v4249_v0  ;;  %v2512_v38 = vsel %vm2004_vm3, %v90_v46, 0  ;;  %v2742_v32 = vsel %vm2004_vm3, %v95_v36, 0 }
 0x226   :  { %v5011_v54 = vpop.eup %4201  ;;  %4211 = vrcp.f32 %v1847_v49  ;;  %3993 = vmatprep.subr.bf16.mxu1 %v4249_v0  ;;  %v1977_v28 = vpack.c.bf16 %v1945_v60, %v1945_v60 }
 0x227   :  { %v4204_v29 = vpop.eup %4203  ;;  %v1902_v10 = vsel %vm1616_vm2, %v5011_v54, 0.0 }
 0x228   :  { %1903 = vadd.xlane.f32.xlu1 %v1902_v10  ;;  %v1946_v61 = vmul.f32 %v4204_v29, %v4830_v56  ;;  %3978 = vmatmul.mubr.msk.bf16.vlgmr.msra.gmra.mxu0 %vm1616_vm2, %v1977_v28  ;;  %v91_v56 = vld [vmem:[%s5344_s2 + $0x30] sm:$0xf]  ;;  %v97_v28 = vld [vmem:[%s5344_s2 + $0x48] sm:$0xf] }
 0x229   :  { %3988 = vmatpush3.bf16.msra.mxu0 %v2466_v31  ;;  %3989 = vmatprep.mubr.msk.bf16.mxu0 %vm4250_vm1, %v4249_v0  ;;  %v2558_v34 = vsel %vm2004_vm3, %v91_v56, 0 }
 0x22a   :  { %v4206_v43 = vpop.eup %4205  ;;  %v1978_v23 = vpack.c.bf16 %v1946_v61, %v1946_v61  ;;  %3999 = vmatprep.subr.bf16.mxu0 %v4249_v0  ;;  %v2834_v61 = vsel %vm2004_vm3, %v97_v28, 0 }
 0x22b   :  { %v4208_v52 = vpop.eup %4207  ;;  %v1948_v6 = vmul.f32 %v4206_v43, %v4838_v3 }
 0x22c   :  { %3984 = vmatmul.mubr.msk.bf16.vlgmr.msra.gmra.mxu1 %vm1616_vm2, %v1978_v23  ;;  %v1856_v50 = vpop.xlane.xlu1 %1855  ;;  %v1947_v47 = vmul.f32 %v4208_v52, %v4840_v4  ;;  %v92_v4 = vld [vmem:[%s5344_s2 + $0x34] sm:$0xf] }
 0x22d   :  { %4213 = vrcp.f32 %v1856_v50  ;;  %v1853_v16 = vpop.xlane.xlu0 %1852  ;;  %3994 = vmatpush3.bf16.msra.mxu1 %v2512_v38  ;;  %3995 = vmatprep.mubr.msk.bf16.mxu1 %vm4250_vm1, %v4249_v0  ;;  %v1980_v37 = vpack.c.bf16 %v1948_v6, %v1948_v6  ;;  %v2604_v57 = vsel %vm2004_vm3, %v92_v4, 0 }
 0x22e   :  { %4215 = vrcp.f32 %v1853_v16  ;;  %v1979_v45 = vpack.c.bf16 %v1947_v47, %v1947_v47  ;;  %4005 = vmatprep.subr.bf16.mxu1 %v4249_v0  ;;  %v99_v47 = vld [vmem:[%s5344_s2 + $0x50] sm:$0xf] }
 0x22f   :  { %v2926_v6 = vsel %vm2004_vm3, %v99_v47, 0 }
 0x230   :  { %3990 = vmatmul.mubr.msk.bf16.vlgmr.msra.gmra.mxu0 %vm1616_vm2, %v1979_v45 }
 0x231   :  { %4000 = vmatpush3.bf16.msra.mxu0 %v2558_v34  ;;  %4001 = vmatprep.mubr.msk.bf16.mxu0 %vm4250_vm1, %v4249_v0 }
 0x232   :  { %v4210_v44 = vpop.eup %4209  ;;  %4011 = vmatprep.subr.bf16.mxu0 %v4249_v0 }
 0x233   :  { %v4212_v9 = vpop.eup %4211  ;;  %v1950_v62 = vmul.f32 %v4210_v44, %v4848_v17 }
 0x234   :  { %3996 = vmatmul.mubr.msk.bf16.vlgmr.msra.gmra.mxu1 %vm1616_vm2, %v1980_v37  ;;  %v1862_v3 = vpop.xlane.xlu1 %1861  ;;  %v1949_v7 = vmul.f32 %v4212_v9, %v4850_v18  ;;  %v94_v18 = vld [vmem:[%s5344_s2 + $0x3c] sm:$0xf] }
 0x235   :  { %4217 = vrcp.f32 %v1862_v3  ;;  %v1859_v11 = vpop.xlane.xlu0 %1858  ;;  %4006 = vmatpush3.bf16.msra.mxu1 %v2604_v57  ;;  %4007 = vmatprep.mubr.msk.bf16.mxu1 %vm4250_vm1, %v4249_v0  ;;  %v1982_v20 = vpack.c.bf16 %v1950_v62, %v1950_v62  ;;  %v2696_v40 = vsel %vm2004_vm3, %v94_v18, 0  ;;  %v101_v57 = vld [vmem:[%s5344_s2 + $0x58] sm:$0xf] }
 0x236   :  { %4219 = vrcp.f32 %v1859_v11  ;;  %v1981_v41 = vpack.c.bf16 %v1949_v7, %v1949_v7  ;;  %4017 = vmatprep.subr.bf16.mxu1 %v4249_v0  ;;  %v3018_v7 = vsel %vm2004_vm3, %v101_v57, 0 }
 0x238   :  { %4002 = vmatmul.mubr.msk.bf16.vlgmr.msra.gmra.mxu0 %vm1616_vm2, %v1981_v41  ;;  %v3064_v41 = vsel %vm2004_vm3, %v102_v8, 0 }
 0x239   :  { %4012 = vmatpush3.bf16.msra.mxu0 %v2650_v21  ;;  %4013 = vmatprep.mubr.msk.bf16.mxu0 %vm4250_vm1, %v4249_v0  ;;  %v103_v21 = vld [vmem:[%s5344_s2 + $0x60] sm:$0xf] }
 0x23a   :  { %v4214_v19 = vpop.eup %4213  ;;  %4023 = vmatprep.subr.bf16.mxu0 %v4249_v0 }
 0x23b   :  { %v4216_v27 = vpop.eup %4215  ;;  %v1952_v22 = vmul.f32 %v4214_v19, %v4858_v33 }
 0x23c   :  { %4008 = vmatmul.mubr.msk.bf16.vlgmr.msra.gmra.mxu1 %vm1616_vm2, %v1982_v20  ;;  %v1868_v17 = vpop.xlane.xlu1 %1867  ;;  %v1951_v24 = vmul.f32 %v4216_v27, %v4860_v53  ;;  %v96_v53 = vld [vmem:[%s5344_s2 + $0x44] sm:$0xf]  ;;  %v3110_v20 = vsel %vm2004_vm3, %v103_v21, 0 }
 0x23d   :  { %4221 = vrcp.f32 %v1868_v17  ;;  %v1865_v15 = vpop.xlane.xlu0 %1864  ;;  %4018 = vmatpush3.bf16.msra.mxu1 %v2696_v40  ;;  %4019 = vmatprep.mubr.msk.bf16.mxu1 %vm4250_vm1, %v4249_v0  ;;  %v1984_v35 = vpack.c.bf16 %v1952_v22, %v1952_v22  ;;  %v2788_v49 = vsel %vm2004_vm3, %v96_v53, 0  ;;  %v104_v40 = vld [vmem:[%s5344_s2 + $0x64] sm:$0xf] }
 0x23e   :  { %4223 = vrcp.f32 %v1865_v15  ;;  %v1983_v14 = vpack.c.bf16 %v1951_v24, %v1951_v24  ;;  %4029 = vmatprep.subr.bf16.mxu1 %v4249_v0  ;;  %v3156_v27 = vsel %vm2004_vm3, %v104_v40, 0 }
 0x240   :  { %4014 = vmatmul.mubr.msk.bf16.vlgmr.msra.gmra.mxu0 %vm1616_vm2, %v1983_v14  ;;  %v105_v14 = vld [vmem:[%s5344_s2 + $0x68] sm:$0xf] }
 0x241   :  { %4024 = vmatpush3.bf16.msra.mxu0 %v2742_v32  ;;  %4025 = vmatprep.mubr.msk.bf16.mxu0 %vm4250_vm1, %v4249_v0 }
 0x242   :  { %v4218_v30 = vpop.eup %4217  ;;  %4035 = vmatprep.subr.bf16.mxu0 %v4249_v0 }
 0x243   :  { %v4220_v60 = vpop.eup %4219  ;;  %v1954_v46 = vmul.f32 %v4218_v30, %v4868_v13  ;;  %v3202_v30 = vsel %vm2004_vm3, %v105_v14, 0 }
 0x244   :  { %4020 = vmatmul.mubr.msk.bf16.vlgmr.msra.gmra.mxu1 %vm1616_vm2, %v1984_v35  ;;  %v1874_v33 = vpop.xlane.xlu1 %1873  ;;  %v1953_v29 = vmul.f32 %v4220_v60, %v4870_v42  ;;  %v98_v42 = vld [vmem:[%s5344_s2 + $0x4c] sm:$0xf] }
 0x245   :  { %4225 = vrcp.f32 %v1874_v33  ;;  %v1871_v10 = vpop.xlane.xlu0 %1870  ;;  %4030 = vmatpush3.bf16.msra.mxu1 %v2788_v49  ;;  %4031 = vmatprep.mubr.msk.bf16.mxu1 %vm4250_vm1, %v4249_v0  ;;  %v1986_v23 = vpack.c.bf16 %v1954_v46, %v1954_v46  ;;  %v2880_v38 = vsel %vm2004_vm3, %v98_v42, 0  ;;  %v106_v49 = vld [vmem:[%s5344_s2 + $0x6c] sm:$0xf] }
 0x246   :  { %4227 = vrcp.f32 %v1871_v10  ;;  %v1985_v31 = vpack.c.bf16 %v1953_v29, %v1953_v29  ;;  %4041 = vmatprep.subr.bf16.mxu1 %v4249_v0  ;;  %v3248_v29 = vsel %vm2004_vm3, %v106_v49, 0  ;;  %v107_v10 = vld [vmem:[%s5344_s2 + $0x70] sm:$0xf] }
 0x248   :  { %4026 = vmatmul.mubr.msk.bf16.vlgmr.msra.gmra.mxu0 %vm1616_vm2, %v1985_v31 }
 0x249   :  { %4036 = vmatpush3.bf16.msra.mxu0 %v2834_v61  ;;  %4037 = vmatprep.mubr.msk.bf16.mxu0 %vm4250_vm1, %v4249_v0  ;;  %v3294_v61 = vsel %vm2004_vm3, %v107_v10, 0 }
 0x24a   :  { %v4222_v43 = vpop.eup %4221  ;;  %4047 = vmatprep.subr.bf16.mxu0 %v4249_v0 }
 0x24b   :  { %v4224_v52 = vpop.eup %4223  ;;  %v1956_v45 = vmul.f32 %v4222_v43, %v4878_v25  ;;  %v108_v43 = vld [vmem:[%s5344_s2 + $0x74] sm:$0xf] }
 0x24c   :  { %4032 = vmatmul.mubr.msk.bf16.vlgmr.msra.gmra.mxu1 %vm1616_vm2, %v1986_v23  ;;  %v1880_v13 = vpop.xlane.xlu1 %1879  ;;  %v1955_v50 = vmul.f32 %v4224_v52, %v4880_v58  ;;  %v100_v58 = vld [vmem:[%s5344_s2 + $0x54] sm:$0xf]  ;;  %v3340_v52 = vsel %vm2004_vm3, %v108_v43, 0 }
 0x24d   :  { %4229 = vrcp.f32 %v1880_v13  ;;  %v1877_v56 = vpop.xlane.xlu0 %1876  ;;  %4042 = vmatpush3.bf16.msra.mxu1 %v2880_v38  ;;  %4043 = vmatprep.mubr.msk.bf16.mxu1 %vm4250_vm1, %v4249_v0  ;;  %v1988_v4 = vpack.c.bf16 %v1956_v45, %v1956_v45  ;;  %v2972_v44 = vsel %vm2004_vm3, %v100_v58, 0  ;;  %v110_v45 = vld [vmem:[%s5344_s2 + $0x7c] sm:$0xf] }
 0x24e   :  { %4231 = vrcp.f32 %v1877_v56  ;;  %v1987_v16 = vpack.c.bf16 %v1955_v50, %v1955_v50  ;;  %4053 = vmatprep.subr.bf16.mxu1 %v4249_v0 }
 0x250   :  { %4038 = vmatmul.mubr.msk.bf16.vlgmr.msra.gmra.mxu0 %vm1616_vm2, %v1987_v16 }
 0x251   :  { %4048 = vmatpush3.bf16.msra.mxu0 %v2926_v6  ;;  %4049 = vmatprep.mubr.msk.bf16.mxu0 %vm4250_vm1, %v4249_v0 }
 0x252   :  { %v4226_v34 = vpop.eup %4225  ;;  %4059 = vmatprep.subr.bf16.mxu0 %v4249_v0 }
 0x253   :  { %v4228_v37 = vpop.eup %4227  ;;  %v1958_v3 = vmul.f32 %v4226_v34, %v4886_v12 }
 0x254   :  { %4044 = vmatmul.mubr.msk.bf16.vlgmr.msra.gmra.mxu1 %vm1616_vm2, %v1988_v4  ;;  %v1957_v25 = vmul.f32 %v4228_v37, %v4888_v2 }
 0x255   :  { %4054 = vmatpush3.bf16.msra.mxu1 %v2972_v44  ;;  %4055 = vmatprep.mubr.msk.bf16.mxu1 %vm4250_vm1, %v4249_v0  ;;  %v1990_v11 = vpack.c.bf16 %v1958_v3, %v1958_v3 }
 0x256   :  { %v1989_v9 = vpack.c.bf16 %v1957_v25, %v1957_v25  ;;  %4065 = vmatprep.subr.bf16.mxu1 %v4249_v0 }
 0x258   :  { %4050 = vmatmul.mubr.msk.bf16.vlgmr.msra.gmra.mxu0 %vm1616_vm2, %v1989_v9 }
 0x259   :  { %4060 = vmatpush3.bf16.msra.mxu0 %v3018_v7  ;;  %4061 = vmatprep.mubr.msk.bf16.mxu0 %vm4250_vm1, %v4249_v0 }
 0x25a   :  { %v4230_v2 = vpop.eup %4229  ;;  %4071 = vmatprep.subr.bf16.mxu0 %v4249_v0 }
 0x25b   :  { %v4232_v62 = vpop.eup %4231  ;;  %v1960_v19 = vmul.f32 %v4230_v2, %v4894_v1 }
 0x25c   :  { %4056 = vmatmul.mubr.msk.bf16.vlgmr.msra.gmra.mxu1 %vm1616_vm2, %v1990_v11  ;;  %v1959_v12 = vmul.f32 %v4232_v62, %v4896_v63 }
 0x25d   :  { %4066 = vmatpush3.bf16.msra.mxu1 %v3064_v41  ;;  %4067 = vmatprep.mubr.msk.bf16.mxu1 %vm4250_vm1, %v4249_v0  ;;  %v1992_v63 = vpack.c.bf16 %v1960_v19, %v1960_v19 }
 0x25e   :  { %v1991_v18 = vpack.c.bf16 %v1959_v12, %v1959_v12  ;;  %4077 = vmatprep.subr.bf16.mxu1 %v4249_v0 }
 0x260   :  { %4062 = vmatmul.mubr.msk.bf16.vlgmr.msra.gmra.mxu0 %vm1616_vm2, %v1991_v18 }
 0x261   :  { %4072 = vmatpush3.bf16.msra.mxu0 %v3110_v20  ;;  %4073 = vmatprep.mubr.msk.bf16.mxu0 %vm4250_vm1, %v4249_v0 }
 0x262   :  { %4083 = vmatprep.subr.bf16.mxu0 %v4249_v0 }
 0x264   :  { %4068 = vmatmul.mubr.msk.bf16.vlgmr.msra.gmra.mxu1 %vm1616_vm2, %v1992_v63 }
 0x265   :  { %4078 = vmatpush3.bf16.msra.mxu1 %v3156_v27  ;;  %4079 = vmatprep.mubr.msk.bf16.mxu1 %vm4250_vm1, %v4249_v0 }
 0x266   :  { %4089 = vmatprep.subr.bf16.mxu1 %v4249_v0 }
 0x295   :  { %v1883_v1 = vpop.xlane.xlu0 %1882 }
 0x296   :  { %4233 = vrcp.f32 %v1883_v1 }
 0x299   :  { %v1886_v17 = vpop.xlane.xlu1 %1885 }
 0x29a   :  { %4235 = vrcp.f32 %v1886_v17 }
 0x29d   :  { %v1889_v24 = vpop.xlane.xlu0 %1888 }
 0x29e   :  { %4237 = vrcp.f32 %v1889_v24 }
 0x2a1   :  { %v1892_v36 = vpop.xlane.xlu1 %1891 }
 0x2a2   :  { %4239 = vrcp.f32 %v1892_v36 }
 0x2a3   :  { %v4234_v15 = vpop.eup %4233 }
 0x2a4   :  { %v1961_v22 = vmul.f32 %v4234_v15, %v4920_v26 }
 0x2a5   :  { %v1895_v53 = vpop.xlane.xlu0 %1894 }
 0x2a6   :  { %v1993_v32 = vpack.c.bf16 %v1961_v22, %v1961_v22  ;;  %4241 = vrcp.f32 %v1895_v53 }
 0x2a7   :  { %v4236_v35 = vpop.eup %4235 }
 0x2a8   :  { %v1962_v60 = vmul.f32 %v4236_v35, %v4934_v5  ;;  %4074 = vmatmul.mubr.msk.bf16.vlgmr.msra.gmra.mxu0 %vm1616_vm2, %v1993_v32 }
 0x2a9   :  { %v1898_v33 = vpop.xlane.xlu1 %1897  ;;  %4084 = vmatpush3.bf16.msra.mxu0 %v3202_v30  ;;  %4085 = vmatprep.mubr.msk.bf16.mxu0 %vm4250_vm1, %v4249_v0 }
 0x2aa   :  { %v1994_v26 = vpack.c.bf16 %v1962_v60, %v1962_v60  ;;  %4243 = vrcp.f32 %v1898_v33  ;;  %4095 = vmatprep.subr.bf16.mxu0 %v4249_v0 }
 0x2ab   :  { %v4238_v28 = vpop.eup %4237 }
 0x2ac   :  { %v1963_v5 = vmul.f32 %v4238_v28, %v4946_v48  ;;  %4080 = vmatmul.mubr.msk.bf16.vlgmr.msra.gmra.mxu1 %vm1616_vm2, %v1994_v26 }
 0x2ad   :  { %4090 = vmatpush3.bf16.msra.mxu1 %v3248_v29  ;;  %4091 = vmatprep.mubr.msk.bf16.mxu1 %vm4250_vm1, %v4249_v0  ;;  %v1901_v46 = vpop.xlane.xlu0 %1900 }
 0x2ae   :  { %v1995_v31 = vpack.c.bf16 %v1963_v5, %v1963_v5  ;;  %4101 = vmatprep.subr.bf16.mxu1 %v4249_v0  ;;  %4245 = vrcp.f32 %v1901_v46 }
 0x2af   :  { %v4240_v42 = vpop.eup %4239 }
 0x2b0   :  { %v1964_v48 = vmul.f32 %v4240_v42, %v4961_v55  ;;  %4086 = vmatmul.mubr.msk.bf16.vlgmr.msra.gmra.mxu0 %vm1616_vm2, %v1995_v31  ;;  %v109_v55 = vld [vmem:[%s5344_s2 + $0x78] sm:$0xf] }
 0x2b1   :  { %v1904_v23 = vpop.xlane.xlu1 %1903  ;;  %4096 = vmatpush3.bf16.msra.mxu0 %v3294_v61  ;;  %4097 = vmatprep.mubr.msk.bf16.mxu0 %vm4250_vm1, %v4249_v0  ;;  %v3386_v16 = vsel %vm2004_vm3, %v109_v55, 0 }
 0x2b2   :  { %v1996_v38 = vpack.c.bf16 %v1964_v48, %v1964_v48  ;;  %4247 = vrcp.f32 %v1904_v23  ;;  %4107 = vmatprep.subr.bf16.mxu0 %v4249_v0 }
 0x2b3   :  { %v4242_v13 = vpop.eup %4241 }
 0x2b4   :  { %4092 = vmatmul.mubr.msk.bf16.vlgmr.msra.gmra.mxu1 %vm1616_vm2, %v1996_v38  ;;  %v1965_v50 = vmul.f32 %v4242_v13, %v4976_v59  ;;  %v3432_v59 = vsel %vm2004_vm3, %v110_v45, 0 }
 0x2b5   :  { %4102 = vmatpush3.bf16.msra.mxu1 %v3340_v52  ;;  %4103 = vmatprep.mubr.msk.bf16.mxu1 %vm4250_vm1, %v4249_v0 }
 0x2b6   :  { %4113 = vmatprep.subr.bf16.mxu1 %v4249_v0  ;;  %v1997_v56 = vpack.c.bf16 %v1965_v50, %v1965_v50 }
 0x2b7   :  { %v4244_v47 = vpop.eup %4243 }
 0x2b8   :  { %v1966_v6 = vmul.f32 %v4244_v47, %v4985_v39  ;;  %4098 = vmatmul.mubr.msk.bf16.vlgmr.msra.gmra.mxu0 %vm1616_vm2, %v1997_v56 }
 0x2b9   :  { %4108 = vmatpush3.bf16.msra.mxu0 %v3386_v16  ;;  %4109 = vmatprep.mubr.msk.bf16.mxu0 %vm4250_vm1, %v4249_v0 }
 0x2ba   :  { %v1998_v58 = vpack.c.bf16 %v1966_v6, %v1966_v6 }
 0x2bb   :  { %v4246_v34 = vpop.eup %4245 }
 0x2bc   :  { %4104 = vmatmul.mubr.msk.bf16.vlgmr.msra.gmra.mxu1 %vm1616_vm2, %v1998_v58  ;;  %v1967_v4 = vmul.f32 %v4246_v34, %v5001_v51 }
 0x2bd   :  { %4114 = vmatpush3.bf16.msra.mxu1 %v3432_v59  ;;  %4115 = vmatprep.mubr.msk.bf16.mxu1 %vm4250_vm1, %v4249_v0 }
 0x2be   :  { %v1999_v39 = vpack.c.bf16 %v1967_v4, %v1967_v4 }
 0x2bf   :  { %v4248_v44 = vpop.eup %4247 }
 0x2c0   :  { %v1968_v37 = vmul.f32 %v4248_v44, %v5011_v54  ;;  %4110 = vmatmul.mubr.msk.bf16.vlgmr.msra.gmra.mxu0 %vm1616_vm2, %v1999_v39 }
 0x2c2   :  { %v2000_v25 = vpack.c.bf16 %v1968_v37, %v1968_v37 }
 0x2c4   :  { %4116 = vmatmul.mubr.msk.bf16.vlgmr.msra.gmra.mxu1 %vm1616_vm2, %v2000_v25 }
 0x2c7   :  { %v2042_v57 = vpop.f32.mrf.mxu0 }
 0x2c8   :  { %v3474_v9 = vpack.c.bf16 %v2042_v57, %v2042_v57 }
 0x2c9   :  { %v3931_v3 = vpop.f32.mrf.mxu0 }
 0x2ca   :  { %3507 = vst.msk [vmem:[%s5345_s3] sm:$0xf] %vm3506_vm4, %v3474_v9 }
 0x2cb   :  { %v2045_v51 = vpop.f32.mrf.mxu0  ;;  %v2088_v0 = vpop.f32.mrf.mxu1 }
 0x2cc   :  { %v3475_v7 = vpack.c.bf16 %v2088_v0, %v2088_v0 }
 0x2cd   :  { %v3932_v8 = vpop.f32.mrf.mxu0  ;;  %v3937_v2 = vpop.f32.mrf.mxu1 }
 0x2ce   :  { %3508 = vst.msk [vmem:[%s5345_s3 + $0x4] sm:$0xf] %vm3506_vm4, %v3475_v7 }
 0x2cf   :  { %v2091_v54 = vpop.f32.mrf.mxu1 }
 0x2d0   :  { %v2134_v11 = vpop.f32.mrf.mxu0 }
 0x2d1   :  { %v3476_v41 = vpack.c.bf16 %v2134_v11, %v2134_v11  ;;  %v3938_v62 = vpop.f32.mrf.mxu1 }
 0x2d2   :  { %v3943_v12 = vpop.f32.mrf.mxu0 }
 0x2d3   :  { %3509 = vst.msk [vmem:[%s5345_s3 + $0x8] sm:$0xf] %vm3506_vm4, %v3476_v41 }
 0x2d4   :  { %v2137_v21 = vpop.f32.mrf.mxu0  ;;  %v2180_v18 = vpop.f32.mrf.mxu1 }
 0x2d5   :  { %v3477_v19 = vpack.c.bf16 %v2180_v18, %v2180_v18 }
 0x2d6   :  { %v3944_v20 = vpop.f32.mrf.mxu0  ;;  %v3949_v40 = vpop.f32.mrf.mxu1 }
 0x2d7   :  { %3510 = vst.msk [vmem:[%s5345_s3 + $0xc] sm:$0xf] %vm3506_vm4, %v3477_v19 }
 0x2d8   :  { %v2183_v63 = vpop.f32.mrf.mxu1  ;;  %v2226_v27 = vpop.f32.mrf.mxu0 }
 0x2d9   :  { %v3478_v1 = vpack.c.bf16 %v2226_v27, %v2226_v27 }
 0x2da   :  { %v3950_v17 = vpop.f32.mrf.mxu1  ;;  %v3955_v24 = vpop.f32.mrf.mxu0 }
 0x2db   :  { %3511 = vst.msk [vmem:[%s5345_s3 + $0x10] sm:$0xf] %vm3506_vm4, %v3478_v1 }
 0x2dc   :  { %v2229_v36 = vpop.f32.mrf.mxu0  ;;  %v2272_v15 = vpop.f32.mrf.mxu1 }
 0x2dd   :  { %v3479_v14 = vpack.c.bf16 %v2272_v15, %v2272_v15 }
 0x2de   :  { %v3956_v22 = vpop.f32.mrf.mxu0  ;;  %v3961_v32 = vpop.f32.mrf.mxu1 }
 0x2df   :  { %3512 = vst.msk [vmem:[%s5345_s3 + $0x14] sm:$0xf] %vm3506_vm4, %v3479_v14 }
 0x2e0   :  { %v2275_v53 = vpop.f32.mrf.mxu1  ;;  %v2318_v30 = vpop.f32.mrf.mxu0 }
 0x2e1   :  { %v3480_v35 = vpack.c.bf16 %v2318_v30, %v2318_v30 }
 0x2e2   :  { %v3962_v49 = vpop.f32.mrf.mxu1  ;;  %v3967_v60 = vpop.f32.mrf.mxu0 }
 0x2e3   :  { %3513 = vst.msk [vmem:[%s5345_s3 + $0x18] sm:$0xf] %vm3506_vm4, %v3480_v35 }
 0x2e4   :  { %v2364_v33 = vpop.f32.mrf.mxu1  ;;  %v2321_v26 = vpop.f32.mrf.mxu0 }
 0x2e5   :  { %v3481_v29 = vpack.c.bf16 %v2364_v33, %v2364_v33 }
 0x2e6   :  { %v3973_v28 = vpop.f32.mrf.mxu1  ;;  %v3968_v10 = vpop.f32.mrf.mxu0 }
 0x2e7   :  { %3514 = vst.msk [vmem:[%s5345_s3 + $0x1c] sm:$0xf] %vm3506_vm4, %v3481_v29 }
 0x2e8   :  { %v2367_v5 = vpop.f32.mrf.mxu1  ;;  %v2410_v31 = vpop.f32.mrf.mxu0 }
 0x2e9   :  { %v3482_v46 = vpack.c.bf16 %v2410_v31, %v2410_v31 }
 0x2ea   :  { %v3974_v61 = vpop.f32.mrf.mxu1  ;;  %v3979_v42 = vpop.f32.mrf.mxu0 }
 0x2eb   :  { %3515 = vst.msk [vmem:[%s5345_s3 + $0x20] sm:$0xf] %vm3506_vm4, %v3482_v46 }
 0x2ec   :  { %v2456_v43 = vpop.f32.mrf.mxu1  ;;  %v2413_v48 = vpop.f32.mrf.mxu0 }
 0x2ed   :  { %v3483_v23 = vpack.c.bf16 %v2456_v43, %v2456_v43 }
 0x2ee   :  { %v3985_v38 = vpop.f32.mrf.mxu1  ;;  %v3980_v52 = vpop.f32.mrf.mxu0 }
 0x2ef   :  { %3516 = vst.msk [vmem:[%s5345_s3 + $0x24] sm:$0xf] %vm3506_vm4, %v3483_v23 }
 0x2f0   :  { %v2459_v13 = vpop.f32.mrf.mxu1  ;;  %v2502_v55 = vpop.f32.mrf.mxu0 }
 0x2f1   :  { %v3484_v50 = vpack.c.bf16 %v2502_v55, %v2502_v55 }
 0x2f2   :  { %v3986_v47 = vpop.f32.mrf.mxu1  ;;  %v3991_v56 = vpop.f32.mrf.mxu0 }
 0x2f3   :  { %3517 = vst.msk [vmem:[%s5345_s3 + $0x28] sm:$0xf] %vm3506_vm4, %v3484_v50 }
 0x2f4   :  { %v2548_v16 = vpop.f32.mrf.mxu1  ;;  %v2505_v45 = vpop.f32.mrf.mxu0 }
 0x2f5   :  { %v3485_v6 = vpack.c.bf16 %v2548_v16, %v2548_v16 }
 0x2f6   :  { %v3997_v58 = vpop.f32.mrf.mxu1  ;;  %v3992_v59 = vpop.f32.mrf.mxu0 }
 0x2f7   :  { %3518 = vst.msk [vmem:[%s5345_s3 + $0x2c] sm:$0xf] %vm3506_vm4, %v3485_v6 }
 0x2f8   :  { %v2551_v34 = vpop.f32.mrf.mxu1  ;;  %v2594_v4 = vpop.f32.mrf.mxu0 }
 0x2f9   :  { %v3486_v44 = vpack.c.bf16 %v2594_v4, %v2594_v4 }
 0x2fa   :  { %v3998_v39 = vpop.f32.mrf.mxu1  ;;  %v4003_v37 = vpop.f32.mrf.mxu0 }
 0x2fb   :  { %3519 = vst.msk [vmem:[%s5345_s3 + $0x30] sm:$0xf] %vm3506_vm4, %v3486_v44 }
 0x2fc   :  { %v2640_v25 = vpop.f32.mrf.mxu1  ;;  %v2597_v57 = vpop.f32.mrf.mxu0 }
 0x2fd   :  { %v3487_v9 = vpack.c.bf16 %v2640_v25, %v2640_v25 }
 0x2fe   :  { %v4009_v3 = vpop.f32.mrf.mxu1  ;;  %v4004_v51 = vpop.f32.mrf.mxu0 }
 0x2ff   :  { %3520 = vst.msk [vmem:[%s5345_s3 + $0x34] sm:$0xf] %vm3506_vm4, %v3487_v9 }
 0x300   :  { %v2643_v0 = vpop.f32.mrf.mxu1  ;;  %v2686_v7 = vpop.f32.mrf.mxu0 }
 0x301   :  { %v3488_v8 = vpack.c.bf16 %v2686_v7, %v2686_v7 }
 0x302   :  { %v4010_v2 = vpop.f32.mrf.mxu1  ;;  %v4015_v54 = vpop.f32.mrf.mxu0 }
 0x303   :  { %3521 = vst.msk [vmem:[%s5345_s3 + $0x38] sm:$0xf] %vm3506_vm4, %v3488_v8 }
 0x304   :  { %v2732_v11 = vpop.f32.mrf.mxu1  ;;  %v2689_v41 = vpop.f32.mrf.mxu0 }
 0x305   :  { %v3489_v62 = vpack.c.bf16 %v2732_v11, %v2732_v11 }
 0x306   :  { %v4021_v12 = vpop.f32.mrf.mxu1  ;;  %v4016_v21 = vpop.f32.mrf.mxu0 }
 0x307   :  { %3522 = vst.msk [vmem:[%s5345_s3 + $0x3c] sm:$0xf] %vm3506_vm4, %v3489_v62 }
 0x308   :  { %v2735_v18 = vpop.f32.mrf.mxu1  ;;  %v2778_v19 = vpop.f32.mrf.mxu0 }
 0x309   :  { %v3490_v20 = vpack.c.bf16 %v2778_v19, %v2778_v19 }
 0x30a   :  { %v4022_v40 = vpop.f32.mrf.mxu1  ;;  %v4027_v63 = vpop.f32.mrf.mxu0 }
 0x30b   :  { %3523 = vst.msk [vmem:[%s5345_s3 + $0x40] sm:$0xf] %vm3506_vm4, %v3490_v20 }
 0x30c   :  { %v2824_v27 = vpop.f32.mrf.mxu1  ;;  %v2781_v1 = vpop.f32.mrf.mxu0 }
 0x30d   :  { %v3491_v17 = vpack.c.bf16 %v2824_v27, %v2824_v27 }
 0x30e   :  { %v4033_v24 = vpop.f32.mrf.mxu1  ;;  %v4028_v36 = vpop.f32.mrf.mxu0 }
 0x30f   :  { %3524 = vst.msk [vmem:[%s5345_s3 + $0x44] sm:$0xf] %vm3506_vm4, %v3491_v17 }
 0x310   :  { %v2827_v15 = vpop.f32.mrf.mxu1  ;;  %v2870_v14 = vpop.f32.mrf.mxu0 }
 0x311   :  { %v3492_v22 = vpack.c.bf16 %v2870_v14, %v2870_v14 }
 0x312   :  { %v4034_v32 = vpop.f32.mrf.mxu1  ;;  %v4039_v53 = vpop.f32.mrf.mxu0 }
 0x313   :  { %3525 = vst.msk [vmem:[%s5345_s3 + $0x48] sm:$0xf] %vm3506_vm4, %v3492_v22 }
 0x314   :  { %v2916_v30 = vpop.f32.mrf.mxu1  ;;  %v2873_v35 = vpop.f32.mrf.mxu0 }
 0x315   :  { %v3493_v49 = vpack.c.bf16 %v2916_v30, %v2916_v30 }
 0x316   :  { %v4045_v60 = vpop.f32.mrf.mxu1  ;;  %v4040_v33 = vpop.f32.mrf.mxu0 }
 0x317   :  { %3526 = vst.msk [vmem:[%s5345_s3 + $0x4c] sm:$0xf] %vm3506_vm4, %v3493_v49 }
 0x318   :  { %v2919_v26 = vpop.f32.mrf.mxu1  ;;  %v2962_v29 = vpop.f32.mrf.mxu0 }
 0x319   :  { %v3494_v28 = vpack.c.bf16 %v2962_v29, %v2962_v29 }
 0x31a   :  { %v4046_v10 = vpop.f32.mrf.mxu1  ;;  %v4051_v5 = vpop.f32.mrf.mxu0 }
 0x31b   :  { %3527 = vst.msk [vmem:[%s5345_s3 + $0x50] sm:$0xf] %vm3506_vm4, %v3494_v28 }
 0x31c   :  { %v3008_v31 = vpop.f32.mrf.mxu1  ;;  %v2965_v46 = vpop.f32.mrf.mxu0 }
 0x31d   :  { %v3495_v61 = vpack.c.bf16 %v3008_v31, %v3008_v31 }
 0x31e   :  { %v4057_v42 = vpop.f32.mrf.mxu1  ;;  %v4052_v43 = vpop.f32.mrf.mxu0 }
 0x31f   :  { %3528 = vst.msk [vmem:[%s5345_s3 + $0x54] sm:$0xf] %vm3506_vm4, %v3495_v61 }
 0x320   :  { %v3011_v48 = vpop.f32.mrf.mxu1  ;;  %v3054_v23 = vpop.f32.mrf.mxu0 }
 0x321   :  { %v3496_v38 = vpack.c.bf16 %v3054_v23, %v3054_v23 }
 0x322   :  { %v4058_v52 = vpop.f32.mrf.mxu1  ;;  %v4063_v13 = vpop.f32.mrf.mxu0 }
 0x323   :  { %3529 = vst.msk [vmem:[%s5345_s3 + $0x58] sm:$0xf] %vm3506_vm4, %v3496_v38 }
 0x324   :  { %v3100_v55 = vpop.f32.mrf.mxu1  ;;  %v3057_v50 = vpop.f32.mrf.mxu0 }
 0x325   :  { %v3497_v47 = vpack.c.bf16 %v3100_v55, %v3100_v55 }
 0x326   :  { %v4069_v56 = vpop.f32.mrf.mxu1  ;;  %v4064_v16 = vpop.f32.mrf.mxu0 }
 0x327   :  { %3530 = vst.msk [vmem:[%s5345_s3 + $0x5c] sm:$0xf] %vm3506_vm4, %v3497_v47 }
 0x328   :  { %v3103_v45 = vpop.f32.mrf.mxu1 }
 0x32a   :  { %v4070_v6 = vpop.f32.mrf.mxu1 }
 0x368   :  { %v3146_v58 = vpop.f32.mrf.mxu0 }
 0x369   :  { %v3498_v59 = vpack.c.bf16 %v3146_v58, %v3146_v58 }
 0x36a   :  { %v4075_v34 = vpop.f32.mrf.mxu0 }
 0x36b   :  { %3531 = vst.msk [vmem:[%s5345_s3 + $0x60] sm:$0xf] %vm3506_vm4, %v3498_v59 }
 0x36c   :  { %v3149_v4 = vpop.f32.mrf.mxu0  ;;  %v3192_v44 = vpop.f32.mrf.mxu1 }
 0x36d   :  { %v3499_v39 = vpack.c.bf16 %v3192_v44, %v3192_v44 }
 0x36e   :  { %v4076_v37 = vpop.f32.mrf.mxu0  ;;  %v4081_v25 = vpop.f32.mrf.mxu1 }
 0x36f   :  { %3532 = vst.msk [vmem:[%s5345_s3 + $0x64] sm:$0xf] %vm3506_vm4, %v3499_v39 }
 0x370   :  { %v3195_v57 = vpop.f32.mrf.mxu1  ;;  %v3238_v9 = vpop.f32.mrf.mxu0 }
 0x371   :  { %v3500_v3 = vpack.c.bf16 %v3238_v9, %v3238_v9 }
 0x372   :  { %v4082_v51 = vpop.f32.mrf.mxu1  ;;  %v4087_v0 = vpop.f32.mrf.mxu0 }
 0x373   :  { %3533 = vst.msk [vmem:[%s5345_s3 + $0x68] sm:$0xf] %vm3506_vm4, %v3500_v3 }
 0x374   :  { %v3241_v7 = vpop.f32.mrf.mxu0  ;;  %v3284_v8 = vpop.f32.mrf.mxu1 }
 0x375   :  { %v3501_v2 = vpack.c.bf16 %v3284_v8, %v3284_v8 }
 0x376   :  { %v4088_v54 = vpop.f32.mrf.mxu0  ;;  %v4093_v11 = vpop.f32.mrf.mxu1 }
 0x377   :  { %3534 = vst.msk [vmem:[%s5345_s3 + $0x6c] sm:$0xf] %vm3506_vm4, %v3501_v2 }
 0x378   :  { %v3287_v41 = vpop.f32.mrf.mxu1  ;;  %v3330_v62 = vpop.f32.mrf.mxu0 }
 0x379   :  { %v3502_v12 = vpack.c.bf16 %v3330_v62, %v3330_v62 }
 0x37a   :  { %v4094_v21 = vpop.f32.mrf.mxu1  ;;  %v4099_v18 = vpop.f32.mrf.mxu0 }
 0x37b   :  { %3535 = vst.msk [vmem:[%s5345_s3 + $0x70] sm:$0xf] %vm3506_vm4, %v3502_v12 }
 0x37c   :  { %v3376_v19 = vpop.f32.mrf.mxu1  ;;  %v3333_v20 = vpop.f32.mrf.mxu0 }
 0x37d   :  { %v3503_v40 = vpack.c.bf16 %v3376_v19, %v3376_v19 }
 0x37e   :  { %v4105_v63 = vpop.f32.mrf.mxu1  ;;  %v4100_v27 = vpop.f32.mrf.mxu0 }
 0x37f   :  { %3536 = vst.msk [vmem:[%s5345_s3 + $0x74] sm:$0xf] %vm3506_vm4, %v3503_v40 }
 0x380   :  { %v3379_v1 = vpop.f32.mrf.mxu1  ;;  %v3422_v17 = vpop.f32.mrf.mxu0 }
 0x381   :  { %v3504_v24 = vpack.c.bf16 %v3422_v17, %v3422_v17 }
 0x382   :  { %v4106_v36 = vpop.f32.mrf.mxu1  ;;  %v4111_v15 = vpop.f32.mrf.mxu0 }
 0x383   :  { %3537 = vst.msk [vmem:[%s5345_s3 + $0x78] sm:$0xf] %vm3506_vm4, %v3504_v24 }
 0x384   :  { %v3468_v14 = vpop.f32.mrf.mxu1  ;;  %v3425_v22 = vpop.f32.mrf.mxu0 }
 0x385   :  { %v3505_v32 = vpack.c.bf16 %v3468_v14, %v3468_v14 }
 0x386   :  { %v4117_v53 = vpop.f32.mrf.mxu1  ;;  %v4112_v30 = vpop.f32.mrf.mxu0 }
 0x387   :  { %3538 = vst.msk [vmem:[%s5345_s3 + $0x7c] sm:$0xf] %vm3506_vm4, %v3505_v32 }
 0x388   :  { %v3471_v35 = vpop.f32.mrf.mxu1 }
 0x38a   :  { %v4118_v49 = vpop.f32.mrf.mxu1 }

// kernel: cdsa_forward_pallas.7
= control target key start
LH: loop header
LB: loop body
LE: loop exit
PB: predicated region body
PF: predicated region fallthrough
CT: control target
= control target key end

     0   :  { %vm191_vm0 = vcmask 31744   ;;  %vm1316_vm1 = vcmask 257024   ;;  %s2461_s1 = inlined_call_operand.vmem [shape: bf16[2,128,4], index: 1, kind: input, shape index: {}]   ;;  %s2462_s0 = inlined_call_operand.vmem [shape: bf16[2,128,4], index: 0, kind: input, shape index: {}]   ;;  %s2463_s2 = inlined_call_operand.vmem [shape: bf16[2,128,32], index: 2, kind: input, shape index: {}]   ;;  %s2464_s3 = inlined_call_operand.vmem [shape: bf16[2,128,32], index: 3, kind: output, shape index: {}]  }
   0x1   :  { %v1689_v0 = vld [vmem:[%s2461_s1 + $0x38] sm:$0xff]   ;;  %v1691_v3 = vld [vmem:[%s2461_s1 + $0x30] sm:$0xff]   ;;  %v1693_v7 = vld [vmem:[%s2461_s1 + $0x28] sm:$0xff]  }
   0x2   :  { %v1690_v1 = vld [vmem:[%s2461_s1 + $0x78] sm:$0xff]   ;;  %1673 = vmatprep.subr.msk.bf16.mxu0 %vm191_vm0, %v1689_v0  ;;  %v238_v2 = vsel %vm191_vm0, %v1689_v0, 0  ;;  %v1692_v5 = vld [vmem:[%s2461_s1 + $0x70] sm:$0xff]   ;;  %v235_v6 = vsel %vm191_vm0, %v1691_v3, 0  ;;  %v1694_v9 = vld [vmem:[%s2461_s1 + $0x68] sm:$0xff]   ;;  %v232_v12 = vsel %vm191_vm0, %v1693_v7, 0 }
   0x3   :  { %1681 = vmatprep.subr.msk.bf16.mxu1 %vm191_vm0, %v1690_v1  ;;  %1546 = vmatpush3.bf16.xpose.msra.mxu0 %v238_v2  ;;  %v463_v4 = vsel %vm191_vm0, %v1690_v1, 0  ;;  %v460_v8 = vsel %vm191_vm0, %v1692_v5, 0  ;;  %v1695_v10 = vld [vmem:[%s2461_s1 + $0x20] sm:$0xff]   ;;  %v457_v14 = vsel %vm191_vm0, %v1694_v9, 0  ;;  %v1697_v17 = vld [vmem:[%s2461_s1 + $0x18] sm:$0xff]   ;;  %v1699_v21 = vld [vmem:[%s2461_s1 + $0x10] sm:$0xff]  }
   0x4   :  { %1578 = vmatpush3.bf16.xpose.msra.mxu1 %v463_v4  ;;  %1674 = vmatprep.subr.msk.bf16.mxu0 %vm191_vm0, %v1691_v3  ;;  %v1696_v11 = vld [vmem:[%s2461_s1 + $0x60] sm:$0xff]   ;;  %v229_v16 = vsel %vm191_vm0, %v1695_v10, 0  ;;  %v1698_v19 = vld [vmem:[%s2461_s1 + $0x58] sm:$0xff]   ;;  %v226_v20 = vsel %vm191_vm0, %v1697_v17, 0  ;;  %v1700_v23 = vld [vmem:[%s2461_s1 + $0x50] sm:$0xff]   ;;  %v223_v24 = vsel %vm191_vm0, %v1699_v21, 0 }
   0x5   :  { %1682 = vmatprep.subr.msk.bf16.mxu1 %vm191_vm0, %v1692_v5  ;;  %v1705_v13 = vld [vmem:[%s2462_s0] sm:$0xff]   ;;  %v454_v18 = vsel %vm191_vm0, %v1696_v11, 0  ;;  %v451_v22 = vsel %vm191_vm0, %v1698_v19, 0  ;;  %v1701_v25 = vld [vmem:[%s2461_s1 + $0x8] sm:$0xff]   ;;  %v448_v26 = vsel %vm191_vm0, %v1700_v23, 0  ;;  %v1709_v36 = vld [vmem:[%s2462_s0 + $0x10] sm:$0xff]  }
   0x6   :  { %v1706_v15 = vld [vmem:[%s2462_s0 + $0x40] sm:$0xff]   ;;  %1561 = vmatprep.mubr.msk.bf16.mxu0 %vm191_vm0, %v1705_v13  ;;  %v1702_v27 = vld [vmem:[%s2461_s1 + $0x48] sm:$0xff]   ;;  %v220_v28 = vsel %vm191_vm0, %v1701_v25, 0  ;;  %v1711_v37 = vld [vmem:[%s2462_s0 + $0x50] sm:$0xff]  }
   0x7   :  { %1593 = vmatprep.mubr.msk.bf16.mxu1 %vm191_vm0, %v1706_v15  ;;  %v1703_v29 = vld [vmem:[%s2461_s1] sm:$0xff]   ;;  %v445_v30 = vsel %vm191_vm0, %v1702_v27, 0  ;;  %v1707_v34 = vld [vmem:[%s2462_s0 + $0x8] sm:$0xff]   ;;  %v1710_v38 = vld [vmem:[%s2462_s0 + $0x18] sm:$0xff]  }
   0x8   :  { %v1704_v31 = vld [vmem:[%s2461_s1 + $0x40] sm:$0xff]   ;;  %v217_v32 = vsel %vm191_vm0, %v1703_v29, 0  ;;  %v1708_v35 = vld [vmem:[%s2462_s0 + $0x48] sm:$0xff]   ;;  %v1712_v39 = vld [vmem:[%s2462_s0 + $0x58] sm:$0xff]  }
   0x9   :  { %v442_v33 = vsel %vm191_vm0, %v1704_v31, 0  ;;  %v1713_v40 = vld [vmem:[%s2462_s0 + $0x20] sm:$0xff]   ;;  %v1714_v42 = vld [vmem:[%s2462_s0 + $0x28] sm:$0xff]   ;;  %v1717_v44 = vld [vmem:[%s2462_s0 + $0x30] sm:$0xff]  }
   0xa   :  { %v1715_v41 = vld [vmem:[%s2462_s0 + $0x60] sm:$0xff]   ;;  %v1716_v43 = vld [vmem:[%s2462_s0 + $0x68] sm:$0xff]   ;;  %v1719_v45 = vld [vmem:[%s2462_s0 + $0x70] sm:$0xff]  }
   0xb   :  { %1548 = vmatpush3.bf16.xpose.msra.mxu0 %v235_v6  ;;  %v1718_v46 = vld [vmem:[%s2462_s0 + $0x38] sm:$0xff]  }
   0xc   :  { %1580 = vmatpush3.bf16.xpose.msra.mxu1 %v460_v8  ;;  %1675 = vmatprep.subr.msk.bf16.mxu0 %vm191_vm0, %v1693_v7  ;;  %v1720_v47 = vld [vmem:[%s2462_s0 + $0x78] sm:$0xff]  }
   0xd   :  { %1683 = vmatprep.subr.msk.bf16.mxu1 %vm191_vm0, %v1694_v9 }
  0x13   :  { %1550 = vmatpush3.bf16.xpose.msra.mxu0 %v232_v12 }
  0x14   :  { %1582 = vmatpush3.bf16.xpose.msra.mxu1 %v457_v14  ;;  %1676 = vmatprep.subr.msk.bf16.mxu0 %vm191_vm0, %v1695_v10 }
  0x15   :  { %1684 = vmatprep.subr.msk.bf16.mxu1 %vm191_vm0, %v1696_v11 }
  0x1b   :  { %1552 = vmatpush3.bf16.xpose.msra.mxu0 %v229_v16 }
  0x1c   :  { %1584 = vmatpush3.bf16.xpose.msra.mxu1 %v454_v18  ;;  %1677 = vmatprep.subr.msk.bf16.mxu0 %vm191_vm0, %v1697_v17 }
  0x1d   :  { %1685 = vmatprep.subr.msk.bf16.mxu1 %vm191_vm0, %v1698_v19 }
  0x23   :  { %1554 = vmatpush3.bf16.xpose.msra.mxu0 %v226_v20 }
  0x24   :  { %1586 = vmatpush3.bf16.xpose.msra.mxu1 %v451_v22  ;;  %1678 = vmatprep.subr.msk.bf16.mxu0 %vm191_vm0, %v1699_v21 }
  0x25   :  { %1686 = vmatprep.subr.msk.bf16.mxu1 %vm191_vm0, %v1700_v23 }
  0x2b   :  { %1556 = vmatpush3.bf16.xpose.msra.mxu0 %v223_v24 }
  0x2c   :  { %1588 = vmatpush3.bf16.xpose.msra.mxu1 %v448_v26  ;;  %1679 = vmatprep.subr.msk.bf16.mxu0 %vm191_vm0, %v1701_v25 }
  0x2d   :  { %1687 = vmatprep.subr.msk.bf16.mxu1 %vm191_vm0, %v1702_v27 }
  0x33   :  { %1558 = vmatpush3.bf16.xpose.msra.mxu0 %v220_v28 }
  0x34   :  { %1590 = vmatpush3.bf16.xpose.msra.mxu1 %v445_v30  ;;  %1680 = vmatprep.subr.msk.bf16.mxu0 %vm191_vm0, %v1703_v29 }
  0x35   :  { %1688 = vmatprep.subr.msk.bf16.mxu1 %vm191_vm0, %v1704_v31 }
  0x3b   :  { %1560 = vmatpush3.bf16.xpose.msra.mxu0 %v217_v32 }
  0x3c   :  { %1592 = vmatpush3.bf16.xpose.msra.mxu1 %v442_v33 }
  0x42   :  { %1562 = vmatmul.mubr.msk.bf16.vlgmr.msra.gmra.mxu0 %vm191_vm0, %v1707_v34 }
  0x43   :  { %1594 = vmatmul.mubr.msk.bf16.vlgmr.msra.gmra.mxu1 %vm191_vm0, %v1708_v35  ;;  %1565 = vmatprep.mubr.msk.bf16.mxu0 %vm191_vm0, %v1709_v36 }
  0x44   :  { %1597 = vmatprep.mubr.msk.bf16.mxu1 %vm191_vm0, %v1711_v37 }
  0x4a   :  { %1566 = vmatmul.mubr.msk.bf16.gmra.mxu0 %vm191_vm0, %v1710_v38 }
  0x4b   :  { %1598 = vmatmul.mubr.msk.bf16.gmra.mxu1 %vm191_vm0, %v1712_v39  ;;  %1569 = vmatprep.mubr.msk.bf16.mxu0 %vm191_vm0, %v1713_v40 }
  0x4c   :  { %1601 = vmatprep.mubr.msk.bf16.mxu1 %vm191_vm0, %v1715_v41 }
  0x52   :  { %1570 = vmatmul.mubr.msk.bf16.gmra.mxu0 %vm191_vm0, %v1714_v42 }
  0x53   :  { %1602 = vmatmul.mubr.msk.bf16.gmra.mxu1 %vm191_vm0, %v1716_v43  ;;  %1573 = vmatprep.mubr.msk.bf16.mxu0 %vm191_vm0, %v1717_v44 }
  0x54   :  { %1605 = vmatprep.mubr.msk.bf16.mxu1 %vm191_vm0, %v1719_v45 }
  0x5a   :  { %1574 = vmatmul.mubr.msk.bf16.gmra.mxu0 %vm191_vm0, %v1718_v46 }
  0x5b   :  { %1606 = vmatmul.mubr.msk.bf16.gmra.mxu1 %vm191_vm0, %v1720_v47 }
 0x102   :  { %v1563_v48 = vpop.f32.mrf.mxu0 }
 0x103   :  { %v2029_v49 = vmul.f32 0.5, %v1563_v48  ;;  %v1595_v50 = vpop.f32.mrf.mxu1 }
 0x104   :  { %v274_v51 = vpop.f32.mrf.mxu0  ;;  %v2034_v55 = vmul.f32 0.5, %v1595_v50 }
 0x105   :  { %v499_v52 = vpop.f32.mrf.mxu1  ;;  %598 = vmax.xlane.f32.xlu0 %v2029_v49  ;;  %v2040_v59 = vmul.f32 0.5, %v274_v51 }
 0x106   :  { %v2032_v53 = vmul.f32 0.5, %v499_v52  ;;  %v1564_v54 = vpop.f32.mrf.mxu0 }
 0x107   :  { %v1596_v56 = vpop.f32.mrf.mxu1  ;;  %v2038_v58 = vmul.f32 0.5, %v1564_v54 }
 0x108   :  { %626 = vmax.xlane.f32.xlu1 %v2032_v53  ;;  %v277_v57 = vpop.f32.mrf.mxu0  ;;  %v2044_v62 = vmul.f32 0.5, %v1596_v56 }
 0x109   :  { %630 = vmax.xlane.f32.xlu0 %v2034_v55  ;;  %v502_v61 = vpop.f32.mrf.mxu1  ;;  %v2046_v63 = vmul.f32 0.5, %v277_v57 }
 0x10a   :  { %v1567_v60 = vpop.f32.mrf.mxu0  ;;  %v2052_v3 = vmul.f32 0.5, %v502_v61 }
 0x10b   :  { %v1599_v1 = vpop.f32.mrf.mxu1  ;;  %v2049_v2 = vmul.f32 0.5, %v1567_v60 }
 0x10c   :  { %600 = vmax.xlane.f32.xlu1 %v2038_v58  ;;  %v290_v0 = vpop.f32.mrf.mxu0  ;;  %v2057_v7 = vmul.f32 0.5, %v1599_v1 }
 0x10d   :  { %594 = vmax.xlane.f32.xlu0 %v2040_v59  ;;  %v515_v5 = vpop.f32.mrf.mxu1  ;;  %v2064_v11 = vmul.f32 0.5, %v290_v0 }
 0x10e   :  { %v1568_v4 = vpop.f32.mrf.mxu0  ;;  %v2070_v15 = vmul.f32 0.5, %v515_v5 }
 0x10f   :  { %v2054_v6 = vmul.f32 0.5, %v1568_v4  ;;  %v1600_v8 = vpop.f32.mrf.mxu1 }
 0x110   :  { %632 = vmax.xlane.f32.xlu1 %v2044_v62  ;;  %v2060_v9 = vmul.f32 0.5, %v1600_v8  ;;  %v293_v10 = vpop.f32.mrf.mxu0 }
 0x111   :  { %596 = vmax.xlane.f32.xlu0 %v2046_v63  ;;  %v518_v13 = vpop.f32.mrf.mxu1  ;;  %v2068_v14 = vmul.f32 0.5, %v293_v10 }
 0x112   :  { %v1571_v12 = vpop.f32.mrf.mxu0  ;;  %v2076_v19 = vmul.f32 0.5, %v518_v13 }
 0x113   :  { %v1603_v17 = vpop.f32.mrf.mxu1  ;;  %v2073_v18 = vmul.f32 0.5, %v1571_v12 }
 0x114   :  { %628 = vmax.xlane.f32.xlu1 %v2052_v3  ;;  %v306_v16 = vpop.f32.mrf.mxu0  ;;  %v2081_v23 = vmul.f32 0.5, %v1603_v17 }
 0x115   :  { %606 = vmax.xlane.f32.xlu0 %v2049_v2  ;;  %v531_v21 = vpop.f32.mrf.mxu1  ;;  %v2088_v27 = vmul.f32 0.5, %v306_v16 }
 0x116   :  { %v1572_v20 = vpop.f32.mrf.mxu0  ;;  %v2094_v31 = vmul.f32 0.5, %v531_v21 }
 0x117   :  { %v2078_v22 = vmul.f32 0.5, %v1572_v20  ;;  %v1604_v24 = vpop.f32.mrf.mxu1 }
 0x118   :  { %608 = vmax.xlane.f32.xlu1 %v2054_v6  ;;  %v2084_v25 = vmul.f32 0.5, %v1604_v24  ;;  %v309_v26 = vpop.f32.mrf.mxu0 }
 0x119   :  { %638 = vmax.xlane.f32.xlu0 %v2057_v7  ;;  %v534_v29 = vpop.f32.mrf.mxu1  ;;  %v2092_v30 = vmul.f32 0.5, %v309_v26 }
 0x11a   :  { %v1575_v28 = vpop.f32.mrf.mxu0  ;;  %v2100_v35 = vmul.f32 0.5, %v534_v29 }
 0x11b   :  { %v1607_v33 = vpop.f32.mrf.mxu1  ;;  %v2097_v34 = vmul.f32 0.5, %v1575_v28 }
 0x11c   :  { %640 = vmax.xlane.f32.xlu1 %v2060_v9  ;;  %v322_v32 = vpop.f32.mrf.mxu0  ;;  %v2118_v46 = vmul.f32 0.5, %v1607_v33 }
 0x11d   :  { %602 = vmax.xlane.f32.xlu0 %v2064_v11  ;;  %v547_v37 = vpop.f32.mrf.mxu1  ;;  %v2106_v39 = vmul.f32 0.5, %v322_v32 }
 0x11e   :  { %v1576_v36 = vpop.f32.mrf.mxu0  ;;  %v2109_v42 = vmul.f32 0.5, %v547_v37 }
 0x11f   :  { %v2102_v38 = vmul.f32 0.5, %v1576_v36  ;;  %v1608_v41 = vpop.f32.mrf.mxu1 }
 0x120   :  { %604 = vmax.xlane.f32.xlu1 %v2068_v14  ;;  %v325_v40 = vpop.f32.mrf.mxu0  ;;  %v2122_v47 = vmul.f32 0.5, %v1608_v41 }
 0x121   :  { %634 = vmax.xlane.f32.xlu0 %v2070_v15  ;;  %v2112_v43 = vmul.f32 0.5, %v325_v40  ;;  %v550_v44 = vpop.f32.mrf.mxu1 }
 0x122   :  { %v2116_v45 = vmul.f32 0.5, %v550_v44 }
 0x124   :  { %636 = vmax.xlane.f32.xlu1 %v2076_v19 }
 0x125   :  { %614 = vmax.xlane.f32.xlu0 %v2073_v18 }
 0x128   :  { %616 = vmax.xlane.f32.xlu1 %v2078_v22 }
 0x129   :  { %646 = vmax.xlane.f32.xlu0 %v2081_v23 }
 0x12c   :  { %648 = vmax.xlane.f32.xlu1 %v2084_v25 }
 0x12d   :  { %610 = vmax.xlane.f32.xlu0 %v2088_v27 }
 0x130   :  { %612 = vmax.xlane.f32.xlu1 %v2092_v30 }
 0x131   :  { %642 = vmax.xlane.f32.xlu0 %v2094_v31 }
 0x134   :  { %644 = vmax.xlane.f32.xlu1 %v2100_v35 }
 0x135   :  { %622 = vmax.xlane.f32.xlu0 %v2097_v34 }
 0x138   :  { %624 = vmax.xlane.f32.xlu1 %v2102_v38 }
 0x139   :  { %618 = vmax.xlane.f32.xlu0 %v2106_v39 }
 0x13c   :  { %620 = vmax.xlane.f32.xlu1 %v2112_v43 }
 0x13d   :  { %650 = vmax.xlane.f32.xlu0 %v2109_v42 }
 0x140   :  { %652 = vmax.xlane.f32.xlu1 %v2116_v45 }
 0x141   :  { %654 = vmax.xlane.f32.xlu0 %v2118_v46 }
 0x144   :  { %656 = vmax.xlane.f32.xlu1 %v2122_v47 }
 0x18e   :  { %v599_v48 = vpop.xlane.xlu0 %598 }
 0x18f   :  { %v660_v50 = vsub.f32 %v2029_v49, %v599_v48 }
 0x191   :  { %v694_v51 = vmul.f32 1.442695, %v660_v50  ;;  %v627_v52 = vpop.xlane.xlu1 %626 }
 0x192   :  { %v631_v54 = vpop.xlane.xlu0 %630  ;;  %v674_v1 = vsub.f32 %v2032_v53, %v627_v52 }
 0x193   :  { %1737 = vpow2.f32 %v694_v51  ;;  %v676_v56 = vsub.f32 %v2034_v55, %v631_v54 }
 0x194   :  { %v722_v13 = vmul.f32 1.442695, %v674_v1  ;;  %v1722_v1 = vld [vmem:[%s2463_s2 + $0x30] sm:$0xff]  }
 0x195   :  { %v726_v57 = vmul.f32 1.442695, %v676_v56  ;;  %v601_v60 = vpop.xlane.xlu1 %600 }
 0x196   :  { %v661_v61 = vsub.f32 %v2038_v58, %v601_v60  ;;  %v595_v0 = vpop.xlane.xlu0 %594 }
 0x197   :  { %1739 = vpow2.f32 %v726_v57  ;;  %v658_v4 = vsub.f32 %v2040_v59, %v595_v0 }
 0x198   :  { %v696_v5 = vmul.f32 1.442695, %v661_v61 }
 0x199   :  { %v690_v8 = vmul.f32 1.442695, %v658_v4  ;;  %v633_v10 = vpop.xlane.xlu1 %632  ;;  %v1723_v4 = vld [vmem:[%s2463_s2 + $0x78] sm:$0xff]  }
 0x19a   :  { %1741 = vpow2.f32 %v696_v5  ;;  %v677_v49 = vsub.f32 %v2044_v62, %v633_v10  ;;  %v597_v12 = vpop.xlane.xlu0 %596  ;;  %1641 = vmatprep.subr.bf16.mxu1 %v1723_v4 }
 0x19b   :  { %1743 = vpow2.f32 %v690_v8  ;;  %v659_v55 = vsub.f32 %v2046_v63, %v597_v12  ;;  %1642 = vmatpush3.bf16.msra.mxu1 %v1723_v4  ;;  %v1733_v4 = vld [vmem:[%s2463_s2 + $0x50] sm:$0xff]  }
 0x19c   :  { %v728_v16 = vmul.f32 1.442695, %v677_v49 }
 0x19d   :  { %v629_v17 = vpop.xlane.xlu1 %628  ;;  %v692_v58 = vmul.f32 1.442695, %v659_v55  ;;  %v1724_v55 = vld [vmem:[%s2463_s2 + $0x28] sm:$0xff]  }
 0x19e   :  { %1745 = vpow2.f32 %v728_v16  ;;  %v675_v53 = vsub.f32 %v2052_v3, %v629_v17  ;;  %v607_v20 = vpop.xlane.xlu0 %606  ;;  %v1725_v16 = vld [vmem:[%s2463_s2 + $0x70] sm:$0xff]  }
 0x19f   :  { %1747 = vpow2.f32 %v722_v13  ;;  %v664_v59 = vsub.f32 %v2049_v2, %v607_v20  ;;  %1643 = vmatprep.subr.bf16.mxu1 %v1725_v16 }
 0x1a0   :  { %v2134_v21 = vpop.eup %1737  ;;  %1749 = vpow2.f32 %v692_v58  ;;  %v724_v62 = vmul.f32 1.442695, %v675_v53  ;;  %1644 = vmatpush3.bf16.msra.mxu1 %v1725_v16  ;;  %v1735_v16 = vld [vmem:[%s2463_s2 + $0x48] sm:$0xff]  }
 0x1a1   :  { %v702_v24 = vmul.f32 1.442695, %v664_v59  ;;  %v609_v26 = vpop.xlane.xlu1 %608  ;;  %758 = vadd.xlane.f32.xlu0 %v2134_v21 }
 0x1a2   :  { %v665_v63 = vsub.f32 %v2054_v6, %v609_v26  ;;  %v639_v28 = vpop.xlane.xlu0 %638  ;;  %v1726_v26 = vld [vmem:[%s2463_s2 + $0x20] sm:$0xff]  }
 0x1a3   :  { %1751 = vpow2.f32 %v702_v24  ;;  %v680_v29 = vsub.f32 %v2057_v7, %v639_v28 }
 0x1a4   :  { %v2139_v32 = vpop.eup %1739  ;;  %1753 = vpow2.f32 %v724_v62  ;;  %v704_v2 = vmul.f32 1.442695, %v665_v63  ;;  %v1727_v62 = vld [vmem:[%s2463_s2 + $0x68] sm:$0xff]  }
 0x1a5   :  { %v734_v3 = vmul.f32 1.442695, %v680_v29  ;;  %v641_v33 = vpop.xlane.xlu1 %640  ;;  %790 = vadd.xlane.f32.xlu0 %v2139_v32  ;;  %1645 = vmatprep.subr.bf16.mxu1 %v1727_v62 }
 0x1a6   :  { %v681_v36 = vsub.f32 %v2060_v9, %v641_v33  ;;  %v603_v37 = vpop.xlane.xlu0 %602  ;;  %1646 = vmatpush3.bf16.msra.mxu1 %v1727_v62 }
 0x1a7   :  { %v2143_v40 = vpop.eup %1741  ;;  %1755 = vpow2.f32 %v734_v3  ;;  %v662_v6 = vsub.f32 %v2064_v11, %v603_v37  ;;  %v1721_v11 = vld [vmem:[%s2463_s2 + $0x38] sm:$0xff]   ;;  %v1729_v37 = vld [vmem:[%s2463_s2 + $0x60] sm:$0xff]  }
 0x1a8   :  { %v2146_v41 = vpop.eup %1743  ;;  %760 = vadd.xlane.f32.xlu1 %v2143_v40  ;;  %1757 = vpow2.f32 %v704_v2  ;;  %v736_v48 = vmul.f32 1.442695, %v681_v36  ;;  %1609 = vmatprep.subr.bf16.mxu0 %v1721_v11  ;;  %v1728_v36 = vld [vmem:[%s2463_s2 + $0x18] sm:$0xff]  }
 0x1a9   :  { %v698_v7 = vmul.f32 1.442695, %v662_v6  ;;  %v605_v44 = vpop.xlane.xlu1 %604  ;;  %754 = vadd.xlane.f32.xlu0 %v2146_v41  ;;  %1610 = vmatpush3.bf16.msra.mxu0 %v1721_v11  ;;  %v1731_v11 = vld [vmem:[%s2463_s2 + $0x58] sm:$0xff]  }
 0x1aa   :  { %v663_v50 = vsub.f32 %v2068_v14, %v605_v44  ;;  %v635_v51 = vpop.xlane.xlu0 %634  ;;  %1611 = vmatprep.subr.bf16.mxu0 %v1722_v1  ;;  %1647 = vmatprep.subr.bf16.mxu1 %v1729_v37 }
 0x1ab   :  { %v2151_v9 = vpop.eup %1745  ;;  %1759 = vpow2.f32 %v698_v7  ;;  %v678_v52 = vsub.f32 %v2070_v15, %v635_v51  ;;  %1648 = vmatpush3.bf16.msra.mxu1 %v1729_v37 }
 0x1ac   :  { %v2157_v54 = vpop.eup %1747  ;;  %v700_v56 = vmul.f32 1.442695, %v663_v50  ;;  %792 = vadd.xlane.f32.xlu1 %v2151_v9  ;;  %1761 = vpow2.f32 %v736_v48  ;;  %1649 = vmatprep.subr.bf16.mxu1 %v1731_v11 }
 0x1ad   :  { %v730_v57 = vmul.f32 1.442695, %v678_v52  ;;  %v637_v60 = vpop.xlane.xlu1 %636  ;;  %786 = vadd.xlane.f32.xlu0 %v2157_v54  ;;  %v2162_v15 = vpop.eup %1749  ;;  %1612 = vmatpush3.bf16.msra.mxu0 %v1722_v1  ;;  %v1730_v52 = vld [vmem:[%s2463_s2 + $0x10] sm:$0xff]   ;;  %v1732_v1 = vld [vmem:[%s2463_s2 + $0x8] sm:$0xff]  }
 0x1ae   :  { %v679_v14 = vsub.f32 %v2076_v19, %v637_v60  ;;  %v615_v61 = vpop.xlane.xlu0 %614  ;;  %1613 = vmatprep.subr.bf16.mxu0 %v1724_v55 }
 0x1af   :  { %1763 = vpow2.f32 %v730_v57  ;;  %v668_v0 = vsub.f32 %v2073_v18, %v615_v61  ;;  %1650 = vmatpush3.bf16.msra.mxu1 %v1731_v11 }
 0x1b0   :  { %v2171_v5 = vpop.eup %1751  ;;  %v732_v8 = vmul.f32 1.442695, %v679_v14  ;;  %756 = vadd.xlane.f32.xlu1 %v2162_v15  ;;  %1765 = vpow2.f32 %v700_v56  ;;  %1651 = vmatprep.subr.bf16.mxu1 %v1733_v4 }
 0x1b1   :  { %v710_v19 = vmul.f32 1.442695, %v668_v0  ;;  %v617_v10 = vpop.xlane.xlu1 %616  ;;  %766 = vadd.xlane.f32.xlu0 %v2171_v5  ;;  %v2176_v12 = vpop.eup %1753  ;;  %1614 = vmatpush3.bf16.msra.mxu0 %v1724_v55  ;;  %v1734_v55 = vld [vmem:[%s2463_s2] sm:$0xff]  }
 0x1b2   :  { %v669_v18 = vsub.f32 %v2078_v22, %v617_v10  ;;  %v647_v49 = vpop.xlane.xlu0 %646  ;;  %1615 = vmatprep.subr.bf16.mxu0 %v1726_v26 }
 0x1b3   :  { %1767 = vpow2.f32 %v710_v19  ;;  %v684_v13 = vsub.f32 %v2081_v23, %v647_v49  ;;  %1652 = vmatpush3.bf16.msra.mxu1 %v1733_v4 }
 0x1b4   :  { %v2185_v17 = vpop.eup %1755  ;;  %v712_v22 = vmul.f32 1.442695, %v669_v18  ;;  %788 = vadd.xlane.f32.xlu1 %v2176_v12  ;;  %1769 = vpow2.f32 %v732_v8  ;;  %1653 = vmatprep.subr.bf16.mxu1 %v1735_v16 }
 0x1b5   :  { %v742_v58 = vmul.f32 1.442695, %v684_v13  ;;  %v649_v53 = vpop.xlane.xlu1 %648  ;;  %798 = vadd.xlane.f32.xlu0 %v2185_v17  ;;  %v2190_v59 = vpop.eup %1757  ;;  %1616 = vmatpush3.bf16.msra.mxu0 %v1726_v26  ;;  %v1736_v26 = vld [vmem:[%s2463_s2 + $0x40] sm:$0xff]  }
 0x1b6   :  { %v685_v23 = vsub.f32 %v2084_v25, %v649_v53  ;;  %v611_v20 = vpop.xlane.xlu0 %610  ;;  %1617 = vmatprep.subr.bf16.mxu0 %v1728_v36 }
 0x1b7   :  { %1771 = vpow2.f32 %v742_v58  ;;  %v666_v24 = vsub.f32 %v2088_v27, %v611_v20  ;;  %1654 = vmatpush3.bf16.msra.mxu1 %v1735_v16 }
 0x1b8   :  { %v2199_v63 = vpop.eup %1759  ;;  %768 = vadd.xlane.f32.xlu1 %v2190_v59  ;;  %1773 = vpow2.f32 %v712_v22  ;;  %v744_v27 = vmul.f32 1.442695, %v685_v23  ;;  %1655 = vmatprep.subr.bf16.mxu1 %v1736_v26 }
 0x1b9   :  { %v706_v25 = vmul.f32 1.442695, %v666_v24  ;;  %v613_v28 = vpop.xlane.xlu1 %612  ;;  %762 = vadd.xlane.f32.xlu0 %v2199_v63  ;;  %v2204_v33 = vpop.eup %1761  ;;  %1618 = vmatpush3.bf16.msra.mxu0 %v1728_v36 }
 0x1ba   :  { %v667_v29 = vsub.f32 %v2092_v30, %v613_v28  ;;  %v643_v3 = vpop.xlane.xlu0 %642  ;;  %1619 = vmatprep.subr.bf16.mxu0 %v1730_v52 }
 0x1bb   :  { %1775 = vpow2.f32 %v706_v25  ;;  %v682_v2 = vsub.f32 %v2094_v31, %v643_v3  ;;  %1656 = vmatpush3.bf16.msra.mxu1 %v1736_v26 }
 0x1bc   :  { %v2213_v6 = vpop.eup %1763  ;;  %800 = vadd.xlane.f32.xlu1 %v2204_v33  ;;  %1777 = vpow2.f32 %v744_v27  ;;  %v708_v31 = vmul.f32 1.442695, %v667_v29 }
 0x1bd   :  { %v738_v30 = vmul.f32 1.442695, %v682_v2  ;;  %v645_v7 = vpop.xlane.xlu1 %644  ;;  %794 = vadd.xlane.f32.xlu0 %v2213_v6  ;;  %v2218_v50 = vpop.eup %1765  ;;  %1620 = vmatpush3.bf16.msra.mxu0 %v1730_v52 }
 0x1be   :  { %v683_v44 = vsub.f32 %v2100_v35, %v645_v7  ;;  %v623_v48 = vpop.xlane.xlu0 %622  ;;  %1621 = vmatprep.subr.bf16.mxu0 %v1732_v1 }
 0x1bf   :  { %1779 = vpow2.f32 %v738_v30  ;;  %v672_v51 = vsub.f32 %v2097_v34, %v623_v48 }
 0x1c0   :  { %v2227_v56 = vpop.eup %1767  ;;  %764 = vadd.xlane.f32.xlu1 %v2218_v50  ;;  %1781 = vpow2.f32 %v708_v31  ;;  %v740_v34 = vmul.f32 1.442695, %v683_v44 }
 0x1c1   :  { %v718_v35 = vmul.f32 1.442695, %v672_v51  ;;  %v625_v57 = vpop.xlane.xlu1 %624  ;;  %774 = vadd.xlane.f32.xlu0 %v2227_v56  ;;  %v2232_v61 = vpop.eup %1769  ;;  %1622 = vmatpush3.bf16.msra.mxu0 %v1732_v1 }
 0x1c2   :  { %v673_v60 = vsub.f32 %v2102_v38, %v625_v57  ;;  %v619_v14 = vpop.xlane.xlu0 %618  ;;  %1623 = vmatprep.subr.bf16.mxu0 %v1734_v55 }
 0x1c3   :  { %1783 = vpow2.f32 %v718_v35  ;;  %v670_v0 = vsub.f32 %v2106_v39, %v619_v14 }
 0x1c4   :  { %v2241_v8 = vpop.eup %1771  ;;  %796 = vadd.xlane.f32.xlu1 %v2232_v61  ;;  %1785 = vpow2.f32 %v740_v34  ;;  %v720_v39 = vmul.f32 1.442695, %v673_v60 }
 0x1c5   :  { %v714_v38 = vmul.f32 1.442695, %v670_v0  ;;  %v621_v19 = vpop.xlane.xlu1 %620  ;;  %806 = vadd.xlane.f32.xlu0 %v2241_v8  ;;  %v2246_v49 = vpop.eup %1773  ;;  %1624 = vmatpush3.bf16.msra.mxu0 %v1734_v55 }
 0x1c6   :  { %v671_v10 = vsub.f32 %v2112_v43, %v621_v19  ;;  %v651_v18 = vpop.xlane.xlu0 %650 }
 0x1c7   :  { %1787 = vpow2.f32 %v714_v38  ;;  %v686_v13 = vsub.f32 %v2109_v42, %v651_v18 }
 0x1c8   :  { %v2255_v22 = vpop.eup %1775  ;;  %776 = vadd.xlane.f32.xlu1 %v2246_v49  ;;  %1789 = vpow2.f32 %v720_v39  ;;  %v716_v42 = vmul.f32 1.442695, %v671_v10 }
 0x1c9   :  { %v746_v43 = vmul.f32 1.442695, %v686_v13  ;;  %v653_v58 = vpop.xlane.xlu1 %652  ;;  %770 = vadd.xlane.f32.xlu0 %v2255_v22  ;;  %v2260_v20 = vpop.eup %1777 }
 0x1ca   :  { %v687_v53 = vsub.f32 %v2116_v45, %v653_v58  ;;  %v655_v23 = vpop.xlane.xlu0 %654 }
 0x1cb   :  { %1791 = vpow2.f32 %v746_v43  ;;  %v688_v24 = vsub.f32 %v2118_v46, %v655_v23 }
 0x1cc   :  { %v2266_v62 = vpop.eup %1779  ;;  %808 = vadd.xlane.f32.xlu1 %v2260_v20  ;;  %1793 = vpow2.f32 %v716_v42  ;;  %v748_v45 = vmul.f32 1.442695, %v687_v53 }
 0x1cd   :  { %v750_v25 = vmul.f32 1.442695, %v688_v24  ;;  %v657_v28 = vpop.xlane.xlu1 %656  ;;  %802 = vadd.xlane.f32.xlu0 %v2266_v62  ;;  %v2271_v29 = vpop.eup %1781 }
 0x1ce   :  { %v689_v27 = vsub.f32 %v2122_v47, %v657_v28 }
 0x1cf   :  { %1795 = vpow2.f32 %v750_v25 }
 0x1d0   :  { %v2273_v46 = vpop.eup %1783  ;;  %772 = vadd.xlane.f32.xlu1 %v2271_v29  ;;  %1797 = vpow2.f32 %v748_v45  ;;  %v752_v3 = vmul.f32 1.442695, %v689_v27 }
 0x1d1   :  { %782 = vadd.xlane.f32.xlu0 %v2273_v46  ;;  %v2277_v2 = vpop.eup %1785 }
 0x1d2   :  { %1799 = vpow2.f32 %v752_v3 }
 0x1d4   :  { %v2279_v36 = vpop.eup %1787  ;;  %804 = vadd.xlane.f32.xlu1 %v2277_v2 }
 0x1d5   :  { %778 = vadd.xlane.f32.xlu0 %v2279_v36  ;;  %v2283_v47 = vpop.eup %1789 }
 0x1d8   :  { %v2285_v37 = vpop.eup %1791  ;;  %784 = vadd.xlane.f32.xlu1 %v2283_v47 }
 0x1d9   :  { %810 = vadd.xlane.f32.xlu0 %v2285_v37  ;;  %v2289_v30 = vpop.eup %1793 }
 0x1dc   :  { %v2291_v7 = vpop.eup %1795  ;;  %780 = vadd.xlane.f32.xlu1 %v2289_v30 }
 0x1dd   :  { %814 = vadd.xlane.f32.xlu0 %v2291_v7  ;;  %v2295_v31 = vpop.eup %1797 }
 0x1df   :  { %v2298_v44 = vpop.eup %1799 }
 0x1e0   :  { %812 = vadd.xlane.f32.xlu1 %v2295_v31 }
 0x1e4   :  { %816 = vadd.xlane.f32.xlu1 %v2298_v44 }
 0x22a   :  { %v759_v48 = vpop.xlane.xlu0 %758 }
 0x22e   :  { %v791_v51 = vpop.xlane.xlu0 %790 }
 0x231   :  { %v761_v52 = vpop.xlane.xlu1 %760 }
 0x232   :  { %v755_v11 = vpop.xlane.xlu0 %754  ;;  %1801 = vrcp.f32 %v761_v52 }
 0x233   :  { %1803 = vrcp.f32 %v755_v11 }
 0x234   :  { %1805 = vrcp.f32 %v759_v48 }
 0x235   :  { %v793_v35 = vpop.xlane.xlu1 %792 }
 0x236   :  { %v787_v57 = vpop.xlane.xlu0 %786 }
 0x239   :  { %v757_v34 = vpop.xlane.xlu1 %756 }
 0x23a   :  { %1807 = vrcp.f32 %v757_v34  ;;  %v767_v60 = vpop.xlane.xlu0 %766 }
 0x23b   :  { %1809 = vrcp.f32 %v793_v35 }
 0x23c   :  { %1811 = vrcp.f32 %v787_v57 }
 0x23d   :  { %1813 = vrcp.f32 %v791_v51  ;;  %v789_v14 = vpop.xlane.xlu1 %788 }
 0x23e   :  { %1815 = vrcp.f32 %v789_v14  ;;  %v799_v0 = vpop.xlane.xlu0 %798 }
 0x23f   :  { %v1802_v38 = vpop.eup %1801 }
 0x240   :  { %v1804_v19 = vpop.eup %1803  ;;  %v853_v55 = vmul.f32 %v1802_v38, %v2143_v40 }
 0x241   :  { %v769_v1 = vpop.xlane.xlu1 %768  ;;  %v1806_v10 = vpop.eup %1805  ;;  %v850_v43 = vmul.f32 %v1804_v19, %v2146_v41 }
 0x242   :  { %v763_v4 = vpop.xlane.xlu0 %762  ;;  %1817 = vrcp.f32 %v769_v1  ;;  %v852_v23 = vmul.f32 %v1806_v10, %v2134_v21 }
 0x243   :  { %1819 = vrcp.f32 %v763_v4 }
 0x244   :  { %1821 = vrcp.f32 %v767_v60  ;;  %v883_v45 = vpack.c.bf16 %v853_v55, %v852_v23 }
 0x245   :  { %v801_v39 = vpop.xlane.xlu1 %800 }
 0x246   :  { %v795_v18 = vpop.xlane.xlu0 %794 }
 0x247   :  { %v1808_v13 = vpop.eup %1807 }
 0x248   :  { %v1810_v16 = vpop.eup %1809  ;;  %v851_v58 = vmul.f32 %v1808_v13, %v2162_v15 }
 0x249   :  { %v1812_v42 = vpop.eup %1811  ;;  %v765_v53 = vpop.xlane.xlu1 %764  ;;  %v869_v40 = vmul.f32 %v1810_v16, %v2151_v9 }
 0x24a   :  { %v1814_v24 = vpop.eup %1813  ;;  %1823 = vrcp.f32 %v765_v53  ;;  %v775_v26 = vpop.xlane.xlu0 %774  ;;  %v882_v25 = vpack.c.bf16 %v851_v58, %v850_v43  ;;  %v866_v41 = vmul.f32 %v1812_v42, %v2157_v54 }
 0x24b   :  { %v1816_v28 = vpop.eup %1815  ;;  %1825 = vrcp.f32 %v801_v39  ;;  %v868_v21 = vmul.f32 %v1814_v24, %v2139_v32 }
 0x24c   :  { %1827 = vrcp.f32 %v795_v18  ;;  %1625 = vmatprep.mubr.bf16.mxu0 %v882_v25  ;;  %v867_v15 = vmul.f32 %v1816_v28, %v2176_v12 }
 0x24d   :  { %1829 = vrcp.f32 %v799_v0  ;;  %1626 = vmatmul.mubr.bf16.vlgmr.msra.gmra.mxu0 %v883_v45  ;;  %v797_v27 = vpop.xlane.xlu1 %796  ;;  %v891_v51 = vpack.c.bf16 %v869_v40, %v868_v21 }
 0x24e   :  { %1831 = vrcp.f32 %v797_v27  ;;  %v807_v3 = vpop.xlane.xlu0 %806  ;;  %v890_v48 = vpack.c.bf16 %v867_v15, %v866_v41 }
 0x24f   :  { %v1818_v9 = vpop.eup %1817 }
 0x250   :  { %1657 = vmatprep.mubr.bf16.mxu1 %v890_v48  ;;  %v1820_v35 = vpop.eup %1819  ;;  %v857_v12 = vmul.f32 %v1818_v9, %v2190_v59 }
 0x251   :  { %1658 = vmatmul.mubr.bf16.vlgmr.msra.gmra.mxu1 %v891_v51  ;;  %v777_v52 = vpop.xlane.xlu1 %776  ;;  %v1822_v34 = vpop.eup %1821  ;;  %v854_v32 = vmul.f32 %v1820_v35, %v2199_v63 }
 0x252   :  { %v771_v11 = vpop.xlane.xlu0 %770  ;;  %1833 = vrcp.f32 %v777_v52  ;;  %v856_v38 = vmul.f32 %v1822_v34, %v2171_v5 }
 0x253   :  { %1835 = vrcp.f32 %v771_v11 }
 0x254   :  { %1837 = vrcp.f32 %v775_v26  ;;  %v885_v13 = vpack.c.bf16 %v857_v12, %v856_v38 }
 0x255   :  { %v809_v57 = vpop.xlane.xlu1 %808 }
 0x256   :  { %v803_v54 = vpop.xlane.xlu0 %802 }
 0x257   :  { %v1824_v60 = vpop.eup %1823 }
 0x258   :  { %v1826_v14 = vpop.eup %1825  ;;  %v855_v0 = vmul.f32 %v1824_v60, %v2218_v50 }
 0x259   :  { %v1828_v1 = vpop.eup %1827  ;;  %v773_v4 = vpop.xlane.xlu1 %772  ;;  %v873_v59 = vmul.f32 %v1826_v14, %v2204_v33 }
 0x25a   :  { %v1830_v19 = vpop.eup %1829  ;;  %1839 = vrcp.f32 %v773_v4  ;;  %v783_v39 = vpop.xlane.xlu0 %782  ;;  %v884_v10 = vpack.c.bf16 %v855_v0, %v854_v32  ;;  %v870_v63 = vmul.f32 %v1828_v1, %v2213_v6 }
 0x25b   :  { %v1832_v18 = vpop.eup %1831  ;;  %1841 = vrcp.f32 %v809_v57  ;;  %v872_v5 = vmul.f32 %v1830_v19, %v2185_v17 }
 0x25c   :  { %1843 = vrcp.f32 %v803_v54  ;;  %1629 = vmatprep.mubr.bf16.mxu0 %v884_v10  ;;  %v871_v50 = vmul.f32 %v1832_v18, %v2232_v61 }
 0x25d   :  { %1845 = vrcp.f32 %v807_v3  ;;  %1630 = vmatmul.mubr.bf16.gmra.mxu0 %v885_v13  ;;  %v805_v55 = vpop.xlane.xlu1 %804  ;;  %v893_v58 = vpack.c.bf16 %v873_v59, %v872_v5 }
 0x25e   :  { %1847 = vrcp.f32 %v805_v55  ;;  %v779_v16 = vpop.xlane.xlu0 %778  ;;  %v892_v43 = vpack.c.bf16 %v871_v50, %v870_v63 }
 0x25f   :  { %v1834_v53 = vpop.eup %1833 }
 0x260   :  { %1661 = vmatprep.mubr.bf16.mxu1 %v892_v43  ;;  %v1836_v23 = vpop.eup %1835  ;;  %v861_v26 = vmul.f32 %v1834_v53, %v2246_v49 }
 0x261   :  { %1662 = vmatmul.mubr.bf16.gmra.mxu1 %v893_v58  ;;  %v785_v42 = vpop.xlane.xlu1 %784  ;;  %v1838_v61 = vpop.eup %1837  ;;  %v858_v25 = vmul.f32 %v1836_v23, %v2255_v22 }
 0x262   :  { %1849 = vrcp.f32 %v785_v42  ;;  %v811_v33 = vpop.xlane.xlu0 %810  ;;  %v860_v15 = vmul.f32 %v1838_v61, %v2227_v56 }
 0x263   :  { %1851 = vrcp.f32 %v779_v16 }
 0x264   :  { %1853 = vrcp.f32 %v783_v39  ;;  %v887_v48 = vpack.c.bf16 %v861_v26, %v860_v15 }
 0x265   :  { %v781_v6 = vpop.xlane.xlu1 %780 }
 0x266   :  { %1855 = vrcp.f32 %v781_v6  ;;  %v815_v40 = vpop.xlane.xlu0 %814 }
 0x267   :  { %v1840_v24 = vpop.eup %1839  ;;  %1857 = vrcp.f32 %v811_v33 }
 0x268   :  { %v1842_v17 = vpop.eup %1841  ;;  %v859_v28 = vmul.f32 %v1840_v24, %v2271_v29 }
 0x269   :  { %v1844_v45 = vpop.eup %1843  ;;  %v813_v41 = vpop.xlane.xlu1 %812  ;;  %v877_v51 = vmul.f32 %v1842_v17, %v2260_v20 }
 0x26a   :  { %v1846_v27 = vpop.eup %1845  ;;  %1859 = vrcp.f32 %v813_v41  ;;  %v886_v21 = vpack.c.bf16 %v859_v28, %v858_v25  ;;  %v874_v49 = vmul.f32 %v1844_v45, %v2266_v62 }
 0x26b   :  { %v1848_v3 = vpop.eup %1847  ;;  %1861 = vrcp.f32 %v815_v40  ;;  %v876_v52 = vmul.f32 %v1846_v27, %v2241_v8 }
 0x26c   :  { %1633 = vmatprep.mubr.bf16.mxu0 %v886_v21  ;;  %v875_v22 = vmul.f32 %v1848_v3, %v2277_v2 }
 0x26d   :  { %1634 = vmatmul.mubr.bf16.gmra.mxu0 %v887_v48  ;;  %v817_v29 = vpop.xlane.xlu1 %816  ;;  %v895_v56 = vpack.c.bf16 %v877_v51, %v876_v52 }
 0x26e   :  { %1863 = vrcp.f32 %v817_v29  ;;  %v894_v11 = vpack.c.bf16 %v875_v22, %v874_v49 }
 0x26f   :  { %v1850_v9 = vpop.eup %1849 }
 0x270   :  { %1665 = vmatprep.mubr.bf16.mxu1 %v894_v11  ;;  %v1852_v35 = vpop.eup %1851  ;;  %v865_v20 = vmul.f32 %v1850_v9, %v2283_v47 }
 0x271   :  { %1666 = vmatmul.mubr.bf16.gmra.mxu1 %v895_v56  ;;  %v1854_v57 = vpop.eup %1853  ;;  %v862_v54 = vmul.f32 %v1852_v35, %v2279_v36 }
 0x272   :  { %v864_v60 = vmul.f32 %v1854_v57, %v2273_v46 }
 0x273   :  { %v1856_v34 = vpop.eup %1855 }
 0x274   :  { %v863_v62 = vmul.f32 %v1856_v34, %v2289_v30  ;;  %v1858_v2 = vpop.eup %1857  ;;  %v889_v14 = vpack.c.bf16 %v865_v20, %v864_v60 }
 0x275   :  { %v878_v32 = vmul.f32 %v1858_v2, %v2285_v37 }
 0x276   :  { %v888_v12 = vpack.c.bf16 %v863_v62, %v862_v54 }
 0x277   :  { %v1860_v8 = vpop.eup %1859 }
 0x278   :  { %1637 = vmatprep.mubr.bf16.mxu0 %v888_v12  ;;  %v879_v0 = vmul.f32 %v1860_v8, %v2295_v31  ;;  %v1862_v1 = vpop.eup %1861 }
 0x279   :  { %1638 = vmatmul.mubr.bf16.gmra.mxu0 %v889_v14  ;;  %v880_v36 = vmul.f32 %v1862_v1, %v2291_v7 }
 0x27a   :  { %v896_v4 = vpack.c.bf16 %v879_v0, %v878_v32 }
 0x27b   :  { %v1864_v38 = vpop.eup %1863 }
 0x27c   :  { %1669 = vmatprep.mubr.bf16.mxu1 %v896_v4  ;;  %v881_v47 = vmul.f32 %v1864_v38, %v2298_v44 }
 0x27e   :  { %v897_v30 = vpack.c.bf16 %v881_v47, %v880_v36 }
 0x280   :  { %1670 = vmatmul.mubr.bf16.gmra.mxu1 %v897_v30 }
 0x30d   :  { %v1627_v46 = vpop.f32.mrf.mxu0 }
 0x30e   :  { %v1451_v19 = vpack.c.bf16 %v1627_v46, %v1627_v46 }
 0x30f   :  { %v980_v39 = vpop.f32.mrf.mxu0 }
 0x310   :  { %1319 = vst.msk [vmem:[%s2464_s3 + $0x8] sm:$0xf] %vm1316_vm1, %v1451_v19  ;;  %v1449_v37 = vpack.c.bf16 %v980_v39, %v980_v39 }
 0x311   :  { %v1628_v31 = vpop.f32.mrf.mxu0  ;;  %v1659_v10 = vpop.f32.mrf.mxu1 }
 0x312   :  { %1317 = vst.msk [vmem:[%s2464_s3] sm:$0xf] %vm1316_vm1, %v1449_v37  ;;  %v1452_v7 = vpack.c.bf16 %v1628_v31, %v1628_v31  ;;  %v1467_v44 = vpack.c.bf16 %v1659_v10, %v1659_v10 }
 0x313   :  { %v983_v18 = vpop.f32.mrf.mxu0  ;;  %v1125_v13 = vpop.f32.mrf.mxu1 }
 0x314   :  { %1320 = vst.msk [vmem:[%s2464_s3 + $0xc] sm:$0xf] %vm1316_vm1, %v1452_v7  ;;  %1335 = vst.msk [vmem:[%s2464_s3 + $0x48] sm:$0xf] %vm1316_vm1, %v1467_v44  ;;  %v1450_v59 = vpack.c.bf16 %v983_v18, %v983_v18  ;;  %v1465_v63 = vpack.c.bf16 %v1125_v13, %v1125_v13 }
 0x315   :  { %v1660_v50 = vpop.f32.mrf.mxu1 }
 0x316   :  { %1318 = vst.msk [vmem:[%s2464_s3 + $0x4] sm:$0xf] %vm1316_vm1, %v1450_v59  ;;  %1333 = vst.msk [vmem:[%s2464_s3 + $0x40] sm:$0xf] %vm1316_vm1, %v1465_v63  ;;  %v1468_v55 = vpack.c.bf16 %v1660_v50, %v1660_v50 }
 0x317   :  { %v1128_v5 = vpop.f32.mrf.mxu1 }
 0x318   :  { %1336 = vst.msk [vmem:[%s2464_s3 + $0x4c] sm:$0xf] %vm1316_vm1, %v1468_v55  ;;  %v1466_v16 = vpack.c.bf16 %v1128_v5, %v1128_v5 }
 0x31a   :  { %1334 = vst.msk [vmem:[%s2464_s3 + $0x44] sm:$0xf] %vm1316_vm1, %v1466_v16 }
 0x31d   :  { %v1631_v43 = vpop.f32.mrf.mxu0 }
 0x31e   :  { %v1455_v58 = vpack.c.bf16 %v1631_v43, %v1631_v43 }
 0x31f   :  { %v996_v42 = vpop.f32.mrf.mxu0 }
 0x320   :  { %1323 = vst.msk [vmem:[%s2464_s3 + $0x18] sm:$0xf] %vm1316_vm1, %v1455_v58  ;;  %v1453_v33 = vpack.c.bf16 %v996_v42, %v996_v42 }
 0x321   :  { %v1632_v53 = vpop.f32.mrf.mxu0  ;;  %v1663_v23 = vpop.f32.mrf.mxu1 }
 0x322   :  { %1321 = vst.msk [vmem:[%s2464_s3 + $0x10] sm:$0xf] %vm1316_vm1, %v1453_v33  ;;  %v1456_v6 = vpack.c.bf16 %v1632_v53, %v1632_v53  ;;  %v1471_v61 = vpack.c.bf16 %v1663_v23, %v1663_v23 }
 0x323   :  { %v999_v24 = vpop.f32.mrf.mxu0  ;;  %v1141_v26 = vpop.f32.mrf.mxu1 }
 0x324   :  { %1324 = vst.msk [vmem:[%s2464_s3 + $0x1c] sm:$0xf] %vm1316_vm1, %v1456_v6  ;;  %1339 = vst.msk [vmem:[%s2464_s3 + $0x58] sm:$0xf] %vm1316_vm1, %v1471_v61  ;;  %v1454_v17 = vpack.c.bf16 %v999_v24, %v999_v24  ;;  %v1469_v25 = vpack.c.bf16 %v1141_v26, %v1141_v26 }
 0x325   :  { %v1664_v28 = vpop.f32.mrf.mxu1 }
 0x326   :  { %1322 = vst.msk [vmem:[%s2464_s3 + $0x14] sm:$0xf] %vm1316_vm1, %v1454_v17  ;;  %1337 = vst.msk [vmem:[%s2464_s3 + $0x50] sm:$0xf] %vm1316_vm1, %v1469_v25  ;;  %v1472_v45 = vpack.c.bf16 %v1664_v28, %v1664_v28 }
 0x327   :  { %v1144_v40 = vpop.f32.mrf.mxu1 }
 0x328   :  { %1340 = vst.msk [vmem:[%s2464_s3 + $0x5c] sm:$0xf] %vm1316_vm1, %v1472_v45  ;;  %v1470_v41 = vpack.c.bf16 %v1144_v40, %v1144_v40 }
 0x32a   :  { %1338 = vst.msk [vmem:[%s2464_s3 + $0x54] sm:$0xf] %vm1316_vm1, %v1470_v41 }
 0x32d   :  { %v1635_v15 = vpop.f32.mrf.mxu0 }
 0x32e   :  { %v1459_v27 = vpack.c.bf16 %v1635_v15, %v1635_v15 }
 0x32f   :  { %v1012_v21 = vpop.f32.mrf.mxu0 }
 0x330   :  { %1327 = vst.msk [vmem:[%s2464_s3 + $0x28] sm:$0xf] %vm1316_vm1, %v1459_v27  ;;  %v1457_v3 = vpack.c.bf16 %v1012_v21, %v1012_v21 }
 0x331   :  { %v1636_v48 = vpop.f32.mrf.mxu0  ;;  %v1667_v51 = vpop.f32.mrf.mxu1 }
 0x332   :  { %1325 = vst.msk [vmem:[%s2464_s3 + $0x20] sm:$0xf] %vm1316_vm1, %v1457_v3  ;;  %v1460_v49 = vpack.c.bf16 %v1636_v48, %v1636_v48  ;;  %v1475_v22 = vpack.c.bf16 %v1667_v51, %v1667_v51 }
 0x333   :  { %v1015_v29 = vpop.f32.mrf.mxu0  ;;  %v1157_v52 = vpop.f32.mrf.mxu1 }
 0x334   :  { %1328 = vst.msk [vmem:[%s2464_s3 + $0x2c] sm:$0xf] %vm1316_vm1, %v1460_v49  ;;  %1343 = vst.msk [vmem:[%s2464_s3 + $0x68] sm:$0xf] %vm1316_vm1, %v1475_v22  ;;  %v1458_v11 = vpack.c.bf16 %v1015_v29, %v1015_v29  ;;  %v1473_v56 = vpack.c.bf16 %v1157_v52, %v1157_v52 }
 0x335   :  { %v1668_v9 = vpop.f32.mrf.mxu1 }
 0x336   :  { %1326 = vst.msk [vmem:[%s2464_s3 + $0x24] sm:$0xf] %vm1316_vm1, %v1458_v11  ;;  %1341 = vst.msk [vmem:[%s2464_s3 + $0x60] sm:$0xf] %vm1316_vm1, %v1473_v56  ;;  %v1476_v35 = vpack.c.bf16 %v1668_v9, %v1668_v9 }
 0x337   :  { %v1160_v57 = vpop.f32.mrf.mxu1 }
 0x338   :  { %1344 = vst.msk [vmem:[%s2464_s3 + $0x6c] sm:$0xf] %vm1316_vm1, %v1476_v35  ;;  %v1474_v34 = vpack.c.bf16 %v1160_v57, %v1160_v57 }
 0x339   :  { %v1639_v20 = vpop.f32.mrf.mxu0 }
 0x33a   :  { %1342 = vst.msk [vmem:[%s2464_s3 + $0x64] sm:$0xf] %vm1316_vm1, %v1474_v34  ;;  %v1463_v54 = vpack.c.bf16 %v1639_v20, %v1639_v20 }
 0x33b   :  { %v1028_v62 = vpop.f32.mrf.mxu0 }
 0x33c   :  { %1331 = vst.msk [vmem:[%s2464_s3 + $0x38] sm:$0xf] %vm1316_vm1, %v1463_v54  ;;  %v1461_v2 = vpack.c.bf16 %v1028_v62, %v1028_v62 }
 0x33d   :  { %v1640_v60 = vpop.f32.mrf.mxu0 }
 0x33e   :  { %1329 = vst.msk [vmem:[%s2464_s3 + $0x30] sm:$0xf] %vm1316_vm1, %v1461_v2  ;;  %v1464_v12 = vpack.c.bf16 %v1640_v60, %v1640_v60 }
 0x33f   :  { %v1031_v8 = vpop.f32.mrf.mxu0 }
 0x340   :  { %1332 = vst.msk [vmem:[%s2464_s3 + $0x3c] sm:$0xf] %vm1316_vm1, %v1464_v12  ;;  %v1462_v14 = vpack.c.bf16 %v1031_v8, %v1031_v8  ;;  %v1671_v32 = vpop.f32.mrf.mxu1 }
 0x341   :  { %v1479_v0 = vpack.c.bf16 %v1671_v32, %v1671_v32 }
 0x342   :  { %1330 = vst.msk [vmem:[%s2464_s3 + $0x34] sm:$0xf] %vm1316_vm1, %v1462_v14  ;;  %v1173_v1 = vpop.f32.mrf.mxu1 }
 0x343   :  { %1347 = vst.msk [vmem:[%s2464_s3 + $0x78] sm:$0xf] %vm1316_vm1, %v1479_v0  ;;  %v1477_v4 = vpack.c.bf16 %v1173_v1, %v1173_v1 }
 0x344   :  { %v1672_v38 = vpop.f32.mrf.mxu1 }
 0x345   :  { %1345 = vst.msk [vmem:[%s2464_s3 + $0x70] sm:$0xf] %vm1316_vm1, %v1477_v4  ;;  %v1480_v36 = vpack.c.bf16 %v1672_v38, %v1672_v38 }
 0x346   :  { %v1176_v47 = vpop.f32.mrf.mxu1 }
 0x347   :  { %1348 = vst.msk [vmem:[%s2464_s3 + $0x7c] sm:$0xf] %vm1316_vm1, %v1480_v36  ;;  %v1478_v30 = vpack.c.bf16 %v1176_v47, %v1176_v47 }
 0x349   :  { %1346 = vst.msk [vmem:[%s2464_s3 + $0x74] sm:$0xf] %vm1316_vm1, %v1478_v30 }

// kernel: cdsa_forward_pallas.10
= control target key start
LH: loop header
LB: loop body
LE: loop exit
PB: predicated region body
PF: predicated region fallthrough
CT: control target
= control target key end

     0   :  { %s8777_s12 = smov 0   ;;  %s10534_s0 = inlined_call_operand.vmem [shape: bf16[128,2,4], index: 0, kind: input, shape index: {}]   ;;  %s10535_s1 = inlined_call_operand.vmem [shape: bf16[128,2,4], index: 1, kind: input, shape index: {}]   ;;  %s10536_s2 = inlined_call_operand.vmem [shape: bf16[128,2,32], index: 2, kind: input, shape index: {}]   ;;  %s10537_s3 = inlined_call_operand.vmem [shape: bf16[128,2,32], index: 3, kind: output, shape index: {}]  }
   0x1 LB: > { %s7318_s13 = sadd.s32 4294967295, %s8753_s12   ;;  %p7322_p0 = scmp.ge.s32.totalorder %s8753_s12, 1  ;;  %s8753_s12 = sphi %s8777_s12, %s13_s12  }
   0x2   : > { %p157_p1 = scmp.lt.s32.totalorder %s8753_s12, 3 }
   0x4   : > { %p158_p2 = pnand %p7322_p0, %p157_p1 }
   0x6   : > { %161 = sbr.rel (%p158_p2) target bundleno = 1116 (0x45c), region = 32 }
   0xb   : > { %s7323_s14 = sshll.u32 %s7318_s13, 6  ;;  %v10538_v0 = vmov 0.0   ;;  %vm8756_vm0 = vmmov 0   ;;  %vm400_vm1 = vcmask 31744   ;;  %vm3409_vm2 = vcmask 9216  }
   0xc   : > { %7713 = vmatprep.subr.bf16.mxu0 %v10538_v0  ;;  %7719 = vmatprep.subr.bf16.mxu1 %v10538_v0  ;;  %p188_p3 = scmp.lt.s32.totalorder %s7323_s14, 127  ;;  %vm4182_vm3 = vcmask 1040384   ;;  %vm4178_vm4 = vcmask 15360   ;;  %vm7188_vm5 = vcmask 253952  }
   0xd   : > { %7715 = vmatprep.mubr.msk.bf16.mxu0 %vm8756_vm0, %v10538_v0  ;;  %7721 = vmatprep.mubr.msk.bf16.mxu1 %vm8756_vm0, %v10538_v0 }
   0xe   : > { %s10581_s14 = smov (!%p188_p3, %s7323_s14), 127 }
   0xf   : > { %s8797_s17 = scalar_lea.vmem %s10535_s1, %s10581_s14  ;;  %s8807_s20 = scalar_lea.vmem %s10534_s0, %s10581_s14 }
  0x10   : > { %v272_v1 = vld [vmem:[%s8797_s17] sm:$0x1]  ;;  %v273_v2 = vld [vmem:[%s8797_s17 + $0x1] sm:$0x1]  ;;  %v274_v5 = vld [vmem:[%s8797_s17 + $0x2] sm:$0x1]  ;;  %s9472_s23 = scalar_lea.vmem %s10536_s2, %s10581_s14  ;;  %s10150_s26 = scalar_lea.vmem %s10537_s3, %s10581_s14 }
  0x11   : > { %v405_v3 = vsel %vm400_vm1, %v272_v1, 0  ;;  %v451_v4 = vsel %vm400_vm1, %v273_v2, 0  ;;  %v275_v6 = vld [vmem:[%s8797_s17 + $0x3] sm:$0x1]  ;;  %v208_v7 = vld [vmem:[%s8807_s20] sm:$0x1] }
  0x12   : > { %7714 = vmatpush3.bf16.xpose.msra.mxu0 %v405_v3  ;;  %7720 = vmatpush3.bf16.xpose.msra.mxu1 %v451_v4  ;;  %v209_v8 = vld [vmem:[%s8807_s20 + $0x1] sm:$0x1]  ;;  %v497_v9 = vsel %vm400_vm1, %v274_v5, 0  ;;  %v543_v10 = vsel %vm400_vm1, %v275_v6, 0  ;;  %v276_v11 = vld [vmem:[%s8797_s17 + $0x4] sm:$0x1] }
  0x13   : > { %7725 = vmatprep.subr.bf16.mxu0 %v10538_v0  ;;  %7731 = vmatprep.subr.bf16.mxu1 %v10538_v0  ;;  %v277_v12 = vld [vmem:[%s8797_s17 + $0x5] sm:$0x1]  ;;  %v210_v13 = vld [vmem:[%s8807_s20 + $0x2] sm:$0x1]  ;;  %v211_v14 = vld [vmem:[%s8807_s20 + $0x3] sm:$0x1] }
  0x14   : > { %v589_v15 = vsel %vm400_vm1, %v276_v11, 0  ;;  %v635_v16 = vsel %vm400_vm1, %v277_v12, 0  ;;  %v278_v17 = vld [vmem:[%s8797_s17 + $0x6] sm:$0x1]  ;;  %v279_v18 = vld [vmem:[%s8797_s17 + $0x7] sm:$0x1] }
  0x15   : > { %v212_v19 = vld [vmem:[%s8807_s20 + $0x4] sm:$0x1]  ;;  %v213_v20 = vld [vmem:[%s8807_s20 + $0x5] sm:$0x1]  ;;  %v681_v21 = vsel %vm400_vm1, %v278_v17, 0  ;;  %v727_v22 = vsel %vm400_vm1, %v279_v18, 0 }
  0x16   : > { %v280_v23 = vld [vmem:[%s8797_s17 + $0x8] sm:$0x1]  ;;  %v281_v24 = vld [vmem:[%s8797_s17 + $0x9] sm:$0x1]  ;;  %v214_v25 = vld [vmem:[%s8807_s20 + $0x6] sm:$0x1] }
  0x17   : > { %v215_v26 = vld [vmem:[%s8807_s20 + $0x7] sm:$0x1]  ;;  %v773_v27 = vsel %vm400_vm1, %v280_v23, 0  ;;  %v819_v28 = vsel %vm400_vm1, %v281_v24, 0  ;;  %v282_v29 = vld [vmem:[%s8797_s17 + $0xa] sm:$0x1] }
  0x18   : > { %v283_v30 = vld [vmem:[%s8797_s17 + $0xb] sm:$0x1]  ;;  %v216_v31 = vld [vmem:[%s8807_s20 + $0x8] sm:$0x1]  ;;  %v217_v32 = vld [vmem:[%s8807_s20 + $0x9] sm:$0x1] }
  0x19   : > { %7716 = vmatmul.mubr.msk.bf16.vlgmr.msra.gmra.mxu0 %vm400_vm1, %v208_v7  ;;  %7722 = vmatmul.mubr.msk.bf16.vlgmr.msra.gmra.mxu1 %vm400_vm1, %v209_v8  ;;  %v865_v33 = vsel %vm400_vm1, %v282_v29, 0  ;;  %v911_v34 = vsel %vm400_vm1, %v283_v30, 0  ;;  %v284_v35 = vld [vmem:[%s8797_s17 + $0xc] sm:$0x1]  ;;  %v285_v36 = vld [vmem:[%s8797_s17 + $0xd] sm:$0x1] }
  0x1a   : > { %7726 = vmatpush3.bf16.xpose.msra.mxu0 %v497_v9  ;;  %7732 = vmatpush3.bf16.xpose.msra.mxu1 %v543_v10  ;;  %v218_v37 = vld [vmem:[%s8807_s20 + $0xa] sm:$0x1]  ;;  %v219_v38 = vld [vmem:[%s8807_s20 + $0xb] sm:$0x1]  ;;  %v957_v39 = vsel %vm400_vm1, %v284_v35, 0  ;;  %v1003_v40 = vsel %vm400_vm1, %v285_v36, 0 }
  0x1b   : > { %7727 = vmatprep.mubr.msk.bf16.mxu0 %vm8756_vm0, %v10538_v0  ;;  %7733 = vmatprep.mubr.msk.bf16.mxu1 %vm8756_vm0, %v10538_v0  ;;  %v286_v41 = vld [vmem:[%s8797_s17 + $0xe] sm:$0x1]  ;;  %v287_v42 = vld [vmem:[%s8797_s17 + $0xf] sm:$0x1]  ;;  %v220_v43 = vld [vmem:[%s8807_s20 + $0xc] sm:$0x1] }
  0x1c   : > { %7737 = vmatprep.subr.bf16.mxu0 %v10538_v0  ;;  %7743 = vmatprep.subr.bf16.mxu1 %v10538_v0  ;;  %v221_v44 = vld [vmem:[%s8807_s20 + $0xd] sm:$0x1]  ;;  %v1049_v45 = vsel %vm400_vm1, %v286_v41, 0  ;;  %v1095_v46 = vsel %vm400_vm1, %v287_v42, 0  ;;  %v288_v47 = vld [vmem:[%s8797_s17 + $0x10] sm:$0x1] }
  0x1d   : > { %v289_v48 = vld [vmem:[%s8797_s17 + $0x11] sm:$0x1]  ;;  %v222_v49 = vld [vmem:[%s8807_s20 + $0xe] sm:$0x1]  ;;  %v223_v50 = vld [vmem:[%s8807_s20 + $0xf] sm:$0x1] }
  0x1e   : > { %v1141_v51 = vsel %vm400_vm1, %v288_v47, 0  ;;  %v1187_v52 = vsel %vm400_vm1, %v289_v48, 0  ;;  %v290_v53 = vld [vmem:[%s8797_s17 + $0x12] sm:$0x1]  ;;  %v291_v54 = vld [vmem:[%s8797_s17 + $0x13] sm:$0x1] }
  0x1f   : > { %v224_v55 = vld [vmem:[%s8807_s20 + $0x10] sm:$0x1]  ;;  %v225_v56 = vld [vmem:[%s8807_s20 + $0x11] sm:$0x1]  ;;  %v1233_v57 = vsel %vm400_vm1, %v290_v53, 0  ;;  %v1279_v58 = vsel %vm400_vm1, %v291_v54, 0 }
  0x20   : > { %v292_v59 = vld [vmem:[%s8797_s17 + $0x14] sm:$0x1]  ;;  %v293_v60 = vld [vmem:[%s8797_s17 + $0x15] sm:$0x1]  ;;  %v226_v61 = vld [vmem:[%s8807_s20 + $0x12] sm:$0x1] }
  0x21   : > { %7728 = vmatmul.mubr.msk.bf16.vlgmr.msra.gmra.mxu0 %vm400_vm1, %v210_v13  ;;  %7734 = vmatmul.mubr.msk.bf16.vlgmr.msra.gmra.mxu1 %vm400_vm1, %v211_v14  ;;  %v227_v62 = vld [vmem:[%s8807_s20 + $0x13] sm:$0x1]  ;;  %v1325_v63 = vsel %vm400_vm1, %v292_v59, 0  ;;  %v1371_v1 = vsel %vm400_vm1, %v293_v60, 0  ;;  %v294_v2 = vld [vmem:[%s8797_s17 + $0x16] sm:$0x1] }
  0x22   : > { %7738 = vmatpush3.bf16.xpose.msra.mxu0 %v589_v15  ;;  %7744 = vmatpush3.bf16.xpose.msra.mxu1 %v635_v16  ;;  %v295_v3 = vld [vmem:[%s8797_s17 + $0x17] sm:$0x1]  ;;  %v228_v4 = vld [vmem:[%s8807_s20 + $0x14] sm:$0x1]  ;;  %v229_v5 = vld [vmem:[%s8807_s20 + $0x15] sm:$0x1] }
  0x23   : > { %7739 = vmatprep.mubr.msk.bf16.mxu0 %vm8756_vm0, %v10538_v0  ;;  %7745 = vmatprep.mubr.msk.bf16.mxu1 %vm8756_vm0, %v10538_v0  ;;  %v1417_v6 = vsel %vm400_vm1, %v294_v2, 0  ;;  %v1463_v7 = vsel %vm400_vm1, %v295_v3, 0  ;;  %v296_v8 = vld [vmem:[%s8797_s17 + $0x18] sm:$0x1]  ;;  %v297_v9 = vld [vmem:[%s8797_s17 + $0x19] sm:$0x1] }
  0x24   : > { %7749 = vmatprep.subr.bf16.mxu0 %v10538_v0  ;;  %7755 = vmatprep.subr.bf16.mxu1 %v10538_v0  ;;  %v230_v10 = vld [vmem:[%s8807_s20 + $0x16] sm:$0x1]  ;;  %v231_v11 = vld [vmem:[%s8807_s20 + $0x17] sm:$0x1]  ;;  %v1509_v12 = vsel %vm400_vm1, %v296_v8, 0  ;;  %v1555_v13 = vsel %vm400_vm1, %v297_v9, 0 }
  0x25   : > { %v298_v14 = vld [vmem:[%s8797_s17 + $0x1a] sm:$0x1]  ;;  %v299_v15 = vld [vmem:[%s8797_s17 + $0x1b] sm:$0x1]  ;;  %v232_v16 = vld [vmem:[%s8807_s20 + $0x18] sm:$0x1] }
  0x26   : > { %v233_v17 = vld [vmem:[%s8807_s20 + $0x19] sm:$0x1]  ;;  %v1601_v18 = vsel %vm400_vm1, %v298_v14, 0  ;;  %v235_v23 = vld [vmem:[%s8807_s20 + $0x1b] sm:$0x1] }
  0x27   : > { %v237_v29 = vld [vmem:[%s8807_s20 + $0x1d] sm:$0x1]  ;;  %v239_v35 = vld [vmem:[%s8807_s20 + $0x1f] sm:$0x1]  ;;  %v241_v41 = vld [vmem:[%s8807_s20 + $0x21] sm:$0x1] }
  0x28   : > { %v243_v47 = vld [vmem:[%s8807_s20 + $0x23] sm:$0x1]  ;;  %v245_v53 = vld [vmem:[%s8807_s20 + $0x25] sm:$0x1]  ;;  %v247_v59 = vld [vmem:[%s8807_s20 + $0x27] sm:$0x1] }
  0x29   : > { %7740 = vmatmul.mubr.msk.bf16.vlgmr.msra.gmra.mxu0 %vm400_vm1, %v212_v19  ;;  %7746 = vmatmul.mubr.msk.bf16.vlgmr.msra.gmra.mxu1 %vm400_vm1, %v213_v20  ;;  %v1647_v19 = vsel %vm400_vm1, %v299_v15, 0  ;;  %v300_v20 = vld [vmem:[%s8797_s17 + $0x1c] sm:$0x1]  ;;  %v249_v2 = vld [vmem:[%s8807_s20 + $0x29] sm:$0x1] }
  0x2a   : > { %7750 = vmatpush3.bf16.xpose.msra.mxu0 %v681_v21  ;;  %7756 = vmatpush3.bf16.xpose.msra.mxu1 %v727_v22  ;;  %v301_v21 = vld [vmem:[%s8797_s17 + $0x1d] sm:$0x1]  ;;  %v234_v22 = vld [vmem:[%s8807_s20 + $0x1a] sm:$0x1]  ;;  %v1693_v24 = vsel %vm400_vm1, %v300_v20, 0 }
  0x2b   : > { %7751 = vmatprep.mubr.msk.bf16.mxu0 %vm8756_vm0, %v10538_v0  ;;  %7757 = vmatprep.mubr.msk.bf16.mxu1 %vm8756_vm0, %v10538_v0  ;;  %v251_v8 = vld [vmem:[%s8807_s20 + $0x2b] sm:$0x1]  ;;  %v253_v14 = vld [vmem:[%s8807_s20 + $0x2d] sm:$0x1]  ;;  %v255_v20 = vld [vmem:[%s8807_s20 + $0x2f] sm:$0x1] }
  0x2c   : > { %7761 = vmatprep.subr.bf16.mxu0 %v10538_v0  ;;  %7767 = vmatprep.subr.bf16.mxu1 %v10538_v0 }
  0x31   : > { %7752 = vmatmul.mubr.msk.bf16.vlgmr.msra.gmra.mxu0 %vm400_vm1, %v214_v25  ;;  %7758 = vmatmul.mubr.msk.bf16.vlgmr.msra.gmra.mxu1 %vm400_vm1, %v215_v26  ;;  %v1739_v25 = vsel %vm400_vm1, %v301_v21, 0  ;;  %v302_v26 = vld [vmem:[%s8797_s17 + $0x1e] sm:$0x1] }
  0x32   : > { %7762 = vmatpush3.bf16.xpose.msra.mxu0 %v773_v27  ;;  %7768 = vmatpush3.bf16.xpose.msra.mxu1 %v819_v28  ;;  %v303_v27 = vld [vmem:[%s8797_s17 + $0x1f] sm:$0x1]  ;;  %v236_v28 = vld [vmem:[%s8807_s20 + $0x1c] sm:$0x1]  ;;  %v1785_v30 = vsel %vm400_vm1, %v302_v26, 0 }
  0x33   : > { %7763 = vmatprep.mubr.msk.bf16.mxu0 %vm8756_vm0, %v10538_v0  ;;  %7769 = vmatprep.mubr.msk.bf16.mxu1 %vm8756_vm0, %v10538_v0  ;;  %v257_v26 = vld [vmem:[%s8807_s20 + $0x31] sm:$0x1] }
  0x34   : > { %7773 = vmatprep.subr.bf16.mxu0 %v10538_v0  ;;  %7779 = vmatprep.subr.bf16.mxu1 %v10538_v0 }
  0x39   : > { %7764 = vmatmul.mubr.msk.bf16.vlgmr.msra.gmra.mxu0 %vm400_vm1, %v216_v31  ;;  %7770 = vmatmul.mubr.msk.bf16.vlgmr.msra.gmra.mxu1 %vm400_vm1, %v217_v32  ;;  %v1831_v31 = vsel %vm400_vm1, %v303_v27, 0  ;;  %v304_v32 = vld [vmem:[%s8797_s17 + $0x20] sm:$0x1] }
  0x3a   : > { %7774 = vmatpush3.bf16.xpose.msra.mxu0 %v865_v33  ;;  %7780 = vmatpush3.bf16.xpose.msra.mxu1 %v911_v34  ;;  %v305_v33 = vld [vmem:[%s8797_s17 + $0x21] sm:$0x1]  ;;  %v238_v34 = vld [vmem:[%s8807_s20 + $0x1e] sm:$0x1]  ;;  %v1877_v36 = vsel %vm400_vm1, %v304_v32, 0 }
  0x3b   : > { %7775 = vmatprep.mubr.msk.bf16.mxu0 %vm8756_vm0, %v10538_v0  ;;  %7781 = vmatprep.mubr.msk.bf16.mxu1 %vm8756_vm0, %v10538_v0 }
  0x3c   : > { %7785 = vmatprep.subr.bf16.mxu0 %v10538_v0  ;;  %7791 = vmatprep.subr.bf16.mxu1 %v10538_v0 }
  0x41   : > { %7776 = vmatmul.mubr.msk.bf16.vlgmr.msra.gmra.mxu0 %vm400_vm1, %v218_v37  ;;  %7782 = vmatmul.mubr.msk.bf16.vlgmr.msra.gmra.mxu1 %vm400_vm1, %v219_v38  ;;  %v1923_v37 = vsel %vm400_vm1, %v305_v33, 0  ;;  %v306_v38 = vld [vmem:[%s8797_s17 + $0x22] sm:$0x1] }
  0x42   : > { %7786 = vmatpush3.bf16.xpose.msra.mxu0 %v957_v39  ;;  %7792 = vmatpush3.bf16.xpose.msra.mxu1 %v1003_v40  ;;  %v307_v39 = vld [vmem:[%s8797_s17 + $0x23] sm:$0x1]  ;;  %v240_v40 = vld [vmem:[%s8807_s20 + $0x20] sm:$0x1]  ;;  %v1969_v42 = vsel %vm400_vm1, %v306_v38, 0 }
  0x43   : > { %7787 = vmatprep.mubr.msk.bf16.mxu0 %vm8756_vm0, %v10538_v0  ;;  %7793 = vmatprep.mubr.msk.bf16.mxu1 %vm8756_vm0, %v10538_v0 }
  0x44   : > { %7797 = vmatprep.subr.bf16.mxu0 %v10538_v0  ;;  %7803 = vmatprep.subr.bf16.mxu1 %v10538_v0 }
  0x49   : > { %7788 = vmatmul.mubr.msk.bf16.vlgmr.msra.gmra.mxu0 %vm400_vm1, %v220_v43  ;;  %7794 = vmatmul.mubr.msk.bf16.vlgmr.msra.gmra.mxu1 %vm400_vm1, %v221_v44  ;;  %v2015_v43 = vsel %vm400_vm1, %v307_v39, 0  ;;  %v308_v44 = vld [vmem:[%s8797_s17 + $0x24] sm:$0x1]  ;;  %v325_v39 = vld [vmem:[%s8797_s17 + $0x35] sm:$0x1] }
  0x4a   : > { %7798 = vmatpush3.bf16.xpose.msra.mxu0 %v1049_v45  ;;  %7804 = vmatpush3.bf16.xpose.msra.mxu1 %v1095_v46  ;;  %v309_v45 = vld [vmem:[%s8797_s17 + $0x25] sm:$0x1]  ;;  %v242_v46 = vld [vmem:[%s8807_s20 + $0x22] sm:$0x1]  ;;  %v2061_v48 = vsel %vm400_vm1, %v308_v44, 0 }
  0x4b   : > { %7799 = vmatprep.mubr.msk.bf16.mxu0 %vm8756_vm0, %v10538_v0  ;;  %7805 = vmatprep.mubr.msk.bf16.mxu1 %vm8756_vm0, %v10538_v0  ;;  %v259_v44 = vld [vmem:[%s8807_s20 + $0x33] sm:$0x1] }
  0x4c   : > { %7809 = vmatprep.subr.bf16.mxu0 %v10538_v0  ;;  %7815 = vmatprep.subr.bf16.mxu1 %v10538_v0 }
  0x51   : > { %7800 = vmatmul.mubr.msk.bf16.vlgmr.msra.gmra.mxu0 %vm400_vm1, %v222_v49  ;;  %7806 = vmatmul.mubr.msk.bf16.vlgmr.msra.gmra.mxu1 %vm400_vm1, %v223_v50  ;;  %v2107_v49 = vsel %vm400_vm1, %v309_v45, 0  ;;  %v310_v50 = vld [vmem:[%s8797_s17 + $0x26] sm:$0x1] }
  0x52   : > { %7810 = vmatpush3.bf16.xpose.msra.mxu0 %v1141_v51  ;;  %7816 = vmatpush3.bf16.xpose.msra.mxu1 %v1187_v52  ;;  %v311_v51 = vld [vmem:[%s8797_s17 + $0x27] sm:$0x1]  ;;  %v244_v52 = vld [vmem:[%s8807_s20 + $0x24] sm:$0x1]  ;;  %v2153_v54 = vsel %vm400_vm1, %v310_v50, 0 }
  0x53   : > { %7811 = vmatprep.mubr.msk.bf16.mxu0 %vm8756_vm0, %v10538_v0  ;;  %7817 = vmatprep.mubr.msk.bf16.mxu1 %vm8756_vm0, %v10538_v0 }
  0x54   : > { %7821 = vmatprep.subr.bf16.mxu0 %v10538_v0  ;;  %7827 = vmatprep.subr.bf16.mxu1 %v10538_v0 }
  0x59   : > { %7812 = vmatmul.mubr.msk.bf16.vlgmr.msra.gmra.mxu0 %vm400_vm1, %v224_v55  ;;  %7818 = vmatmul.mubr.msk.bf16.vlgmr.msra.gmra.mxu1 %vm400_vm1, %v225_v56  ;;  %v2199_v55 = vsel %vm400_vm1, %v311_v51, 0  ;;  %v312_v56 = vld [vmem:[%s8797_s17 + $0x28] sm:$0x1] }
  0x5a   : > { %7822 = vmatpush3.bf16.xpose.msra.mxu0 %v1233_v57  ;;  %7828 = vmatpush3.bf16.xpose.msra.mxu1 %v1279_v58  ;;  %v313_v57 = vld [vmem:[%s8797_s17 + $0x29] sm:$0x1]  ;;  %v246_v58 = vld [vmem:[%s8807_s20 + $0x26] sm:$0x1]  ;;  %v2245_v60 = vsel %vm400_vm1, %v312_v56, 0 }
  0x5b   : > { %7823 = vmatprep.mubr.msk.bf16.mxu0 %vm8756_vm0, %v10538_v0  ;;  %7829 = vmatprep.mubr.msk.bf16.mxu1 %vm8756_vm0, %v10538_v0 }
  0x5c   : > { %7833 = vmatprep.subr.bf16.mxu0 %v10538_v0  ;;  %7839 = vmatprep.subr.bf16.mxu1 %v10538_v0 }
  0x61   : > { %7824 = vmatmul.mubr.msk.bf16.vlgmr.msra.gmra.mxu0 %vm400_vm1, %v226_v61  ;;  %7830 = vmatmul.mubr.msk.bf16.vlgmr.msra.gmra.mxu1 %vm400_vm1, %v227_v62  ;;  %v2291_v61 = vsel %vm400_vm1, %v313_v57, 0  ;;  %v314_v62 = vld [vmem:[%s8797_s17 + $0x2a] sm:$0x1] }
  0x62   : > { %7834 = vmatpush3.bf16.xpose.msra.mxu0 %v1325_v63  ;;  %7840 = vmatpush3.bf16.xpose.msra.mxu1 %v1371_v1  ;;  %v315_v63 = vld [vmem:[%s8797_s17 + $0x2b] sm:$0x1]  ;;  %v248_v1 = vld [vmem:[%s8807_s20 + $0x28] sm:$0x1]  ;;  %v2337_v3 = vsel %vm400_vm1, %v314_v62, 0 }
  0x63   : > { %7835 = vmatprep.mubr.msk.bf16.mxu0 %vm8756_vm0, %v10538_v0  ;;  %7841 = vmatprep.mubr.msk.bf16.mxu1 %vm8756_vm0, %v10538_v0 }
  0x64   : > { %7845 = vmatprep.subr.bf16.mxu0 %v10538_v0  ;;  %7851 = vmatprep.subr.bf16.mxu1 %v10538_v0 }
  0x69   : > { %7836 = vmatmul.mubr.msk.bf16.vlgmr.msra.gmra.mxu0 %vm400_vm1, %v228_v4  ;;  %7842 = vmatmul.mubr.msk.bf16.vlgmr.msra.gmra.mxu1 %vm400_vm1, %v229_v5  ;;  %v2383_v4 = vsel %vm400_vm1, %v315_v63, 0  ;;  %v316_v5 = vld [vmem:[%s8797_s17 + $0x2c] sm:$0x1] }
  0x6a   : > { %7846 = vmatpush3.bf16.xpose.msra.mxu0 %v1417_v6  ;;  %7852 = vmatpush3.bf16.xpose.msra.mxu1 %v1463_v7  ;;  %v317_v6 = vld [vmem:[%s8797_s17 + $0x2d] sm:$0x1]  ;;  %v250_v7 = vld [vmem:[%s8807_s20 + $0x2a] sm:$0x1]  ;;  %v2429_v9 = vsel %vm400_vm1, %v316_v5, 0 }
  0x6b   : > { %7847 = vmatprep.mubr.msk.bf16.mxu0 %vm8756_vm0, %v10538_v0  ;;  %7853 = vmatprep.mubr.msk.bf16.mxu1 %vm8756_vm0, %v10538_v0 }
  0x6c   : > { %7857 = vmatprep.subr.bf16.mxu0 %v10538_v0  ;;  %7863 = vmatprep.subr.bf16.mxu1 %v10538_v0 }
  0x71   : > { %7848 = vmatmul.mubr.msk.bf16.vlgmr.msra.gmra.mxu0 %vm400_vm1, %v230_v10  ;;  %7854 = vmatmul.mubr.msk.bf16.vlgmr.msra.gmra.mxu1 %vm400_vm1, %v231_v11  ;;  %v2475_v10 = vsel %vm400_vm1, %v317_v6, 0  ;;  %v318_v11 = vld [vmem:[%s8797_s17 + $0x2e] sm:$0x1] }
  0x72   : > { %7858 = vmatpush3.bf16.xpose.msra.mxu0 %v1509_v12  ;;  %7864 = vmatpush3.bf16.xpose.msra.mxu1 %v1555_v13  ;;  %v319_v12 = vld [vmem:[%s8797_s17 + $0x2f] sm:$0x1]  ;;  %v252_v13 = vld [vmem:[%s8807_s20 + $0x2c] sm:$0x1]  ;;  %v2521_v15 = vsel %vm400_vm1, %v318_v11, 0 }
  0x73   : > { %7859 = vmatprep.mubr.msk.bf16.mxu0 %vm8756_vm0, %v10538_v0  ;;  %7865 = vmatprep.mubr.msk.bf16.mxu1 %vm8756_vm0, %v10538_v0 }
  0x74   : > { %7869 = vmatprep.subr.bf16.mxu0 %v10538_v0  ;;  %7875 = vmatprep.subr.bf16.mxu1 %v10538_v0 }
  0x79   : > { %7860 = vmatmul.mubr.msk.bf16.vlgmr.msra.gmra.mxu0 %vm400_vm1, %v232_v16  ;;  %7866 = vmatmul.mubr.msk.bf16.vlgmr.msra.gmra.mxu1 %vm400_vm1, %v233_v17  ;;  %v2567_v16 = vsel %vm400_vm1, %v319_v12, 0  ;;  %v320_v17 = vld [vmem:[%s8797_s17 + $0x30] sm:$0x1] }
  0x7a   : > { %7870 = vmatpush3.bf16.xpose.msra.mxu0 %v1601_v18  ;;  %7876 = vmatpush3.bf16.xpose.msra.mxu1 %v1647_v19  ;;  %v321_v18 = vld [vmem:[%s8797_s17 + $0x31] sm:$0x1]  ;;  %v254_v19 = vld [vmem:[%s8807_s20 + $0x2e] sm:$0x1]  ;;  %v2613_v21 = vsel %vm400_vm1, %v320_v17, 0 }
  0x7b   : > { %7871 = vmatprep.mubr.msk.bf16.mxu0 %vm8756_vm0, %v10538_v0  ;;  %7877 = vmatprep.mubr.msk.bf16.mxu1 %vm8756_vm0, %v10538_v0 }
  0x7c   : > { %7881 = vmatprep.subr.bf16.mxu0 %v10538_v0  ;;  %7887 = vmatprep.subr.bf16.mxu1 %v10538_v0 }
  0x81   : > { %7872 = vmatmul.mubr.msk.bf16.vlgmr.msra.gmra.mxu0 %vm400_vm1, %v234_v22  ;;  %7878 = vmatmul.mubr.msk.bf16.vlgmr.msra.gmra.mxu1 %vm400_vm1, %v235_v23  ;;  %v2659_v22 = vsel %vm400_vm1, %v321_v18, 0  ;;  %v322_v23 = vld [vmem:[%s8797_s17 + $0x32] sm:$0x1] }
  0x82   : > { %7882 = vmatpush3.bf16.xpose.msra.mxu0 %v1693_v24  ;;  %7888 = vmatpush3.bf16.xpose.msra.mxu1 %v1739_v25  ;;  %v323_v24 = vld [vmem:[%s8797_s17 + $0x33] sm:$0x1]  ;;  %v256_v25 = vld [vmem:[%s8807_s20 + $0x30] sm:$0x1]  ;;  %v2705_v27 = vsel %vm400_vm1, %v322_v23, 0 }
  0x83   : > { %7883 = vmatprep.mubr.msk.bf16.mxu0 %vm8756_vm0, %v10538_v0  ;;  %7889 = vmatprep.mubr.msk.bf16.mxu1 %vm8756_vm0, %v10538_v0 }
  0x84   : > { %7893 = vmatprep.subr.bf16.mxu0 %v10538_v0  ;;  %7899 = vmatprep.subr.bf16.mxu1 %v10538_v0 }
  0x89   : > { %7884 = vmatmul.mubr.msk.bf16.vlgmr.msra.gmra.mxu0 %vm400_vm1, %v236_v28  ;;  %7890 = vmatmul.mubr.msk.bf16.vlgmr.msra.gmra.mxu1 %vm400_vm1, %v237_v29  ;;  %v2751_v28 = vsel %vm400_vm1, %v323_v24, 0 }
  0x8a   : > { %7894 = vmatpush3.bf16.xpose.msra.mxu0 %v1785_v30  ;;  %7900 = vmatpush3.bf16.xpose.msra.mxu1 %v1831_v31 }
  0x8b   : > { %7895 = vmatprep.mubr.msk.bf16.mxu0 %vm8756_vm0, %v10538_v0  ;;  %7901 = vmatprep.mubr.msk.bf16.mxu1 %vm8756_vm0, %v10538_v0 }
  0x8c   : > { %7905 = vmatprep.subr.bf16.mxu0 %v10538_v0  ;;  %7911 = vmatprep.subr.bf16.mxu1 %v10538_v0 }
  0x91   : > { %7896 = vmatmul.mubr.msk.bf16.vlgmr.msra.gmra.mxu0 %vm400_vm1, %v238_v34  ;;  %7902 = vmatmul.mubr.msk.bf16.vlgmr.msra.gmra.mxu1 %vm400_vm1, %v239_v35 }
  0x92   : > { %7906 = vmatpush3.bf16.xpose.msra.mxu0 %v1877_v36  ;;  %7912 = vmatpush3.bf16.xpose.msra.mxu1 %v1923_v37  ;;  %v324_v36 = vld [vmem:[%s8797_s17 + $0x34] sm:$0x1] }
  0x93   : > { %7907 = vmatprep.mubr.msk.bf16.mxu0 %vm8756_vm0, %v10538_v0  ;;  %7913 = vmatprep.mubr.msk.bf16.mxu1 %vm8756_vm0, %v10538_v0  ;;  %v2797_v45 = vsel %vm400_vm1, %v324_v36, 0  ;;  %v264_v36 = vld [vmem:[%s8807_s20 + $0x38] sm:$0x1] }
  0x94   : > { %7917 = vmatprep.subr.bf16.mxu0 %v10538_v0  ;;  %7923 = vmatprep.subr.bf16.mxu1 %v10538_v0 }
  0x99   : > { %7908 = vmatmul.mubr.msk.bf16.vlgmr.msra.gmra.mxu0 %vm400_vm1, %v240_v40  ;;  %7914 = vmatmul.mubr.msk.bf16.vlgmr.msra.gmra.mxu1 %vm400_vm1, %v241_v41  ;;  %v258_v41 = vld [vmem:[%s8807_s20 + $0x32] sm:$0x1] }
  0x9a   : > { %7918 = vmatpush3.bf16.xpose.msra.mxu0 %v1969_v42  ;;  %7924 = vmatpush3.bf16.xpose.msra.mxu1 %v2015_v43 }
  0x9b   : > { %7919 = vmatprep.mubr.msk.bf16.mxu0 %vm8756_vm0, %v10538_v0  ;;  %7925 = vmatprep.mubr.msk.bf16.mxu1 %vm8756_vm0, %v10538_v0 }
  0x9c   : > { %7929 = vmatprep.subr.bf16.mxu0 %v10538_v0  ;;  %7935 = vmatprep.subr.bf16.mxu1 %v10538_v0 }
  0xa1   : > { %7920 = vmatmul.mubr.msk.bf16.vlgmr.msra.gmra.mxu0 %vm400_vm1, %v242_v46  ;;  %7926 = vmatmul.mubr.msk.bf16.vlgmr.msra.gmra.mxu1 %vm400_vm1, %v243_v47  ;;  %v2843_v46 = vsel %vm400_vm1, %v325_v39, 0 }
  0xa2   : > { %7930 = vmatpush3.bf16.xpose.msra.mxu0 %v2061_v48  ;;  %7936 = vmatpush3.bf16.xpose.msra.mxu1 %v2107_v49 }
  0xa3   : > { %7931 = vmatprep.mubr.msk.bf16.mxu0 %vm8756_vm0, %v10538_v0  ;;  %7937 = vmatprep.mubr.msk.bf16.mxu1 %vm8756_vm0, %v10538_v0 }
  0xa4   : > { %7941 = vmatprep.subr.bf16.mxu0 %v10538_v0  ;;  %7947 = vmatprep.subr.bf16.mxu1 %v10538_v0 }
  0xa9   : > { %7932 = vmatmul.mubr.msk.bf16.vlgmr.msra.gmra.mxu0 %vm400_vm1, %v244_v52  ;;  %7938 = vmatmul.mubr.msk.bf16.vlgmr.msra.gmra.mxu1 %vm400_vm1, %v245_v53 }
  0xaa   : > { %7942 = vmatpush3.bf16.xpose.msra.mxu0 %v2153_v54  ;;  %7948 = vmatpush3.bf16.xpose.msra.mxu1 %v2199_v55 }
  0xab   : > { %7943 = vmatprep.mubr.msk.bf16.mxu0 %vm8756_vm0, %v10538_v0  ;;  %7949 = vmatprep.mubr.msk.bf16.mxu1 %vm8756_vm0, %v10538_v0 }
  0xac   : > { %7953 = vmatprep.subr.bf16.mxu0 %v10538_v0  ;;  %7959 = vmatprep.subr.bf16.mxu1 %v10538_v0 }
  0xb1   : > { %7944 = vmatmul.mubr.msk.bf16.vlgmr.msra.gmra.mxu0 %vm400_vm1, %v246_v58  ;;  %7950 = vmatmul.mubr.msk.bf16.vlgmr.msra.gmra.mxu1 %vm400_vm1, %v247_v59  ;;  %v260_v59 = vld [vmem:[%s8807_s20 + $0x34] sm:$0x1] }
  0xb2   : > { %7954 = vmatpush3.bf16.xpose.msra.mxu0 %v2245_v60  ;;  %7960 = vmatpush3.bf16.xpose.msra.mxu1 %v2291_v61  ;;  %v261_v60 = vld [vmem:[%s8807_s20 + $0x35] sm:$0x1]  ;;  %v326_v61 = vld [vmem:[%s8797_s17 + $0x36] sm:$0x1] }
  0xb3   : > { %7955 = vmatprep.mubr.msk.bf16.mxu0 %vm8756_vm0, %v10538_v0  ;;  %7965 = vmatprep.subr.bf16.mxu0 %v10538_v0 }
  0xb4   : > { %7961 = vmatprep.mubr.msk.bf16.mxu1 %vm8756_vm0, %v10538_v0  ;;  %7971 = vmatprep.subr.bf16.mxu1 %v10538_v0 }
  0xb9   : > { %7956 = vmatmul.mubr.msk.bf16.vlgmr.msra.gmra.mxu0 %vm400_vm1, %v248_v1  ;;  %7962 = vmatmul.mubr.msk.bf16.vlgmr.msra.gmra.mxu1 %vm400_vm1, %v249_v2  ;;  %v2889_v1 = vsel %vm400_vm1, %v326_v61, 0  ;;  %v327_v2 = vld [vmem:[%s8797_s17 + $0x37] sm:$0x1] }
  0xba   : > { %7966 = vmatpush3.bf16.xpose.msra.mxu0 %v2337_v3  ;;  %7972 = vmatpush3.bf16.xpose.msra.mxu1 %v2383_v4  ;;  %v2935_v5 = vsel %vm400_vm1, %v327_v2, 0 }
  0xbb   : > { %7967 = vmatprep.mubr.msk.bf16.mxu0 %vm8756_vm0, %v10538_v0  ;;  %7977 = vmatprep.subr.bf16.mxu0 %v10538_v0 }
  0xbc   : > { %7973 = vmatprep.mubr.msk.bf16.mxu1 %vm8756_vm0, %v10538_v0  ;;  %7983 = vmatprep.subr.bf16.mxu1 %v10538_v0 }
  0xc1   : > { %7968 = vmatmul.mubr.msk.bf16.vlgmr.msra.gmra.mxu0 %vm400_vm1, %v250_v7  ;;  %7974 = vmatmul.mubr.msk.bf16.vlgmr.msra.gmra.mxu1 %vm400_vm1, %v251_v8 }
  0xc2   : > { %7978 = vmatpush3.bf16.xpose.msra.mxu0 %v2429_v9  ;;  %7984 = vmatpush3.bf16.xpose.msra.mxu1 %v2475_v10 }
  0xc3   : > { %7979 = vmatprep.mubr.msk.bf16.mxu0 %vm8756_vm0, %v10538_v0  ;;  %7989 = vmatprep.subr.bf16.mxu0 %v10538_v0 }
  0xc4   : > { %7985 = vmatprep.mubr.msk.bf16.mxu1 %vm8756_vm0, %v10538_v0  ;;  %7995 = vmatprep.subr.bf16.mxu1 %v10538_v0 }
  0xc9   : > { %7980 = vmatmul.mubr.msk.bf16.vlgmr.msra.gmra.mxu0 %vm400_vm1, %v252_v13  ;;  %7986 = vmatmul.mubr.msk.bf16.vlgmr.msra.gmra.mxu1 %vm400_vm1, %v253_v14  ;;  %v262_v14 = vld [vmem:[%s8807_s20 + $0x36] sm:$0x1] }
  0xca   : > { %7990 = vmatpush3.bf16.xpose.msra.mxu0 %v2521_v15  ;;  %7996 = vmatpush3.bf16.xpose.msra.mxu1 %v2567_v16  ;;  %v263_v15 = vld [vmem:[%s8807_s20 + $0x37] sm:$0x1]  ;;  %v328_v16 = vld [vmem:[%s8797_s17 + $0x38] sm:$0x1] }
  0xcb   : > { %7991 = vmatprep.mubr.msk.bf16.mxu0 %vm8756_vm0, %v10538_v0  ;;  %7997 = vmatprep.mubr.msk.bf16.mxu1 %vm8756_vm0, %v10538_v0 }
  0xcc   : > { %8001 = vmatprep.subr.bf16.mxu0 %v10538_v0  ;;  %8007 = vmatprep.subr.bf16.mxu1 %v10538_v0 }
  0xd1   : > { %7992 = vmatmul.mubr.msk.bf16.vlgmr.msra.gmra.mxu0 %vm400_vm1, %v254_v19  ;;  %7998 = vmatmul.mubr.msk.bf16.vlgmr.msra.gmra.mxu1 %vm400_vm1, %v255_v20  ;;  %v2981_v19 = vsel %vm400_vm1, %v328_v16, 0  ;;  %v329_v20 = vld [vmem:[%s8797_s17 + $0x39] sm:$0x1] }
  0xd2   : > { %8002 = vmatpush3.bf16.xpose.msra.mxu0 %v2613_v21  ;;  %8008 = vmatpush3.bf16.xpose.msra.mxu1 %v2659_v22  ;;  %v3027_v23 = vsel %vm400_vm1, %v329_v20, 0 }
  0xd3   : > { %8003 = vmatprep.mubr.msk.bf16.mxu0 %vm8756_vm0, %v10538_v0  ;;  %8009 = vmatprep.mubr.msk.bf16.mxu1 %vm8756_vm0, %v10538_v0 }
  0xd4   : > { %8013 = vmatprep.subr.bf16.mxu0 %v10538_v0  ;;  %8019 = vmatprep.subr.bf16.mxu1 %v10538_v0 }
  0xd9   : > { %v441_v29 = vpop.f32.mrf.mxu0  ;;  %v487_v30 = vpop.f32.mrf.mxu1  ;;  %8004 = vmatmul.mubr.msk.bf16.vlgmr.msra.gmra.mxu0 %vm400_vm1, %v256_v25  ;;  %8010 = vmatmul.mubr.msk.bf16.vlgmr.msra.gmra.mxu1 %vm400_vm1, %v257_v26 }
  0xda   : > { %v9155_v31 = vmul.f32 0.5, %v441_v29  ;;  %v9157_v32 = vmul.f32 0.5, %v487_v30  ;;  %8014 = vmatpush3.bf16.xpose.msra.mxu0 %v2705_v27  ;;  %8020 = vmatpush3.bf16.xpose.msra.mxu1 %v2751_v28 }
  0xdb   : > { %v7717_v33 = vpop.f32.mrf.mxu0  ;;  %v7723_v34 = vpop.f32.mrf.mxu1  ;;  %8015 = vmatprep.mubr.msk.bf16.mxu0 %vm8756_vm0, %v10538_v0  ;;  %8021 = vmatprep.mubr.msk.bf16.mxu1 %vm8756_vm0, %v10538_v0 }
  0xdc   : > { %v3410_v35 = vsel %vm3409_vm2, %v9155_v31, -inf  ;;  %8025 = vmatprep.subr.bf16.mxu0 %v10538_v0  ;;  %8031 = vmatprep.subr.bf16.mxu1 %v10538_v0  ;;  %v3413_v40 = vsel %vm3409_vm2, %v9157_v32, -inf }
  0xdd   : > { %v490_v37 = vpop.f32.mrf.mxu1  ;;  %3411 = vmax.xlane.f32.xlu0 %v3410_v35  ;;  %v444_v38 = vpop.f32.mrf.mxu0 }
  0xde   : > { %v265_v37 = vld [vmem:[%s8807_s20 + $0x39] sm:$0x1]  ;;  %v330_v38 = vld [vmem:[%s8797_s17 + $0x3a] sm:$0x1] }
  0xdf   : > { %v7718_v42 = vpop.f32.mrf.mxu0  ;;  %v7724_v43 = vpop.f32.mrf.mxu1 }
  0xe0   : > { %v331_v42 = vld [vmem:[%s8797_s17 + $0x3b] sm:$0x1] }
  0xe1   : > { %v579_v47 = vpop.f32.mrf.mxu1  ;;  %3414 = vmax.xlane.f32.xlu0 %v3413_v40  ;;  %v533_v48 = vpop.f32.mrf.mxu0  ;;  %8016 = vmatmul.mubr.msk.bf16.vlgmr.msra.gmra.mxu0 %vm400_vm1, %v258_v41  ;;  %v3073_v41 = vsel %vm400_vm1, %v330_v38, 0 }
  0xe2   : > { %v9176_v49 = vmul.f32 0.5, %v579_v47  ;;  %v9178_v50 = vmul.f32 0.5, %v533_v48  ;;  %8022 = vmatmul.mubr.msk.bf16.vlgmr.msra.gmra.mxu1 %vm400_vm1, %v259_v44  ;;  %8026 = vmatpush3.bf16.xpose.msra.mxu0 %v2797_v45  ;;  %v3119_v45 = vsel %vm400_vm1, %v331_v42, 0 }
  0xe3   : > { %v7729_v51 = vpop.f32.mrf.mxu0  ;;  %v7735_v52 = vpop.f32.mrf.mxu1  ;;  %8032 = vmatpush3.bf16.xpose.msra.mxu1 %v2843_v46  ;;  %8027 = vmatprep.mubr.msk.bf16.mxu0 %vm8756_vm0, %v10538_v0 }
  0xe4   : > { %v3416_v53 = vsel %vm3409_vm2, %v9178_v50, -inf  ;;  %8033 = vmatprep.mubr.msk.bf16.mxu1 %vm8756_vm0, %v10538_v0  ;;  %8037 = vmatprep.subr.bf16.mxu0 %v10538_v0  ;;  %v3419_v56 = vsel %vm3409_vm2, %v9176_v49, -inf }
  0xe5   : > { %v582_v54 = vpop.f32.mrf.mxu1  ;;  %3417 = vmax.xlane.f32.xlu1 %v3416_v53  ;;  %v536_v55 = vpop.f32.mrf.mxu0  ;;  %8043 = vmatprep.subr.bf16.mxu1 %v10538_v0 }
  0xe7   : > { %v7730_v57 = vpop.f32.mrf.mxu0  ;;  %v7736_v58 = vpop.f32.mrf.mxu1 }
  0xe8   : > { %v266_v57 = vld [vmem:[%s8807_s20 + $0x3a] sm:$0x1]  ;;  %v332_v58 = vld [vmem:[%s8797_s17 + $0x3c] sm:$0x1] }
  0xe9   : > { %v671_v62 = vpop.f32.mrf.mxu1  ;;  %3420 = vmax.xlane.f32.xlu1 %v3419_v56  ;;  %v625_v63 = vpop.f32.mrf.mxu0  ;;  %8028 = vmatmul.mubr.msk.bf16.vlgmr.msra.gmra.mxu0 %vm400_vm1, %v260_v59  ;;  %v267_v56 = vld [vmem:[%s8807_s20 + $0x3b] sm:$0x1]  ;;  %v3165_v61 = vsel %vm400_vm1, %v332_v58, 0 }
  0xea   : > { %v9197_v3 = vmul.f32 0.5, %v671_v62  ;;  %v9199_v4 = vmul.f32 0.5, %v625_v63  ;;  %8034 = vmatmul.mubr.msk.bf16.vlgmr.msra.gmra.mxu1 %vm400_vm1, %v261_v60  ;;  %8038 = vmatpush3.bf16.xpose.msra.mxu0 %v2889_v1  ;;  %v333_v62 = vld [vmem:[%s8797_s17 + $0x3d] sm:$0x1] }
  0xeb   : > { %v7741_v6 = vpop.f32.mrf.mxu0  ;;  %v7747_v7 = vpop.f32.mrf.mxu1  ;;  %8044 = vmatpush3.bf16.xpose.msra.mxu1 %v2935_v5  ;;  %8039 = vmatprep.mubr.msk.bf16.mxu0 %vm8756_vm0, %v10538_v0  ;;  %v3211_v2 = vsel %vm400_vm1, %v333_v62, 0 }
  0xec   : > { %v3425_v8 = vsel %vm3409_vm2, %v9197_v3, -inf  ;;  %v3422_v9 = vsel %vm3409_vm2, %v9199_v4, -inf  ;;  %8045 = vmatprep.mubr.msk.bf16.mxu1 %vm8756_vm0, %v10538_v0  ;;  %8049 = vmatprep.subr.bf16.mxu0 %v10538_v0 }
  0xed   : > { %v674_v10 = vpop.f32.mrf.mxu1  ;;  %3426 = vmax.xlane.f32.xlu1 %v3425_v8  ;;  %3423 = vmax.xlane.f32.xlu0 %v3422_v9  ;;  %v628_v11 = vpop.f32.mrf.mxu0 }
  0xee   : > { %8055 = vmatprep.subr.bf16.mxu1 %v10538_v0 }
  0xef   : > { %v7742_v12 = vpop.f32.mrf.mxu0  ;;  %v7748_v13 = vpop.f32.mrf.mxu1 }
  0xf0   : > { %v269_v13 = vld [vmem:[%s8807_s20 + $0x3d] sm:$0x1] }
  0xf1   : > { %v717_v17 = vpop.f32.mrf.mxu0  ;;  %v763_v18 = vpop.f32.mrf.mxu1  ;;  %8040 = vmatmul.mubr.msk.bf16.vlgmr.msra.gmra.mxu0 %vm400_vm1, %v262_v14  ;;  %v268_v14 = vld [vmem:[%s8807_s20 + $0x3c] sm:$0x1] }
  0xf2   : > { %v9219_v21 = vmul.f32 0.5, %v717_v17  ;;  %v9221_v22 = vmul.f32 0.5, %v763_v18  ;;  %8046 = vmatmul.mubr.msk.bf16.vlgmr.msra.gmra.mxu1 %vm400_vm1, %v263_v15  ;;  %8050 = vmatpush3.bf16.xpose.msra.mxu0 %v2981_v19  ;;  %v334_v15 = vld [vmem:[%s8797_s17 + $0x3e] sm:$0x1]  ;;  %v335_v19 = vld [vmem:[%s8797_s17 + $0x3f] sm:$0x1] }
  0xf3   : > { %v7753_v24 = vpop.f32.mrf.mxu0  ;;  %v7759_v25 = vpop.f32.mrf.mxu1  ;;  %8056 = vmatpush3.bf16.xpose.msra.mxu1 %v3027_v23  ;;  %8051 = vmatprep.mubr.msk.bf16.mxu0 %vm8756_vm0, %v10538_v0  ;;  %v3257_v18 = vsel %vm400_vm1, %v334_v15, 0 }
  0xf4   : > { %v3431_v26 = vsel %vm3409_vm2, %v9221_v22, -inf  ;;  %v3428_v27 = vsel %vm3409_vm2, %v9219_v21, -inf  ;;  %8057 = vmatprep.mubr.msk.bf16.mxu1 %vm8756_vm0, %v10538_v0  ;;  %8061 = vmatprep.subr.bf16.mxu0 %v10538_v0  ;;  %v3303_v24 = vsel %vm400_vm1, %v335_v19, 0 }
  0xf5   : > { %v766_v28 = vpop.f32.mrf.mxu1  ;;  %3432 = vmax.xlane.f32.xlu1 %v3431_v26  ;;  %3429 = vmax.xlane.f32.xlu0 %v3428_v27  ;;  %v720_v29 = vpop.f32.mrf.mxu0 }
  0xf6   : > { %8067 = vmatprep.subr.bf16.mxu1 %v10538_v0 }
  0xf7   : > { %v7754_v30 = vpop.f32.mrf.mxu0  ;;  %v7760_v33 = vpop.f32.mrf.mxu1 }
  0xf9   : > { %v809_v34 = vpop.f32.mrf.mxu0  ;;  %v855_v35 = vpop.f32.mrf.mxu1  ;;  %8052 = vmatmul.mubr.msk.bf16.vlgmr.msra.gmra.mxu0 %vm400_vm1, %v264_v36  ;;  %v270_v36 = vld [vmem:[%s8807_s20 + $0x3e] sm:$0x1] }
  0xfa   : > { %v9238_v39 = vmul.f32 0.5, %v809_v34  ;;  %v9240_v40 = vmul.f32 0.5, %v855_v35  ;;  %8058 = vmatmul.mubr.msk.bf16.vlgmr.msra.gmra.mxu1 %vm400_vm1, %v265_v37  ;;  %8062 = vmatpush3.bf16.xpose.msra.mxu0 %v3073_v41  ;;  %v271_v35 = vld [vmem:[%s8807_s20 + $0x3f] sm:$0x1] }
  0xfb   : > { %v7765_v43 = vpop.f32.mrf.mxu0  ;;  %v7771_v44 = vpop.f32.mrf.mxu1  ;;  %8063 = vmatprep.mubr.msk.bf16.mxu0 %vm8756_vm0, %v10538_v0  ;;  %8068 = vmatpush3.bf16.xpose.msra.mxu1 %v3119_v45 }
  0xfc   : > { %v3437_v46 = vsel %vm3409_vm2, %v9240_v40, -inf  ;;  %v3434_v47 = vsel %vm3409_vm2, %v9238_v39, -inf  ;;  %8069 = vmatprep.mubr.msk.bf16.mxu1 %vm8756_vm0, %v10538_v0  ;;  %8073 = vmatprep.subr.bf16.mxu0 %v10538_v0 }
  0xfd   : > { %v858_v48 = vpop.f32.mrf.mxu1  ;;  %3438 = vmax.xlane.f32.xlu1 %v3437_v46  ;;  %3435 = vmax.xlane.f32.xlu0 %v3434_v47  ;;  %v812_v51 = vpop.f32.mrf.mxu0 }
  0xfe   : > { %8079 = vmatprep.subr.bf16.mxu1 %v10538_v0 }
  0xff   : > { %v7766_v52 = vpop.f32.mrf.mxu0  ;;  %v7772_v53 = vpop.f32.mrf.mxu1 }
 0x101   : > { %v901_v54 = vpop.f32.mrf.mxu0  ;;  %v947_v55 = vpop.f32.mrf.mxu1  ;;  %8064 = vmatmul.mubr.msk.bf16.vlgmr.msra.gmra.mxu0 %vm400_vm1, %v266_v57 }
 0x102   : > { %v9260_v59 = vmul.f32 0.5, %v901_v54  ;;  %v9262_v60 = vmul.f32 0.5, %v947_v55  ;;  %8070 = vmatmul.mubr.msk.bf16.vlgmr.msra.gmra.mxu1 %vm400_vm1, %v267_v56  ;;  %8074 = vmatpush3.bf16.xpose.msra.mxu0 %v3165_v61 }
 0x103   : > { %v7777_v63 = vpop.f32.mrf.mxu0  ;;  %v7783_v1 = vpop.f32.mrf.mxu1  ;;  %8080 = vmatpush3.bf16.xpose.msra.mxu1 %v3211_v2  ;;  %8075 = vmatprep.mubr.msk.bf16.mxu0 %vm8756_vm0, %v10538_v0 }
 0x104   : > { %v3443_v5 = vsel %vm3409_vm2, %v9262_v60, -inf  ;;  %v3440_v6 = vsel %vm3409_vm2, %v9260_v59, -inf  ;;  %8081 = vmatprep.mubr.msk.bf16.mxu1 %vm8756_vm0, %v10538_v0  ;;  %8091 = vmatprep.subr.bf16.mxu1 %v10538_v0 }
 0x105   : > { %v950_v7 = vpop.f32.mrf.mxu1  ;;  %3444 = vmax.xlane.f32.xlu1 %v3443_v5  ;;  %3441 = vmax.xlane.f32.xlu0 %v3440_v6  ;;  %v904_v8 = vpop.f32.mrf.mxu0 }
 0x106   : > { %8085 = vmatprep.subr.bf16.mxu0 %v10538_v0 }
 0x107   : > { %v7778_v9 = vpop.f32.mrf.mxu0  ;;  %v7784_v10 = vpop.f32.mrf.mxu1 }
 0x109   : > { %v993_v11 = vpop.f32.mrf.mxu0  ;;  %v1039_v12 = vpop.f32.mrf.mxu1  ;;  %8076 = vmatmul.mubr.msk.bf16.vlgmr.msra.gmra.mxu0 %vm400_vm1, %v268_v14 }
 0x10a   : > { %v9282_v16 = vmul.f32 0.5, %v993_v11  ;;  %v9284_v17 = vmul.f32 0.5, %v1039_v12  ;;  %8082 = vmatmul.mubr.msk.bf16.vlgmr.msra.gmra.mxu1 %vm400_vm1, %v269_v13  ;;  %8086 = vmatpush3.bf16.xpose.msra.mxu0 %v3257_v18 }
 0x10b   : > { %v7789_v20 = vpop.f32.mrf.mxu0  ;;  %v7795_v23 = vpop.f32.mrf.mxu1  ;;  %8092 = vmatpush3.bf16.xpose.msra.mxu1 %v3303_v24  ;;  %8087 = vmatprep.mubr.msk.bf16.mxu0 %vm8756_vm0, %v10538_v0 }
 0x10c   : > { %v3449_v25 = vsel %vm3409_vm2, %v9284_v17, -inf  ;;  %v3446_v26 = vsel %vm3409_vm2, %v9282_v16, -inf  ;;  %8093 = vmatprep.mubr.msk.bf16.mxu1 %vm8756_vm0, %v10538_v0  ;;  %8097 = vmatprep.subr.bf16.mxu0 %v10538_v0 }
 0x10d   : > { %v1042_v27 = vpop.f32.mrf.mxu1  ;;  %3450 = vmax.xlane.f32.xlu1 %v3449_v25  ;;  %3447 = vmax.xlane.f32.xlu0 %v3446_v26  ;;  %v996_v28 = vpop.f32.mrf.mxu0 }
 0x10e   : > { %8103 = vmatprep.subr.bf16.mxu1 %v10538_v0 }
 0x10f   : > { %v7790_v29 = vpop.f32.mrf.mxu0  ;;  %v7796_v30 = vpop.f32.mrf.mxu1 }
 0x111   : > { %v1085_v33 = vpop.f32.mrf.mxu0  ;;  %v1131_v34 = vpop.f32.mrf.mxu1  ;;  %8088 = vmatmul.mubr.msk.bf16.vlgmr.msra.gmra.mxu0 %vm400_vm1, %v270_v36 }
 0x112   : > { %v9303_v37 = vmul.f32 0.5, %v1085_v33  ;;  %v9305_v38 = vmul.f32 0.5, %v1131_v34  ;;  %8094 = vmatmul.mubr.msk.bf16.vlgmr.msra.gmra.mxu1 %vm400_vm1, %v271_v35  ;;  %8099 = vmatprep.mubr.msk.bf16.mxu0 %vm8756_vm0, %v10538_v0 }
 0x113   : > { %v7801_v41 = vpop.f32.mrf.mxu0  ;;  %v7807_v42 = vpop.f32.mrf.mxu1  ;;  %8105 = vmatprep.mubr.msk.bf16.mxu1 %vm8756_vm0, %v10538_v0 }
 0x114   : > { %v3455_v43 = vsel %vm3409_vm2, %v9305_v38, -inf  ;;  %v3452_v44 = vsel %vm3409_vm2, %v9303_v37, -inf }
 0x115   : > { %v1134_v45 = vpop.f32.mrf.mxu1  ;;  %3456 = vmax.xlane.f32.xlu1 %v3455_v43  ;;  %3453 = vmax.xlane.f32.xlu0 %v3452_v44  ;;  %v1088_v46 = vpop.f32.mrf.mxu0 }
 0x117   : > { %v7802_v47 = vpop.f32.mrf.mxu0  ;;  %v7808_v48 = vpop.f32.mrf.mxu1 }
 0x119   : > { %v1177_v51 = vpop.f32.mrf.mxu0  ;;  %v1223_v52 = vpop.f32.mrf.mxu1 }
 0x11a   : > { %v9317_v53 = vmul.f32 0.5, %v1177_v51  ;;  %v9319_v54 = vmul.f32 0.5, %v1223_v52 }
 0x11b   : > { %v7813_v55 = vpop.f32.mrf.mxu0  ;;  %v7819_v56 = vpop.f32.mrf.mxu1 }
 0x11c   : > { %v3461_v57 = vsel %vm3409_vm2, %v9319_v54, -inf  ;;  %v3458_v58 = vsel %vm3409_vm2, %v9317_v53, -inf }
 0x11d   : > { %v1226_v61 = vpop.f32.mrf.mxu1  ;;  %3462 = vmax.xlane.f32.xlu1 %v3461_v57  ;;  %3459 = vmax.xlane.f32.xlu0 %v3458_v58  ;;  %v1180_v62 = vpop.f32.mrf.mxu0 }
 0x11f   : > { %v7814_v63 = vpop.f32.mrf.mxu0  ;;  %v7820_v1 = vpop.f32.mrf.mxu1 }
 0x121   : > { %v1269_v2 = vpop.f32.mrf.mxu0  ;;  %v1315_v5 = vpop.f32.mrf.mxu1 }
 0x122   : > { %v9325_v6 = vmul.f32 0.5, %v1269_v2  ;;  %v9327_v7 = vmul.f32 0.5, %v1315_v5 }
 0x123   : > { %v7825_v8 = vpop.f32.mrf.mxu0  ;;  %v7831_v9 = vpop.f32.mrf.mxu1 }
 0x124   : > { %v3467_v10 = vsel %vm3409_vm2, %v9327_v7, -inf  ;;  %v3464_v11 = vsel %vm3409_vm2, %v9325_v6, -inf }
 0x125   : > { %v1318_v12 = vpop.f32.mrf.mxu1  ;;  %3468 = vmax.xlane.f32.xlu1 %v3467_v10  ;;  %3465 = vmax.xlane.f32.xlu0 %v3464_v11  ;;  %v1272_v13 = vpop.f32.mrf.mxu0 }
 0x127   : > { %v7826_v14 = vpop.f32.mrf.mxu0  ;;  %v7832_v15 = vpop.f32.mrf.mxu1 }
 0x129   : > { %v1361_v18 = vpop.f32.mrf.mxu0  ;;  %v1407_v19 = vpop.f32.mrf.mxu1 }
 0x12a   : > { %v9333_v20 = vmul.f32 0.5, %v1361_v18  ;;  %v9335_v23 = vmul.f32 0.5, %v1407_v19 }
 0x12b   : > { %v7837_v24 = vpop.f32.mrf.mxu0  ;;  %v7843_v25 = vpop.f32.mrf.mxu1 }
 0x12c   : > { %v3473_v26 = vsel %vm3409_vm2, %v9335_v23, -inf  ;;  %v3470_v27 = vsel %vm3409_vm2, %v9333_v20, -inf }
 0x12d   : > { %v1410_v28 = vpop.f32.mrf.mxu1  ;;  %3474 = vmax.xlane.f32.xlu1 %v3473_v26  ;;  %3471 = vmax.xlane.f32.xlu0 %v3470_v27  ;;  %v1364_v29 = vpop.f32.mrf.mxu0 }
 0x12f   : > { %v7838_v30 = vpop.f32.mrf.mxu0  ;;  %v7844_v33 = vpop.f32.mrf.mxu1 }
 0x131   : > { %v1453_v34 = vpop.f32.mrf.mxu0  ;;  %v1499_v35 = vpop.f32.mrf.mxu1 }
 0x132   : > { %v9341_v36 = vmul.f32 0.5, %v1453_v34  ;;  %v9343_v41 = vmul.f32 0.5, %v1499_v35 }
 0x133   : > { %v7849_v42 = vpop.f32.mrf.mxu0  ;;  %v7855_v43 = vpop.f32.mrf.mxu1 }
 0x134   : > { %v3479_v44 = vsel %vm3409_vm2, %v9343_v41, -inf  ;;  %v3476_v45 = vsel %vm3409_vm2, %v9341_v36, -inf }
 0x135   : > { %3480 = vmax.xlane.f32.xlu1 %v3479_v44  ;;  %3477 = vmax.xlane.f32.xlu0 %v3476_v45  ;;  %v1456_v46 = vpop.f32.mrf.mxu0  ;;  %v1502_v47 = vpop.f32.mrf.mxu1 }
 0x137   : > { %v7850_v48 = vpop.f32.mrf.mxu0  ;;  %v7856_v51 = vpop.f32.mrf.mxu1 }
 0x139   : > { %v9349_v52 = vpop.f32.mrf.mxu0  ;;  %v9351_v55 = vpop.f32.mrf.mxu1 }
 0x13b   : > { %v7861_v56 = vpop.f32.mrf.mxu0  ;;  %v7867_v57 = vpop.f32.mrf.mxu1 }
 0x13d   : > { %v1548_v58 = vpop.f32.mrf.mxu0  ;;  %v1594_v61 = vpop.f32.mrf.mxu1 }
 0x13f   : > { %v7862_v62 = vpop.f32.mrf.mxu0  ;;  %v7868_v63 = vpop.f32.mrf.mxu1 }
 0x141   : > { %v9353_v1 = vpop.f32.mrf.mxu0  ;;  %v9355_v2 = vpop.f32.mrf.mxu1 }
 0x143   : > { %v7873_v5 = vpop.f32.mrf.mxu0  ;;  %v7879_v8 = vpop.f32.mrf.mxu1 }
 0x145   : > { %v1640_v9 = vpop.f32.mrf.mxu0  ;;  %v1686_v10 = vpop.f32.mrf.mxu1 }
 0x147   : > { %v7874_v11 = vpop.f32.mrf.mxu0  ;;  %v7880_v12 = vpop.f32.mrf.mxu1 }
 0x149   : > { %v9357_v13 = vpop.f32.mrf.mxu0  ;;  %v9359_v14 = vpop.f32.mrf.mxu1 }
 0x14b   : > { %v7885_v15 = vpop.f32.mrf.mxu0  ;;  %v7891_v18 = vpop.f32.mrf.mxu1 }
 0x14d   : > { %v1732_v19 = vpop.f32.mrf.mxu0  ;;  %v1778_v24 = vpop.f32.mrf.mxu1 }
 0x14f   : > { %v7886_v25 = vpop.f32.mrf.mxu0  ;;  %v7892_v26 = vpop.f32.mrf.mxu1 }
 0x151   : > { %v9361_v27 = vpop.f32.mrf.mxu0  ;;  %v9363_v28 = vpop.f32.mrf.mxu1 }
 0x153   : > { %v7897_v29 = vpop.f32.mrf.mxu0  ;;  %v7903_v30 = vpop.f32.mrf.mxu1 }
 0x155   : > { %v1824_v33 = vpop.f32.mrf.mxu0  ;;  %v1870_v34 = vpop.f32.mrf.mxu1 }
 0x157   : > { %v7898_v35 = vpop.f32.mrf.mxu0  ;;  %v7904_v42 = vpop.f32.mrf.mxu1 }
 0x159   : > { %v9365_v43 = vpop.f32.mrf.mxu0  ;;  %v9367_v44 = vpop.f32.mrf.mxu1 }
 0x15b   : > { %v7909_v45 = vpop.f32.mrf.mxu0  ;;  %v7915_v46 = vpop.f32.mrf.mxu1 }
 0x15d   : > { %v1916_v47 = vpop.f32.mrf.mxu0  ;;  %v1962_v48 = vpop.f32.mrf.mxu1 }
 0x15f   : > { %v7910_v51 = vpop.f32.mrf.mxu0  ;;  %v7916_v56 = vpop.f32.mrf.mxu1 }
 0x161   : > { %v9369_v57 = vpop.f32.mrf.mxu0  ;;  %v9371_v58 = vpop.f32.mrf.mxu1 }
 0x163   : > { %v7921_v61 = vpop.f32.mrf.mxu0  ;;  %v7927_v62 = vpop.f32.mrf.mxu1 }
 0x165   : > { %v2008_v63 = vpop.f32.mrf.mxu0  ;;  %v2054_v5 = vpop.f32.mrf.mxu1 }
 0x166   : > { %v3412_v8 = vpop.xlane.xlu0 %3411 }
 0x167   : > { %v3602_v9 = vsub.f32 %v9155_v31, %v3412_v8  ;;  %v7922_v10 = vpop.f32.mrf.mxu0  ;;  %v7928_v11 = vpop.f32.mrf.mxu1 }
 0x168   : > { %v9388_v10 = vmul.f32 0.5, %v9349_v52 }
 0x169   : > { %v3666_v12 = vmul.f32 1.442695, %v3602_v9  ;;  %v9374_v15 = vpop.f32.mrf.mxu0  ;;  %v9376_v18 = vpop.f32.mrf.mxu1 }
 0x16a   : > { %v3415_v19 = vpop.xlane.xlu0 %3414 }
 0x16b   : > { %8491 = vpow2.f32 %v3666_v12  ;;  %v3603_v24 = vsub.f32 %v9157_v32, %v3415_v19  ;;  %v7933_v25 = vpop.f32.mrf.mxu0  ;;  %v7939_v26 = vpop.f32.mrf.mxu1 }
 0x16d   : > { %v3668_v29 = vmul.f32 1.442695, %v3603_v24  ;;  %v2100_v30 = vpop.f32.mrf.mxu0  ;;  %v2146_v33 = vpop.f32.mrf.mxu1 }
 0x16e   : > { %v3418_v34 = vpop.xlane.xlu1 %3417 }
 0x16f   : > { %8493 = vpow2.f32 %v3668_v29  ;;  %v3604_v31 = vsub.f32 %v9178_v50, %v3418_v34  ;;  %v7934_v35 = vpop.f32.mrf.mxu0  ;;  %v7940_v42 = vpop.f32.mrf.mxu1 }
 0x171   : > { %v3670_v45 = vmul.f32 1.442695, %v3604_v31  ;;  %v9380_v46 = vpop.f32.mrf.mxu0  ;;  %v9382_v47 = vpop.f32.mrf.mxu1 }
 0x172   : > { %v3421_v48 = vpop.xlane.xlu1 %3420 }
 0x173   : > { %8495 = vpow2.f32 %v3670_v45  ;;  %v3605_v32 = vsub.f32 %v9176_v49, %v3421_v48  ;;  %v7945_v51 = vpop.f32.mrf.mxu0  ;;  %v7951_v56 = vpop.f32.mrf.mxu1 }
 0x175   : > { %v3672_v61 = vmul.f32 1.442695, %v3605_v32  ;;  %v2192_v62 = vpop.f32.mrf.mxu0  ;;  %v2238_v63 = vpop.f32.mrf.mxu1  ;;  %v9410_v32 = vmul.f32 0.5, %v9353_v1 }
 0x176   : > { %v3427_v5 = vpop.xlane.xlu1 %3426  ;;  %v3424_v8 = vpop.xlane.xlu0 %3423 }
 0x177   : > { %8497 = vpow2.f32 %v3672_v61  ;;  %v3607_v50 = vsub.f32 %v9197_v3, %v3427_v5  ;;  %v3606_v9 = vsub.f32 %v9199_v4, %v3424_v8  ;;  %v7946_v11 = vpop.f32.mrf.mxu0  ;;  %v7952_v12 = vpop.f32.mrf.mxu1  ;;  %v9399_v3 = vmul.f32 0.5, %v9351_v55 }
 0x178   : > { %v9390_v19 = vpop.eup %8491  ;;  %v3482_v4 = vsel %vm3409_vm2, %v9388_v10, -inf  ;;  %v3488_v1 = vsel %vm3409_vm2, %v9410_v32, -inf }
 0x179   : > { %v3676_v49 = vmul.f32 1.442695, %v3607_v50  ;;  %v3674_v24 = vmul.f32 1.442695, %v3606_v9  ;;  %v3794_v25 = vsel %vm3409_vm2, %v9390_v19, 0.0  ;;  %v9394_v26 = vpop.f32.mrf.mxu0  ;;  %v9396_v29 = vpop.f32.mrf.mxu1  ;;  %v3485_v51 = vsel %vm3409_vm2, %v9399_v3, -inf }
 0x17a   : > { %3795 = vadd.xlane.f32.xlu0 %v3794_v25 }
 0x17b   : > { %v7957_v52 = vpop.f32.mrf.mxu0  ;;  %v7963_v30 = vpop.f32.mrf.mxu1  ;;  %8499 = vpow2.f32 %v3674_v24 }
 0x17c   : > { %v9403_v33 = vpop.eup %8493  ;;  %8501 = vpow2.f32 %v3676_v49 }
 0x17d   : > { %v3797_v34 = vsel %vm3409_vm2, %v9403_v33, 0.0  ;;  %v2284_v31 = vpop.f32.mrf.mxu0  ;;  %v2330_v35 = vpop.f32.mrf.mxu1 }
 0x17e   : > { %3798 = vadd.xlane.f32.xlu1 %v3797_v34  ;;  %v3433_v42 = vpop.xlane.xlu1 %3432  ;;  %v3430_v45 = vpop.xlane.xlu0 %3429  ;;  %3483 = vmax.xlane.f32.xlu0 %v3482_v4 }
 0x17f   : > { %v3609_v55 = vsub.f32 %v9221_v22, %v3433_v42  ;;  %v3608_v48 = vsub.f32 %v9219_v21, %v3430_v45  ;;  %v7958_v56 = vpop.f32.mrf.mxu0  ;;  %v7964_v61 = vpop.f32.mrf.mxu1  ;;  %v9423_v21 = vmul.f32 0.5, %v9355_v2  ;;  %v9436_v42 = vmul.f32 0.5, %v9357_v13 }
 0x180   : > { %v9414_v62 = vpop.eup %8495 }
 0x181   : > { %v3680_v63 = vmul.f32 1.442695, %v3609_v55  ;;  %v3678_v5 = vmul.f32 1.442695, %v3608_v48  ;;  %v3800_v8 = vsel %vm3409_vm2, %v9414_v62, 0.0  ;;  %v9418_v50 = vpop.f32.mrf.mxu0  ;;  %v9420_v22 = vpop.f32.mrf.mxu1  ;;  %v3491_v34 = vsel %vm3409_vm2, %v9423_v21, -inf }
 0x182   : > { %3486 = vmax.xlane.f32.xlu1 %v3485_v51  ;;  %3801 = vadd.xlane.f32.xlu0 %v3800_v8 }
 0x183   : > { %v7969_v9 = vpop.f32.mrf.mxu0  ;;  %v7975_v11 = vpop.f32.mrf.mxu1  ;;  %8503 = vpow2.f32 %v3678_v5  ;;  %v3494_v5 = vsel %vm3409_vm2, %v9436_v42, -inf }
 0x184   : > { %v9427_v12 = vpop.eup %8497  ;;  %8505 = vpow2.f32 %v3680_v63 }
 0x185   : > { %v3803_v49 = vsel %vm3409_vm2, %v9427_v12, 0.0  ;;  %v2376_v24 = vpop.f32.mrf.mxu0  ;;  %v2422_v25 = vpop.f32.mrf.mxu1 }
 0x186   : > { %3804 = vadd.xlane.f32.xlu1 %v3803_v49  ;;  %v3439_v4 = vpop.xlane.xlu1 %3438  ;;  %v3436_v52 = vpop.xlane.xlu0 %3435  ;;  %3489 = vmax.xlane.f32.xlu0 %v3488_v1 }
 0x187   : > { %v3611_v2 = vsub.f32 %v9240_v40, %v3439_v4  ;;  %v3610_v30 = vsub.f32 %v9238_v39, %v3436_v52  ;;  %v7970_v31 = vpop.f32.mrf.mxu0  ;;  %v7976_v35 = vpop.f32.mrf.mxu1  ;;  %v9449_v40 = vmul.f32 0.5, %v9359_v14 }
 0x188   : > { %v9438_v45 = vpop.eup %8499 }
 0x189   : > { %v3684_v55 = vmul.f32 1.442695, %v3611_v2  ;;  %v3682_v48 = vmul.f32 1.442695, %v3610_v30  ;;  %v9440_v51 = vpop.f32.mrf.mxu0  ;;  %v9442_v56 = vpop.f32.mrf.mxu1  ;;  %v3806_v39 = vsel %vm3409_vm2, %v9438_v45, 0.0  ;;  %v3497_v25 = vsel %vm3409_vm2, %v9449_v40, -inf }
 0x18a   : > { %v9444_v61 = vpop.eup %8501  ;;  %3492 = vmax.xlane.f32.xlu1 %v3491_v34  ;;  %3807 = vadd.xlane.f32.xlu0 %v3806_v39  ;;  %v9460_v2 = vmul.f32 0.5, %v9361_v27  ;;  %v336_v27 = vld [vmem:[%s9472_s23] sm:$0x1] }
 0x18b   : > { %v7981_v13 = vpop.f32.mrf.mxu0  ;;  %v7987_v63 = vpop.f32.mrf.mxu1  ;;  %8507 = vpow2.f32 %v3682_v48  ;;  %v3809_v8 = vsel %vm3409_vm2, %v9444_v61, 0.0  ;;  %v9480_v48 = vmul.f32 0.5, %v9363_v28  ;;  %v4184_v39 = vsel %vm4182_vm3, %v336_v27, 0 }
 0x18c   : > { %8509 = vpow2.f32 %v3684_v55  ;;  %8098 = vmatpush3.bf16.msra.mxu0 %v4184_v39 }
 0x18d   : > { %v2468_v1 = vpop.f32.mrf.mxu0  ;;  %v2514_v9 = vpop.f32.mrf.mxu1  ;;  %8109 = vmatprep.subr.bf16.mxu0 %v10538_v0 }
 0x18e   : > { %3810 = vadd.xlane.f32.xlu1 %v3809_v8  ;;  %v3445_v11 = vpop.xlane.xlu1 %3444  ;;  %v3442_v49 = vpop.xlane.xlu0 %3441  ;;  %3495 = vmax.xlane.f32.xlu0 %v3494_v5  ;;  %v3500_v5 = vsel %vm3409_vm2, %v9460_v2, -inf }
 0x18f   : > { %v3613_v14 = vsub.f32 %v9262_v60, %v3445_v11  ;;  %v3612_v24 = vsub.f32 %v9260_v59, %v3442_v49  ;;  %v7982_v4 = vpop.f32.mrf.mxu0  ;;  %v7988_v52 = vpop.f32.mrf.mxu1  ;;  %v337_v49 = vld [vmem:[%s9472_s23 + $0x1] sm:$0x1] }
 0x190   : > { %v9462_v30 = vpop.eup %8503  ;;  %v4230_v4 = vsel %vm4182_vm3, %v337_v49, 0 }
 0x191   : > { %v3688_v34 = vmul.f32 1.442695, %v3613_v14  ;;  %v3686_v31 = vmul.f32 1.442695, %v3612_v24  ;;  %v9464_v35 = vpop.f32.mrf.mxu0  ;;  %v9466_v55 = vpop.f32.mrf.mxu1  ;;  %v3812_v60 = vsel %vm3409_vm2, %v9462_v30, 0.0  ;;  %8104 = vmatpush3.bf16.msra.mxu1 %v4230_v4  ;;  %v9520_v4 = vmul.f32 0.5, %v9369_v57 }
 0x192   : > { %v9474_v59 = vpop.eup %8505  ;;  %3498 = vmax.xlane.f32.xlu1 %v3497_v25  ;;  %3813 = vadd.xlane.f32.xlu0 %v3812_v60  ;;  %v3503_v25 = vsel %vm3409_vm2, %v9480_v48, -inf }
 0x193   : > { %v7993_v13 = vpop.f32.mrf.mxu0  ;;  %v7999_v63 = vpop.f32.mrf.mxu1  ;;  %8511 = vpow2.f32 %v3686_v31  ;;  %v3815_v8 = vsel %vm3409_vm2, %v9474_v59, 0.0  ;;  %v9495_v31 = vmul.f32 0.5, %v9365_v43  ;;  %8115 = vmatprep.subr.bf16.mxu1 %v10538_v0  ;;  %v9509_v43 = vmul.f32 0.5, %v9367_v44 }
 0x194   : > { %8513 = vpow2.f32 %v3688_v34 }
 0x195   : > { %v2560_v1 = vpop.f32.mrf.mxu0  ;;  %v2606_v9 = vpop.f32.mrf.mxu1  ;;  %v3509_v44 = vsel %vm3409_vm2, %v9509_v43, -inf }
 0x196   : > { %3816 = vadd.xlane.f32.xlu1 %v3815_v8  ;;  %v3451_v28 = vpop.xlane.xlu1 %3450  ;;  %v3448_v11 = vpop.xlane.xlu0 %3447  ;;  %3501 = vmax.xlane.f32.xlu0 %v3500_v5  ;;  %v3506_v5 = vsel %vm3409_vm2, %v9495_v31, -inf }
 0x197   : > { %v3615_v14 = vsub.f32 %v9284_v17, %v3451_v28  ;;  %v3614_v24 = vsub.f32 %v9282_v16, %v3448_v11  ;;  %v7994_v52 = vpop.f32.mrf.mxu0  ;;  %v8000_v34 = vpop.f32.mrf.mxu1 }
 0x198   : > { %v9497_v60 = vpop.eup %8507 }
 0x199   : > { %v3692_v27 = vmul.f32 1.442695, %v3615_v14  ;;  %v3690_v39 = vmul.f32 1.442695, %v3614_v24  ;;  %v9500_v17 = vpop.eup %8509  ;;  %v3818_v16 = vsel %vm3409_vm2, %v9497_v60, 0.0  ;;  %v9504_v13 = vpop.f32.mrf.mxu0 }
 0x19a   : > { %3504 = vmax.xlane.f32.xlu1 %v3503_v25  ;;  %v9506_v63 = vpop.f32.mrf.mxu1  ;;  %3819 = vadd.xlane.f32.xlu0 %v3818_v16  ;;  %v3821_v9 = vsel %vm3409_vm2, %v9500_v17, 0.0 }
 0x19b   : > { %8515 = vpow2.f32 %v3690_v39  ;;  %v8005_v8 = vpop.f32.mrf.mxu0 }
 0x19c   : > { %v8011_v1 = vpop.f32.mrf.mxu1  ;;  %8517 = vpow2.f32 %v3692_v27 }
 0x19d   : > { %v2652_v24 = vpop.f32.mrf.mxu0  ;;  %v3512_v1 = vsel %vm3409_vm2, %v9520_v4, -inf }
 0x19e   : > { %3822 = vadd.xlane.f32.xlu1 %v3821_v9  ;;  %v3457_v28 = vpop.xlane.xlu1 %3456  ;;  %v3454_v11 = vpop.xlane.xlu0 %3453  ;;  %3507 = vmax.xlane.f32.xlu0 %v3506_v5 }
 0x19f   : > { %v3617_v49 = vsub.f32 %v9305_v38, %v3457_v28  ;;  %v3616_v14 = vsub.f32 %v9303_v37, %v3454_v11  ;;  %v2698_v25 = vpop.f32.mrf.mxu1  ;;  %v8006_v39 = vpop.f32.mrf.mxu0  ;;  %v9529_v38 = vmul.f32 0.5, %v9371_v58 }
 0x1a0   : > { %v9522_v52 = vpop.eup %8511 }
 0x1a1   : > { %v3696_v34 = vmul.f32 1.442695, %v3617_v49  ;;  %v3694_v27 = vmul.f32 1.442695, %v3616_v14  ;;  %v8012_v16 = vpop.f32.mrf.mxu1  ;;  %v9524_v8 = vpop.eup %8513  ;;  %v3824_v37 = vsel %vm3409_vm2, %v9522_v52, 0.0  ;;  %v3515_v24 = vsel %vm3409_vm2, %v9529_v38, -inf }
 0x1a2   : > { %3510 = vmax.xlane.f32.xlu1 %v3509_v44  ;;  %3825 = vadd.xlane.f32.xlu0 %v3824_v37  ;;  %v9531_v5 = vpop.f32.mrf.mxu0  ;;  %v3827_v9 = vsel %vm3409_vm2, %v9524_v8, 0.0 }
 0x1a3   : > { %v9533_v57 = vpop.f32.mrf.mxu1  ;;  %8519 = vpow2.f32 %v3694_v27 }
 0x1a4   : > { %8521 = vpow2.f32 %v3696_v34  ;;  %v8017_v28 = vpop.f32.mrf.mxu0  ;;  %v9544_v34 = vmul.f32 0.5, %v9374_v15 }
 0x1a5   : > { %v8023_v11 = vpop.f32.mrf.mxu1 }
 0x1a6   : > { %3828 = vadd.xlane.f32.xlu1 %v3827_v9  ;;  %v3463_v49 = vpop.xlane.xlu1 %3462  ;;  %v3460_v14 = vpop.xlane.xlu0 %3459  ;;  %3513 = vmax.xlane.f32.xlu0 %v3512_v1 }
 0x1a7   : > { %v3619_v58 = vsub.f32 %v9319_v54, %v3463_v49  ;;  %v3618_v44 = vsub.f32 %v9317_v53, %v3460_v14  ;;  %v2744_v25 = vpop.f32.mrf.mxu0  ;;  %v2790_v27 = vpop.f32.mrf.mxu1  ;;  %v9553_v54 = vmul.f32 0.5, %v9376_v18  ;;  %v3518_v49 = vsel %vm3409_vm2, %v9544_v34, -inf }
 0x1a8   : > { %v9546_v39 = vpop.eup %8515 }
 0x1a9   : > { %v3700_v16 = vmul.f32 1.442695, %v3619_v58  ;;  %v3698_v37 = vmul.f32 1.442695, %v3618_v44  ;;  %v8018_v9 = vpop.f32.mrf.mxu0  ;;  %v8024_v28 = vpop.f32.mrf.mxu1  ;;  %v3830_v53 = vsel %vm3409_vm2, %v9546_v39, 0.0 }
 0x1aa   : > { %v9548_v11 = vpop.eup %8517  ;;  %3516 = vmax.xlane.f32.xlu1 %v3515_v24  ;;  %3831 = vadd.xlane.f32.xlu0 %v3830_v53 }
 0x1ab   : > { %10553 = vst [vmem:[#allocation2_spill] sm:$0xff] %v9548_v11  ;;  %v9555_v1 = vpop.f32.mrf.mxu0  ;;  %v9557_v15 = vpop.f32.mrf.mxu1  ;;  %8523 = vpow2.f32 %v3698_v37  ;;  %v3833_v14 = vsel %vm3409_vm2, %v9548_v11, 0.0  ;;  %v3521_v37 = vsel %vm3409_vm2, %v9553_v54, -inf }
 0x1ac   : > { %8525 = vpow2.f32 %v3700_v16  ;;  %v9568_v16 = vmul.f32 0.5, %v9380_v46 }
 0x1ad   : > { %v8029_v58 = vpop.f32.mrf.mxu0  ;;  %v8035_v44 = vpop.f32.mrf.mxu1 }
 0x1ae   : > { %3834 = vadd.xlane.f32.xlu1 %v3833_v14  ;;  %v3469_v24 = vpop.xlane.xlu1 %3468  ;;  %v3466_v25 = vpop.xlane.xlu0 %3465  ;;  %3519 = vmax.xlane.f32.xlu0 %v3518_v49 }
 0x1af   : > { %v3621_v18 = vsub.f32 %v9327_v7, %v3469_v24  ;;  %v3620_v27 = vsub.f32 %v9325_v6, %v3466_v25  ;;  %v2836_v9 = vpop.f32.mrf.mxu0  ;;  %v2882_v28 = vpop.f32.mrf.mxu1  ;;  %v9577_v7 = vmul.f32 0.5, %v9382_v47  ;;  %v3524_v24 = vsel %vm3409_vm2, %v9568_v16, -inf }
 0x1b0   : > { %v9570_v53 = vpop.eup %8519 }
 0x1b1   : > { %10554 = vst [vmem:[#allocation3_spill] sm:$0xff] %v9570_v53  ;;  %v3704_v58 = vmul.f32 1.442695, %v3621_v18  ;;  %v3702_v44 = vmul.f32 1.442695, %v3620_v27  ;;  %v8030_v14 = vpop.f32.mrf.mxu0  ;;  %v8036_v0 = vpop.f32.mrf.mxu1  ;;  %v3836_v6 = vsel %vm3409_vm2, %v9570_v53, 0.0 }
 0x1b2   : > { %v9572_v11 = vpop.eup %8521  ;;  %3522 = vmax.xlane.f32.xlu1 %v3521_v37  ;;  %3837 = vadd.xlane.f32.xlu0 %v3836_v6  ;;  %v3527_v28 = vsel %vm3409_vm2, %v9577_v7, -inf }
 0x1b3   : > { %10555 = vst [vmem:[#allocation4_spill] sm:$0xff] %v9572_v11  ;;  %v9579_v49 = vpop.f32.mrf.mxu0  ;;  %v9581_v46 = vpop.f32.mrf.mxu1  ;;  %8527 = vpow2.f32 %v3702_v44  ;;  %v3839_v0 = vsel %vm3409_vm2, %v9572_v11, 0.0 }
 0x1b4   : > { %8529 = vpow2.f32 %v3704_v58  ;;  %v9592_v58 = vmul.f32 0.5, %v9394_v26 }
 0x1b5   : > { %v8041_v25 = vpop.f32.mrf.mxu0  ;;  %v8047_v18 = vpop.f32.mrf.mxu1 }
 0x1b6   : > { %3840 = vadd.xlane.f32.xlu1 %v3839_v0  ;;  %v3475_v27 = vpop.xlane.xlu1 %3474  ;;  %v3472_v37 = vpop.xlane.xlu0 %3471  ;;  %3525 = vmax.xlane.f32.xlu0 %v3524_v24 }
 0x1b7   : > { %v3623_v47 = vsub.f32 %v9335_v23, %v3475_v27  ;;  %v3622_v9 = vsub.f32 %v9333_v20, %v3472_v37  ;;  %v2928_v44 = vpop.f32.mrf.mxu0  ;;  %v2974_v14 = vpop.f32.mrf.mxu1  ;;  %v9601_v23 = vmul.f32 0.5, %v9396_v29  ;;  %v3530_v27 = vsel %vm3409_vm2, %v9592_v58, -inf }
 0x1b8   : > { %v9594_v6 = vpop.eup %8523 }
 0x1b9   : > { %10556 = vst [vmem:[#allocation5_spill] sm:$0xff] %v9594_v6  ;;  %v3708_v25 = vmul.f32 1.442695, %v3623_v47  ;;  %v3706_v18 = vmul.f32 1.442695, %v3622_v9  ;;  %v8042_v0 = vpop.f32.mrf.mxu0  ;;  %v8048_v11 = vpop.f32.mrf.mxu1  ;;  %v3842_v20 = vsel %vm3409_vm2, %v9594_v6, 0.0 }
 0x1ba   : > { %v9596_v53 = vpop.eup %8525  ;;  %3528 = vmax.xlane.f32.xlu1 %v3527_v28  ;;  %3843 = vadd.xlane.f32.xlu0 %v3842_v20  ;;  %v3533_v14 = vsel %vm3409_vm2, %v9601_v23, -inf }
 0x1bb   : > { %10557 = vst [vmem:[#allocation6_spill] sm:$0xff] %v9596_v53  ;;  %v9603_v24 = vpop.f32.mrf.mxu0  ;;  %v9605_v26 = vpop.f32.mrf.mxu1  ;;  %8531 = vpow2.f32 %v3706_v18  ;;  %v3845_v11 = vsel %vm3409_vm2, %v9596_v53, 0.0 }
 0x1bc   : > { %8533 = vpow2.f32 %v3708_v25  ;;  %v9616_v25 = vmul.f32 0.5, %v9418_v50 }
 0x1bd   : > { %v8053_v37 = vpop.f32.mrf.mxu0  ;;  %v8059_v47 = vpop.f32.mrf.mxu1 }
 0x1be   : > { %3846 = vadd.xlane.f32.xlu1 %v3845_v11  ;;  %v3481_v9 = vpop.xlane.xlu1 %3480  ;;  %v3478_v28 = vpop.xlane.xlu0 %3477  ;;  %3531 = vmax.xlane.f32.xlu0 %v3530_v27 }
 0x1bf   : > { %v3625_v29 = vsub.f32 %v9343_v41, %v3481_v9  ;;  %v3624_v44 = vsub.f32 %v9341_v36, %v3478_v28  ;;  %v3020_v18 = vpop.f32.mrf.mxu0  ;;  %v3066_v0 = vpop.f32.mrf.mxu1  ;;  %v9625_v41 = vmul.f32 0.5, %v9420_v22  ;;  %v3536_v9 = vsel %vm3409_vm2, %v9616_v25, -inf }
 0x1c0   : > { %v9618_v20 = vpop.eup %8527  ;;  %v9638_v18 = vmul.f32 0.5, %v9440_v51 }
 0x1c1   : > { %10558 = vst [vmem:[#allocation7_spill] sm:$0xff] %v9618_v20  ;;  %v3712_v37 = vmul.f32 1.442695, %v3625_v29  ;;  %v3710_v47 = vmul.f32 1.442695, %v3624_v44  ;;  %v8054_v11 = vpop.f32.mrf.mxu0  ;;  %v8060_v53 = vpop.f32.mrf.mxu1  ;;  %v3848_v36 = vsel %vm3409_vm2, %v9618_v20, 0.0 }
 0x1c2   : > { %v9620_v6 = vpop.eup %8529  ;;  %3534 = vmax.xlane.f32.xlu1 %v3533_v14  ;;  %3849 = vadd.xlane.f32.xlu0 %v3848_v36  ;;  %v3539_v22 = vsel %vm3409_vm2, %v9625_v41, -inf  ;;  %10560 = vst [vmem:[#allocation9_spill] sm:$0xff] %v9638_v18  ;;  %v3542_v51 = vsel %vm3409_vm2, %v9638_v18, -inf }
 0x1c3   : > { %10559 = vst [vmem:[#allocation8_spill] sm:$0xff] %v9620_v6  ;;  %v9627_v27 = vpop.f32.mrf.mxu0  ;;  %v9629_v50 = vpop.f32.mrf.mxu1  ;;  %8535 = vpow2.f32 %v3710_v47  ;;  %v3851_v53 = vsel %vm3409_vm2, %v9620_v6, 0.0 }
 0x1c4   : > { %8537 = vpow2.f32 %v3712_v37 }
 0x1c5   : > { %v8065_v28 = vpop.f32.mrf.mxu0  ;;  %v8071_v29 = vpop.f32.mrf.mxu1 }
 0x1c6   : > { %3852 = vadd.xlane.f32.xlu1 %v3851_v53  ;;  %3537 = vmax.xlane.f32.xlu0 %v3536_v9  ;;  %v9647_v9 = vmul.f32 0.5, %v9442_v56 }
 0x1c7   : > { %v3112_v44 = vpop.f32.mrf.mxu0  ;;  %v3158_v14 = vpop.f32.mrf.mxu1 }
 0x1c8   : > { %v9640_v0 = vpop.eup %8531  ;;  %10563 = vst [vmem:[#allocation12_spill] sm:$0xff] %v9647_v9 }
 0x1c9   : > { %10561 = vst [vmem:[#allocation10_spill] sm:$0xff] %v9640_v0  ;;  %v8066_v47 = vpop.f32.mrf.mxu0  ;;  %v8072_v11 = vpop.f32.mrf.mxu1  ;;  %v3854_v36 = vsel %vm3409_vm2, %v9640_v0, 0.0 }
 0x1ca   : > { %v9642_v37 = vpop.eup %8533  ;;  %3540 = vmax.xlane.f32.xlu1 %v3539_v22  ;;  %3855 = vadd.xlane.f32.xlu0 %v3854_v36  ;;  %v3545_v22 = vsel %vm3409_vm2, %v9647_v9, -inf  ;;  %v9660_v11 = vmul.f32 0.5, %v9464_v35 }
 0x1cb   : > { %10562 = vst [vmem:[#allocation11_spill] sm:$0xff] %v9642_v37  ;;  %v9649_v53 = vpop.f32.mrf.mxu0  ;;  %v9651_v28 = vpop.f32.mrf.mxu1  ;;  %v3857_v29 = vsel %vm3409_vm2, %v9642_v37, 0.0 }
 0x1cc   : > { %v3548_v35 = vsel %vm3409_vm2, %v9660_v11, -inf }
 0x1cd   : > { %v8077_v44 = vpop.f32.mrf.mxu0  ;;  %v8083_v14 = vpop.f32.mrf.mxu1 }
 0x1ce   : > { %3858 = vadd.xlane.f32.xlu1 %v3857_v29  ;;  %3543 = vmax.xlane.f32.xlu0 %v3542_v51  ;;  %v9669_v51 = vmul.f32 0.5, %v9466_v55 }
 0x1cf   : > { %v3204_v47 = vpop.f32.mrf.mxu0  ;;  %v3250_v56 = vpop.f32.mrf.mxu1 }
 0x1d0   : > { %v9662_v36 = vpop.eup %8535 }
 0x1d1   : > { %10564 = vst [vmem:[#allocation13_spill] sm:$0xff] %v9662_v36  ;;  %v8078_v0 = vpop.f32.mrf.mxu0  ;;  %v8084_v6 = vpop.f32.mrf.mxu1  ;;  %v3860_v44 = vsel %vm3409_vm2, %v9662_v36, 0.0 }
 0x1d2   : > { %v9664_v20 = vpop.eup %8537  ;;  %3546 = vmax.xlane.f32.xlu1 %v3545_v22  ;;  %3861 = vadd.xlane.f32.xlu0 %v3860_v44  ;;  %v3551_v22 = vsel %vm3409_vm2, %v9669_v51, -inf }
 0x1d3   : > { %10565 = vst [vmem:[#allocation14_spill] sm:$0xff] %v9664_v20  ;;  %v9671_v29 = vpop.f32.mrf.mxu0  ;;  %v9673_v14 = vpop.f32.mrf.mxu1  ;;  %v3863_v6 = vsel %vm3409_vm2, %v9664_v20, 0.0 }
 0x1d5   : > { %v8089_v0 = vpop.f32.mrf.mxu0  ;;  %v8095_v47 = vpop.f32.mrf.mxu1 }
 0x1d6   : > { %3864 = vadd.xlane.f32.xlu1 %v3863_v6  ;;  %3549 = vmax.xlane.f32.xlu0 %v3548_v35 }
 0x1d7   : > { %v3296_v56 = vpop.f32.mrf.mxu0  ;;  %v3342_v55 = vpop.f32.mrf.mxu1 }
 0x1d9   : > { %v8090_v44 = vpop.f32.mrf.mxu0  ;;  %v8096_v36 = vpop.f32.mrf.mxu1 }
 0x1da   : > { %3552 = vmax.xlane.f32.xlu1 %v3551_v22  ;;  %v338_v22 = vld [vmem:[%s9472_s23 + $0x2] sm:$0x1] }
 0x203   : > { %v3796_v37 = vpop.xlane.xlu0 %3795 }
 0x204   : > { %8539 = vrcp.f32 %v3796_v37 }
 0x207   : > { %v3799_v9 = vpop.xlane.xlu1 %3798  ;;  %v3484_v18 = vpop.xlane.xlu0 %3483 }
 0x208   : > { %8541 = vrcp.f32 %v3799_v9  ;;  %v3626_v20 = vsub.f32 %v9388_v10, %v3484_v18 }
 0x20a   : > { %v3714_v0 = vmul.f32 1.442695, %v3626_v20 }
 0x20b   : > { %v3487_v47 = vpop.xlane.xlu1 %3486  ;;  %v3802_v6 = vpop.xlane.xlu0 %3801 }
 0x20c   : > { %8543 = vpow2.f32 %v3714_v0  ;;  %v3627_v35 = vsub.f32 %v9399_v3, %v3487_v47  ;;  %v4276_v47 = vsel %vm4182_vm3, %v338_v22, 0  ;;  %v9699_v22 = vmul.f32 0.5, %v9504_v13 }
 0x20d   : > { %8545 = vrcp.f32 %v3802_v6 }
 0x20e   : > { %v3716_v56 = vmul.f32 1.442695, %v3627_v35  ;;  %v339_v35 = vld [vmem:[%s9472_s23 + $0x3] sm:$0x1] }
 0x20f   : > { %v3805_v55 = vpop.xlane.xlu1 %3804  ;;  %v3490_v44 = vpop.xlane.xlu0 %3489 }
 0x210   : > { %8547 = vpow2.f32 %v3716_v56  ;;  %v3628_v37 = vsub.f32 %v9410_v32, %v3490_v44 }
 0x211   : > { %v8540_v36 = vpop.eup %8539  ;;  %8549 = vrcp.f32 %v3805_v55  ;;  %v10566_v55 = vmov 0.0  }
 0x212   : > { %v4050_v9 = vmul.f32 %v8540_v36, %v9390_v19  ;;  %v3718_v10 = vmul.f32 1.442695, %v3628_v37  ;;  %v4322_v37 = vsel %vm4182_vm3, %v339_v35, 0 }
 0x213   : > { %v3493_v20 = vpop.xlane.xlu1 %3492  ;;  %v3808_v0 = vpop.xlane.xlu0 %3807 }
 0x214   : > { %v4114_v18 = vpack.c.bf16 %v4050_v9, %v4050_v9  ;;  %8551 = vpow2.f32 %v3718_v10  ;;  %v3629_v3 = vsub.f32 %v9423_v21, %v3493_v20  ;;  %v340_v20 = vld [vmem:[%s9472_s23 + $0x4] sm:$0x1] }
 0x215   : > { %v8542_v6 = vpop.eup %8541  ;;  %8553 = vrcp.f32 %v3808_v0 }
 0x216   : > { %v4051_v32 = vmul.f32 %v8542_v6, %v9403_v33  ;;  %v3720_v56 = vmul.f32 1.442695, %v3629_v3  ;;  %8100 = vmatmul.mubr.msk.bf16.vlgmr.msra.gmra.mxu0 %vm4178_vm4, %v4114_v18 }
 0x217   : > { %v3811_v19 = vpop.xlane.xlu1 %3810  ;;  %8110 = vmatpush3.bf16.msra.mxu0 %v4276_v47  ;;  %8111 = vmatprep.mubr.msk.bf16.mxu0 %vm8756_vm0, %v10566_v55  ;;  %v3496_v21 = vpop.xlane.xlu0 %3495  ;;  %v9707_v47 = vmul.f32 0.5, %v9506_v63 }
 0x218   : > { %v4115_v44 = vpack.c.bf16 %v4051_v32, %v4051_v32  ;;  %8555 = vpow2.f32 %v3720_v56  ;;  %8121 = vmatprep.subr.bf16.mxu0 %v10566_v55  ;;  %v3630_v33 = vsub.f32 %v9436_v42, %v3496_v21  ;;  %v4368_v32 = vsel %vm4182_vm3, %v340_v20, 0 }
 0x219   : > { %v9695_v36 = vpop.eup %8543  ;;  %8557 = vrcp.f32 %v3811_v19  ;;  %v341_v19 = vld [vmem:[%s9472_s23 + $0x5] sm:$0x1] }
 0x21a   : > { %v8546_v9 = vpop.eup %8545  ;;  %8106 = vmatmul.mubr.msk.bf16.vlgmr.msra.gmra.mxu1 %vm4178_vm4, %v4115_v44  ;;  %v3866_v10 = vsel %vm3409_vm2, %v9695_v36, 0.0  ;;  %v3722_v3 = vmul.f32 1.442695, %v3630_v33  ;;  %v9724_v33 = vmul.f32 0.5, %v9531_v5 }
 0x21b   : > { %v4052_v18 = vmul.f32 %v8546_v9, %v9414_v62  ;;  %v3499_v0 = vpop.xlane.xlu1 %3498  ;;  %3867 = vadd.xlane.f32.xlu0 %v3866_v10  ;;  %8116 = vmatpush3.bf16.msra.mxu1 %v4322_v37  ;;  %v3814_v13 = vpop.xlane.xlu0 %3813  ;;  %v3554_v62 = vsel %vm3409_vm2, %v9699_v22, -inf  ;;  %v3557_v9 = vsel %vm3409_vm2, %v9707_v47, -inf }
 0x21c   : > { %v3631_v42 = vsub.f32 %v9449_v40, %v3499_v0  ;;  %8117 = vmatprep.mubr.msk.bf16.mxu1 %vm8756_vm0, %v10566_v55  ;;  %8127 = vmatprep.subr.bf16.mxu1 %v10566_v55  ;;  %8559 = vpow2.f32 %v3722_v3  ;;  %v342_v0 = vld [vmem:[%s9472_s23 + $0x6] sm:$0x1] }
 0x21d   : > { %v9713_v6 = vpop.eup %8547  ;;  %v4116_v35 = vpack.c.bf16 %v4052_v18, %v4052_v18  ;;  %8561 = vrcp.f32 %v3814_v13  ;;  %v4414_v18 = vsel %vm4182_vm3, %v341_v19, 0 }
 0x21e   : > { %v8550_v56 = vpop.eup %8549  ;;  %v3724_v63 = vmul.f32 1.442695, %v3631_v42  ;;  %v3869_v40 = vsel %vm3409_vm2, %v9713_v6, 0.0 }
 0x21f   : > { %v4053_v44 = vmul.f32 %v8550_v56, %v9427_v12  ;;  %8112 = vmatmul.mubr.msk.bf16.vlgmr.msra.gmra.mxu0 %vm4178_vm4, %v4116_v35  ;;  %3870 = vadd.xlane.f32.xlu1 %v3869_v40  ;;  %v3817_v21 = vpop.xlane.xlu1 %3816  ;;  %v3502_v37 = vpop.xlane.xlu0 %3501  ;;  %v4460_v40 = vsel %vm4182_vm3, %v342_v0, 0  ;;  %v344_v0 = vld [vmem:[%s9472_s23 + $0x8] sm:$0x1] }
 0x220   : > { %8563 = vpow2.f32 %v3724_v63  ;;  %3555 = vmax.xlane.f32.xlu0 %v3554_v62  ;;  %8122 = vmatpush3.bf16.msra.mxu0 %v4368_v32  ;;  %v3632_v12 = vsub.f32 %v9460_v2, %v3502_v37  ;;  %v9741_v2 = vmul.f32 0.5, %v9533_v57 }
 0x221   : > { %v9728_v10 = vpop.eup %8551  ;;  %v4117_v20 = vpack.c.bf16 %v4053_v44, %v4053_v44  ;;  %8565 = vrcp.f32 %v3817_v21  ;;  %8123 = vmatprep.mubr.msk.bf16.mxu0 %vm8756_vm0, %v10566_v55  ;;  %8133 = vmatprep.subr.bf16.mxu0 %v10566_v55  ;;  %v343_v44 = vld [vmem:[%s9472_s23 + $0x7] sm:$0x1] }
 0x222   : > { %v8554_v3 = vpop.eup %8553  ;;  %v3872_v5 = vsel %vm3409_vm2, %v9728_v10, 0.0  ;;  %v3726_v13 = vmul.f32 1.442695, %v3632_v12  ;;  %v3563_v12 = vsel %vm3409_vm2, %v9741_v2, -inf }
 0x223   : > { %v4054_v42 = vmul.f32 %v8554_v3, %v9438_v45  ;;  %8118 = vmatmul.mubr.msk.bf16.vlgmr.msra.gmra.mxu1 %vm4178_vm4, %v4117_v20  ;;  %3558 = vmax.xlane.f32.xlu1 %v3557_v9  ;;  %v3505_v35 = vpop.xlane.xlu1 %3504  ;;  %v3820_v32 = vpop.xlane.xlu0 %3819  ;;  %v3560_v45 = vsel %vm3409_vm2, %v9724_v33, -inf  ;;  %v9758_v20 = vmul.f32 0.5, %v9555_v1 }
 0x224   : > { %v3633_v62 = vsub.f32 %v9480_v48, %v3505_v35  ;;  %3873 = vadd.xlane.f32.xlu0 %v3872_v5  ;;  %8128 = vmatpush3.bf16.msra.mxu1 %v4414_v18  ;;  %8567 = vpow2.f32 %v3726_v13 }
 0x225   : > { %v9744_v56 = vpop.eup %8555  ;;  %v4118_v63 = vpack.c.bf16 %v4054_v42, %v4054_v42  ;;  %8129 = vmatprep.mubr.msk.bf16.mxu1 %vm8756_vm0, %v10566_v55  ;;  %8139 = vmatprep.subr.bf16.mxu1 %v10566_v55  ;;  %8569 = vrcp.f32 %v3820_v32 }
 0x226   : > { %v8558_v57 = vpop.eup %8557  ;;  %v3728_v19 = vmul.f32 1.442695, %v3633_v62  ;;  %v3875_v48 = vsel %vm3409_vm2, %v9744_v56, 0.0  ;;  %v9775_v62 = vmul.f32 0.5, %v9557_v15 }
 0x227   : > { %v4055_v21 = vmul.f32 %v8558_v57, %v9444_v61  ;;  %8124 = vmatmul.mubr.msk.bf16.vlgmr.msra.gmra.mxu0 %vm4178_vm4, %v4118_v63  ;;  %3876 = vadd.xlane.f32.xlu1 %v3875_v48  ;;  %v3823_v37 = vpop.xlane.xlu1 %3822  ;;  %v3508_v9 = vpop.xlane.xlu0 %3507  ;;  %v4506_v61 = vsel %vm4182_vm3, %v343_v44, 0  ;;  %v345_v48 = vld [vmem:[%s9472_s23 + $0x9] sm:$0x1] }
 0x228   : > { %8571 = vpow2.f32 %v3728_v19  ;;  %3561 = vmax.xlane.f32.xlu0 %v3560_v45  ;;  %8134 = vmatpush3.bf16.msra.mxu0 %v4460_v40  ;;  %v3634_v3 = vsub.f32 %v9495_v31, %v3508_v9  ;;  %v3566_v40 = vsel %vm3409_vm2, %v9758_v20, -inf  ;;  %v9792_v9 = vmul.f32 0.5, %v9579_v49 }
 0x229   : > { %v4119_v18 = vpack.c.bf16 %v4055_v21, %v4055_v21  ;;  %8573 = vrcp.f32 %v3823_v37  ;;  %8135 = vmatprep.mubr.msk.bf16.mxu0 %vm8756_vm0, %v10566_v55  ;;  %8145 = vmatprep.subr.bf16.mxu0 %v10566_v55  ;;  %v9767_v5 = vpop.eup %8559 }
 0x22a   : > { %v8562_v1 = vpop.eup %8561  ;;  %v3730_v42 = vmul.f32 1.442695, %v3634_v3  ;;  %v3878_v35 = vsel %vm3409_vm2, %v9767_v5, 0.0 }
 0x22b   : > { %8130 = vmatmul.mubr.msk.bf16.vlgmr.msra.gmra.mxu1 %vm4178_vm4, %v4119_v18  ;;  %3564 = vmax.xlane.f32.xlu1 %v3563_v12  ;;  %v3511_v13 = vpop.xlane.xlu1 %3510  ;;  %v4056_v31 = vmul.f32 %v8562_v1, %v9462_v30  ;;  %v3826_v63 = vpop.xlane.xlu0 %3825  ;;  %v4552_v30 = vsel %vm4182_vm3, %v344_v0, 0  ;;  %v3569_v12 = vsel %vm3409_vm2, %v9775_v62, -inf  ;;  %v346_v0 = vld [vmem:[%s9472_s23 + $0xa] sm:$0x1] }
 0x22c   : > { %v3635_v32 = vsub.f32 %v9509_v43, %v3511_v13  ;;  %3879 = vadd.xlane.f32.xlu0 %v3878_v35  ;;  %8140 = vmatpush3.bf16.msra.mxu1 %v4506_v61  ;;  %8575 = vpow2.f32 %v3730_v42  ;;  %v9809_v35 = vmul.f32 0.5, %v9581_v46 }
 0x22d   : > { %v9778_v45 = vpop.eup %8563  ;;  %8141 = vmatprep.mubr.msk.bf16.mxu1 %vm8756_vm0, %v10566_v55  ;;  %8151 = vmatprep.subr.bf16.mxu1 %v10566_v55  ;;  %v4120_v57 = vpack.c.bf16 %v4056_v31, %v4056_v31  ;;  %8577 = vrcp.f32 %v3826_v63 }
 0x22e   : > { %v8566_v15 = vpop.eup %8565  ;;  %v3732_v19 = vmul.f32 1.442695, %v3635_v32  ;;  %v3881_v43 = vsel %vm3409_vm2, %v9778_v45, 0.0 }
 0x22f   : > { %v4057_v44 = vmul.f32 %v8566_v15, %v9474_v59  ;;  %3882 = vadd.xlane.f32.xlu1 %v3881_v43  ;;  %v3829_v21 = vpop.xlane.xlu1 %3828  ;;  %8136 = vmatmul.mubr.msk.bf16.vlgmr.msra.gmra.mxu0 %vm4178_vm4, %v4120_v57  ;;  %v3514_v37 = vpop.xlane.xlu0 %3513  ;;  %v4598_v59 = vsel %vm4182_vm3, %v345_v48, 0  ;;  %v347_v57 = vld [vmem:[%s9472_s23 + $0xb] sm:$0x1] }
 0x230   : > { %8579 = vpow2.f32 %v3732_v19  ;;  %3567 = vmax.xlane.f32.xlu0 %v3566_v40  ;;  %v3636_v3 = vsub.f32 %v9520_v4, %v3514_v37  ;;  %8146 = vmatpush3.bf16.msra.mxu0 %v4552_v30  ;;  %v3572_v40 = vsel %vm3409_vm2, %v9792_v9, -inf }
 0x231   : > { %v4121_v18 = vpack.c.bf16 %v4057_v44, %v4057_v44  ;;  %8581 = vrcp.f32 %v3829_v21  ;;  %8147 = vmatprep.mubr.msk.bf16.mxu0 %vm8756_vm0, %v10566_v55  ;;  %v9800_v61 = vpop.eup %8567  ;;  %8157 = vmatprep.subr.bf16.mxu0 %v10566_v55  ;;  %v9826_v44 = vmul.f32 0.5, %v9603_v24  ;;  %v3575_v21 = vsel %vm3409_vm2, %v9809_v35, -inf }
 0x232   : > { %v8570_v49 = vpop.eup %8569  ;;  %v3734_v1 = vmul.f32 1.442695, %v3636_v3  ;;  %v3884_v4 = vsel %vm3409_vm2, %v9800_v61, 0.0  ;;  %v348_v3 = vld [vmem:[%s9472_s23 + $0xc] sm:$0x1] }
 0x233   : > { %8142 = vmatmul.mubr.msk.bf16.vlgmr.msra.gmra.mxu1 %vm4178_vm4, %v4121_v18  ;;  %3570 = vmax.xlane.f32.xlu1 %v3569_v12  ;;  %v3517_v42 = vpop.xlane.xlu1 %3516  ;;  %v4058_v13 = vmul.f32 %v8570_v49, %v9497_v60  ;;  %v3832_v32 = vpop.xlane.xlu0 %3831  ;;  %v4644_v60 = vsel %vm4182_vm3, %v346_v0, 0 }
 0x234   : > { %v3637_v31 = vsub.f32 %v9529_v38, %v3517_v42  ;;  %3885 = vadd.xlane.f32.xlu0 %v3884_v4  ;;  %8152 = vmatpush3.bf16.msra.mxu1 %v4598_v59  ;;  %8583 = vpow2.f32 %v3734_v1  ;;  %v9843_v1 = vmul.f32 0.5, %v9605_v26 }
 0x235   : > { %v9812_v63 = vpop.eup %8571  ;;  %8153 = vmatprep.mubr.msk.bf16.mxu1 %vm8756_vm0, %v10566_v55  ;;  %8163 = vmatprep.subr.bf16.mxu1 %v10566_v55  ;;  %v4122_v30 = vpack.c.bf16 %v4058_v13, %v4058_v13  ;;  %8585 = vrcp.f32 %v3832_v32 }
 0x236   : > { %v8574_v46 = vpop.eup %8573  ;;  %v3736_v15 = vmul.f32 1.442695, %v3637_v31  ;;  %v3887_v38 = vsel %vm3409_vm2, %v9812_v63, 0.0  ;;  %v3578_v31 = vsel %vm3409_vm2, %v9826_v44, -inf }
 0x237   : > { %v4059_v19 = vmul.f32 %v8574_v46, %v9500_v17  ;;  %3888 = vadd.xlane.f32.xlu1 %v3887_v38  ;;  %v3835_v43 = vpop.xlane.xlu1 %3834  ;;  %8148 = vmatmul.mubr.msk.bf16.vlgmr.msra.gmra.mxu0 %vm4178_vm4, %v4122_v30  ;;  %v3520_v48 = vpop.xlane.xlu0 %3519  ;;  %v4690_v17 = vsel %vm4182_vm3, %v347_v57, 0  ;;  %v9860_v38 = vmul.f32 0.5, %v9627_v27  ;;  %v3581_v57 = vsel %vm3409_vm2, %v9843_v1, -inf }
 0x238   : > { %8587 = vpow2.f32 %v3736_v15  ;;  %3573 = vmax.xlane.f32.xlu0 %v3572_v40  ;;  %v3638_v12 = vsub.f32 %v9544_v34, %v3520_v48  ;;  %8158 = vmatpush3.bf16.msra.mxu0 %v4644_v60  ;;  %v349_v60 = vld [vmem:[%s9472_s23 + $0xd] sm:$0x1] }
 0x239   : > { %v4123_v37 = vpack.c.bf16 %v4059_v19, %v4059_v19  ;;  %8589 = vrcp.f32 %v3835_v43  ;;  %8159 = vmatprep.mubr.msk.bf16.mxu0 %vm8756_vm0, %v10566_v55  ;;  %v9834_v18 = vpop.eup %8575  ;;  %8169 = vmatprep.subr.bf16.mxu0 %v10566_v55 }
 0x23a   : > { %v8578_v24 = vpop.eup %8577  ;;  %v3738_v59 = vmul.f32 1.442695, %v3638_v12  ;;  %v3890_v34 = vsel %vm3409_vm2, %v9834_v18, 0.0 }
 0x23b   : > { %8154 = vmatmul.mubr.msk.bf16.vlgmr.msra.gmra.mxu1 %vm4178_vm4, %v4123_v37  ;;  %3576 = vmax.xlane.f32.xlu1 %v3575_v21  ;;  %v3523_v0 = vpop.xlane.xlu1 %3522  ;;  %v4060_v49 = vmul.f32 %v8578_v24, %v9522_v52  ;;  %v3838_v4 = vpop.xlane.xlu0 %3837  ;;  %v4736_v52 = vsel %vm4182_vm3, %v348_v3, 0  ;;  %v350_v21 = vld [vmem:[%s9472_s23 + $0xe] sm:$0x1]  ;;  %v9877_v3 = vmul.f32 0.5, %v9629_v50 }
 0x23c   : > { %v3639_v42 = vsub.f32 %v9553_v54, %v3523_v0  ;;  %3891 = vadd.xlane.f32.xlu0 %v3890_v34  ;;  %8164 = vmatpush3.bf16.msra.mxu1 %v4690_v17  ;;  %8591 = vpow2.f32 %v3738_v59  ;;  %v3584_v34 = vsel %vm3409_vm2, %v9860_v38, -inf }
 0x23d   : > { %v9846_v13 = vpop.eup %8579  ;;  %8165 = vmatprep.mubr.msk.bf16.mxu1 %vm8756_vm0, %v10566_v55  ;;  %8175 = vmatprep.subr.bf16.mxu1 %v10566_v55  ;;  %v4124_v32 = vpack.c.bf16 %v4060_v49, %v4060_v49  ;;  %8593 = vrcp.f32 %v3838_v4  ;;  %v351_v4 = vld [vmem:[%s9472_s23 + $0xf] sm:$0x1] }
 0x23e   : > { %v8582_v26 = vpop.eup %8581  ;;  %v3740_v40 = vmul.f32 1.442695, %v3639_v42  ;;  %v3893_v54 = vsel %vm3409_vm2, %v9846_v13, 0.0 }
 0x23f   : > { %v4061_v46 = vmul.f32 %v8582_v26, %v9524_v8  ;;  %3894 = vadd.xlane.f32.xlu1 %v3893_v54  ;;  %v3841_v30 = vpop.xlane.xlu1 %3840  ;;  %8160 = vmatmul.mubr.msk.bf16.vlgmr.msra.gmra.mxu0 %vm4178_vm4, %v4124_v32  ;;  %v3526_v15 = vpop.xlane.xlu0 %3525  ;;  %v4782_v8 = vsel %vm4182_vm3, %v349_v60, 0  ;;  %v3587_v54 = vsel %vm3409_vm2, %v9877_v3, -inf }
 0x240   : > { %8595 = vpow2.f32 %v3740_v40  ;;  %3579 = vmax.xlane.f32.xlu0 %v3578_v31  ;;  %v3640_v43 = vsub.f32 %v9568_v16, %v3526_v15  ;;  %8170 = vmatpush3.bf16.msra.mxu0 %v4736_v52  ;;  %v10567_v31 = vld [vmem:[#allocation2_spill] sm:$0xff]  ;;  %v9894_v40 = vmul.f32 0.5, %v9649_v53 }
 0x241   : > { %v4125_v19 = vpack.c.bf16 %v4061_v46, %v4061_v46  ;;  %8597 = vrcp.f32 %v3841_v30  ;;  %8171 = vmatprep.mubr.msk.bf16.mxu0 %vm8756_vm0, %v10566_v55  ;;  %v9868_v48 = vpop.eup %8583  ;;  %8181 = vmatprep.subr.bf16.mxu0 %v10566_v55  ;;  %v4874_v30 = vsel %vm4182_vm3, %v351_v4, 0  ;;  %v9928_v4 = vmul.f32 0.5, %v9671_v29 }
 0x242   : > { %v8586_v27 = vpop.eup %8585  ;;  %v3742_v37 = vmul.f32 1.442695, %v3640_v43  ;;  %v3896_v16 = vsel %vm3409_vm2, %v9868_v48, 0.0 }
 0x243   : > { %8166 = vmatmul.mubr.msk.bf16.vlgmr.msra.gmra.mxu1 %vm4178_vm4, %v4125_v19  ;;  %3582 = vmax.xlane.f32.xlu1 %v3581_v57  ;;  %v3529_v12 = vpop.xlane.xlu1 %3528  ;;  %v4062_v17 = vmul.f32 %v8586_v27, %v9546_v39  ;;  %v3844_v59 = vpop.xlane.xlu0 %3843  ;;  %v4828_v39 = vsel %vm4182_vm3, %v350_v21, 0  ;;  %v352_v57 = vld [vmem:[%s9472_s23 + $0x10] sm:$0x1]  ;;  %v9911_v27 = vmul.f32 0.5, %v9651_v28 }
 0x244   : > { %v3641_v24 = vsub.f32 %v9577_v7, %v3529_v12  ;;  %3897 = vadd.xlane.f32.xlu0 %v3896_v16  ;;  %8176 = vmatpush3.bf16.msra.mxu1 %v4782_v8  ;;  %8599 = vpow2.f32 %v3742_v37  ;;  %v10568_v8 = vld [vmem:[#allocation3_spill] sm:$0xff] }
 0x245   : > { %v9880_v0 = vpop.eup %8587  ;;  %8177 = vmatprep.mubr.msk.bf16.mxu1 %vm8756_vm0, %v10566_v55  ;;  %8187 = vmatprep.subr.bf16.mxu1 %v10566_v55  ;;  %v4126_v49 = vpack.c.bf16 %v4062_v17, %v4062_v17  ;;  %8601 = vrcp.f32 %v3844_v59  ;;  %v3590_v17 = vsel %vm3409_vm2, %v9894_v40, -inf }
 0x246   : > { %v8590_v50 = vpop.eup %8589  ;;  %v3744_v42 = vmul.f32 1.442695, %v3641_v24  ;;  %v3899_v7 = vsel %vm3409_vm2, %v9880_v0, 0.0  ;;  %v4920_v24 = vsel %vm4182_vm3, %v352_v57, 0  ;;  %v10570_v57 = vld [vmem:[#allocation5_spill] sm:$0xff] }
 0x247   : > { %v4063_v52 = vmul.f32 %v8590_v50, %v10567_v31  ;;  %3900 = vadd.xlane.f32.xlu1 %v3899_v7  ;;  %v3847_v26 = vpop.xlane.xlu1 %3846  ;;  %8172 = vmatmul.mubr.msk.bf16.vlgmr.msra.gmra.mxu0 %vm4178_vm4, %v4126_v49  ;;  %v3532_v32 = vpop.xlane.xlu0 %3531  ;;  %v10569_v50 = vld [vmem:[#allocation4_spill] sm:$0xff]  ;;  %v3593_v31 = vsel %vm3409_vm2, %v9911_v27, -inf }
 0x248   : > { %8603 = vpow2.f32 %v3744_v42  ;;  %3585 = vmax.xlane.f32.xlu0 %v3584_v34  ;;  %v3642_v46 = vsub.f32 %v9592_v58, %v3532_v32  ;;  %8182 = vmatpush3.bf16.msra.mxu0 %v4828_v39  ;;  %v353_v39 = vld [vmem:[%s9472_s23 + $0x11] sm:$0x1] }
 0x249   : > { %v4127_v60 = vpack.c.bf16 %v4063_v52, %v4063_v52  ;;  %8605 = vrcp.f32 %v3847_v26  ;;  %8183 = vmatprep.mubr.msk.bf16.mxu0 %vm8756_vm0, %v10566_v55  ;;  %v9902_v15 = vpop.eup %8591  ;;  %8193 = vmatprep.subr.bf16.mxu0 %v10566_v55  ;;  %v4966_v32 = vsel %vm4182_vm3, %v353_v39, 0 }
 0x24a   : > { %v8594_v53 = vpop.eup %8593  ;;  %v3746_v19 = vmul.f32 1.442695, %v3642_v46  ;;  %v3902_v58 = vsel %vm3409_vm2, %v9902_v15, 0.0 }
 0x24b   : > { %8178 = vmatmul.mubr.msk.bf16.vlgmr.msra.gmra.mxu1 %vm4178_vm4, %v4127_v60  ;;  %3588 = vmax.xlane.f32.xlu1 %v3587_v54  ;;  %v3535_v43 = vpop.xlane.xlu1 %3534  ;;  %v4064_v21 = vmul.f32 %v8594_v53, %v10568_v8  ;;  %v3850_v12 = vpop.xlane.xlu0 %3849  ;;  %v354_v60 = vld [vmem:[%s9472_s23 + $0x12] sm:$0x1] }
 0x24c   : > { %v3643_v37 = vsub.f32 %v9601_v23, %v3535_v43  ;;  %3903 = vadd.xlane.f32.xlu0 %v3902_v58  ;;  %8188 = vmatpush3.bf16.msra.mxu1 %v4874_v30  ;;  %8607 = vpow2.f32 %v3746_v19  ;;  %v9945_v19 = vmul.f32 0.5, %v9673_v14 }
 0x24d   : > { %v9914_v16 = vpop.eup %8595  ;;  %8189 = vmatprep.mubr.msk.bf16.mxu1 %vm8756_vm0, %v10566_v55  ;;  %8199 = vmatprep.subr.bf16.mxu1 %v10566_v55  ;;  %v4128_v59 = vpack.c.bf16 %v4064_v21, %v4064_v21  ;;  %8609 = vrcp.f32 %v3850_v12  ;;  %v3596_v21 = vsel %vm3409_vm2, %v9928_v4, -inf }
 0x24e   : > { %v8598_v28 = vpop.eup %8597  ;;  %v3748_v34 = vmul.f32 1.442695, %v3643_v37  ;;  %v3905_v23 = vsel %vm3409_vm2, %v9914_v16, 0.0  ;;  %v5012_v37 = vsel %vm4182_vm3, %v354_v60, 0  ;;  %v3599_v39 = vsel %vm3409_vm2, %v9945_v19, -inf }
 0x24f   : > { %v4065_v49 = vmul.f32 %v8598_v28, %v10569_v50  ;;  %3906 = vadd.xlane.f32.xlu1 %v3905_v23  ;;  %v3853_v42 = vpop.xlane.xlu1 %3852  ;;  %8184 = vmatmul.mubr.msk.bf16.vlgmr.msra.gmra.mxu0 %vm4178_vm4, %v4128_v59  ;;  %v3538_v7 = vpop.xlane.xlu0 %3537  ;;  %v10571_v28 = vld [vmem:[#allocation6_spill] sm:$0xff] }
 0x250   : > { %8611 = vpow2.f32 %v3748_v34  ;;  %3591 = vmax.xlane.f32.xlu0 %v3590_v17  ;;  %v3644_v26 = vsub.f32 %v9616_v25, %v3538_v7  ;;  %8194 = vmatpush3.bf16.msra.mxu0 %v4920_v24  ;;  %v355_v24 = vld [vmem:[%s9472_s23 + $0x13] sm:$0x1] }
 0x251   : > { %v4129_v52 = vpack.c.bf16 %v4065_v49, %v4065_v49  ;;  %8613 = vrcp.f32 %v3853_v42  ;;  %8195 = vmatprep.mubr.msk.bf16.mxu0 %vm8756_vm0, %v10566_v55  ;;  %v9936_v54 = vpop.eup %8599  ;;  %8205 = vmatprep.subr.bf16.mxu0 %v10566_v55  ;;  %v10572_v49 = vld [vmem:[#allocation9_spill] sm:$0xff]  ;;  %v5058_v7 = vsel %vm4182_vm3, %v355_v24, 0 }
 0x252   : > { %v8602_v29 = vpop.eup %8601  ;;  %v3750_v46 = vmul.f32 1.442695, %v3644_v26  ;;  %v3908_v25 = vsel %vm3409_vm2, %v9936_v54, 0.0 }
 0x253   : > { %8190 = vmatmul.mubr.msk.bf16.vlgmr.msra.gmra.mxu1 %vm4178_vm4, %v4129_v52  ;;  %3594 = vmax.xlane.f32.xlu1 %v3593_v31  ;;  %v3541_v30 = vpop.xlane.xlu1 %3540  ;;  %v4066_v53 = vmul.f32 %v8602_v29, %v10570_v57  ;;  %v3856_v58 = vpop.xlane.xlu0 %3855  ;;  %v356_v52 = vld [vmem:[%s9472_s23 + $0x14] sm:$0x1] }
 0x254   : > { %v3645_v43 = vsub.f32 %v9625_v41, %v3541_v30  ;;  %3909 = vadd.xlane.f32.xlu0 %v3908_v25  ;;  %8200 = vmatpush3.bf16.msra.mxu1 %v4966_v32  ;;  %8615 = vpow2.f32 %v3750_v46  ;;  %v10573_v46 = vld [vmem:[#allocation7_spill] sm:$0xff]  ;;  %v10574_v25 = vld [vmem:[#allocation12_spill] sm:$0xff] }
 0x255   : > { %v9948_v8 = vpop.eup %8603  ;;  %8201 = vmatprep.mubr.msk.bf16.mxu1 %vm8756_vm0, %v10566_v55  ;;  %8211 = vmatprep.subr.bf16.mxu1 %v10566_v55  ;;  %v4130_v12 = vpack.c.bf16 %v4066_v53, %v4066_v53  ;;  %8617 = vrcp.f32 %v3856_v58  ;;  %v5104_v58 = vsel %vm4182_vm3, %v356_v52, 0 }
 0x256   : > { %v8606_v14 = vpop.eup %8605  ;;  %v3752_v17 = vmul.f32 1.442695, %v3645_v43  ;;  %v3911_v41 = vsel %vm3409_vm2, %v9948_v8, 0.0 }
 0x257   : > { %v4067_v59 = vmul.f32 %v8606_v14, %v10571_v28  ;;  %3912 = vadd.xlane.f32.xlu1 %v3911_v41  ;;  %v3859_v34 = vpop.xlane.xlu1 %3858  ;;  %8196 = vmatmul.mubr.msk.bf16.vlgmr.msra.gmra.mxu0 %vm4178_vm4, %v4130_v12  ;;  %v3544_v23 = vpop.xlane.xlu0 %3543  ;;  %v10575_v41 = vld [vmem:[#allocation8_spill] sm:$0xff] }
 0x258   : > { %8619 = vpow2.f32 %v3752_v17  ;;  %3597 = vmax.xlane.f32.xlu0 %v3596_v21  ;;  %v3646_v42 = vsub.f32 %v10572_v49, %v3544_v23  ;;  %8206 = vmatpush3.bf16.msra.mxu0 %v5012_v37  ;;  %v357_v17 = vld [vmem:[%s9472_s23 + $0x15] sm:$0x1] }
 0x259   : > { %v4131_v50 = vpack.c.bf16 %v4067_v59, %v4067_v59  ;;  %8621 = vrcp.f32 %v3859_v34  ;;  %8207 = vmatprep.mubr.msk.bf16.mxu0 %vm8756_vm0, %v10566_v55  ;;  %v9967_v31 = vpop.eup %8607  ;;  %8217 = vmatprep.subr.bf16.mxu0 %v10566_v55 }
 0x25a   : > { %v8610_v26 = vpop.eup %8609  ;;  %v3754_v32 = vmul.f32 1.442695, %v3646_v42  ;;  %v3914_v29 = vsel %vm3409_vm2, %v9967_v31, 0.0 }
 0x25b   : > { %8202 = vmatmul.mubr.msk.bf16.vlgmr.msra.gmra.mxu1 %vm4178_vm4, %v4131_v50  ;;  %3600 = vmax.xlane.f32.xlu1 %v3599_v39  ;;  %v3547_v60 = vpop.xlane.xlu1 %3546  ;;  %v4068_v30 = vmul.f32 %v8610_v26, %v10573_v46  ;;  %v3862_v53 = vpop.xlane.xlu0 %3861  ;;  %v5150_v39 = vsel %vm4182_vm3, %v357_v17, 0  ;;  %v10576_v26 = vld [vmem:[#allocation10_spill] sm:$0xff] }
 0x25c   : > { %v3647_v57 = vsub.f32 %v10574_v25, %v3547_v60  ;;  %3915 = vadd.xlane.f32.xlu0 %v3914_v29  ;;  %8212 = vmatpush3.bf16.msra.mxu1 %v5058_v7  ;;  %8623 = vpow2.f32 %v3754_v32 }
 0x25d   : > { %v9976_v43 = vpop.eup %8611  ;;  %8213 = vmatprep.mubr.msk.bf16.mxu1 %vm8756_vm0, %v10566_v55  ;;  %8223 = vmatprep.subr.bf16.mxu1 %v10566_v55  ;;  %v4132_v37 = vpack.c.bf16 %v4068_v30, %v4068_v30  ;;  %8625 = vrcp.f32 %v3862_v53 }
 0x25e   : > { %v8614_v21 = vpop.eup %8613  ;;  %v3756_v14 = vmul.f32 1.442695, %v3647_v57  ;;  %v3917_v12 = vsel %vm3409_vm2, %v9976_v43, 0.0 }
 0x25f   : > { %v4069_v24 = vmul.f32 %v8614_v21, %v10575_v41  ;;  %3918 = vadd.xlane.f32.xlu1 %v3917_v12  ;;  %v3865_v28 = vpop.xlane.xlu1 %3864  ;;  %8208 = vmatmul.mubr.msk.bf16.vlgmr.msra.gmra.mxu0 %vm4178_vm4, %v4132_v37  ;;  %v3550_v59 = vpop.xlane.xlu0 %3549 }
 0x260   : > { %8627 = vpow2.f32 %v3756_v14  ;;  %v3648_v23 = vsub.f32 %v9660_v11, %v3550_v59  ;;  %8218 = vmatpush3.bf16.msra.mxu0 %v5104_v58  ;;  %8219 = vmatprep.mubr.msk.bf16.mxu0 %vm8756_vm0, %v10566_v55  ;;  %v358_v11 = vld [vmem:[%s9472_s23 + $0x16] sm:$0x1]  ;;  %v10577_v58 = vld [vmem:[#allocation11_spill] sm:$0xff] }
 0x261   : > { %v4133_v34 = vpack.c.bf16 %v4069_v24, %v4069_v24  ;;  %8629 = vrcp.f32 %v3865_v28  ;;  %v9991_v50 = vpop.eup %8615  ;;  %8229 = vmatprep.subr.bf16.mxu0 %v10566_v55  ;;  %v5196_v53 = vsel %vm4182_vm3, %v358_v11, 0  ;;  %v360_v24 = vld [vmem:[%s9472_s23 + $0x18] sm:$0x1] }
 0x262   : > { %v8618_v49 = vpop.eup %8617  ;;  %v3758_v42 = vmul.f32 1.442695, %v3648_v23  ;;  %v3920_v52 = vsel %vm3409_vm2, %v9991_v50, 0.0  ;;  %v10578_v28 = vld [vmem:[#allocation13_spill] sm:$0xff] }
 0x263   : > { %8214 = vmatmul.mubr.msk.bf16.vlgmr.msra.gmra.mxu1 %vm4178_vm4, %v4133_v34  ;;  %v3553_v7 = vpop.xlane.xlu1 %3552  ;;  %v4070_v32 = vmul.f32 %v8618_v49, %v10576_v26  ;;  %3921 = vadd.xlane.f32.xlu0 %v3920_v52  ;;  %v10579_v52 = vld [vmem:[#allocation14_spill] sm:$0xff] }
 0x264   : > { %v3649_v60 = vsub.f32 %v9669_v51, %v3553_v7  ;;  %8224 = vmatpush3.bf16.msra.mxu1 %v5150_v39  ;;  %8631 = vpow2.f32 %v3758_v42  ;;  %8225 = vmatprep.mubr.msk.bf16.mxu1 %vm8756_vm0, %v10566_v55  ;;  %v359_v51 = vld [vmem:[%s9472_s23 + $0x17] sm:$0x1]  ;;  %v5288_v42 = vsel %vm4182_vm3, %v360_v24, 0  ;;  %v361_v7 = vld [vmem:[%s9472_s23 + $0x19] sm:$0x1] }
 0x265   : > { %v10000_v29 = vpop.eup %8619  ;;  %8235 = vmatprep.subr.bf16.mxu1 %v10566_v55  ;;  %v4134_v30 = vpack.c.bf16 %v4070_v32, %v4070_v32  ;;  %v5242_v14 = vsel %vm4182_vm3, %v359_v51, 0  ;;  %v5334_v32 = vsel %vm4182_vm3, %v361_v7, 0 }
 0x266   : > { %v8622_v46 = vpop.eup %8621  ;;  %v3760_v25 = vmul.f32 1.442695, %v3649_v60  ;;  %v3923_v57 = vsel %vm3409_vm2, %v10000_v29, 0.0 }
 0x267   : > { %v4071_v21 = vmul.f32 %v8622_v46, %v10577_v58  ;;  %3924 = vadd.xlane.f32.xlu1 %v3923_v57  ;;  %8220 = vmatmul.mubr.msk.bf16.vlgmr.msra.gmra.mxu0 %vm4178_vm4, %v4134_v30 }
 0x268   : > { %8633 = vpow2.f32 %v3760_v25  ;;  %8230 = vmatpush3.bf16.msra.mxu0 %v5196_v53  ;;  %8231 = vmatprep.mubr.msk.bf16.mxu0 %vm8756_vm0, %v10566_v55 }
 0x269   : > { %v4135_v37 = vpack.c.bf16 %v4071_v21, %v4071_v21  ;;  %v10014_v12 = vpop.eup %8623  ;;  %8241 = vmatprep.subr.bf16.mxu0 %v10566_v55 }
 0x26a   : > { %v8626_v17 = vpop.eup %8625  ;;  %v3926_v41 = vsel %vm3409_vm2, %v10014_v12, 0.0 }
 0x26b   : > { %8226 = vmatmul.mubr.msk.bf16.vlgmr.msra.gmra.mxu1 %vm4178_vm4, %v4135_v37  ;;  %v4072_v59 = vmul.f32 %v8626_v17, %v10578_v28  ;;  %3927 = vadd.xlane.f32.xlu0 %v3926_v41 }
 0x26c   : > { %8236 = vmatpush3.bf16.msra.mxu1 %v5242_v14  ;;  %8237 = vmatprep.mubr.msk.bf16.mxu1 %vm8756_vm0, %v10566_v55 }
 0x26d   : > { %v10022_v34 = vpop.eup %8627  ;;  %8247 = vmatprep.subr.bf16.mxu1 %v10566_v55  ;;  %v4136_v39 = vpack.c.bf16 %v4072_v59, %v4072_v59 }
 0x26e   : > { %v8630_v23 = vpop.eup %8629  ;;  %v3929_v49 = vsel %vm3409_vm2, %v10022_v34, 0.0 }
 0x26f   : > { %v4073_v11 = vmul.f32 %v8630_v23, %v10579_v52  ;;  %3930 = vadd.xlane.f32.xlu1 %v3929_v49  ;;  %8232 = vmatmul.mubr.msk.bf16.vlgmr.msra.gmra.mxu0 %vm4178_vm4, %v4136_v39  ;;  %v362_v39 = vld [vmem:[%s9472_s23 + $0x1a] sm:$0x1] }
 0x270   : > { %8242 = vmatpush3.bf16.msra.mxu0 %v5288_v42  ;;  %8243 = vmatprep.mubr.msk.bf16.mxu0 %vm8756_vm0, %v10566_v55 }
 0x271   : > { %v4137_v26 = vpack.c.bf16 %v4073_v11, %v4073_v11  ;;  %v10036_v60 = vpop.eup %8631  ;;  %8253 = vmatprep.subr.bf16.mxu0 %v10566_v55  ;;  %v5380_v11 = vsel %vm4182_vm3, %v362_v39, 0 }
 0x272   : > { %v3932_v46 = vsel %vm3409_vm2, %v10036_v60, 0.0 }
 0x273   : > { %8238 = vmatmul.mubr.msk.bf16.vlgmr.msra.gmra.mxu1 %vm4178_vm4, %v4137_v26  ;;  %3933 = vadd.xlane.f32.xlu0 %v3932_v46 }
 0x274   : > { %8248 = vmatpush3.bf16.msra.mxu1 %v5334_v32  ;;  %8249 = vmatprep.mubr.msk.bf16.mxu1 %vm8756_vm0, %v10566_v55  ;;  %v363_v32 = vld [vmem:[%s9472_s23 + $0x1b] sm:$0x1] }
 0x275   : > { %v10042_v30 = vpop.eup %8633  ;;  %8259 = vmatprep.subr.bf16.mxu1 %v10566_v55 }
 0x276   : > { %v3935_v25 = vsel %vm3409_vm2, %v10042_v30, 0.0 }
 0x277   : > { %3936 = vadd.xlane.f32.xlu1 %v3935_v25 }
 0x2a4   : > { %v3868_v57 = vpop.xlane.xlu0 %3867 }
 0x2a5   : > { %8635 = vrcp.f32 %v3868_v57  ;;  %v5426_v57 = vsel %vm4182_vm3, %v363_v32, 0 }
 0x2a8   : > { %v3871_v53 = vpop.xlane.xlu1 %3870 }
 0x2a9   : > { %8637 = vrcp.f32 %v3871_v53  ;;  %v3556_v51 = vpop.xlane.xlu0 %3555 }
 0x2aa   : > { %v3650_v58 = vsub.f32 %v9699_v22, %v3556_v51  ;;  %v364_v51 = vld [vmem:[%s9472_s23 + $0x1c] sm:$0x1] }
 0x2ac   : > { %v3762_v21 = vmul.f32 1.442695, %v3650_v58  ;;  %v3559_v37 = vpop.xlane.xlu1 %3558 }
 0x2ad   : > { %v3651_v14 = vsub.f32 %v9707_v47, %v3559_v37  ;;  %v3874_v17 = vpop.xlane.xlu0 %3873 }
 0x2ae   : > { %8639 = vpow2.f32 %v3762_v21 }
 0x2af   : > { %v3764_v41 = vmul.f32 1.442695, %v3651_v14  ;;  %8641 = vrcp.f32 %v3874_v17 }
 0x2b0   : > { %v3877_v24 = vpop.xlane.xlu1 %3876 }
 0x2b1   : > { %8643 = vpow2.f32 %v3764_v41  ;;  %v3562_v28 = vpop.xlane.xlu0 %3561 }
 0x2b2   : > { %v8636_v59 = vpop.eup %8635  ;;  %8645 = vrcp.f32 %v3877_v24  ;;  %v3652_v23 = vsub.f32 %v9724_v33, %v3562_v28  ;;  %v5472_v28 = vsel %vm4182_vm3, %v364_v51, 0 }
 0x2b3   : > { %v4074_v49 = vmul.f32 %v8636_v59, %v9695_v36 }
 0x2b4   : > { %v3766_v22 = vmul.f32 1.442695, %v3652_v23  ;;  %v3565_v42 = vpop.xlane.xlu1 %3564 }
 0x2b5   : > { %v4138_v7 = vpack.c.bf16 %v4074_v49, %v4074_v49  ;;  %v3653_v47 = vsub.f32 %v9741_v2, %v3565_v42  ;;  %v3880_v52 = vpop.xlane.xlu0 %3879 }
 0x2b6   : > { %v8638_v26 = vpop.eup %8637  ;;  %8647 = vpow2.f32 %v3766_v22 }
 0x2b7   : > { %v4075_v46 = vmul.f32 %v8638_v26, %v9713_v6  ;;  %v3768_v25 = vmul.f32 1.442695, %v3653_v47  ;;  %8649 = vrcp.f32 %v3880_v52  ;;  %8244 = vmatmul.mubr.msk.bf16.vlgmr.msra.gmra.mxu0 %vm4178_vm4, %v4138_v7 }
 0x2b8   : > { %v3883_v33 = vpop.xlane.xlu1 %3882  ;;  %8254 = vmatpush3.bf16.msra.mxu0 %v5380_v11  ;;  %8255 = vmatprep.mubr.msk.bf16.mxu0 %vm8756_vm0, %v10566_v55 }
 0x2b9   : > { %v4139_v36 = vpack.c.bf16 %v4075_v46, %v4075_v46  ;;  %8651 = vpow2.f32 %v3768_v25  ;;  %v3568_v2 = vpop.xlane.xlu0 %3567  ;;  %8265 = vmatprep.subr.bf16.mxu0 %v10566_v55 }
 0x2ba   : > { %8653 = vrcp.f32 %v3883_v33  ;;  %v3654_v6 = vsub.f32 %v9758_v20, %v3568_v2 }
 0x2bb   : > { %v10064_v53 = vpop.eup %8639  ;;  %8250 = vmatmul.mubr.msk.bf16.vlgmr.msra.gmra.mxu1 %vm4178_vm4, %v4139_v36 }
 0x2bc   : > { %v8642_v58 = vpop.eup %8641  ;;  %v3770_v21 = vmul.f32 1.442695, %v3654_v6  ;;  %v3571_v37 = vpop.xlane.xlu1 %3570  ;;  %v3938_v14 = vsel %vm3409_vm2, %v10064_v53, 0.0  ;;  %8260 = vmatpush3.bf16.msra.mxu1 %v5426_v57  ;;  %8261 = vmatprep.mubr.msk.bf16.mxu1 %vm8756_vm0, %v10566_v55 }
 0x2bd   : > { %v4076_v17 = vmul.f32 %v8642_v58, %v9728_v10  ;;  %v3655_v20 = vsub.f32 %v9775_v62, %v3571_v37  ;;  %v3886_v41 = vpop.xlane.xlu0 %3885  ;;  %3939 = vadd.xlane.f32.xlu0 %v3938_v14  ;;  %8271 = vmatprep.subr.bf16.mxu1 %v10566_v55  ;;  %v365_v10 = vld [vmem:[%s9472_s23 + $0x1d] sm:$0x1] }
 0x2be   : > { %v10075_v24 = vpop.eup %8643  ;;  %8655 = vpow2.f32 %v3770_v21  ;;  %v5518_v52 = vsel %vm4182_vm3, %v365_v10, 0 }
 0x2bf   : > { %v8646_v59 = vpop.eup %8645  ;;  %v4140_v23 = vpack.c.bf16 %v4076_v17, %v4076_v17  ;;  %v3772_v39 = vmul.f32 1.442695, %v3655_v20  ;;  %8657 = vrcp.f32 %v3886_v41  ;;  %v3941_v49 = vsel %vm3409_vm2, %v10075_v24, 0.0 }
 0x2c0   : > { %v4077_v62 = vmul.f32 %v8646_v59, %v9744_v56  ;;  %3942 = vadd.xlane.f32.xlu1 %v3941_v49  ;;  %v3889_v22 = vpop.xlane.xlu1 %3888  ;;  %v366_v56 = vld [vmem:[%s9472_s23 + $0x1e] sm:$0x1] }
 0x2c1   : > { %8659 = vpow2.f32 %v3772_v39  ;;  %8256 = vmatmul.mubr.msk.bf16.vlgmr.msra.gmra.mxu0 %vm4178_vm4, %v4140_v23  ;;  %v3574_v42 = vpop.xlane.xlu0 %3573  ;;  %v5564_v57 = vsel %vm4182_vm3, %v366_v56, 0 }
 0x2c2   : > { %v4141_v7 = vpack.c.bf16 %v4077_v62, %v4077_v62  ;;  %8661 = vrcp.f32 %v3889_v22  ;;  %v3656_v47 = vsub.f32 %v9792_v9, %v3574_v42  ;;  %8266 = vmatpush3.bf16.msra.mxu0 %v5472_v28  ;;  %8267 = vmatprep.mubr.msk.bf16.mxu0 %vm8756_vm0, %v10566_v55 }
 0x2c3   : > { %v10087_v11 = vpop.eup %8647  ;;  %8277 = vmatprep.subr.bf16.mxu0 %v10566_v55 }
 0x2c4   : > { %v8650_v26 = vpop.eup %8649  ;;  %v3774_v32 = vmul.f32 1.442695, %v3656_v47  ;;  %8262 = vmatmul.mubr.msk.bf16.vlgmr.msra.gmra.mxu1 %vm4178_vm4, %v4141_v7  ;;  %v3577_v46 = vpop.xlane.xlu1 %3576  ;;  %v3944_v25 = vsel %vm3409_vm2, %v10087_v11, 0.0 }
 0x2c5   : > { %v4078_v9 = vmul.f32 %v8650_v26, %v9767_v5  ;;  %v3657_v33 = vsub.f32 %v9809_v35, %v3577_v46  ;;  %v3892_v36 = vpop.xlane.xlu0 %3891  ;;  %3945 = vadd.xlane.f32.xlu0 %v3944_v25  ;;  %8272 = vmatpush3.bf16.msra.mxu1 %v5518_v52  ;;  %v367_v35 = vld [vmem:[%s9472_s23 + $0x1f] sm:$0x1] }
 0x2c6   : > { %v10096_v2 = vpop.eup %8651  ;;  %8663 = vpow2.f32 %v3774_v32  ;;  %8273 = vmatprep.mubr.msk.bf16.mxu1 %vm8756_vm0, %v10566_v55  ;;  %8283 = vmatprep.subr.bf16.mxu1 %v10566_v55  ;;  %v5610_v41 = vsel %vm4182_vm3, %v367_v35, 0 }
 0x2c7   : > { %v8654_v6 = vpop.eup %8653  ;;  %v4142_v51 = vpack.c.bf16 %v4078_v9, %v4078_v9  ;;  %v3776_v58 = vmul.f32 1.442695, %v3657_v33  ;;  %8665 = vrcp.f32 %v3892_v36  ;;  %v3947_v5 = vsel %vm3409_vm2, %v10096_v2, 0.0 }
 0x2c8   : > { %v4079_v21 = vmul.f32 %v8654_v6, %v9778_v45  ;;  %3948 = vadd.xlane.f32.xlu1 %v3947_v5  ;;  %v3895_v37 = vpop.xlane.xlu1 %3894  ;;  %v368_v45 = vld [vmem:[%s9472_s23 + $0x20] sm:$0x1] }
 0x2c9   : > { %8667 = vpow2.f32 %v3776_v58  ;;  %8268 = vmatmul.mubr.msk.bf16.vlgmr.msra.gmra.mxu0 %vm4178_vm4, %v4142_v51  ;;  %v3580_v14 = vpop.xlane.xlu0 %3579  ;;  %v5656_v42 = vsel %vm4182_vm3, %v368_v45, 0 }
 0x2ca   : > { %v4143_v17 = vpack.c.bf16 %v4079_v21, %v4079_v21  ;;  %8669 = vrcp.f32 %v3895_v37  ;;  %v3658_v20 = vsub.f32 %v9826_v44, %v3580_v14  ;;  %8278 = vmatpush3.bf16.msra.mxu0 %v5564_v57  ;;  %8279 = vmatprep.mubr.msk.bf16.mxu0 %vm8756_vm0, %v10566_v55 }
 0x2cb   : > { %v10111_v28 = vpop.eup %8655  ;;  %8289 = vmatprep.subr.bf16.mxu0 %v10566_v55 }
 0x2cc   : > { %v8658_v59 = vpop.eup %8657  ;;  %v3778_v23 = vmul.f32 1.442695, %v3658_v20  ;;  %8274 = vmatmul.mubr.msk.bf16.vlgmr.msra.gmra.mxu1 %vm4178_vm4, %v4143_v17  ;;  %v3583_v39 = vpop.xlane.xlu1 %3582  ;;  %v3950_v49 = vsel %vm3409_vm2, %v10111_v28, 0.0  ;;  %v371_v20 = vld [vmem:[%s9472_s23 + $0x23] sm:$0x1] }
 0x2cd   : > { %v4080_v44 = vmul.f32 %v8658_v59, %v9800_v61  ;;  %v3659_v10 = vsub.f32 %v9843_v1, %v3583_v39  ;;  %v3898_v62 = vpop.xlane.xlu0 %3897  ;;  %3951 = vadd.xlane.f32.xlu0 %v3950_v49  ;;  %8284 = vmatpush3.bf16.msra.mxu1 %v5610_v41  ;;  %v369_v1 = vld [vmem:[%s9472_s23 + $0x21] sm:$0x1] }
 0x2ce   : > { %v10120_v22 = vpop.eup %8659  ;;  %8671 = vpow2.f32 %v3778_v23  ;;  %8285 = vmatprep.mubr.msk.bf16.mxu1 %vm8756_vm0, %v10566_v55  ;;  %8295 = vmatprep.subr.bf16.mxu1 %v10566_v55  ;;  %v5702_v9 = vsel %vm4182_vm3, %v369_v1, 0 }
 0x2cf   : > { %v8662_v7 = vpop.eup %8661  ;;  %v4144_v47 = vpack.c.bf16 %v4080_v44, %v4080_v44  ;;  %v3780_v52 = vmul.f32 1.442695, %v3659_v10  ;;  %8673 = vrcp.f32 %v3898_v62  ;;  %v3953_v61 = vsel %vm3409_vm2, %v10120_v22, 0.0 }
 0x2d0   : > { %v4081_v56 = vmul.f32 %v8662_v7, %v9812_v63  ;;  %3954 = vadd.xlane.f32.xlu1 %v3953_v61  ;;  %v3901_v26 = vpop.xlane.xlu1 %3900  ;;  %v370_v63 = vld [vmem:[%s9472_s23 + $0x22] sm:$0x1]  ;;  %v5794_v62 = vsel %vm4182_vm3, %v371_v20, 0 }
 0x2d1   : > { %8675 = vpow2.f32 %v3780_v52  ;;  %8280 = vmatmul.mubr.msk.bf16.vlgmr.msra.gmra.mxu0 %vm4178_vm4, %v4144_v47  ;;  %v3586_v32 = vpop.xlane.xlu0 %3585  ;;  %v372_v47 = vld [vmem:[%s9472_s23 + $0x24] sm:$0x1] }
 0x2d2   : > { %v4145_v46 = vpack.c.bf16 %v4081_v56, %v4081_v56  ;;  %8677 = vrcp.f32 %v3901_v26  ;;  %v3660_v25 = vsub.f32 %v9860_v38, %v3586_v32  ;;  %8290 = vmatpush3.bf16.msra.mxu0 %v5656_v42  ;;  %8291 = vmatprep.mubr.msk.bf16.mxu0 %vm8756_vm0, %v10566_v55 }
 0x2d3   : > { %v10135_v33 = vpop.eup %8663  ;;  %8301 = vmatprep.subr.bf16.mxu0 %v10566_v55 }
 0x2d4   : > { %v8666_v36 = vpop.eup %8665  ;;  %v3782_v57 = vmul.f32 1.442695, %v3660_v25  ;;  %8286 = vmatmul.mubr.msk.bf16.vlgmr.msra.gmra.mxu1 %vm4178_vm4, %v4145_v46  ;;  %v3589_v6 = vpop.xlane.xlu1 %3588  ;;  %v3956_v38 = vsel %vm3409_vm2, %v10135_v33, 0.0 }
 0x2d5   : > { %v4082_v51 = vmul.f32 %v8666_v36, %v9834_v18  ;;  %v3661_v58 = vsub.f32 %v9877_v3, %v3589_v6  ;;  %v3904_v5 = vpop.xlane.xlu0 %3903  ;;  %3957 = vadd.xlane.f32.xlu0 %v3956_v38  ;;  %8296 = vmatpush3.bf16.msra.mxu1 %v5702_v9  ;;  %v5748_v18 = vsel %vm4182_vm3, %v370_v63, 0  ;;  %v5840_v36 = vsel %vm4182_vm3, %v372_v47, 0 }
 0x2d6   : > { %v10144_v35 = vpop.eup %8667  ;;  %8679 = vpow2.f32 %v3782_v57  ;;  %v4220_v21 = vpop.f32.mrf.mxu0  ;;  %8297 = vmatprep.mubr.msk.bf16.mxu1 %vm8756_vm0, %v10566_v55  ;;  %8307 = vmatprep.subr.bf16.mxu1 %v10566_v55 }
 0x2d7   : > { %v8670_v3 = vpop.eup %8669  ;;  %v4146_v37 = vpack.c.bf16 %v4082_v51, %v4082_v51  ;;  %v3784_v14 = vmul.f32 1.442695, %v3661_v58  ;;  %8681 = vrcp.f32 %v3904_v5  ;;  %v7124_v17 = vpack.c.bf16 %v4220_v21, %v4220_v21  ;;  %v373_v51 = vld [vmem:[%s9472_s23 + $0x25] sm:$0x1] }
 0x2d8   : > { %v4083_v41 = vmul.f32 %v8670_v3, %v9846_v13  ;;  %v3959_v45 = vsel %vm3409_vm2, %v10144_v35, 0.0  ;;  %v3907_v59 = vpop.xlane.xlu1 %3906  ;;  %v8101_v23 = vpop.f32.mrf.mxu0 }
 0x2d9   : > { %8683 = vpow2.f32 %v3784_v14  ;;  %7189 = vst.msk [vmem:[%s10150_s26] sm:$0x1] %vm7188_vm5, %v7124_v17  ;;  %8292 = vmatmul.mubr.msk.bf16.vlgmr.msra.gmra.mxu0 %vm4178_vm4, %v4146_v37  ;;  %3960 = vadd.xlane.f32.xlu1 %v3959_v45  ;;  %v3592_v39 = vpop.xlane.xlu0 %3591 }
 0x2da   : > { %v4147_v49 = vpack.c.bf16 %v4083_v41, %v4083_v41  ;;  %8685 = vrcp.f32 %v3907_v59  ;;  %v3662_v44 = vsub.f32 %v9894_v40, %v3592_v39  ;;  %v4223_v10 = vpop.f32.mrf.mxu0  ;;  %v4266_v13 = vpop.f32.mrf.mxu1  ;;  %8302 = vmatpush3.bf16.msra.mxu0 %v5748_v18  ;;  %8303 = vmatprep.mubr.msk.bf16.mxu0 %vm8756_vm0, %v10566_v55  ;;  %v374_v59 = vld [vmem:[%s9472_s23 + $0x26] sm:$0x1] }
 0x2db   : > { %v10167_v42 = vpop.eup %8671  ;;  %v7125_v7 = vpack.c.bf16 %v4266_v13, %v4266_v13  ;;  %8313 = vmatprep.subr.bf16.mxu0 %v10566_v55 }
 0x2dc   : > { %v8674_v52 = vpop.eup %8673  ;;  %v3786_v61 = vmul.f32 1.442695, %v3662_v44  ;;  %8298 = vmatmul.mubr.msk.bf16.vlgmr.msra.gmra.mxu1 %vm4178_vm4, %v4147_v49  ;;  %v8107_v40 = vpop.f32.mrf.mxu1  ;;  %v3962_v56 = vsel %vm3409_vm2, %v10167_v42, 0.0 }
 0x2dd   : > { %v3595_v1 = vpop.xlane.xlu1 %3594  ;;  %v4084_v26 = vmul.f32 %v8674_v52, %v9868_v48  ;;  %7190 = vst.msk [vmem:[%s10150_s26 + $0x1] sm:$0x1] %vm7188_vm5, %v7125_v7  ;;  %v3910_v46 = vpop.xlane.xlu0 %3909  ;;  %3963 = vadd.xlane.f32.xlu0 %v3962_v56  ;;  %8308 = vmatpush3.bf16.msra.mxu1 %v5794_v62 }
 0x2de   : > { %v3663_v32 = vsub.f32 %v9911_v27, %v3595_v1  ;;  %v8102_v25 = vpop.f32.mrf.mxu0  ;;  %v10178_v9 = vpop.eup %8675  ;;  %8687 = vpow2.f32 %v3786_v61  ;;  %8309 = vmatprep.mubr.msk.bf16.mxu1 %vm8756_vm0, %v10566_v55  ;;  %8319 = vmatprep.subr.bf16.mxu1 %v10566_v55  ;;  %v5932_v61 = vsel %vm4182_vm3, %v374_v59, 0 }
 0x2df   : > { %v4269_v63 = vpop.f32.mrf.mxu1  ;;  %v8678_v48 = vpop.eup %8677  ;;  %v4148_v57 = vpack.c.bf16 %v4084_v26, %v4084_v26  ;;  %8689 = vrcp.f32 %v3910_v46  ;;  %v3965_v38 = vsel %vm3409_vm2, %v10178_v9, 0.0  ;;  %v375_v26 = vld [vmem:[%s9472_s23 + $0x27] sm:$0x1] }
 0x2e0   : > { %v3788_v27 = vmul.f32 1.442695, %v3663_v32  ;;  %v4312_v6 = vpop.f32.mrf.mxu0  ;;  %v4085_v58 = vmul.f32 %v8678_v48, %v9880_v0  ;;  %3966 = vadd.xlane.f32.xlu1 %v3965_v38  ;;  %v5886_v0 = vsel %vm4182_vm3, %v373_v51, 0 }
 0x2e1   : > { %v7126_v5 = vpack.c.bf16 %v4312_v6, %v4312_v6  ;;  %v8108_v21 = vpop.f32.mrf.mxu1  ;;  %v3913_v18 = vpop.xlane.xlu1 %3912  ;;  %8304 = vmatmul.mubr.msk.bf16.vlgmr.msra.gmra.mxu0 %vm4178_vm4, %v4148_v57 }
 0x2e2   : > { %8691 = vpow2.f32 %v3788_v27  ;;  %v3598_v3 = vpop.xlane.xlu0 %3597  ;;  %v8113_v37 = vpop.f32.mrf.mxu0  ;;  %v4149_v14 = vpack.c.bf16 %v4085_v58, %v4085_v58  ;;  %8314 = vmatpush3.bf16.msra.mxu0 %v5840_v36  ;;  %8315 = vmatprep.mubr.msk.bf16.mxu0 %vm8756_vm0, %v10566_v55  ;;  %v5978_v27 = vsel %vm4182_vm3, %v375_v26, 0  ;;  %v376_v21 = vld [vmem:[%s9472_s23 + $0x28] sm:$0x1] }
 0x2e3   : > { %7191 = vst.msk [vmem:[%s10150_s26 + $0x2] sm:$0x1] %vm7188_vm5, %v7126_v5  ;;  %8693 = vrcp.f32 %v3913_v18  ;;  %v3664_v17 = vsub.f32 %v9928_v4, %v3598_v3  ;;  %v10195_v20 = vpop.eup %8679  ;;  %v4358_v45 = vpop.f32.mrf.mxu1  ;;  %8325 = vmatprep.subr.bf16.mxu0 %v10566_v55  ;;  %v6024_v59 = vsel %vm4182_vm3, %v376_v21, 0 }
 0x2e4   : > { %v4315_v41 = vpop.f32.mrf.mxu0  ;;  %v8682_v23 = vpop.eup %8681  ;;  %v7127_v49 = vpack.c.bf16 %v4358_v45, %v4358_v45  ;;  %8310 = vmatmul.mubr.msk.bf16.vlgmr.msra.gmra.mxu1 %vm4178_vm4, %v4149_v14  ;;  %v3968_v44 = vsel %vm3409_vm2, %v10195_v20, 0.0 }
 0x2e5   : > { %v3790_v39 = vmul.f32 1.442695, %v3664_v17  ;;  %v3601_v4 = vpop.xlane.xlu1 %3600  ;;  %v4086_v10 = vmul.f32 %v8682_v23, %v9902_v15  ;;  %v8119_v13 = vpop.f32.mrf.mxu1  ;;  %3969 = vadd.xlane.f32.xlu0 %v3968_v44  ;;  %8320 = vmatpush3.bf16.msra.mxu1 %v5886_v0  ;;  %v377_v23 = vld [vmem:[%s9472_s23 + $0x29] sm:$0x1] }
 0x2e6   : > { %v3665_v62 = vsub.f32 %v9945_v19, %v3601_v4  ;;  %v3916_v7 = vpop.xlane.xlu0 %3915  ;;  %v10204_v47 = vpop.eup %8683  ;;  %7192 = vst.msk [vmem:[%s10150_s26 + $0x3] sm:$0x1] %vm7188_vm5, %v7127_v49  ;;  %8321 = vmatprep.mubr.msk.bf16.mxu1 %vm8756_vm0, %v10566_v55  ;;  %8331 = vmatprep.subr.bf16.mxu1 %v10566_v55 }
 0x2e7   : > { %8695 = vpow2.f32 %v3790_v39  ;;  %v8114_v52 = vpop.f32.mrf.mxu0  ;;  %v8686_v15 = vpop.eup %8685  ;;  %v4150_v40 = vpack.c.bf16 %v4086_v10, %v4086_v10  ;;  %v3971_v56 = vsel %vm3409_vm2, %v10204_v47, 0.0 }
 0x2e8   : > { %v3792_v19 = vmul.f32 1.442695, %v3665_v62  ;;  %8697 = vrcp.f32 %v3916_v7  ;;  %v4361_v1 = vpop.f32.mrf.mxu1  ;;  %v4087_v32 = vmul.f32 %v8686_v15, %v9914_v16  ;;  %3972 = vadd.xlane.f32.xlu1 %v3971_v56  ;;  %v6070_v7 = vsel %vm4182_vm3, %v377_v23, 0 }
 0x2e9   : > { %v4404_v46 = vpop.f32.mrf.mxu0  ;;  %v3919_v25 = vpop.xlane.xlu1 %3918  ;;  %8316 = vmatmul.mubr.msk.bf16.vlgmr.msra.gmra.mxu0 %vm4178_vm4, %v4150_v40  ;;  %v378_v1 = vld [vmem:[%s9472_s23 + $0x2a] sm:$0x1] }
 0x2ea   : > { %8699 = vpow2.f32 %v3792_v19  ;;  %v7128_v63 = vpack.c.bf16 %v4404_v46, %v4404_v46  ;;  %v8120_v36 = vpop.f32.mrf.mxu1  ;;  %v4151_v48 = vpack.c.bf16 %v4087_v32, %v4087_v32  ;;  %8326 = vmatpush3.bf16.msra.mxu0 %v5932_v61  ;;  %8327 = vmatprep.mubr.msk.bf16.mxu0 %vm8756_vm0, %v10566_v55 }
 0x2eb   : > { %8701 = vrcp.f32 %v3919_v25  ;;  %v8125_v57 = vpop.f32.mrf.mxu0  ;;  %v10220_v6 = vpop.eup %8687  ;;  %8337 = vmatprep.subr.bf16.mxu0 %v10566_v55 }
 0x2ec   : > { %7193 = vst.msk [vmem:[%s10150_s26 + $0x4] sm:$0x1] %vm7188_vm5, %v7128_v63  ;;  %v4450_v16 = vpop.f32.mrf.mxu1  ;;  %v8690_v38 = vpop.eup %8689  ;;  %8322 = vmatmul.mubr.msk.bf16.vlgmr.msra.gmra.mxu1 %vm4178_vm4, %v4151_v48  ;;  %v3974_v5 = vsel %vm3409_vm2, %v10220_v6, 0.0  ;;  %v6116_v57 = vsel %vm4182_vm3, %v378_v1, 0 }
 0x2ed   : > { %v4407_v51 = vpop.f32.mrf.mxu0  ;;  %v7129_v58 = vpack.c.bf16 %v4450_v16, %v4450_v16  ;;  %v4088_v18 = vmul.f32 %v8690_v38, %v9936_v54  ;;  %3975 = vadd.xlane.f32.xlu0 %v3974_v5  ;;  %v3922_v37 = vpop.xlane.xlu0 %3921  ;;  %8332 = vmatpush3.bf16.msra.mxu1 %v5978_v27  ;;  %v379_v27 = vld [vmem:[%s9472_s23 + $0x2b] sm:$0x1] }
 0x2ee   : > { %v8131_v3 = vpop.f32.mrf.mxu1  ;;  %8703 = vrcp.f32 %v3922_v37  ;;  %8333 = vmatprep.mubr.msk.bf16.mxu1 %vm8756_vm0, %v10566_v55  ;;  %8343 = vmatprep.subr.bf16.mxu1 %v10566_v55 }
 0x2ef   : > { %v10230_v14 = vpop.eup %8691  ;;  %7194 = vst.msk [vmem:[%s10150_s26 + $0x5] sm:$0x1] %vm7188_vm5, %v7129_v58  ;;  %v8126_v17 = vpop.f32.mrf.mxu0  ;;  %v4152_v41 = vpack.c.bf16 %v4088_v18, %v4088_v18  ;;  %v6162_v3 = vsel %vm4182_vm3, %v379_v27, 0  ;;  %v383_v27 = vld [vmem:[%s9472_s23 + $0x2f] sm:$0x1] }
 0x2f0   : > { %v8694_v0 = vpop.eup %8693  ;;  %v4453_v45 = vpop.f32.mrf.mxu1  ;;  %v3977_v54 = vsel %vm3409_vm2, %v10230_v14, 0.0 }
 0x2f1   : > { %v4089_v39 = vmul.f32 %v8694_v0, %v9948_v8  ;;  %v4496_v49 = vpop.f32.mrf.mxu0  ;;  %3978 = vadd.xlane.f32.xlu1 %v3977_v54  ;;  %v3925_v4 = vpop.xlane.xlu1 %3924  ;;  %8328 = vmatmul.mubr.msk.bf16.vlgmr.msra.gmra.mxu0 %vm4178_vm4, %v4152_v41  ;;  %v380_v45 = vld [vmem:[%s9472_s23 + $0x2c] sm:$0x1] }
 0x2f2   : > { %v7130_v44 = vpack.c.bf16 %v4496_v49, %v4496_v49  ;;  %v8132_v10 = vpop.f32.mrf.mxu1  ;;  %8705 = vrcp.f32 %v3925_v4  ;;  %8338 = vmatpush3.bf16.msra.mxu0 %v6024_v59  ;;  %8339 = vmatprep.mubr.msk.bf16.mxu0 %vm8756_vm0, %v10566_v55 }
 0x2f3   : > { %v4153_v13 = vpack.c.bf16 %v4089_v39, %v4089_v39  ;;  %v8137_v62 = vpop.f32.mrf.mxu0  ;;  %8349 = vmatprep.subr.bf16.mxu0 %v10566_v55  ;;  %v381_v10 = vld [vmem:[%s9472_s23 + $0x2d] sm:$0x1] }
 0x2f4   : > { %v10246_v52 = vpop.eup %8695  ;;  %7195 = vst.msk [vmem:[%s10150_s26 + $0x6] sm:$0x1] %vm7188_vm5, %v7130_v44  ;;  %v4542_v8 = vpop.f32.mrf.mxu1  ;;  %v6208_v44 = vsel %vm4182_vm3, %v380_v45, 0 }
 0x2f5   : > { %v8698_v61 = vpop.eup %8697  ;;  %v4499_v15 = vpop.f32.mrf.mxu0  ;;  %v7131_v40 = vpack.c.bf16 %v4542_v8, %v4542_v8  ;;  %8334 = vmatmul.mubr.msk.bf16.vlgmr.msra.gmra.mxu1 %vm4178_vm4, %v4153_v13  ;;  %v3980_v19 = vsel %vm3409_vm2, %v10246_v52, 0.0 }
 0x2f6   : > { %v4090_v56 = vmul.f32 %v8698_v61, %v9967_v31  ;;  %v8143_v26 = vpop.f32.mrf.mxu1  ;;  %3981 = vadd.xlane.f32.xlu0 %v3980_v19  ;;  %v3928_v32 = vpop.xlane.xlu0 %3927  ;;  %8344 = vmatpush3.bf16.msra.mxu1 %v6070_v7 }
 0x2f7   : > { %v10256_v46 = vpop.eup %8699  ;;  %7196 = vst.msk [vmem:[%s10150_s26 + $0x7] sm:$0x1] %vm7188_vm5, %v7131_v40  ;;  %8707 = vrcp.f32 %v3928_v32  ;;  %v8138_v25 = vpop.f32.mrf.mxu0  ;;  %8345 = vmatprep.mubr.msk.bf16.mxu1 %vm8756_vm0, %v10566_v55  ;;  %8355 = vmatprep.subr.bf16.mxu1 %v10566_v55  ;;  %v382_v32 = vld [vmem:[%s9472_s23 + $0x2e] sm:$0x1] }
 0x2f8   : > { %v8702_v63 = vpop.eup %8701  ;;  %v4154_v36 = vpack.c.bf16 %v4090_v56, %v4090_v56  ;;  %v4545_v48 = vpop.f32.mrf.mxu1  ;;  %v3983_v31 = vsel %vm3409_vm2, %v10256_v46, 0.0 }
 0x2f9   : > { %v4091_v16 = vmul.f32 %v8702_v63, %v9976_v43  ;;  %v4588_v38 = vpop.f32.mrf.mxu0  ;;  %3984 = vadd.xlane.f32.xlu1 %v3983_v31  ;;  %v3931_v51 = vpop.xlane.xlu1 %3930 }
 0x2fa   : > { %v7132_v58 = vpack.c.bf16 %v4588_v38, %v4588_v38  ;;  %8340 = vmatmul.mubr.msk.bf16.vlgmr.msra.gmra.mxu0 %vm4178_vm4, %v4154_v36  ;;  %v8144_v5 = vpop.f32.mrf.mxu1  ;;  %8709 = vrcp.f32 %v3931_v51 }
 0x2fb   : > { %v4155_v21 = vpack.c.bf16 %v4091_v16, %v4091_v16  ;;  %v8149_v18 = vpop.f32.mrf.mxu0  ;;  %8350 = vmatpush3.bf16.msra.mxu0 %v6116_v57  ;;  %8351 = vmatprep.mubr.msk.bf16.mxu0 %vm8756_vm0, %v10566_v55  ;;  %v8704_v37 = vpop.eup %8703  ;;  %v6300_v57 = vsel %vm4182_vm3, %v382_v32, 0 }
 0x2fc   : > { %7197 = vst.msk [vmem:[%s10150_s26 + $0x8] sm:$0x1] %vm7188_vm5, %v7132_v58  ;;  %v4634_v43 = vpop.f32.mrf.mxu1  ;;  %8361 = vmatprep.subr.bf16.mxu0 %v10566_v55  ;;  %v4092_v17 = vmul.f32 %v8704_v37, %v9991_v50  ;;  %v3934_v59 = vpop.xlane.xlu0 %3933 }
 0x2fd   : > { %v4591_v0 = vpop.f32.mrf.mxu0  ;;  %v7133_v41 = vpack.c.bf16 %v4634_v43, %v4634_v43  ;;  %8346 = vmatmul.mubr.msk.bf16.vlgmr.msra.gmra.mxu1 %vm4178_vm4, %v4155_v21  ;;  %8711 = vrcp.f32 %v3934_v59  ;;  %v6346_v21 = vsel %vm4182_vm3, %v383_v27, 0 }
 0x2fe   : > { %v8155_v54 = vpop.f32.mrf.mxu1  ;;  %8356 = vmatpush3.bf16.msra.mxu1 %v6162_v3  ;;  %8357 = vmatprep.mubr.msk.bf16.mxu1 %vm8756_vm0, %v10566_v55  ;;  %v4156_v39 = vpack.c.bf16 %v4092_v17, %v4092_v17  ;;  %v384_v17 = vld [vmem:[%s9472_s23 + $0x30] sm:$0x1] }
 0x2ff   : > { %v8706_v23 = vpop.eup %8705  ;;  %7198 = vst.msk [vmem:[%s10150_s26 + $0x9] sm:$0x1] %vm7188_vm5, %v7133_v41  ;;  %v8150_v49 = vpop.f32.mrf.mxu0  ;;  %8367 = vmatprep.subr.bf16.mxu1 %v10566_v55 }
 0x300   : > { %v4093_v50 = vmul.f32 %v8706_v23, %v10000_v29  ;;  %v4637_v4 = vpop.f32.mrf.mxu1  ;;  %v3937_v62 = vpop.xlane.xlu1 %3936  ;;  %v6254_v29 = vsel %vm4182_vm3, %v381_v10, 0  ;;  %v6392_v23 = vsel %vm4182_vm3, %v384_v17, 0 }
 0x301   : > { %v4680_v13 = vpop.f32.mrf.mxu0  ;;  %8713 = vrcp.f32 %v3937_v62 }
 0x302   : > { %v4157_v7 = vpack.c.bf16 %v4093_v50, %v4093_v50  ;;  %v7134_v8 = vpack.c.bf16 %v4680_v13, %v4680_v13  ;;  %8352 = vmatmul.mubr.msk.bf16.vlgmr.msra.gmra.mxu0 %vm4178_vm4, %v4156_v39  ;;  %v8156_v61 = vpop.f32.mrf.mxu1  ;;  %v385_v39 = vld [vmem:[%s9472_s23 + $0x31] sm:$0x1] }
 0x303   : > { %v8161_v15 = vpop.f32.mrf.mxu0  ;;  %8362 = vmatpush3.bf16.msra.mxu0 %v6208_v44  ;;  %8363 = vmatprep.mubr.msk.bf16.mxu0 %vm8756_vm0, %v10566_v55  ;;  %v6438_v13 = vsel %vm4182_vm3, %v385_v39, 0 }
 0x304   : > { %v8708_v40 = vpop.eup %8707  ;;  %7199 = vst.msk [vmem:[%s10150_s26 + $0xa] sm:$0x1] %vm7188_vm5, %v7134_v8  ;;  %v4726_v19 = vpop.f32.mrf.mxu1  ;;  %8373 = vmatprep.subr.bf16.mxu0 %v10566_v55 }
 0x305   : > { %v4094_v1 = vmul.f32 %v8708_v40, %v10014_v12  ;;  %v4683_v56 = vpop.f32.mrf.mxu0  ;;  %v7135_v26 = vpack.c.bf16 %v4726_v19, %v4726_v19  ;;  %8358 = vmatmul.mubr.msk.bf16.vlgmr.msra.gmra.mxu1 %vm4178_vm4, %v4157_v7 }
 0x306   : > { %v8167_v25 = vpop.f32.mrf.mxu1  ;;  %8368 = vmatpush3.bf16.msra.mxu1 %v6254_v29  ;;  %8369 = vmatprep.mubr.msk.bf16.mxu1 %vm8756_vm0, %v10566_v55 }
 0x307   : > { %v8710_v63 = vpop.eup %8709  ;;  %v4158_v36 = vpack.c.bf16 %v4094_v1, %v4094_v1  ;;  %7200 = vst.msk [vmem:[%s10150_s26 + $0xb] sm:$0x1] %vm7188_vm5, %v7135_v26  ;;  %v8162_v48 = vpop.f32.mrf.mxu0  ;;  %8379 = vmatprep.subr.bf16.mxu1 %v10566_v55 }
 0x308   : > { %v4095_v12 = vmul.f32 %v8710_v63, %v10022_v34  ;;  %v4729_v31 = vpop.f32.mrf.mxu1 }
 0x309   : > { %v4772_v16 = vpop.f32.mrf.mxu0 }
 0x30a   : > { %v4159_v38 = vpack.c.bf16 %v4095_v12, %v4095_v12  ;;  %v7136_v51 = vpack.c.bf16 %v4772_v16, %v4772_v16  ;;  %8364 = vmatmul.mubr.msk.bf16.vlgmr.msra.gmra.mxu0 %vm4178_vm4, %v4158_v36  ;;  %v8168_v58 = vpop.f32.mrf.mxu1  ;;  %v8712_v34 = vpop.eup %8711 }
 0x30b   : > { %v8173_v5 = vpop.f32.mrf.mxu0  ;;  %8374 = vmatpush3.bf16.msra.mxu0 %v6300_v57  ;;  %8375 = vmatprep.mubr.msk.bf16.mxu0 %vm8756_vm0, %v10566_v55  ;;  %v4096_v3 = vmul.f32 %v8712_v34, %v10036_v60 }
 0x30c   : > { %7201 = vst.msk [vmem:[%s10150_s26 + $0xc] sm:$0x1] %vm7188_vm5, %v7136_v51  ;;  %v4818_v18 = vpop.f32.mrf.mxu1  ;;  %8385 = vmatprep.subr.bf16.mxu0 %v10566_v55 }
 0x30d   : > { %v4775_v37 = vpop.f32.mrf.mxu0  ;;  %v7137_v43 = vpack.c.bf16 %v4818_v18, %v4818_v18  ;;  %8370 = vmatmul.mubr.msk.bf16.vlgmr.msra.gmra.mxu1 %vm4178_vm4, %v4159_v38  ;;  %v4160_v45 = vpack.c.bf16 %v4096_v3, %v4096_v3 }
 0x30e   : > { %v8179_v0 = vpop.f32.mrf.mxu1  ;;  %8380 = vmatpush3.bf16.msra.mxu1 %v6346_v21  ;;  %8381 = vmatprep.mubr.msk.bf16.mxu1 %vm8756_vm0, %v10566_v55  ;;  %v8714_v41 = vpop.eup %8713 }
 0x30f   : > { %7202 = vst.msk [vmem:[%s10150_s26 + $0xd] sm:$0x1] %vm7188_vm5, %v7137_v43  ;;  %v8174_v54 = vpop.f32.mrf.mxu0  ;;  %8391 = vmatprep.subr.bf16.mxu1 %v10566_v55  ;;  %v4097_v60 = vmul.f32 %v8714_v41, %v10042_v30 }
 0x310   : > { %v4821_v59 = vpop.f32.mrf.mxu1 }
 0x311   : > { %v4864_v49 = vpop.f32.mrf.mxu0  ;;  %v4161_v50 = vpack.c.bf16 %v4097_v60, %v4097_v60 }
 0x312   : > { %v7138_v4 = vpack.c.bf16 %v4864_v49, %v4864_v49  ;;  %8376 = vmatmul.mubr.msk.bf16.vlgmr.msra.gmra.mxu0 %vm4178_vm4, %v4160_v45  ;;  %v8180_v44 = vpop.f32.mrf.mxu1 }
 0x313   : > { %v8185_v10 = vpop.f32.mrf.mxu0  ;;  %8386 = vmatpush3.bf16.msra.mxu0 %v6392_v23  ;;  %8387 = vmatprep.mubr.msk.bf16.mxu0 %vm8756_vm0, %v10566_v55 }
 0x314   : > { %7203 = vst.msk [vmem:[%s10150_s26 + $0xe] sm:$0x1] %vm7188_vm5, %v7138_v4  ;;  %v4910_v30 = vpop.f32.mrf.mxu1  ;;  %8397 = vmatprep.subr.bf16.mxu0 %v10566_v55 }
 0x315   : > { %v4867_v62 = vpop.f32.mrf.mxu0  ;;  %v7139_v7 = vpack.c.bf16 %v4910_v30, %v4910_v30  ;;  %8382 = vmatmul.mubr.msk.bf16.vlgmr.msra.gmra.mxu1 %vm4178_vm4, %v4161_v50 }
 0x316   : > { %v8191_v8 = vpop.f32.mrf.mxu1  ;;  %8392 = vmatpush3.bf16.msra.mxu1 %v6438_v13  ;;  %8393 = vmatprep.mubr.msk.bf16.mxu1 %vm8756_vm0, %v10566_v55 }
 0x317   : > { %7204 = vst.msk [vmem:[%s10150_s26 + $0xf] sm:$0x1] %vm7188_vm5, %v7139_v7  ;;  %v8186_v61 = vpop.f32.mrf.mxu0  ;;  %8403 = vmatprep.subr.bf16.mxu1 %v10566_v55 }
 0x318   : > { %v4913_v15 = vpop.f32.mrf.mxu1 }
 0x319   : > { %v4956_v29 = vpop.f32.mrf.mxu0  ;;  %v386_v15 = vld [vmem:[%s9472_s23 + $0x32] sm:$0x1] }
 0x31a   : > { %v7140_v40 = vpack.c.bf16 %v4956_v29, %v4956_v29  ;;  %v8192_v19 = vpop.f32.mrf.mxu1 }
 0x31b   : > { %v8197_v1 = vpop.f32.mrf.mxu0 }
 0x31c   : > { %7205 = vst.msk [vmem:[%s10150_s26 + $0x10] sm:$0x1] %vm7188_vm5, %v7140_v40  ;;  %v5002_v56 = vpop.f32.mrf.mxu1 }
 0x31d   : > { %v4959_v26 = vpop.f32.mrf.mxu0  ;;  %v7141_v32 = vpack.c.bf16 %v5002_v56, %v5002_v56  ;;  %v6484_v56 = vsel %vm4182_vm3, %v386_v15, 0 }
 0x31e   : > { %v8203_v25 = vpop.f32.mrf.mxu1  ;;  %v387_v26 = vld [vmem:[%s9472_s23 + $0x33] sm:$0x1] }
 0x31f   : > { %7206 = vst.msk [vmem:[%s10150_s26 + $0x11] sm:$0x1] %vm7188_vm5, %v7141_v32  ;;  %v8198_v63 = vpop.f32.mrf.mxu0 }
 0x320   : > { %v5005_v36 = vpop.f32.mrf.mxu1 }
 0x321   : > { %v5048_v48 = vpop.f32.mrf.mxu0  ;;  %v6530_v36 = vsel %vm4182_vm3, %v387_v26, 0 }
 0x322   : > { %v7142_v12 = vpack.c.bf16 %v5048_v48, %v5048_v48  ;;  %v8204_v31 = vpop.f32.mrf.mxu1  ;;  %v388_v48 = vld [vmem:[%s9472_s23 + $0x34] sm:$0x1] }
 0x323   : > { %v8209_v57 = vpop.f32.mrf.mxu0 }
 0x324   : > { %7207 = vst.msk [vmem:[%s10150_s26 + $0x12] sm:$0x1] %vm7188_vm5, %v7142_v12  ;;  %v5094_v27 = vpop.f32.mrf.mxu1 }
 0x325   : > { %v5051_v16 = vpop.f32.mrf.mxu0  ;;  %v7143_v38 = vpack.c.bf16 %v5094_v27, %v5094_v27  ;;  %v6576_v27 = vsel %vm4182_vm3, %v388_v48, 0 }
 0x326   : > { %v8215_v51 = vpop.f32.mrf.mxu1  ;;  %v389_v16 = vld [vmem:[%s9472_s23 + $0x35] sm:$0x1] }
 0x327   : > { %7208 = vst.msk [vmem:[%s10150_s26 + $0x13] sm:$0x1] %vm7188_vm5, %v7143_v38  ;;  %v8210_v58 = vpop.f32.mrf.mxu0 }
 0x328   : > { %v5097_v5 = vpop.f32.mrf.mxu1  ;;  %v6622_v58 = vsel %vm4182_vm3, %v389_v16, 0  ;;  %v397_v16 = vld [vmem:[%s9472_s23 + $0x3d] sm:$0x1] }
 0x329   : > { %v5140_v21 = vpop.f32.mrf.mxu0 }
 0x32a   : > { %v7144_v34 = vpack.c.bf16 %v5140_v21, %v5140_v21  ;;  %v8216_v18 = vpop.f32.mrf.mxu1  ;;  %v390_v21 = vld [vmem:[%s9472_s23 + $0x36] sm:$0x1] }
 0x32b   : > { %v8221_v3 = vpop.f32.mrf.mxu0 }
 0x32c   : > { %7209 = vst.msk [vmem:[%s10150_s26 + $0x14] sm:$0x1] %vm7188_vm5, %v7144_v34  ;;  %v5186_v37 = vpop.f32.mrf.mxu1 }
 0x32d   : > { %v5143_v43 = vpop.f32.mrf.mxu0  ;;  %v7145_v17 = vpack.c.bf16 %v5186_v37, %v5186_v37  ;;  %v6668_v37 = vsel %vm4182_vm3, %v390_v21, 0 }
 0x32e   : > { %v8227_v0 = vpop.f32.mrf.mxu1  ;;  %v391_v43 = vld [vmem:[%s9472_s23 + $0x37] sm:$0x1] }
 0x32f   : > { %7210 = vst.msk [vmem:[%s10150_s26 + $0x15] sm:$0x1] %vm7188_vm5, %v7145_v17  ;;  %v8222_v41 = vpop.f32.mrf.mxu0 }
 0x330   : > { %v5189_v45 = vpop.f32.mrf.mxu1  ;;  %v6714_v41 = vsel %vm4182_vm3, %v391_v43, 0 }
 0x331   : > { %v5232_v54 = vpop.f32.mrf.mxu0 }
 0x332   : > { %v7146_v60 = vpack.c.bf16 %v5232_v54, %v5232_v54  ;;  %v8228_v59 = vpop.f32.mrf.mxu1  ;;  %v392_v54 = vld [vmem:[%s9472_s23 + $0x38] sm:$0x1] }
 0x333   : > { %v8233_v23 = vpop.f32.mrf.mxu0 }
 0x334   : > { %7211 = vst.msk [vmem:[%s10150_s26 + $0x16] sm:$0x1] %vm7188_vm5, %v7146_v60  ;;  %v5278_v39 = vpop.f32.mrf.mxu1  ;;  %v6760_v23 = vsel %vm4182_vm3, %v392_v54, 0 }
 0x335   : > { %v5235_v49 = vpop.f32.mrf.mxu0  ;;  %v7147_v50 = vpack.c.bf16 %v5278_v39, %v5278_v39 }
 0x336   : > { %v8239_v4 = vpop.f32.mrf.mxu1  ;;  %v393_v49 = vld [vmem:[%s9472_s23 + $0x39] sm:$0x1] }
 0x337   : > { %7212 = vst.msk [vmem:[%s10150_s26 + $0x17] sm:$0x1] %vm7188_vm5, %v7147_v50  ;;  %v8234_v44 = vpop.f32.mrf.mxu0 }
 0x338   : > { %v5281_v10 = vpop.f32.mrf.mxu1  ;;  %v6806_v44 = vsel %vm4182_vm3, %v393_v49, 0 }
 0x33a   : > { %v8240_v13 = vpop.f32.mrf.mxu1 }
 0x33b   : > { %v394_v13 = vld [vmem:[%s9472_s23 + $0x3a] sm:$0x1] }
 0x346   : > { %v3940_v30 = vpop.xlane.xlu0 %3939 }
 0x347   : > { %8715 = vrcp.f32 %v3940_v30 }
 0x349   : > { %v3943_v62 = vpop.xlane.xlu1 %3942 }
 0x34a   : > { %8717 = vrcp.f32 %v3943_v62 }
 0x34e   : > { %v3946_v7 = vpop.xlane.xlu0 %3945 }
 0x34f   : > { %8719 = vrcp.f32 %v3946_v7 }
 0x351   : > { %v3949_v8 = vpop.xlane.xlu1 %3948 }
 0x352   : > { %8721 = vrcp.f32 %v3949_v8 }
 0x354   : > { %v8716_v61 = vpop.eup %8715 }
 0x355   : > { %v4098_v29 = vmul.f32 %v8716_v61, %v10064_v53  ;;  %v6852_v61 = vsel %vm4182_vm3, %v394_v13, 0 }
 0x356   : > { %v3952_v40 = vpop.xlane.xlu0 %3951 }
 0x357   : > { %v8718_v19 = vpop.eup %8717  ;;  %v4162_v1 = vpack.c.bf16 %v4098_v29, %v4098_v29  ;;  %8723 = vrcp.f32 %v3952_v40 }
 0x358   : > { %v4099_v32 = vmul.f32 %v8718_v19, %v10075_v24 }
 0x359   : > { %8388 = vmatmul.mubr.msk.bf16.vlgmr.msra.gmra.mxu0 %vm4178_vm4, %v4162_v1  ;;  %v3955_v25 = vpop.xlane.xlu1 %3954 }
 0x35a   : > { %v4163_v63 = vpack.c.bf16 %v4099_v32, %v4099_v32  ;;  %8725 = vrcp.f32 %v3955_v25  ;;  %8398 = vmatpush3.bf16.msra.mxu0 %v6484_v56  ;;  %8399 = vmatprep.mubr.msk.bf16.mxu0 %vm8756_vm0, %v10566_v55 }
 0x35b   : > { %8409 = vmatprep.subr.bf16.mxu0 %v10566_v55 }
 0x35c   : > { %v8720_v53 = vpop.eup %8719  ;;  %8394 = vmatmul.mubr.msk.bf16.vlgmr.msra.gmra.mxu1 %vm4178_vm4, %v4163_v63  ;;  %v396_v63 = vld [vmem:[%s9472_s23 + $0x3c] sm:$0x1] }
 0x35d   : > { %v4100_v24 = vmul.f32 %v8720_v53, %v10087_v11  ;;  %8404 = vmatpush3.bf16.msra.mxu1 %v6530_v36  ;;  %8405 = vmatprep.mubr.msk.bf16.mxu1 %vm8756_vm0, %v10566_v55 }
 0x35e   : > { %v3958_v12 = vpop.xlane.xlu0 %3957  ;;  %8415 = vmatprep.subr.bf16.mxu1 %v10566_v55 }
 0x35f   : > { %v8722_v31 = vpop.eup %8721  ;;  %v4164_v57 = vpack.c.bf16 %v4100_v24, %v4100_v24  ;;  %8727 = vrcp.f32 %v3958_v12 }
 0x360   : > { %v4101_v38 = vmul.f32 %v8722_v31, %v10096_v2 }
 0x361   : > { %8400 = vmatmul.mubr.msk.bf16.vlgmr.msra.gmra.mxu0 %vm4178_vm4, %v4164_v57 }
 0x362   : > { %v4165_v51 = vpack.c.bf16 %v4101_v38, %v4101_v38  ;;  %v3961_v11 = vpop.xlane.xlu1 %3960  ;;  %8410 = vmatpush3.bf16.msra.mxu0 %v6576_v27  ;;  %8411 = vmatprep.mubr.msk.bf16.mxu0 %vm8756_vm0, %v10566_v55  ;;  %v6944_v27 = vsel %vm4182_vm3, %v396_v63, 0 }
 0x363   : > { %8729 = vrcp.f32 %v3961_v11  ;;  %8421 = vmatprep.subr.bf16.mxu0 %v10566_v55 }
 0x364   : > { %v8724_v5 = vpop.eup %8723  ;;  %8406 = vmatmul.mubr.msk.bf16.vlgmr.msra.gmra.mxu1 %vm4178_vm4, %v4165_v51 }
 0x365   : > { %v4102_v2 = vmul.f32 %v8724_v5, %v10111_v28  ;;  %8416 = vmatpush3.bf16.msra.mxu1 %v6622_v58  ;;  %8417 = vmatprep.mubr.msk.bf16.mxu1 %vm8756_vm0, %v10566_v55 }
 0x366   : > { %v3964_v34 = vpop.xlane.xlu0 %3963  ;;  %8427 = vmatprep.subr.bf16.mxu1 %v10566_v55 }
 0x367   : > { %v8726_v18 = vpop.eup %8725  ;;  %v4166_v3 = vpack.c.bf16 %v4102_v2, %v4102_v2  ;;  %8731 = vrcp.f32 %v3964_v34  ;;  %v6990_v2 = vsel %vm4182_vm3, %v397_v16, 0 }
 0x368   : > { %v4103_v17 = vmul.f32 %v8726_v18, %v10120_v22  ;;  %v398_v18 = vld [vmem:[%s9472_s23 + $0x3e] sm:$0x1] }
 0x369   : > { %8412 = vmatmul.mubr.msk.bf16.vlgmr.msra.gmra.mxu0 %vm4178_vm4, %v4166_v3  ;;  %v3967_v0 = vpop.xlane.xlu1 %3966 }
 0x36a   : > { %v4167_v28 = vpack.c.bf16 %v4103_v17, %v4103_v17  ;;  %8733 = vrcp.f32 %v3967_v0  ;;  %8422 = vmatpush3.bf16.msra.mxu0 %v6668_v37  ;;  %8423 = vmatprep.mubr.msk.bf16.mxu0 %vm8756_vm0, %v10566_v55 }
 0x36b   : > { %8433 = vmatprep.subr.bf16.mxu0 %v10566_v55 }
 0x36c   : > { %v8728_v45 = vpop.eup %8727  ;;  %8418 = vmatmul.mubr.msk.bf16.vlgmr.msra.gmra.mxu1 %vm4178_vm4, %v4167_v28 }
 0x36d   : > { %v4104_v22 = vmul.f32 %v8728_v45, %v10135_v33  ;;  %8428 = vmatpush3.bf16.msra.mxu1 %v6714_v41  ;;  %8429 = vmatprep.mubr.msk.bf16.mxu1 %vm8756_vm0, %v10566_v55  ;;  %v7036_v45 = vsel %vm4182_vm3, %v398_v18, 0 }
 0x36e   : > { %v3970_v60 = vpop.xlane.xlu0 %3969  ;;  %8439 = vmatprep.subr.bf16.mxu1 %v10566_v55 }
 0x36f   : > { %v4168_v59 = vpack.c.bf16 %v4104_v22, %v4104_v22  ;;  %8735 = vrcp.f32 %v3970_v60  ;;  %v399_v22 = vld [vmem:[%s9472_s23 + $0x3f] sm:$0x1] }
 0x370   : > { %v8730_v39 = vpop.eup %8729 }
 0x371   : > { %v4105_v50 = vmul.f32 %v8730_v39, %v10144_v35  ;;  %8424 = vmatmul.mubr.msk.bf16.vlgmr.msra.gmra.mxu0 %vm4178_vm4, %v4168_v59  ;;  %v3973_v4 = vpop.xlane.xlu1 %3972 }
 0x372   : > { %8737 = vrcp.f32 %v3973_v4  ;;  %8434 = vmatpush3.bf16.msra.mxu0 %v6760_v23  ;;  %8435 = vmatprep.mubr.msk.bf16.mxu0 %vm8756_vm0, %v10566_v55 }
 0x373   : > { %v4169_v33 = vpack.c.bf16 %v4105_v50, %v4105_v50  ;;  %8445 = vmatprep.subr.bf16.mxu0 %v10566_v55  ;;  %v7082_v50 = vsel %vm4182_vm3, %v399_v22, 0 }
 0x374   : > { %v8732_v10 = vpop.eup %8731 }
 0x375   : > { %v4106_v30 = vmul.f32 %v8732_v10, %v10167_v42  ;;  %8430 = vmatmul.mubr.msk.bf16.vlgmr.msra.gmra.mxu1 %vm4178_vm4, %v4169_v33  ;;  %v395_v42 = vld [vmem:[%s9472_s23 + $0x3b] sm:$0x1] }
 0x376   : > { %8440 = vmatpush3.bf16.msra.mxu1 %v6806_v44  ;;  %v3976_v35 = vpop.xlane.xlu0 %3975  ;;  %8441 = vmatprep.mubr.msk.bf16.mxu1 %vm8756_vm0, %v10566_v55 }
 0x377   : > { %v8734_v62 = vpop.eup %8733  ;;  %v4170_v7 = vpack.c.bf16 %v4106_v30, %v4106_v30  ;;  %8739 = vrcp.f32 %v3976_v35  ;;  %v5324_v8 = vpop.f32.mrf.mxu0  ;;  %8451 = vmatprep.subr.bf16.mxu1 %v10566_v55 }
 0x378   : > { %v4107_v15 = vmul.f32 %v8734_v62, %v10178_v9  ;;  %v7148_v29 = vpack.c.bf16 %v5324_v8, %v5324_v8  ;;  %v6898_v9 = vsel %vm4182_vm3, %v395_v42, 0 }
 0x379   : > { %8436 = vmatmul.mubr.msk.bf16.vlgmr.msra.gmra.mxu0 %vm4178_vm4, %v4170_v7  ;;  %v8245_v19 = vpop.f32.mrf.mxu0 }
 0x37a   : > { %v3979_v40 = vpop.xlane.xlu1 %3978  ;;  %v4171_v1 = vpack.c.bf16 %v4107_v15, %v4107_v15  ;;  %7213 = vst.msk [vmem:[%s10150_s26 + $0x18] sm:$0x1] %vm7188_vm5, %v7148_v29  ;;  %8446 = vmatpush3.bf16.msra.mxu0 %v6852_v61  ;;  %8447 = vmatprep.mubr.msk.bf16.mxu0 %vm8756_vm0, %v10566_v55 }
 0x37b   : > { %8741 = vrcp.f32 %v3979_v40  ;;  %v5327_v56 = vpop.f32.mrf.mxu0  ;;  %v5370_v26 = vpop.f32.mrf.mxu1  ;;  %8457 = vmatprep.subr.bf16.mxu0 %v10566_v55 }
 0x37c   : > { %v8736_v32 = vpop.eup %8735  ;;  %v7149_v25 = vpack.c.bf16 %v5370_v26, %v5370_v26 }
 0x37d   : > { %v4108_v36 = vmul.f32 %v8736_v32, %v10195_v20  ;;  %8442 = vmatmul.mubr.msk.bf16.vlgmr.msra.gmra.mxu1 %vm4178_vm4, %v4171_v1  ;;  %v8251_v53 = vpop.f32.mrf.mxu1  ;;  %v8246_v48 = vpop.f32.mrf.mxu0 }
 0x37e   : > { %7214 = vst.msk [vmem:[%s10150_s26 + $0x19] sm:$0x1] %vm7188_vm5, %v7149_v25  ;;  %8452 = vmatpush3.bf16.msra.mxu1 %v6898_v9  ;;  %8453 = vmatprep.mubr.msk.bf16.mxu1 %vm8756_vm0, %v10566_v55 }
 0x37f   : > { %v3982_v24 = vpop.xlane.xlu0 %3981  ;;  %v8738_v12 = vpop.eup %8737  ;;  %v4172_v31 = vpack.c.bf16 %v4108_v36, %v4108_v36  ;;  %8463 = vmatprep.subr.bf16.mxu1 %v10566_v55 }
 0x380   : > { %8743 = vrcp.f32 %v3982_v24  ;;  %v5373_v57 = vpop.f32.mrf.mxu1  ;;  %v4109_v20 = vmul.f32 %v8738_v12, %v10204_v47 }
 0x381   : > { %v5416_v38 = vpop.f32.mrf.mxu0  ;;  %8448 = vmatmul.mubr.msk.bf16.vlgmr.msra.gmra.mxu0 %vm4178_vm4, %v4172_v31 }
 0x382   : > { %v8252_v51 = vpop.f32.mrf.mxu1  ;;  %v4173_v11 = vpack.c.bf16 %v4109_v20, %v4109_v20  ;;  %v7150_v58 = vpack.c.bf16 %v5416_v38, %v5416_v38  ;;  %v3985_v5 = vpop.xlane.xlu1 %3984  ;;  %8458 = vmatpush3.bf16.msra.mxu0 %v6944_v27  ;;  %8459 = vmatprep.mubr.msk.bf16.mxu0 %vm8756_vm0, %v10566_v55 }
 0x383   : > { %8745 = vrcp.f32 %v3985_v5  ;;  %v8257_v21 = vpop.f32.mrf.mxu0  ;;  %8469 = vmatprep.subr.bf16.mxu0 %v10566_v55 }
 0x384   : > { %v8740_v47 = vpop.eup %8739  ;;  %7215 = vst.msk [vmem:[%s10150_s26 + $0x1a] sm:$0x1] %vm7188_vm5, %v7150_v58  ;;  %v5462_v34 = vpop.f32.mrf.mxu1 }
 0x385   : > { %v4110_v3 = vmul.f32 %v8740_v47, %v10220_v6  ;;  %v5419_v37 = vpop.f32.mrf.mxu0  ;;  %v7151_v43 = vpack.c.bf16 %v5462_v34, %v5462_v34  ;;  %8454 = vmatmul.mubr.msk.bf16.vlgmr.msra.gmra.mxu1 %vm4178_vm4, %v4173_v11 }
 0x386   : > { %v8263_v17 = vpop.f32.mrf.mxu1  ;;  %8464 = vmatpush3.bf16.msra.mxu1 %v6990_v2  ;;  %8465 = vmatprep.mubr.msk.bf16.mxu1 %vm8756_vm0, %v10566_v55 }
 0x387   : > { %v4174_v28 = vpack.c.bf16 %v4110_v3, %v4110_v3  ;;  %7216 = vst.msk [vmem:[%s10150_s26 + $0x1b] sm:$0x1] %vm7188_vm5, %v7151_v43  ;;  %v8258_v41 = vpop.f32.mrf.mxu0  ;;  %8475 = vmatprep.subr.bf16.mxu1 %v10566_v55 }
 0x388   : > { %v8742_v0 = vpop.eup %8741  ;;  %v5465_v54 = vpop.f32.mrf.mxu1 }
 0x389   : > { %v4111_v6 = vmul.f32 %v8742_v0, %v10230_v14  ;;  %v5508_v60 = vpop.f32.mrf.mxu0  ;;  %8460 = vmatmul.mubr.msk.bf16.vlgmr.msra.gmra.mxu0 %vm4178_vm4, %v4174_v28 }
 0x38a   : > { %v7152_v23 = vpack.c.bf16 %v5508_v60, %v5508_v60  ;;  %v8264_v39 = vpop.f32.mrf.mxu1  ;;  %8470 = vmatpush3.bf16.msra.mxu0 %v7036_v45  ;;  %8471 = vmatprep.mubr.msk.bf16.mxu0 %vm8756_vm0, %v10566_v55 }
 0x38b   : > { %v4175_v59 = vpack.c.bf16 %v4111_v6, %v4111_v6  ;;  %v8269_v49 = vpop.f32.mrf.mxu0 }
 0x38c   : > { %7217 = vst.msk [vmem:[%s10150_s26 + $0x1c] sm:$0x1] %vm7188_vm5, %v7152_v23  ;;  %v5554_v14 = vpop.f32.mrf.mxu1 }
 0x38d   : > { %v8744_v4 = vpop.eup %8743  ;;  %v5511_v44 = vpop.f32.mrf.mxu0  ;;  %v7153_v10 = vpack.c.bf16 %v5554_v14, %v5554_v14  ;;  %8466 = vmatmul.mubr.msk.bf16.vlgmr.msra.gmra.mxu1 %vm4178_vm4, %v4175_v59 }
 0x38e   : > { %v4112_v33 = vmul.f32 %v8744_v4, %v10246_v52  ;;  %v8275_v13 = vpop.f32.mrf.mxu1  ;;  %8476 = vmatpush3.bf16.msra.mxu1 %v7082_v50  ;;  %8477 = vmatprep.mubr.msk.bf16.mxu1 %vm8756_vm0, %v10566_v55 }
 0x38f   : > { %7218 = vst.msk [vmem:[%s10150_s26 + $0x1d] sm:$0x1] %vm7188_vm5, %v7153_v10  ;;  %v8270_v35 = vpop.f32.mrf.mxu0 }
 0x390   : > { %v4176_v30 = vpack.c.bf16 %v4112_v33, %v4112_v33  ;;  %v8746_v62 = vpop.eup %8745  ;;  %v5557_v7 = vpop.f32.mrf.mxu1 }
 0x391   : > { %v4113_v8 = vmul.f32 %v8746_v62, %v10256_v46  ;;  %v5600_v52 = vpop.f32.mrf.mxu0 }
 0x392   : > { %8472 = vmatmul.mubr.msk.bf16.vlgmr.msra.gmra.mxu0 %vm4178_vm4, %v4176_v30  ;;  %v7154_v61 = vpack.c.bf16 %v5600_v52, %v5600_v52  ;;  %v8276_v15 = vpop.f32.mrf.mxu1 }
 0x393   : > { %v4177_v29 = vpack.c.bf16 %v4113_v8, %v4113_v8  ;;  %v8281_v42 = vpop.f32.mrf.mxu0 }
 0x394   : > { %7219 = vst.msk [vmem:[%s10150_s26 + $0x1e] sm:$0x1] %vm7188_vm5, %v7154_v61  ;;  %v5646_v55 = vpop.f32.mrf.mxu1 }
 0x395   : > { %v5603_v40 = vpop.f32.mrf.mxu0  ;;  %v7155_v19 = vpack.c.bf16 %v5646_v55, %v5646_v55  ;;  %8478 = vmatmul.mubr.msk.bf16.vlgmr.msra.gmra.mxu1 %vm4178_vm4, %v4177_v29 }
 0x396   : > { %v8287_v1 = vpop.f32.mrf.mxu1 }
 0x397   : > { %7220 = vst.msk [vmem:[%s10150_s26 + $0x1f] sm:$0x1] %vm7188_vm5, %v7155_v19  ;;  %v8282_v46 = vpop.f32.mrf.mxu0 }
 0x398   : > { %v5649_v56 = vpop.f32.mrf.mxu1 }
 0x399   : > { %v5692_v26 = vpop.f32.mrf.mxu0 }
 0x39a   : > { %v7156_v9 = vpack.c.bf16 %v5692_v26, %v5692_v26  ;;  %v8288_v32 = vpop.f32.mrf.mxu1 }
 0x39b   : > { %v8293_v25 = vpop.f32.mrf.mxu0 }
 0x39c   : > { %7221 = vst.msk [vmem:[%s10150_s26 + $0x20] sm:$0x1] %vm7188_vm5, %v7156_v9  ;;  %v5738_v63 = vpop.f32.mrf.mxu1 }
 0x39d   : > { %v5695_v36 = vpop.f32.mrf.mxu0  ;;  %v7157_v53 = vpack.c.bf16 %v5738_v63, %v5738_v63 }
 0x39e   : > { %v8299_v48 = vpop.f32.mrf.mxu1 }
 0x39f   : > { %7222 = vst.msk [vmem:[%s10150_s26 + $0x21] sm:$0x1] %vm7188_vm5, %v7157_v53  ;;  %v8294_v24 = vpop.f32.mrf.mxu0 }
 0x3a0   : > { %v5741_v12 = vpop.f32.mrf.mxu1 }
 0x3a1   : > { %v5784_v31 = vpop.f32.mrf.mxu0 }
 0x3a2   : > { %v7158_v57 = vpack.c.bf16 %v5784_v31, %v5784_v31  ;;  %v8300_v27 = vpop.f32.mrf.mxu1 }
 0x3a3   : > { %v8305_v20 = vpop.f32.mrf.mxu0 }
 0x3a4   : > { %7223 = vst.msk [vmem:[%s10150_s26 + $0x22] sm:$0x1] %vm7188_vm5, %v7158_v57  ;;  %v5830_v16 = vpop.f32.mrf.mxu1 }
 0x3a5   : > { %v5787_v38 = vpop.f32.mrf.mxu0  ;;  %v7159_v51 = vpack.c.bf16 %v5830_v16, %v5830_v16 }
 0x3a6   : > { %v8311_v11 = vpop.f32.mrf.mxu1 }
 0x3a7   : > { %7224 = vst.msk [vmem:[%s10150_s26 + $0x23] sm:$0x1] %vm7188_vm5, %v7159_v51  ;;  %v8306_v58 = vpop.f32.mrf.mxu0 }
 0x3a8   : > { %v5833_v5 = vpop.f32.mrf.mxu1 }
 0x3a9   : > { %v5876_v21 = vpop.f32.mrf.mxu0 }
 0x3aa   : > { %v7160_v2 = vpack.c.bf16 %v5876_v21, %v5876_v21  ;;  %v8312_v47 = vpop.f32.mrf.mxu1 }
 0x3ab   : > { %v8317_v34 = vpop.f32.mrf.mxu0 }
 0x3ac   : > { %7225 = vst.msk [vmem:[%s10150_s26 + $0x24] sm:$0x1] %vm7188_vm5, %v7160_v2  ;;  %v5922_v18 = vpop.f32.mrf.mxu1 }
 0x3ad   : > { %v5879_v3 = vpop.f32.mrf.mxu0  ;;  %v7161_v37 = vpack.c.bf16 %v5922_v18, %v5922_v18 }
 0x3ae   : > { %v8323_v43 = vpop.f32.mrf.mxu1 }
 0x3af   : > { %7226 = vst.msk [vmem:[%s10150_s26 + $0x25] sm:$0x1] %vm7188_vm5, %v7161_v37  ;;  %v8318_v17 = vpop.f32.mrf.mxu0 }
 0x3b0   : > { %v5925_v0 = vpop.f32.mrf.mxu1 }
 0x3b1   : > { %v5968_v28 = vpop.f32.mrf.mxu0 }
 0x3b2   : > { %v7162_v41 = vpack.c.bf16 %v5968_v28, %v5968_v28  ;;  %v8324_v45 = vpop.f32.mrf.mxu1 }
 0x3b3   : > { %v8329_v6 = vpop.f32.mrf.mxu0 }
 0x3b4   : > { %7227 = vst.msk [vmem:[%s10150_s26 + $0x26] sm:$0x1] %vm7188_vm5, %v7162_v41 }
 0x3b5   : > { %v6014_v54 = vpop.f32.mrf.mxu1  ;;  %v5971_v22 = vpop.f32.mrf.mxu0 }
 0x3b6   : > { %v7163_v60 = vpack.c.bf16 %v6014_v54, %v6014_v54 }
 0x3b7   : > { %v8335_v59 = vpop.f32.mrf.mxu1  ;;  %v8330_v23 = vpop.f32.mrf.mxu0 }
 0x3b8   : > { %7228 = vst.msk [vmem:[%s10150_s26 + $0x27] sm:$0x1] %vm7188_vm5, %v7163_v60 }
 0x3b9   : > { %v6017_v39 = vpop.f32.mrf.mxu1 }
 0x3ba   : > { %v6060_v49 = vpop.f32.mrf.mxu0 }
 0x3bb   : > { %v7164_v50 = vpack.c.bf16 %v6060_v49, %v6060_v49  ;;  %v8336_v4 = vpop.f32.mrf.mxu1 }
 0x3bc   : > { %v8341_v14 = vpop.f32.mrf.mxu0 }
 0x3bd   : > { %7229 = vst.msk [vmem:[%s10150_s26 + $0x28] sm:$0x1] %vm7188_vm5, %v7164_v50  ;;  %v6106_v33 = vpop.f32.mrf.mxu1 }
 0x3be   : > { %v6063_v44 = vpop.f32.mrf.mxu0  ;;  %v7165_v10 = vpack.c.bf16 %v6106_v33, %v6106_v33 }
 0x3bf   : > { %v8347_v13 = vpop.f32.mrf.mxu1 }
 0x3c0   : > { %7230 = vst.msk [vmem:[%s10150_s26 + $0x29] sm:$0x1] %vm7188_vm5, %v7165_v10  ;;  %v8342_v30 = vpop.f32.mrf.mxu0 }
 0x3c1   : > { %v6109_v35 = vpop.f32.mrf.mxu1 }
 0x3c2   : > { %v6152_v62 = vpop.f32.mrf.mxu0 }
 0x3c3   : > { %v7166_v7 = vpack.c.bf16 %v6152_v62, %v6152_v62  ;;  %v8348_v8 = vpop.f32.mrf.mxu1 }
 0x3c4   : > { %v8353_v52 = vpop.f32.mrf.mxu0 }
 0x3c5   : > { %7231 = vst.msk [vmem:[%s10150_s26 + $0x2a] sm:$0x1] %vm7188_vm5, %v7166_v7  ;;  %v6198_v61 = vpop.f32.mrf.mxu1 }
 0x3c6   : > { %v6155_v15 = vpop.f32.mrf.mxu0  ;;  %v7167_v29 = vpack.c.bf16 %v6198_v61, %v6198_v61 }
 0x3c7   : > { %v8359_v42 = vpop.f32.mrf.mxu1 }
 0x3c8   : > { %7232 = vst.msk [vmem:[%s10150_s26 + $0x2b] sm:$0x1] %vm7188_vm5, %v7167_v29  ;;  %v8354_v55 = vpop.f32.mrf.mxu0 }
 0x3c9   : > { %v6201_v40 = vpop.f32.mrf.mxu1 }
 0x3ca   : > { %v6244_v19 = vpop.f32.mrf.mxu0 }
 0x3cb   : > { %v7168_v1 = vpack.c.bf16 %v6244_v19, %v6244_v19  ;;  %v8360_v46 = vpop.f32.mrf.mxu1 }
 0x3cc   : > { %v8365_v56 = vpop.f32.mrf.mxu0 }
 0x3cd   : > { %7233 = vst.msk [vmem:[%s10150_s26 + $0x2c] sm:$0x1] %vm7188_vm5, %v7168_v1  ;;  %v6290_v26 = vpop.f32.mrf.mxu1 }
 0x3ce   : > { %v6247_v9 = vpop.f32.mrf.mxu0  ;;  %v7169_v32 = vpack.c.bf16 %v6290_v26, %v6290_v26 }
 0x3cf   : > { %v8371_v25 = vpop.f32.mrf.mxu1 }
 0x3d0   : > { %7234 = vst.msk [vmem:[%s10150_s26 + $0x2d] sm:$0x1] %vm7188_vm5, %v7169_v32  ;;  %v8366_v63 = vpop.f32.mrf.mxu0 }
 0x3d1   : > { %v6293_v36 = vpop.f32.mrf.mxu1 }
 0x3d2   : > { %v6336_v53 = vpop.f32.mrf.mxu0 }
 0x3d3   : > { %v7170_v48 = vpack.c.bf16 %v6336_v53, %v6336_v53  ;;  %v8372_v24 = vpop.f32.mrf.mxu1 }
 0x3d4   : > { %v8377_v12 = vpop.f32.mrf.mxu0 }
 0x3d5   : > { %7235 = vst.msk [vmem:[%s10150_s26 + $0x2e] sm:$0x1] %vm7188_vm5, %v7170_v48  ;;  %v6382_v31 = vpop.f32.mrf.mxu1 }
 0x3d6   : > { %v6339_v57 = vpop.f32.mrf.mxu0  ;;  %v7171_v27 = vpack.c.bf16 %v6382_v31, %v6382_v31 }
 0x3d7   : > { %v8383_v20 = vpop.f32.mrf.mxu1 }
 0x3d8   : > { %7236 = vst.msk [vmem:[%s10150_s26 + $0x2f] sm:$0x1] %vm7188_vm5, %v7171_v27  ;;  %v8378_v16 = vpop.f32.mrf.mxu0 }
 0x3d9   : > { %v6385_v38 = vpop.f32.mrf.mxu1 }
 0x3db   : > { %v8384_v51 = vpop.f32.mrf.mxu1 }
 0x419   : > { %v6428_v11 = vpop.f32.mrf.mxu0 }
 0x41a   : > { %v7172_v58 = vpack.c.bf16 %v6428_v11, %v6428_v11 }
 0x41b   : > { %v8389_v5 = vpop.f32.mrf.mxu0 }
 0x41c   : > { %7237 = vst.msk [vmem:[%s10150_s26 + $0x30] sm:$0x1] %vm7188_vm5, %v7172_v58  ;;  %v6474_v21 = vpop.f32.mrf.mxu1 }
 0x41d   : > { %v6431_v2 = vpop.f32.mrf.mxu0  ;;  %v7173_v47 = vpack.c.bf16 %v6474_v21, %v6474_v21 }
 0x41e   : > { %v8395_v34 = vpop.f32.mrf.mxu1 }
 0x41f   : > { %7238 = vst.msk [vmem:[%s10150_s26 + $0x31] sm:$0x1] %vm7188_vm5, %v7173_v47  ;;  %v8390_v18 = vpop.f32.mrf.mxu0 }
 0x420   : > { %v6477_v3 = vpop.f32.mrf.mxu1 }
 0x421   : > { %v6520_v37 = vpop.f32.mrf.mxu0 }
 0x422   : > { %v7174_v43 = vpack.c.bf16 %v6520_v37, %v6520_v37  ;;  %v8396_v17 = vpop.f32.mrf.mxu1 }
 0x423   : > { %v8401_v0 = vpop.f32.mrf.mxu0 }
 0x424   : > { %7239 = vst.msk [vmem:[%s10150_s26 + $0x32] sm:$0x1] %vm7188_vm5, %v7174_v43  ;;  %v6566_v28 = vpop.f32.mrf.mxu1 }
 0x425   : > { %v6523_v41 = vpop.f32.mrf.mxu0  ;;  %v7175_v45 = vpack.c.bf16 %v6566_v28, %v6566_v28 }
 0x426   : > { %v8407_v6 = vpop.f32.mrf.mxu1 }
 0x427   : > { %7240 = vst.msk [vmem:[%s10150_s26 + $0x33] sm:$0x1] %vm7188_vm5, %v7175_v45  ;;  %v8402_v54 = vpop.f32.mrf.mxu0 }
 0x428   : > { %v6569_v22 = vpop.f32.mrf.mxu1 }
 0x429   : > { %v6612_v60 = vpop.f32.mrf.mxu0 }
 0x42a   : > { %v7176_v59 = vpack.c.bf16 %v6612_v60, %v6612_v60  ;;  %v8408_v23 = vpop.f32.mrf.mxu1 }
 0x42b   : > { %v8413_v39 = vpop.f32.mrf.mxu0 }
 0x42c   : > { %7241 = vst.msk [vmem:[%s10150_s26 + $0x34] sm:$0x1] %vm7188_vm5, %v7176_v59  ;;  %v6658_v49 = vpop.f32.mrf.mxu1 }
 0x42d   : > { %v6615_v50 = vpop.f32.mrf.mxu0  ;;  %v7177_v4 = vpack.c.bf16 %v6658_v49, %v6658_v49 }
 0x42e   : > { %v8419_v14 = vpop.f32.mrf.mxu1 }
 0x42f   : > { %7242 = vst.msk [vmem:[%s10150_s26 + $0x35] sm:$0x1] %vm7188_vm5, %v7177_v4  ;;  %v8414_v33 = vpop.f32.mrf.mxu0 }
 0x430   : > { %v6661_v44 = vpop.f32.mrf.mxu1 }
 0x431   : > { %v6704_v10 = vpop.f32.mrf.mxu0 }
 0x432   : > { %v7178_v13 = vpack.c.bf16 %v6704_v10, %v6704_v10  ;;  %v8420_v30 = vpop.f32.mrf.mxu1 }
 0x433   : > { %v8425_v35 = vpop.f32.mrf.mxu0 }
 0x434   : > { %7243 = vst.msk [vmem:[%s10150_s26 + $0x36] sm:$0x1] %vm7188_vm5, %v7178_v13 }
 0x435   : > { %v6707_v62 = vpop.f32.mrf.mxu0  ;;  %v6750_v7 = vpop.f32.mrf.mxu1 }
 0x436   : > { %v7179_v8 = vpack.c.bf16 %v6750_v7, %v6750_v7 }
 0x437   : > { %v8426_v52 = vpop.f32.mrf.mxu0  ;;  %v8431_v61 = vpop.f32.mrf.mxu1 }
 0x438   : > { %7244 = vst.msk [vmem:[%s10150_s26 + $0x37] sm:$0x1] %vm7188_vm5, %v7179_v8 }
 0x439   : > { %v6753_v15 = vpop.f32.mrf.mxu1  ;;  %v6796_v29 = vpop.f32.mrf.mxu0 }
 0x43a   : > { %v7180_v42 = vpack.c.bf16 %v6796_v29, %v6796_v29 }
 0x43b   : > { %v8432_v55 = vpop.f32.mrf.mxu1  ;;  %v8437_v40 = vpop.f32.mrf.mxu0 }
 0x43c   : > { %7245 = vst.msk [vmem:[%s10150_s26 + $0x38] sm:$0x1] %vm7188_vm5, %v7180_v42 }
 0x43d   : > { %v6799_v19 = vpop.f32.mrf.mxu0  ;;  %v6842_v1 = vpop.f32.mrf.mxu1 }
 0x43e   : > { %v7181_v46 = vpack.c.bf16 %v6842_v1, %v6842_v1 }
 0x43f   : > { %v8438_v56 = vpop.f32.mrf.mxu0  ;;  %v8443_v26 = vpop.f32.mrf.mxu1 }
 0x440   : > { %7246 = vst.msk [vmem:[%s10150_s26 + $0x39] sm:$0x1] %vm7188_vm5, %v7181_v46 }
 0x441   : > { %v6845_v9 = vpop.f32.mrf.mxu1  ;;  %v6888_v32 = vpop.f32.mrf.mxu0 }
 0x442   : > { %v7182_v25 = vpack.c.bf16 %v6888_v32, %v6888_v32 }
 0x443   : > { %v8444_v63 = vpop.f32.mrf.mxu1  ;;  %v8449_v36 = vpop.f32.mrf.mxu0 }
 0x444   : > { %7247 = vst.msk [vmem:[%s10150_s26 + $0x3a] sm:$0x1] %vm7188_vm5, %v7182_v25 }
 0x445   : > { %v6891_v53 = vpop.f32.mrf.mxu0  ;;  %v6934_v48 = vpop.f32.mrf.mxu1 }
 0x446   : > { %v7183_v24 = vpack.c.bf16 %v6934_v48, %v6934_v48 }
 0x447   : > { %v8450_v12 = vpop.f32.mrf.mxu0  ;;  %v8455_v31 = vpop.f32.mrf.mxu1 }
 0x448   : > { %7248 = vst.msk [vmem:[%s10150_s26 + $0x3b] sm:$0x1] %vm7188_vm5, %v7183_v24 }
 0x449   : > { %v6937_v57 = vpop.f32.mrf.mxu1  ;;  %v6980_v27 = vpop.f32.mrf.mxu0 }
 0x44a   : > { %v7184_v20 = vpack.c.bf16 %v6980_v27, %v6980_v27 }
 0x44b   : > { %v8456_v16 = vpop.f32.mrf.mxu1  ;;  %v8461_v38 = vpop.f32.mrf.mxu0 }
 0x44c   : > { %7249 = vst.msk [vmem:[%s10150_s26 + $0x3c] sm:$0x1] %vm7188_vm5, %v7184_v20 }
 0x44d   : > { %v6983_v51 = vpop.f32.mrf.mxu0  ;;  %v7026_v11 = vpop.f32.mrf.mxu1 }
 0x44e   : > { %v7185_v58 = vpack.c.bf16 %v7026_v11, %v7026_v11 }
 0x44f   : > { %v8462_v5 = vpop.f32.mrf.mxu0  ;;  %v8467_v21 = vpop.f32.mrf.mxu1 }
 0x450   : > { %7250 = vst.msk [vmem:[%s10150_s26 + $0x3d] sm:$0x1] %vm7188_vm5, %v7185_v58 }
 0x451   : > { %v7029_v2 = vpop.f32.mrf.mxu1 }
 0x452   : > { %v7072_v47 = vpop.f32.mrf.mxu0 }
 0x453   : > { %v7186_v34 = vpack.c.bf16 %v7072_v47, %v7072_v47  ;;  %v8468_v18 = vpop.f32.mrf.mxu1 }
 0x454   : > { %v8473_v3 = vpop.f32.mrf.mxu0 }
 0x455   : > { %7251 = vst.msk [vmem:[%s10150_s26 + $0x3e] sm:$0x1] %vm7188_vm5, %v7186_v34  ;;  %v7118_v43 = vpop.f32.mrf.mxu1 }
 0x456   : > { %v7075_v37 = vpop.f32.mrf.mxu0  ;;  %v7187_v17 = vpack.c.bf16 %v7118_v43, %v7118_v43 }
 0x457   : > { %v8479_v28 = vpop.f32.mrf.mxu1 }
 0x458   : > { %v8474_v0 = vpop.f32.mrf.mxu0  ;;  %7252 = vst.msk [vmem:[%s10150_s26 + $0x3f] sm:$0x1] %vm7188_vm5, %v7187_v17 }
 0x459   : > { %v7121_v41 = vpop.f32.mrf.mxu1 }
 0x45b   : > { %v8480_v45 = vpop.f32.mrf.mxu1 }
 0x45c PF: > { %s13_s12 = sadd.s32 1, %s8753_s12  }
 0x45d   : > { %p10_p4 = scmp.ge.s32.totalorder %s13_s12, 4  }
 0x45f   :  { %12 = sbr.rel (!%p10_p4) target bundleno = 1 (0x1), region = 68 }

// kernel: cdsa_forward_pallas.11
= control target key start
LH: loop header
LB: loop body
LE: loop exit
PB: predicated region body
PF: predicated region fallthrough
CT: control target
= control target key end

     0   :  { %vm186_vm0 = vcmask 261120   ;;  %s2536_s4 = inlined_call_operand.vmem [shape: bf16[4,32,32], index: 4, kind: input, shape index: {}]   ;;  %s2537_s1 = inlined_call_operand.vmem [shape: bf16[256,32], index: 1, kind: input, shape index: {}]   ;;  %s2538_s0 = inlined_call_operand.vmem [shape: bf16[256,32], index: 0, kind: input, shape index: {}]   ;;  %s2539_s2 = inlined_call_operand.vmem [shape: bf16[256,32], index: 2, kind: input, shape index: {}]   ;;  %s2540_s3 = inlined_call_operand.vmem [shape: bf16[256,32], index: 3, kind: input, shape index: {}]   ;;  %s2541_s5 = inlined_call_operand.vmem [shape: f32[256,32], index: 5, kind: output, shape index: {}]  }
   0x1   :  { %v1837_v0 = vld [vmem:[%s2536_s4 + $0x18] sm:$0xff]   ;;  %v1838_v1 = vld [vmem:[%s2536_s4 + $0x8] sm:$0xff]   ;;  %v1839_v2 = vld [vmem:[%s2536_s4 + $0x10] sm:$0xff]  }
   0x2   :  { %1693 = vmatprep.subr.bf16.mxu0 %v1837_v0  ;;  %1729 = vmatprep.subr.bf16.mxu1 %v1838_v1  ;;  %v1840_v3 = vld [vmem:[%s2536_s4] sm:$0xff]   ;;  %v1843_v6 = vld [vmem:[%s2537_s1 + $0x8] sm:$0xff]   ;;  %v1846_v9 = vld [vmem:[%s2536_s4 + $0x38] sm:$0xff]  }
   0x3   :  { %1694 = vmatpush3.bf16.msra.mxu0 %v1837_v0  ;;  %1730 = vmatpush3.bf16.msra.mxu1 %v1838_v1  ;;  %v1841_v4 = vld [vmem:[%s2537_s1] sm:$0xff]   ;;  %v1844_v7 = vld [vmem:[%s2538_s0 + $0x8] sm:$0xff]   ;;  %v1847_v10 = vld [vmem:[%s2537_s1 + $0x10] sm:$0xff]  }
   0x4   :  { %1695 = vmatprep.subr.bf16.mxu0 %v1839_v2  ;;  %1731 = vmatprep.subr.bf16.mxu1 %v1840_v3  ;;  %v1842_v5 = vld [vmem:[%s2538_s0] sm:$0xff]   ;;  %v1845_v8 = vld [vmem:[%s2536_s4 + $0x28] sm:$0xff]   ;;  %v1848_v11 = vld [vmem:[%s2538_s0 + $0x10] sm:$0xff]  }
   0x5   :  { %1697 = vmatprep.mubr.msk.bf16.mxu0 %vm186_vm0, %v1841_v4  ;;  %1733 = vmatprep.mubr.msk.bf16.mxu1 %vm186_vm0, %v1842_v5  ;;  %v1849_v12 = vld [vmem:[%s2537_s1 + $0x18] sm:$0xff]   ;;  %v1851_v14 = vld [vmem:[%s2537_s1 + $0x20] sm:$0xff]   ;;  %v1853_v16 = vld [vmem:[%s2537_s1 + $0x28] sm:$0xff]  }
   0x6   :  { %v1850_v13 = vld [vmem:[%s2538_s0 + $0x18] sm:$0xff]   ;;  %v1852_v15 = vld [vmem:[%s2538_s0 + $0x20] sm:$0xff]   ;;  %v1854_v17 = vld [vmem:[%s2538_s0 + $0x28] sm:$0xff]  }
   0x7   :  { %1696 = vmatpush3.bf16.msra.mxu0 %v1839_v2  ;;  %1732 = vmatpush3.bf16.msra.mxu1 %v1840_v3  ;;  %v1855_v18 = vld [vmem:[%s2537_s1 + $0x30] sm:$0xff]   ;;  %v1863_v20 = vld [vmem:[%s2536_s4 + $0x20] sm:$0xff]   ;;  %v1857_v22 = vld [vmem:[%s2537_s1 + $0x38] sm:$0xff]  }
   0x8   :  { %1765 = vmatprep.subr.bf16.mxu0 %v1845_v8  ;;  %1801 = vmatprep.subr.bf16.mxu1 %v1846_v9  ;;  %v1856_v19 = vld [vmem:[%s2538_s0 + $0x30] sm:$0xff]   ;;  %v1858_v23 = vld [vmem:[%s2538_s0 + $0x38] sm:$0xff]   ;;  %v1859_v24 = vld [vmem:[%s2537_s1 + $0x40] sm:$0xff]  }
   0x9   :  { %v1864_v21 = vld [vmem:[%s2536_s4 + $0x30] sm:$0xff]   ;;  %v1860_v25 = vld [vmem:[%s2538_s0 + $0x40] sm:$0xff]   ;;  %v1861_v26 = vld [vmem:[%s2537_s1 + $0x48] sm:$0xff]  }
   0xa   :  { %1698 = vmatmul.mubr.msk.bf16.vlgmr.msra.gmra.mxu0 %vm186_vm0, %v1843_v6  ;;  %1734 = vmatmul.mubr.msk.bf16.vlgmr.msra.gmra.mxu1 %vm186_vm0, %v1844_v7  ;;  %v1862_v27 = vld [vmem:[%s2538_s0 + $0x48] sm:$0xff]   ;;  %v1865_v28 = vld [vmem:[%s2537_s1 + $0x50] sm:$0xff]   ;;  %v1867_v30 = vld [vmem:[%s2537_s1 + $0x58] sm:$0xff]  }
   0xb   :  { %1766 = vmatpush3.bf16.msra.mxu0 %v1845_v8  ;;  %1701 = vmatprep.mubr.msk.bf16.mxu0 %vm186_vm0, %v1847_v10  ;;  %v1866_v29 = vld [vmem:[%s2538_s0 + $0x50] sm:$0xff]   ;;  %v1868_v31 = vld [vmem:[%s2538_s0 + $0x58] sm:$0xff]   ;;  %v1869_v32 = vld [vmem:[%s2537_s1 + $0x60] sm:$0xff]  }
   0xc   :  { %1802 = vmatpush3.bf16.msra.mxu1 %v1846_v9  ;;  %1737 = vmatprep.mubr.msk.bf16.mxu1 %vm186_vm0, %v1848_v11  ;;  %v1870_v33 = vld [vmem:[%s2538_s0 + $0x60] sm:$0xff]   ;;  %v1871_v34 = vld [vmem:[%s2537_s1 + $0x68] sm:$0xff]   ;;  %v1873_v36 = vld [vmem:[%s2537_s1 + $0x70] sm:$0xff]  }
   0xd   :  { %1767 = vmatprep.subr.bf16.mxu0 %v1863_v20  ;;  %1803 = vmatprep.subr.bf16.mxu1 %v1864_v21  ;;  %v1872_v35 = vld [vmem:[%s2538_s0 + $0x68] sm:$0xff]   ;;  %v1874_v37 = vld [vmem:[%s2538_s0 + $0x70] sm:$0xff]   ;;  %v1875_v38 = vld [vmem:[%s2537_s1 + $0x78] sm:$0xff]  }
   0xe   :  { %v1876_v39 = vld [vmem:[%s2538_s0 + $0x78] sm:$0xff]   ;;  %v1877_v40 = vld [vmem:[%s2539_s2] sm:$0xff]   ;;  %v1879_v42 = vld [vmem:[%s2539_s2 + $0x8] sm:$0xff]  }
   0xf   :  { %1768 = vmatpush3.bf16.msra.mxu0 %v1863_v20  ;;  %v1878_v41 = vld [vmem:[%s2540_s3] sm:$0xff]   ;;  %v1880_v43 = vld [vmem:[%s2540_s3 + $0x8] sm:$0xff]   ;;  %v1881_v44 = vld [vmem:[%s2539_s2 + $0x10] sm:$0xff]  }
  0x10   :  { %1804 = vmatpush3.bf16.msra.mxu1 %v1864_v21  ;;  %v1882_v45 = vld [vmem:[%s2540_s3 + $0x10] sm:$0xff]   ;;  %v1883_v46 = vld [vmem:[%s2539_s2 + $0x18] sm:$0xff]   ;;  %v1885_v48 = vld [vmem:[%s2539_s2 + $0x20] sm:$0xff]  }
  0x11   :  { %v1884_v47 = vld [vmem:[%s2540_s3 + $0x18] sm:$0xff]   ;;  %v1886_v49 = vld [vmem:[%s2540_s3 + $0x20] sm:$0xff]   ;;  %v1887_v50 = vld [vmem:[%s2539_s2 + $0x28] sm:$0xff]  }
  0x12   :  { %1702 = vmatmul.mubr.msk.bf16.gmra.mxu0 %vm186_vm0, %v1849_v12  ;;  %1738 = vmatmul.mubr.msk.bf16.gmra.mxu1 %vm186_vm0, %v1850_v13  ;;  %v1888_v51 = vld [vmem:[%s2540_s3 + $0x28] sm:$0xff]   ;;  %v1889_v52 = vld [vmem:[%s2539_s2 + $0x30] sm:$0xff]   ;;  %v1891_v54 = vld [vmem:[%s2539_s2 + $0x38] sm:$0xff]  }
  0x13   :  { %1705 = vmatprep.mubr.msk.bf16.mxu0 %vm186_vm0, %v1851_v14  ;;  %1741 = vmatprep.mubr.msk.bf16.mxu1 %vm186_vm0, %v1852_v15  ;;  %v1890_v53 = vld [vmem:[%s2540_s3 + $0x30] sm:$0xff]   ;;  %v1892_v55 = vld [vmem:[%s2540_s3 + $0x38] sm:$0xff]   ;;  %v1893_v56 = vld [vmem:[%s2539_s2 + $0x40] sm:$0xff]  }
  0x14   :  { %v1894_v57 = vld [vmem:[%s2540_s3 + $0x40] sm:$0xff]   ;;  %v1895_v58 = vld [vmem:[%s2539_s2 + $0x48] sm:$0xff]   ;;  %v1897_v60 = vld [vmem:[%s2539_s2 + $0x50] sm:$0xff]  }
  0x15   :  { %v1896_v59 = vld [vmem:[%s2540_s3 + $0x48] sm:$0xff]   ;;  %v1898_v61 = vld [vmem:[%s2540_s3 + $0x50] sm:$0xff]   ;;  %v1899_v62 = vld [vmem:[%s2539_s2 + $0x58] sm:$0xff]  }
  0x16   :  { %v1900_v63 = vld [vmem:[%s2540_s3 + $0x58] sm:$0xff]   ;;  %v1901_v0 = vld [vmem:[%s2539_s2 + $0x60] sm:$0xff]   ;;  %v1903_v2 = vld [vmem:[%s2539_s2 + $0x68] sm:$0xff]  }
  0x17   :  { %v1902_v1 = vld [vmem:[%s2540_s3 + $0x60] sm:$0xff]   ;;  %v1904_v3 = vld [vmem:[%s2540_s3 + $0x68] sm:$0xff]   ;;  %v1905_v4 = vld [vmem:[%s2539_s2 + $0x70] sm:$0xff]  }
  0x18   :  { %v1906_v5 = vld [vmem:[%s2540_s3 + $0x70] sm:$0xff]   ;;  %v1907_v6 = vld [vmem:[%s2539_s2 + $0x78] sm:$0xff]  }
  0x19   :  { %v1908_v7 = vld [vmem:[%s2540_s3 + $0x78] sm:$0xff]  }
  0x1a   :  { %1706 = vmatmul.mubr.msk.bf16.gmra.mxu0 %vm186_vm0, %v1853_v16  ;;  %1742 = vmatmul.mubr.msk.bf16.gmra.mxu1 %vm186_vm0, %v1854_v17 }
  0x1b   :  { %1709 = vmatprep.mubr.msk.bf16.mxu0 %vm186_vm0, %v1855_v18  ;;  %1745 = vmatprep.mubr.msk.bf16.mxu1 %vm186_vm0, %v1856_v19 }
  0x22   :  { %1710 = vmatmul.mubr.msk.bf16.gmra.mxu0 %vm186_vm0, %v1857_v22  ;;  %1746 = vmatmul.mubr.msk.bf16.gmra.mxu1 %vm186_vm0, %v1858_v23 }
  0x23   :  { %1713 = vmatprep.mubr.msk.bf16.mxu0 %vm186_vm0, %v1859_v24  ;;  %1749 = vmatprep.mubr.msk.bf16.mxu1 %vm186_vm0, %v1860_v25 }
  0x2a   :  { %1714 = vmatmul.mubr.msk.bf16.gmra.mxu0 %vm186_vm0, %v1861_v26  ;;  %1750 = vmatmul.mubr.msk.bf16.gmra.mxu1 %vm186_vm0, %v1862_v27 }
  0x2b   :  { %1717 = vmatprep.mubr.msk.bf16.mxu0 %vm186_vm0, %v1865_v28  ;;  %1753 = vmatprep.mubr.msk.bf16.mxu1 %vm186_vm0, %v1866_v29 }
  0x32   :  { %1718 = vmatmul.mubr.msk.bf16.gmra.mxu0 %vm186_vm0, %v1867_v30  ;;  %1754 = vmatmul.mubr.msk.bf16.gmra.mxu1 %vm186_vm0, %v1868_v31 }
  0x33   :  { %1721 = vmatprep.mubr.msk.bf16.mxu0 %vm186_vm0, %v1869_v32  ;;  %1757 = vmatprep.mubr.msk.bf16.mxu1 %vm186_vm0, %v1870_v33 }
  0x3a   :  { %1722 = vmatmul.mubr.msk.bf16.gmra.mxu0 %vm186_vm0, %v1871_v34  ;;  %1758 = vmatmul.mubr.msk.bf16.gmra.mxu1 %vm186_vm0, %v1872_v35 }
  0x3b   :  { %1725 = vmatprep.mubr.msk.bf16.mxu0 %vm186_vm0, %v1873_v36  ;;  %1761 = vmatprep.mubr.msk.bf16.mxu1 %vm186_vm0, %v1874_v37 }
  0x42   :  { %1726 = vmatmul.mubr.msk.bf16.gmra.mxu0 %vm186_vm0, %v1875_v38  ;;  %1762 = vmatmul.mubr.msk.bf16.gmra.mxu1 %vm186_vm0, %v1876_v39 }
  0x43   :  { %1769 = vmatprep.mubr.msk.bf16.mxu0 %vm186_vm0, %v1877_v40  ;;  %1805 = vmatprep.mubr.msk.bf16.mxu1 %vm186_vm0, %v1878_v41 }
  0x4a   :  { %1770 = vmatmul.mubr.msk.bf16.vlgmr.msra.gmra.mxu0 %vm186_vm0, %v1879_v42  ;;  %1806 = vmatmul.mubr.msk.bf16.vlgmr.msra.gmra.mxu1 %vm186_vm0, %v1880_v43 }
  0x4b   :  { %1773 = vmatprep.mubr.msk.bf16.mxu0 %vm186_vm0, %v1881_v44  ;;  %1809 = vmatprep.mubr.msk.bf16.mxu1 %vm186_vm0, %v1882_v45 }
  0x52   :  { %1774 = vmatmul.mubr.msk.bf16.gmra.mxu0 %vm186_vm0, %v1883_v46  ;;  %1810 = vmatmul.mubr.msk.bf16.gmra.mxu1 %vm186_vm0, %v1884_v47 }
  0x53   :  { %1777 = vmatprep.mubr.msk.bf16.mxu0 %vm186_vm0, %v1885_v48  ;;  %1813 = vmatprep.mubr.msk.bf16.mxu1 %vm186_vm0, %v1886_v49 }
  0x5a   :  { %1778 = vmatmul.mubr.msk.bf16.gmra.mxu0 %vm186_vm0, %v1887_v50  ;;  %1814 = vmatmul.mubr.msk.bf16.gmra.mxu1 %vm186_vm0, %v1888_v51 }
  0x5b   :  { %1781 = vmatprep.mubr.msk.bf16.mxu0 %vm186_vm0, %v1889_v52  ;;  %1817 = vmatprep.mubr.msk.bf16.mxu1 %vm186_vm0, %v1890_v53 }
  0x62   :  { %1782 = vmatmul.mubr.msk.bf16.gmra.mxu0 %vm186_vm0, %v1891_v54  ;;  %1818 = vmatmul.mubr.msk.bf16.gmra.mxu1 %vm186_vm0, %v1892_v55 }
  0x63   :  { %1785 = vmatprep.mubr.msk.bf16.mxu0 %vm186_vm0, %v1893_v56  ;;  %1821 = vmatprep.mubr.msk.bf16.mxu1 %vm186_vm0, %v1894_v57 }
  0x6a   :  { %1786 = vmatmul.mubr.msk.bf16.gmra.mxu0 %vm186_vm0, %v1895_v58  ;;  %1822 = vmatmul.mubr.msk.bf16.gmra.mxu1 %vm186_vm0, %v1896_v59 }
  0x6b   :  { %1789 = vmatprep.mubr.msk.bf16.mxu0 %vm186_vm0, %v1897_v60  ;;  %1825 = vmatprep.mubr.msk.bf16.mxu1 %vm186_vm0, %v1898_v61 }
  0x72   :  { %1790 = vmatmul.mubr.msk.bf16.gmra.mxu0 %vm186_vm0, %v1899_v62  ;;  %1826 = vmatmul.mubr.msk.bf16.gmra.mxu1 %vm186_vm0, %v1900_v63 }
  0x73   :  { %1793 = vmatprep.mubr.msk.bf16.mxu0 %vm186_vm0, %v1901_v0  ;;  %1829 = vmatprep.mubr.msk.bf16.mxu1 %vm186_vm0, %v1902_v1 }
  0x7a   :  { %1794 = vmatmul.mubr.msk.bf16.gmra.mxu0 %vm186_vm0, %v1903_v2  ;;  %1830 = vmatmul.mubr.msk.bf16.gmra.mxu1 %vm186_vm0, %v1904_v3 }
  0x7b   :  { %1797 = vmatprep.mubr.msk.bf16.mxu0 %vm186_vm0, %v1905_v4  ;;  %1833 = vmatprep.mubr.msk.bf16.mxu1 %vm186_vm0, %v1906_v5 }
  0x82   :  { %1798 = vmatmul.mubr.msk.bf16.gmra.mxu0 %vm186_vm0, %v1907_v6  ;;  %1834 = vmatmul.mubr.msk.bf16.gmra.mxu1 %vm186_vm0, %v1908_v7 }
  0xca   :  { %v2219_v8 = vpop.f32.mrf.mxu0  ;;  %v1735_v9 = vpop.f32.mrf.mxu1 }
  0xcb   :  { %v579_v7 = vadd.f32 %v1735_v9, %v2219_v8 }
  0xcc   :  { %v2221_v10 = vpop.f32.mrf.mxu0  ;;  %v2223_v11 = vpop.f32.mrf.mxu1 }
  0xce   :  { %v2225_v12 = vpop.f32.mrf.mxu0  ;;  %v2227_v13 = vpop.f32.mrf.mxu1 }
  0xd0   :  { %v2229_v14 = vpop.f32.mrf.mxu0  ;;  %v2231_v15 = vpop.f32.mrf.mxu1 }
  0xd2   :  { %v2233_v16 = vpop.f32.mrf.mxu0  ;;  %v2235_v17 = vpop.f32.mrf.mxu1 }
  0xd4   :  { %v2237_v18 = vpop.f32.mrf.mxu0  ;;  %v2239_v19 = vpop.f32.mrf.mxu1 }
  0xd6   :  { %v2241_v20 = vpop.f32.mrf.mxu0  ;;  %v2243_v21 = vpop.f32.mrf.mxu1 }
  0xd8   :  { %v2245_v22 = vpop.f32.mrf.mxu0  ;;  %v2247_v23 = vpop.f32.mrf.mxu1 }
  0xda   :  { %v2249_v24 = vpop.f32.mrf.mxu0  ;;  %v2251_v25 = vpop.f32.mrf.mxu1 }
  0xdc   :  { %v2253_v26 = vpop.f32.mrf.mxu0  ;;  %v2255_v27 = vpop.f32.mrf.mxu1 }
  0xde   :  { %v2257_v28 = vpop.f32.mrf.mxu0  ;;  %v2259_v29 = vpop.f32.mrf.mxu1 }
  0xe0   :  { %v2261_v30 = vpop.f32.mrf.mxu0  ;;  %v2263_v31 = vpop.f32.mrf.mxu1 }
  0xe2   :  { %v2265_v32 = vpop.f32.mrf.mxu0  ;;  %v2267_v33 = vpop.f32.mrf.mxu1 }
  0xe4   :  { %v2269_v34 = vpop.f32.mrf.mxu0  ;;  %v2271_v35 = vpop.f32.mrf.mxu1 }
  0xe6   :  { %v2273_v36 = vpop.f32.mrf.mxu0  ;;  %v2275_v37 = vpop.f32.mrf.mxu1 }
  0xe8   :  { %v2277_v38 = vpop.f32.mrf.mxu0  ;;  %v2279_v39 = vpop.f32.mrf.mxu1 }
  0xea   :  { %v2281_v40 = vpop.f32.mrf.mxu0  ;;  %v2283_v41 = vpop.f32.mrf.mxu1 }
  0xec   :  { %v2285_v42 = vpop.f32.mrf.mxu0  ;;  %v2287_v43 = vpop.f32.mrf.mxu1 }
  0xee   :  { %v2289_v44 = vpop.f32.mrf.mxu0  ;;  %v2291_v45 = vpop.f32.mrf.mxu1 }
  0xf0   :  { %v2293_v46 = vpop.f32.mrf.mxu0  ;;  %v2295_v47 = vpop.f32.mrf.mxu1 }
  0xf2   :  { %v2297_v48 = vpop.f32.mrf.mxu0  ;;  %v2299_v49 = vpop.f32.mrf.mxu1 }
  0xf4   :  { %v2301_v50 = vpop.f32.mrf.mxu0  ;;  %v2303_v51 = vpop.f32.mrf.mxu1 }
  0xf6   :  { %v2305_v52 = vpop.f32.mrf.mxu0  ;;  %v2307_v53 = vpop.f32.mrf.mxu1 }
  0xf8   :  { %v2309_v54 = vpop.f32.mrf.mxu0  ;;  %v2311_v55 = vpop.f32.mrf.mxu1 }
  0xfa   :  { %v2313_v56 = vpop.f32.mrf.mxu0  ;;  %v2315_v57 = vpop.f32.mrf.mxu1 }
  0xfc   :  { %v2317_v58 = vpop.f32.mrf.mxu0  ;;  %v2319_v59 = vpop.f32.mrf.mxu1 }
  0xfd   :  { %2542 = vst [vmem:[#allocation2_spill] sm:$0xff] %v2319_v59 }
  0xfe   :  { %v2321_v60 = vpop.f32.mrf.mxu0  ;;  %v2323_v61 = vpop.f32.mrf.mxu1 }
  0xff   :  { %2543 = vst [vmem:[#allocation3_spill] sm:$0xff] %v2321_v60  ;;  %2544 = vst [vmem:[#allocation4_spill] sm:$0xff] %v2323_v61 }
 0x100   :  { %v2325_v62 = vpop.f32.mrf.mxu0  ;;  %v2327_v63 = vpop.f32.mrf.mxu1 }
 0x101   :  { %2545 = vst [vmem:[#allocation5_spill] sm:$0xff] %v2325_v62  ;;  %2546 = vst [vmem:[#allocation6_spill] sm:$0xff] %v2327_v63 }
 0x102   :  { %v2329_v0 = vpop.f32.mrf.mxu0  ;;  %v2331_v1 = vpop.f32.mrf.mxu1 }
 0x103   :  { %2547 = vst [vmem:[#allocation7_spill] sm:$0xff] %v2329_v0  ;;  %2548 = vst [vmem:[#allocation8_spill] sm:$0xff] %v2331_v1  ;;  %v571_v0 = vadd.f32 %v2223_v11, %v2221_v10 }
 0x104   :  { %v2333_v2 = vpop.f32.mrf.mxu0  ;;  %v2335_v3 = vpop.f32.mrf.mxu1 }
 0x105   :  { %2549 = vst [vmem:[#allocation9_spill] sm:$0xff] %v2333_v2  ;;  %2550 = vst [vmem:[#allocation10_spill] sm:$0xff] %v2335_v3  ;;  %v582_v3 = vadd.f32 %v2227_v13, %v2225_v12 }
 0x106   :  { %v2337_v4 = vpop.f32.mrf.mxu0  ;;  %v2339_v5 = vpop.f32.mrf.mxu1 }
 0x107   :  { %2551 = vst [vmem:[#allocation11_spill] sm:$0xff] %v2337_v4  ;;  %2552 = vst [vmem:[#allocation12_spill] sm:$0xff] %v2339_v5 }
 0x108   :  { %v2341_v6 = vpop.f32.mrf.mxu0  ;;  %v2344_v61 = vpop.f32.mrf.mxu1 }
 0x109   :  { %2553 = vst [vmem:[#allocation13_spill] sm:$0xff] %v2341_v6  ;;  %v574_v6 = vadd.f32 %v2231_v15, %v2229_v14 }
 0x10a   :  { %v1771_v62 = vpop.f32.mrf.mxu0  ;;  %v1807_v1 = vpop.f32.mrf.mxu1 }
 0x10b   :  { %v1037_v63 = vadd.f32 %v1771_v62, %v579_v7  ;;  %v595_v62 = vadd.f32 %v2235_v17, %v2233_v16 }
 0x10c   :  { %v908_v60 = vpop.f32.mrf.mxu0  ;;  %v1278_v59 = vpop.f32.mrf.mxu1 }
 0x10d   :  { %v1407_v2 = vadd.f32 %v1807_v1, %v1037_v63  ;;  %v1035_v4 = vadd.f32 %v908_v60, %v571_v0  ;;  %v587_v60 = vadd.f32 %v2239_v19, %v2237_v18  ;;  %v598_v0 = vadd.f32 %v2243_v21, %v2241_v20 }
 0x10e   :  { %v1772_v5 = vpop.f32.mrf.mxu0  ;;  %v1808_v10 = vpop.f32.mrf.mxu1 }
 0x10f   :  { %1439 = vst.msk [vmem:[%s2541_s5 + $0x10] sm:$0xff] %vm186_vm0, %v1407_v2  ;;  %v1405_v8 = vadd.f32 %v1278_v59, %v1035_v4  ;;  %v1038_v9 = vadd.f32 %v1772_v5, %v582_v3  ;;  %v590_v3 = vadd.f32 %v2247_v23, %v2245_v22 }
 0x110   :  { %v911_v11 = vpop.f32.mrf.mxu0  ;;  %v1281_v14 = vpop.f32.mrf.mxu1 }
 0x111   :  { %1437 = vst.msk [vmem:[%s2541_s5] sm:$0xff] %vm186_vm0, %v1405_v8  ;;  %v1408_v12 = vadd.f32 %v1808_v10, %v1038_v9  ;;  %v1036_v13 = vadd.f32 %v911_v11, %v574_v6  ;;  %v611_v6 = vadd.f32 %v2251_v25, %v2249_v24  ;;  %v603_v9 = vadd.f32 %v2255_v27, %v2253_v26 }
 0x112   :  { %v1775_v15 = vpop.f32.mrf.mxu0  ;;  %v1811_v16 = vpop.f32.mrf.mxu1 }
 0x113   :  { %1440 = vst.msk [vmem:[%s2541_s5 + $0x18] sm:$0xff] %vm186_vm0, %v1408_v12  ;;  %v1406_v59 = vadd.f32 %v1281_v14, %v1036_v13  ;;  %v1041_v63 = vadd.f32 %v1775_v15, %v595_v62  ;;  %v614_v62 = vadd.f32 %v2259_v29, %v2257_v28  ;;  %v606_v14 = vadd.f32 %v2263_v31, %v2261_v30 }
 0x114   :  { %v924_v17 = vpop.f32.mrf.mxu0  ;;  %v1294_v18 = vpop.f32.mrf.mxu1 }
 0x115   :  { %1438 = vst.msk [vmem:[%s2541_s5 + $0x8] sm:$0xff] %vm186_vm0, %v1406_v59  ;;  %v1411_v1 = vadd.f32 %v1811_v16, %v1041_v63  ;;  %v1039_v2 = vadd.f32 %v924_v17, %v587_v60  ;;  %v627_v59 = vadd.f32 %v2267_v33, %v2265_v32  ;;  %v619_v17 = vadd.f32 %v2271_v35, %v2269_v34 }
 0x116   :  { %v1776_v19 = vpop.f32.mrf.mxu0  ;;  %v1812_v20 = vpop.f32.mrf.mxu1 }
 0x117   :  { %1443 = vst.msk [vmem:[%s2541_s5 + $0x30] sm:$0xff] %vm186_vm0, %v1411_v1  ;;  %v1409_v4 = vadd.f32 %v1294_v18, %v1039_v2  ;;  %v1042_v5 = vadd.f32 %v1776_v19, %v598_v0  ;;  %v630_v2 = vadd.f32 %v2275_v37, %v2273_v36 }
 0x118   :  { %v927_v21 = vpop.f32.mrf.mxu0  ;;  %v1297_v22 = vpop.f32.mrf.mxu1 }
 0x119   :  { %1441 = vst.msk [vmem:[%s2541_s5 + $0x20] sm:$0xff] %vm186_vm0, %v1409_v4  ;;  %v1412_v7 = vadd.f32 %v1812_v20, %v1042_v5  ;;  %v1040_v8 = vadd.f32 %v927_v21, %v590_v3  ;;  %v622_v3 = vadd.f32 %v2279_v39, %v2277_v38  ;;  %v643_v20 = vadd.f32 %v2283_v41, %v2281_v40 }
 0x11a   :  { %v1779_v23 = vpop.f32.mrf.mxu0  ;;  %v1815_v24 = vpop.f32.mrf.mxu1 }
 0x11b   :  { %1444 = vst.msk [vmem:[%s2541_s5 + $0x38] sm:$0xff] %vm186_vm0, %v1412_v7  ;;  %v1410_v10 = vadd.f32 %v1297_v22, %v1040_v8  ;;  %v1045_v11 = vadd.f32 %v1779_v23, %v611_v6  ;;  %v635_v7 = vadd.f32 %v2287_v43, %v2285_v42  ;;  %v646_v23 = vadd.f32 %v2291_v45, %v2289_v44 }
 0x11c   :  { %v940_v25 = vpop.f32.mrf.mxu0  ;;  %v1310_v26 = vpop.f32.mrf.mxu1 }
 0x11d   :  { %1442 = vst.msk [vmem:[%s2541_s5 + $0x28] sm:$0xff] %vm186_vm0, %v1410_v10  ;;  %v1415_v12 = vadd.f32 %v1815_v24, %v1045_v11  ;;  %v1043_v13 = vadd.f32 %v940_v25, %v603_v9  ;;  %v638_v11 = vadd.f32 %v2295_v47, %v2293_v46 }
 0x11e   :  { %v1780_v27 = vpop.f32.mrf.mxu0  ;;  %v1816_v28 = vpop.f32.mrf.mxu1 }
 0x11f   :  { %1447 = vst.msk [vmem:[%s2541_s5 + $0x50] sm:$0xff] %vm186_vm0, %v1415_v12  ;;  %v1413_v15 = vadd.f32 %v1310_v26, %v1043_v13  ;;  %v1046_v60 = vadd.f32 %v1780_v27, %v614_v62  ;;  %v659_v62 = vadd.f32 %v2299_v49, %v2297_v48  ;;  %v651_v26 = vadd.f32 %v2303_v51, %v2301_v50 }
 0x120   :  { %v943_v29 = vpop.f32.mrf.mxu0  ;;  %v1313_v30 = vpop.f32.mrf.mxu1 }
 0x121   :  { %1445 = vst.msk [vmem:[%s2541_s5 + $0x40] sm:$0xff] %vm186_vm0, %v1413_v15  ;;  %v1416_v63 = vadd.f32 %v1816_v28, %v1046_v60  ;;  %v1044_v16 = vadd.f32 %v943_v29, %v606_v14  ;;  %v662_v15 = vadd.f32 %v2307_v53, %v2305_v52  ;;  %v654_v29 = vadd.f32 %v2311_v55, %v2309_v54 }
 0x122   :  { %v1783_v31 = vpop.f32.mrf.mxu0  ;;  %v1819_v32 = vpop.f32.mrf.mxu1 }
 0x123   :  { %1448 = vst.msk [vmem:[%s2541_s5 + $0x58] sm:$0xff] %vm186_vm0, %v1416_v63  ;;  %v1414_v0 = vadd.f32 %v1313_v30, %v1044_v16  ;;  %v1049_v1 = vadd.f32 %v1783_v31, %v627_v59  ;;  %v675_v16 = vadd.f32 %v2315_v57, %v2313_v56 }
 0x124   :  { %v956_v33 = vpop.f32.mrf.mxu0  ;;  %v1326_v34 = vpop.f32.mrf.mxu1 }
 0x125   :  { %1446 = vst.msk [vmem:[%s2541_s5 + $0x48] sm:$0xff] %vm186_vm0, %v1414_v0  ;;  %v1419_v18 = vadd.f32 %v1819_v32, %v1049_v1  ;;  %v1047_v19 = vadd.f32 %v956_v33, %v619_v17  ;;  %v2554_v17 = vld [vmem:[#allocation2_spill] sm:$0xff]  ;;  %v2555_v33 = vld [vmem:[#allocation3_spill] sm:$0xff] }
 0x126   :  { %v1784_v35 = vpop.f32.mrf.mxu0  ;;  %v1820_v36 = vpop.f32.mrf.mxu1  ;;  %v667_v0 = vadd.f32 %v2554_v17, %v2317_v58 }
 0x127   :  { %1451 = vst.msk [vmem:[%s2541_s5 + $0x70] sm:$0xff] %vm186_vm0, %v1419_v18  ;;  %v1417_v4 = vadd.f32 %v1326_v34, %v1047_v19  ;;  %v1050_v5 = vadd.f32 %v1784_v35, %v630_v2  ;;  %v2556_v2 = vld [vmem:[#allocation4_spill] sm:$0xff] }
 0x128   :  { %v959_v37 = vpop.f32.mrf.mxu0  ;;  %v1329_v38 = vpop.f32.mrf.mxu1  ;;  %v678_v18 = vadd.f32 %v2556_v2, %v2555_v33 }
 0x129   :  { %1449 = vst.msk [vmem:[%s2541_s5 + $0x60] sm:$0xff] %vm186_vm0, %v1417_v4  ;;  %v1420_v21 = vadd.f32 %v1820_v36, %v1050_v5  ;;  %v1048_v6 = vadd.f32 %v959_v37, %v622_v3  ;;  %v2557_v3 = vld [vmem:[#allocation5_spill] sm:$0xff]  ;;  %v2558_v4 = vld [vmem:[#allocation6_spill] sm:$0xff] }
 0x12a   :  { %v1787_v39 = vpop.f32.mrf.mxu0  ;;  %v1823_v40 = vpop.f32.mrf.mxu1  ;;  %v670_v5 = vadd.f32 %v2558_v4, %v2557_v3 }
 0x12b   :  { %1452 = vst.msk [vmem:[%s2541_s5 + $0x78] sm:$0xff] %vm186_vm0, %v1420_v21  ;;  %v1418_v8 = vadd.f32 %v1329_v38, %v1048_v6  ;;  %v1053_v22 = vadd.f32 %v1787_v39, %v643_v20  ;;  %v2559_v6 = vld [vmem:[#allocation7_spill] sm:$0xff]  ;;  %v2560_v38 = vld [vmem:[#allocation8_spill] sm:$0xff] }
 0x12c   :  { %v972_v41 = vpop.f32.mrf.mxu0  ;;  %v1342_v42 = vpop.f32.mrf.mxu1  ;;  %v691_v39 = vadd.f32 %v2560_v38, %v2559_v6 }
 0x12d   :  { %1450 = vst.msk [vmem:[%s2541_s5 + $0x68] sm:$0xff] %vm186_vm0, %v1418_v8  ;;  %v1423_v9 = vadd.f32 %v1823_v40, %v1053_v22  ;;  %v1051_v10 = vadd.f32 %v972_v41, %v635_v7  ;;  %v2561_v41 = vld [vmem:[#allocation9_spill] sm:$0xff] }
 0x12e   :  { %v1788_v43 = vpop.f32.mrf.mxu0  ;;  %v1824_v44 = vpop.f32.mrf.mxu1 }
 0x12f   :  { %1455 = vst.msk [vmem:[%s2541_s5 + $0x90] sm:$0xff] %vm186_vm0, %v1423_v9  ;;  %v1421_v24 = vadd.f32 %v1342_v42, %v1051_v10  ;;  %v1054_v25 = vadd.f32 %v1788_v43, %v646_v23  ;;  %v2562_v23 = vld [vmem:[#allocation10_spill] sm:$0xff] }
 0x130   :  { %v975_v45 = vpop.f32.mrf.mxu0  ;;  %v1345_v46 = vpop.f32.mrf.mxu1  ;;  %v683_v9 = vadd.f32 %v2562_v23, %v2561_v41 }
 0x131   :  { %1453 = vst.msk [vmem:[%s2541_s5 + $0x80] sm:$0xff] %vm186_vm0, %v1421_v24  ;;  %v1424_v12 = vadd.f32 %v1824_v44, %v1054_v25  ;;  %v1052_v13 = vadd.f32 %v975_v45, %v638_v11  ;;  %v2563_v24 = vld [vmem:[#allocation11_spill] sm:$0xff]  ;;  %v2564_v25 = vld [vmem:[#allocation12_spill] sm:$0xff] }
 0x132   :  { %v1791_v47 = vpop.f32.mrf.mxu0  ;;  %v1827_v48 = vpop.f32.mrf.mxu1  ;;  %v694_v44 = vadd.f32 %v2564_v25, %v2563_v24 }
 0x133   :  { %1456 = vst.msk [vmem:[%s2541_s5 + $0x98] sm:$0xff] %vm186_vm0, %v1424_v12  ;;  %v1422_v27 = vadd.f32 %v1345_v46, %v1052_v13  ;;  %v1057_v14 = vadd.f32 %v1791_v47, %v659_v62  ;;  %v2565_v46 = vld [vmem:[#allocation13_spill] sm:$0xff] }
 0x134   :  { %v988_v49 = vpop.f32.mrf.mxu0  ;;  %v1358_v50 = vpop.f32.mrf.mxu1  ;;  %v686_v47 = vadd.f32 %v2344_v61, %v2565_v46 }
 0x135   :  { %1454 = vst.msk [vmem:[%s2541_s5 + $0x88] sm:$0xff] %vm186_vm0, %v1422_v27  ;;  %v1427_v60 = vadd.f32 %v1827_v48, %v1057_v14  ;;  %v1055_v28 = vadd.f32 %v988_v49, %v651_v26 }
 0x136   :  { %v1792_v51 = vpop.f32.mrf.mxu0  ;;  %v1828_v52 = vpop.f32.mrf.mxu1 }
 0x137   :  { %1459 = vst.msk [vmem:[%s2541_s5 + $0xb0] sm:$0xff] %vm186_vm0, %v1427_v60  ;;  %v1425_v59 = vadd.f32 %v1358_v50, %v1055_v28  ;;  %v1058_v63 = vadd.f32 %v1792_v51, %v662_v15 }
 0x138   :  { %v991_v53 = vpop.f32.mrf.mxu0  ;;  %v1361_v54 = vpop.f32.mrf.mxu1 }
 0x139   :  { %1457 = vst.msk [vmem:[%s2541_s5 + $0xa0] sm:$0xff] %vm186_vm0, %v1425_v59  ;;  %v1428_v30 = vadd.f32 %v1828_v52, %v1058_v63  ;;  %v1056_v31 = vadd.f32 %v991_v53, %v654_v29 }
 0x13a   :  { %v1795_v55 = vpop.f32.mrf.mxu0  ;;  %v1831_v56 = vpop.f32.mrf.mxu1 }
 0x13b   :  { %1460 = vst.msk [vmem:[%s2541_s5 + $0xb8] sm:$0xff] %vm186_vm0, %v1428_v30  ;;  %v1426_v1 = vadd.f32 %v1361_v54, %v1056_v31  ;;  %v1061_v32 = vadd.f32 %v1795_v55, %v675_v16 }
 0x13c   :  { %v1004_v57 = vpop.f32.mrf.mxu0  ;;  %v1374_v58 = vpop.f32.mrf.mxu1 }
 0x13d   :  { %1458 = vst.msk [vmem:[%s2541_s5 + $0xa8] sm:$0xff] %vm186_vm0, %v1426_v1  ;;  %v1431_v19 = vadd.f32 %v1831_v56, %v1061_v32  ;;  %v1059_v34 = vadd.f32 %v1004_v57, %v667_v0 }
 0x13e   :  { %v1796_v35 = vpop.f32.mrf.mxu0  ;;  %v1832_v20 = vpop.f32.mrf.mxu1 }
 0x13f   :  { %1463 = vst.msk [vmem:[%s2541_s5 + $0xd0] sm:$0xff] %vm186_vm0, %v1431_v19  ;;  %v1429_v36 = vadd.f32 %v1374_v58, %v1059_v34  ;;  %v1062_v37 = vadd.f32 %v1796_v35, %v678_v18 }
 0x140   :  { %v1007_v21 = vpop.f32.mrf.mxu0  ;;  %v1377_v22 = vpop.f32.mrf.mxu1 }
 0x141   :  { %1461 = vst.msk [vmem:[%s2541_s5 + $0xc0] sm:$0xff] %vm186_vm0, %v1429_v36  ;;  %v1432_v7 = vadd.f32 %v1832_v20, %v1062_v37  ;;  %v1060_v8 = vadd.f32 %v1007_v21, %v670_v5 }
 0x142   :  { %v1799_v40 = vpop.f32.mrf.mxu0  ;;  %v1835_v43 = vpop.f32.mrf.mxu1 }
 0x143   :  { %1464 = vst.msk [vmem:[%s2541_s5 + $0xd8] sm:$0xff] %vm186_vm0, %v1432_v7  ;;  %v1430_v10 = vadd.f32 %v1377_v22, %v1060_v8  ;;  %v1065_v42 = vadd.f32 %v1799_v40, %v691_v39 }
 0x144   :  { %v1020_v11 = vpop.f32.mrf.mxu0  ;;  %v1390_v12 = vpop.f32.mrf.mxu1 }
 0x145   :  { %1462 = vst.msk [vmem:[%s2541_s5 + $0xc8] sm:$0xff] %vm186_vm0, %v1430_v10  ;;  %v1435_v45 = vadd.f32 %v1835_v43, %v1065_v42  ;;  %v1063_v62 = vadd.f32 %v1020_v11, %v683_v9 }
 0x146   :  { %v1800_v13 = vpop.f32.mrf.mxu0  ;;  %v1836_v14 = vpop.f32.mrf.mxu1 }
 0x147   :  { %1467 = vst.msk [vmem:[%s2541_s5 + $0xf0] sm:$0xff] %vm186_vm0, %v1435_v45  ;;  %v1433_v26 = vadd.f32 %v1390_v12, %v1063_v62  ;;  %v1066_v27 = vadd.f32 %v1800_v13, %v694_v44 }
 0x148   :  { %v1023_v48 = vpop.f32.mrf.mxu0  ;;  %v1393_v60 = vpop.f32.mrf.mxu1 }
 0x149   :  { %1465 = vst.msk [vmem:[%s2541_s5 + $0xe0] sm:$0xff] %vm186_vm0, %v1433_v26  ;;  %v1436_v49 = vadd.f32 %v1836_v14, %v1066_v27  ;;  %v1064_v15 = vadd.f32 %v1023_v48, %v686_v47 }
 0x14b   :  { %1468 = vst.msk [vmem:[%s2541_s5 + $0xf8] sm:$0xff] %vm186_vm0, %v1436_v49  ;;  %v1434_v61 = vadd.f32 %v1393_v60, %v1064_v15 }
 0x14d   :  { %1466 = vst.msk [vmem:[%s2541_s5 + $0xe8] sm:$0xff] %vm186_vm0, %v1434_v61 }

</bundles_post_ra>
